<compile_context>
chip_gen: v5e
topology: v5e:2x2
jax: 0.10.0
libtpu: 0.0.40
codegen_flags: <defaults>
</compile_context>

<pallas_src>
import functools

import jax
import jax.numpy as jnp
import numpy as np
from jax.experimental import pallas as pl
from jax.experimental.pallas import tpu as pltpu

LANE = 128


def _round_up(x, m):
    return (x + m - 1) // m * m


# ----------------------------- Pallas kernel --------------------------------


def _cnn_kernel(p_ref, w1_ref, b1_ref, w2_ref, b2_ref, wc_ref, bc_ref, o_ref,
                *, nb, hp, wp):
    """Whole CNN forward for one chunk of `nb` images, entirely in VMEM.

    p_ref : (1, 4*hp*wp, nb, 27) bf16  conv1 pooled-im2col patches; rows are
            ordered (pool_offset, pooled_pos, image), cols are (ki, kj, cin).
    w1_ref: (27, 32)    bf16  conv1 weight as (ki,kj,cin) x cout
    b1_ref: (1, 32)     f32   conv1 bias
    w2_ref: (9, 32, 64) bf16  conv2 weight, one (cin, cout) matrix per (ki,kj)
    b2_ref: (1, 64)     f32   conv2 bias
    wc_ref: (64, 128)   bf16  classifier weight (classes zero-padded to 128)
    bc_ref: (1, 128)    f32   classifier bias (zero padded)
    o_ref : (nb, 128)   f32   logits for this chunk
    """
    np1 = hp * wp                       # pooled conv1 positions per image
    c1 = w1_ref.shape[-1]               # 32
    c2 = w2_ref.shape[-1]               # 64
    k1 = p_ref.shape[-1]                # 27

    # --- conv1: ONE matmul over all 4 pool offsets and all images in chunk ---
    p = p_ref[...].reshape(4 * np1 * nb, k1)
    y1 = jnp.dot(p, w1_ref[...], preferred_element_type=jnp.float32)
    y1 = y1.reshape(4, np1 * nb, c1)
    # 2x2 maxpool = elementwise max over the 4 offset row-blocks (VPU only).
    m1 = jnp.maximum(jnp.maximum(y1[0], y1[1]), jnp.maximum(y1[2], y1[3]))
    m1 = jnp.maximum(m1 + b1_ref[...], 0.0)            # bias + ReLU in f32
    # pooled feature map, image index on the sublane axis: (h, w, n, c)
    f1 = m1.reshape(hp, wp, nb, c1).astype(jnp.bfloat16)

    # --- conv2 in-kernel: 9 shifted slabs -> accumulated matmuls -------------
    h2, w2 = hp - 2, wp - 2             # full conv2 output grid (5x5)
    ph, pw = h2 // 2, w2 // 2           # pooled conv2 grid (2x2)
    he, we = 2 * ph, 2 * pw             # region feeding the pool (4x4)
    acc = None
    for i in range(3):
        for j in range(3):
            slab = f1[i:i + he, j:j + we].reshape(he * we * nb, c1)
            part = jnp.dot(slab, w2_ref[i * 3 + j],
                           preferred_element_type=jnp.float32)
            acc = part if acc is None else acc + part
    y2 = jnp.maximum(acc + b2_ref[...], 0.0)            # bias + ReLU in f32
    y2 = y2.reshape(he, we, nb, c2)                      # rows were (h2, w2, n)

    # --- 2x2 maxpool fused with global average pool (leading-dim indexing) ---
    avg = None
    for pi in range(ph):
        for pj in range(pw):
            m = jnp.maximum(
                jnp.maximum(y2[2 * pi, 2 * pj], y2[2 * pi, 2 * pj + 1]),
                jnp.maximum(y2[2 * pi + 1, 2 * pj], y2[2 * pi + 1, 2 * pj + 1]))
            avg = m if avg is None else avg + m
    avg = avg * (1.0 / (ph * pw))                        # (nb, 64) f32

    # --- classifier -----------------------------------------------------------
    logits = jnp.dot(avg.astype(jnp.bfloat16), wc_ref[...],
                     preferred_element_type=jnp.float32) + bc_ref[...]
    o_ref[...] = logits.astype(o_ref.dtype)


# ------------------------------ JAX wrapper ----------------------------------


def _conv1_pooled_patches(x_nhwc, nb):
    """conv1 im2col patches grouped by 2x2 maxpool offset, bf16, un-padded K.

    Returns (n_blocks, 4*hp*wp, nb, 27): one contiguous HBM block per batch
    chunk; rows within a block ordered (pool_offset, pooled_pos, image).
    """
    n, h, w, c = x_nhwc.shape
    npad = _round_up(n, nb)
    x = jnp.pad(x_nhwc, ((0, npad - n), (0, 0), (0, 0), (0, 0)))
    hp, wp = (h - 2) // 2, (w - 2) // 2
    blocks = []
    for dy in range(2):
        for dx in range(2):
            cols = [x[:, dy + i: dy + i + 2 * hp: 2,
                      dx + j: dx + j + 2 * wp: 2, :]
                    for i in range(3) for j in range(3)]
            blk = jnp.concatenate(cols, axis=-1)             # (npad, hp, wp, 27)
            blocks.append(jnp.transpose(blk, (1, 2, 0, 3)))   # (hp, wp, npad, 27)
    pat = jnp.stack(blocks, axis=0)                           # (4, hp, wp, npad, 27)
    nblk = npad // nb
    pat = pat.reshape(4, hp * wp, nblk, nb, 9 * c)
    pat = jnp.transpose(pat, (2, 0, 1, 3, 4)).reshape(nblk, 4 * hp * wp, nb, 9 * c)
    return pat.astype(jnp.bfloat16), npad


def cnn_forward_pallas(x_nchw, params, *, batch_block=32):
    """Pallas implementation of CNN.forward.  Input is NCHW (PyTorch layout)."""
    w1, b1 = params["w1"], params["b1"]          # (32, 3, 3, 3), (32,)
    w2, b2 = params["w2"], params["b2"]          # (64, 32, 3, 3), (64,)
    wc, bc = params["wc"], params["bc"]          # (nc, 64), (nc,)

    nb = batch_block
    assert nb % 16 == 0, "batch block must be a multiple of the bf16 sublane tile"

    n = x_nchw.shape[0]
    nc = wc.shape[0]
    nc_pad = _round_up(nc, LANE)

    x = jnp.transpose(x_nchw, (0, 2, 3, 1)).astype(jnp.float32)     # NHWC
    hp, wp = (x.shape[1] - 2) // 2, (x.shape[2] - 2) // 2
    patches, npad = _conv1_pooled_patches(x, nb)
    nblk = npad // nb

    c1 = w1.shape[0]                      # 32
    c2 = w2.shape[0]                      # 64
    cin2 = w2.shape[1]                    # 32
    k1 = 9 * w1.shape[1]                  # 27

    w1m = jnp.transpose(w1, (2, 3, 1, 0)).reshape(k1, c1).astype(jnp.bfloat16)
    b1m = b1.reshape(1, c1).astype(jnp.float32)
    w2m = jnp.transpose(w2, (2, 3, 1, 0)).reshape(9, cin2, c2).astype(jnp.bfloat16)
    b2m = b2.reshape(1, c2).astype(jnp.float32)
    wcm = jnp.pad(jnp.transpose(wc), ((0, 0), (0, nc_pad - nc))).astype(jnp.bfloat16)
    bcm = jnp.pad(bc, (0, nc_pad - nc)).reshape(1, nc_pad).astype(jnp.float32)

    kernel = functools.partial(_cnn_kernel, nb=nb, hp=hp, wp=wp)
    out = pl.pallas_call(
        kernel,
        out_shape=jax.ShapeDtypeStruct((npad, nc_pad), jnp.float32),
        grid=(nblk,),
        in_specs=[
            pl.BlockSpec((1, 4 * hp * wp, nb, k1), lambda b: (b, 0, 0, 0)),
            pl.BlockSpec((k1, c1), lambda b: (0, 0)),
            pl.BlockSpec((1, c1), lambda b: (0, 0)),
            pl.BlockSpec((9, cin2, c2), lambda b: (0, 0, 0)),
            pl.BlockSpec((1, c2), lambda b: (0, 0)),
            pl.BlockSpec((c2, nc_pad), lambda b: (0, 0)),
            pl.BlockSpec((1, nc_pad), lambda b: (0, 0)),
        ],
        out_specs=pl.BlockSpec((nb, nc_pad), lambda b: (b, 0)),
        compiler_params=pltpu.CompilerParams(
            dimension_semantics=("parallel",),
            vmem_limit_bytes=32 * 1024 * 1024,
        ),
    )(patches, w1m, b1m, w2m, b2m, wcm, bcm)
    return out[:n, :nc]


cnn_forward = jax.jit(cnn_forward_pallas)


# --------------------------- pure-JAX reference ------------------------------


def reference_forward(x, params):
    dn = ("NCHW", "OIHW", "NCHW")
    y = jax.lax.conv_general_dilated(x, params["w1"], (1, 1), "VALID",
                                     dimension_numbers=dn)
    y = jax.nn.relu(y + params["b1"][None, :, None, None])
    y = jax.lax.reduce_window(y, -jnp.inf, jax.lax.max, (1, 1, 2, 2),
                              (1, 1, 2, 2), "VALID")
    y = jax.lax.conv_general_dilated(y, params["w2"], (1, 1), "VALID",
                                     dimension_numbers=dn)
    y = jax.nn.relu(y + params["b2"][None, :, None, None])
    y = jax.lax.reduce_window(y, -jnp.inf, jax.lax.max, (1, 1, 2, 2),
                              (1, 1, 2, 2), "VALID")
    y = jnp.mean(y, axis=(2, 3))
    return y @ params["wc"].T + params["bc"]


# ---------------------------------- main -------------------------------------


if __name__ == "__main__":
    num_classes = 10
    key = jax.random.PRNGKey(0)
    ks = jax.random.split(key, 7)

    # Deterministic synthetic parameters (shapes from CNN.__init__).
    params = {
        "w1": 0.1 * jax.random.normal(ks[0], (32, 3, 3, 3), jnp.float32),
        "b1": 0.1 * jax.random.normal(ks[1], (32,), jnp.float32),
        "w2": 0.1 * jax.random.normal(ks[2], (64, 32, 3, 3), jnp.float32),
        "b2": 0.1 * jax.random.normal(ks[3], (64,), jnp.float32),
        "wc": 0.1 * jax.random.normal(ks[4], (num_classes, 64), jnp.float32),
        "bc": 0.1 * jax.random.normal(ks[5], (num_classes,), jnp.float32),
    }

    # Small input, PyTorch NCHW convention: (batch=2, channels=3, 16, 16).
    x = jax.random.normal(ks[6], (2, 3, 16, 16), jnp.float32)

    out = jax.block_until_ready(cnn_forward(x, params))
    assert out.shape == (2, num_classes), out.shape

    ref = jax.block_until_ready(reference_forward(x, params))
    # bf16 MXU operands with f32 accumulation -> loosened tolerance vs f32 ref.
    np.testing.assert_allclose(np.asarray(out), np.asarray(ref),
                               rtol=3e-2, atol=3e-2)

    print("KERNEL_OK")
</pallas_src>

<mosaic_0001>
module attributes {stable_mosaic.version = 11 : i64} {
  func.func @_cnn_kernel(%arg0: i32, %arg1: memref<1x196x32x27xbf16, #tpu.memory_space<vmem>>, %arg2: memref<27x32xbf16, #tpu.memory_space<vmem>>, %arg3: memref<1x32xf32, #tpu.memory_space<vmem>>, %arg4: memref<9x32x64xbf16, #tpu.memory_space<vmem>>, %arg5: memref<1x64xf32, #tpu.memory_space<vmem>>, %arg6: memref<64x128xbf16, #tpu.memory_space<vmem>>, %arg7: memref<1x128xf32, #tpu.memory_space<vmem>>, %arg8: memref<32x128xf32, #tpu.memory_space<vmem>>) attributes {dimension_semantics = [#tpu.dimension_semantics<parallel>], iteration_bounds = array<i64: 1>, scalar_prefetch = 0 : i64, scratch_operands = 0 : i64, tpu.core_type = #tpu.core_type<tc>, window_params = [{transform_indices = @transform_0, window_bounds = array<i64: 1, 196, 32, 27>}, {pipeline_mode = #tpu.pipeline_mode<synchronous>, transform_indices = @transform_1, window_bounds = array<i64: 27, 32>}, {pipeline_mode = #tpu.pipeline_mode<synchronous>, transform_indices = @transform_2, window_bounds = array<i64: 1, 32>}, {pipeline_mode = #tpu.pipeline_mode<synchronous>, transform_indices = @transform_3, window_bounds = array<i64: 9, 32, 64>}, {pipeline_mode = #tpu.pipeline_mode<synchronous>, transform_indices = @transform_4, window_bounds = array<i64: 1, 64>}, {pipeline_mode = #tpu.pipeline_mode<synchronous>, transform_indices = @transform_5, window_bounds = array<i64: 64, 128>}, {pipeline_mode = #tpu.pipeline_mode<synchronous>, transform_indices = @transform_6, window_bounds = array<i64: 1, 128>}, {transform_indices = @transform_7, window_bounds = array<i64: 32, 128>}]} {
    %c0 = arith.constant 0 : index
    %c0_0 = arith.constant 0 : index
    %c0_1 = arith.constant 0 : index
    %c0_2 = arith.constant 0 : index
    %0 = vector.load %arg1[%c0, %c0_0, %c0_1, %c0_2] : memref<1x196x32x27xbf16, #tpu.memory_space<vmem>>, vector<1x196x32x27xbf16>
    %1 = vector.shape_cast %0 : vector<1x196x32x27xbf16> to vector<6272x27xbf16>
    %c0_3 = arith.constant 0 : index
    %c0_4 = arith.constant 0 : index
    %2 = vector.load %arg2[%c0_3, %c0_4] : memref<27x32xbf16, #tpu.memory_space<vmem>>, vector<27x32xbf16>
    %cst = arith.constant dense<0.000000e+00> : vector<6272x32xf32>
    %3 = tpu.matmul %1, %2, %cst {dimension_numbers = #tpu.dot_dimension_numbers<[1], [0], [0], [1], [0, 0, 1, 1], [], []>} : vector<6272x27xbf16>, vector<27x32xbf16>, vector<6272x32xf32> -> vector<6272x32xf32>
    %4 = vector.shape_cast %3 : vector<6272x32xf32> to vector<4x1568x32xf32>
    %5 = vector.extract_strided_slice %4 {offsets = [0, 0, 0], sizes = [1, 1568, 32], strides = [1, 1, 1]} : vector<4x1568x32xf32> to vector<1x1568x32xf32>
    %6 = vector.shape_cast %5 : vector<1x1568x32xf32> to vector<1568x32xf32>
    %7 = vector.extract_strided_slice %4 {offsets = [1, 0, 0], sizes = [1, 1568, 32], strides = [1, 1, 1]} : vector<4x1568x32xf32> to vector<1x1568x32xf32>
    %8 = vector.shape_cast %7 : vector<1x1568x32xf32> to vector<1568x32xf32>
    %9 = arith.maximumf %6, %8 : vector<1568x32xf32>
    %10 = vector.extract_strided_slice %4 {offsets = [2, 0, 0], sizes = [1, 1568, 32], strides = [1, 1, 1]} : vector<4x1568x32xf32> to vector<1x1568x32xf32>
    %11 = vector.shape_cast %10 : vector<1x1568x32xf32> to vector<1568x32xf32>
    %12 = vector.extract_strided_slice %4 {offsets = [3, 0, 0], sizes = [1, 1568, 32], strides = [1, 1, 1]} : vector<4x1568x32xf32> to vector<1x1568x32xf32>
    %13 = vector.shape_cast %12 : vector<1x1568x32xf32> to vector<1568x32xf32>
    %14 = arith.maximumf %11, %13 : vector<1568x32xf32>
    %15 = arith.maximumf %9, %14 : vector<1568x32xf32>
    %c0_5 = arith.constant 0 : index
    %c0_6 = arith.constant 0 : index
    %16 = vector.load %arg3[%c0_5, %c0_6] : memref<1x32xf32, #tpu.memory_space<vmem>>, vector<1x32xf32>
    %17 = vector.broadcast %16 : vector<1x32xf32> to vector<1568x32xf32>
    %18 = arith.addf %15, %17 : vector<1568x32xf32>
    %cst_7 = arith.constant 0.000000e+00 : f32
    %19 = vector.broadcast %cst_7 : f32 to vector<1568x32xf32>
    %20 = arith.maximumf %18, %19 : vector<1568x32xf32>
    %21 = vector.shape_cast %20 : vector<1568x32xf32> to vector<7x7x32x32xf32>
    %22 = arith.truncf %21 : vector<7x7x32x32xf32> to vector<7x7x32x32xbf16>
    %23 = vector.extract_strided_slice %22 {offsets = [0, 0, 0, 0], sizes = [4, 4, 32, 32], strides = [1, 1, 1, 1]} : vector<7x7x32x32xbf16> to vector<4x4x32x32xbf16>
    %24 = vector.shape_cast %23 : vector<4x4x32x32xbf16> to vector<512x32xbf16>
    %c0_8 = arith.constant 0 : index
    %c0_9 = arith.constant 0 : index
    %c0_10 = arith.constant 0 : index
    %25 = vector.load %arg4[%c0_8, %c0_9, %c0_10] : memref<9x32x64xbf16, #tpu.memory_space<vmem>>, vector<1x32x64xbf16>
    %26 = vector.shape_cast %25 : vector<1x32x64xbf16> to vector<32x64xbf16>
    %cst_11 = arith.constant dense<0.000000e+00> : vector<512x64xf32>
    %27 = tpu.matmul %24, %26, %cst_11 {dimension_numbers = #tpu.dot_dimension_numbers<[1], [0], [0], [1], [0, 0, 1, 1], [], []>} : vector<512x32xbf16>, vector<32x64xbf16>, vector<512x64xf32> -> vector<512x64xf32>
    %28 = vector.extract_strided_slice %22 {offsets = [0, 1, 0, 0], sizes = [4, 4, 32, 32], strides = [1, 1, 1, 1]} : vector<7x7x32x32xbf16> to vector<4x4x32x32xbf16>
    %29 = vector.shape_cast %28 : vector<4x4x32x32xbf16> to vector<512x32xbf16>
    %c1 = arith.constant 1 : index
    %c0_12 = arith.constant 0 : index
    %c0_13 = arith.constant 0 : index
    %30 = vector.load %arg4[%c1, %c0_12, %c0_13] : memref<9x32x64xbf16, #tpu.memory_space<vmem>>, vector<1x32x64xbf16>
    %31 = vector.shape_cast %30 : vector<1x32x64xbf16> to vector<32x64xbf16>
    %cst_14 = arith.constant dense<0.000000e+00> : vector<512x64xf32>
    %32 = tpu.matmul %29, %31, %cst_14 {dimension_numbers = #tpu.dot_dimension_numbers<[1], [0], [0], [1], [0, 0, 1, 1], [], []>} : vector<512x32xbf16>, vector<32x64xbf16>, vector<512x64xf32> -> vector<512x64xf32>
    %33 = arith.addf %27, %32 : vector<512x64xf32>
    %34 = vector.extract_strided_slice %22 {offsets = [0, 2, 0, 0], sizes = [4, 4, 32, 32], strides = [1, 1, 1, 1]} : vector<7x7x32x32xbf16> to vector<4x4x32x32xbf16>
    %35 = vector.shape_cast %34 : vector<4x4x32x32xbf16> to vector<512x32xbf16>
    %c2 = arith.constant 2 : index
    %c0_15 = arith.constant 0 : index
    %c0_16 = arith.constant 0 : index
    %36 = vector.load %arg4[%c2, %c0_15, %c0_16] : memref<9x32x64xbf16, #tpu.memory_space<vmem>>, vector<1x32x64xbf16>
    %37 = vector.shape_cast %36 : vector<1x32x64xbf16> to vector<32x64xbf16>
    %cst_17 = arith.constant dense<0.000000e+00> : vector<512x64xf32>
    %38 = tpu.matmul %35, %37, %cst_17 {dimension_numbers = #tpu.dot_dimension_numbers<[1], [0], [0], [1], [0, 0, 1, 1], [], []>} : vector<512x32xbf16>, vector<32x64xbf16>, vector<512x64xf32> -> vector<512x64xf32>
    %39 = arith.addf %33, %38 : vector<512x64xf32>
    %40 = vector.extract_strided_slice %22 {offsets = [1, 0, 0, 0], sizes = [4, 4, 32, 32], strides = [1, 1, 1, 1]} : vector<7x7x32x32xbf16> to vector<4x4x32x32xbf16>
    %41 = vector.shape_cast %40 : vector<4x4x32x32xbf16> to vector<512x32xbf16>
    %c3 = arith.constant 3 : index
    %c0_18 = arith.constant 0 : index
    %c0_19 = arith.constant 0 : index
    %42 = vector.load %arg4[%c3, %c0_18, %c0_19] : memref<9x32x64xbf16, #tpu.memory_space<vmem>>, vector<1x32x64xbf16>
    %43 = vector.shape_cast %42 : vector<1x32x64xbf16> to vector<32x64xbf16>
    %cst_20 = arith.constant dense<0.000000e+00> : vector<512x64xf32>
    %44 = tpu.matmul %41, %43, %cst_20 {dimension_numbers = #tpu.dot_dimension_numbers<[1], [0], [0], [1], [0, 0, 1, 1], [], []>} : vector<512x32xbf16>, vector<32x64xbf16>, vector<512x64xf32> -> vector<512x64xf32>
    %45 = arith.addf %39, %44 : vector<512x64xf32>
    %46 = vector.extract_strided_slice %22 {offsets = [1, 1, 0, 0], sizes = [4, 4, 32, 32], strides = [1, 1, 1, 1]} : vector<7x7x32x32xbf16> to vector<4x4x32x32xbf16>
    %47 = vector.shape_cast %46 : vector<4x4x32x32xbf16> to vector<512x32xbf16>
    %c4 = arith.constant 4 : index
    %c0_21 = arith.constant 0 : index
    %c0_22 = arith.constant 0 : index
    %48 = vector.load %arg4[%c4, %c0_21, %c0_22] : memref<9x32x64xbf16, #tpu.memory_space<vmem>>, vector<1x32x64xbf16>
    %49 = vector.shape_cast %48 : vector<1x32x64xbf16> to vector<32x64xbf16>
    %cst_23 = arith.constant dense<0.000000e+00> : vector<512x64xf32>
    %50 = tpu.matmul %47, %49, %cst_23 {dimension_numbers = #tpu.dot_dimension_numbers<[1], [0], [0], [1], [0, 0, 1, 1], [], []>} : vector<512x32xbf16>, vector<32x64xbf16>, vector<512x64xf32> -> vector<512x64xf32>
    %51 = arith.addf %45, %50 : vector<512x64xf32>
    %52 = vector.extract_strided_slice %22 {offsets = [1, 2, 0, 0], sizes = [4, 4, 32, 32], strides = [1, 1, 1, 1]} : vector<7x7x32x32xbf16> to vector<4x4x32x32xbf16>
    %53 = vector.shape_cast %52 : vector<4x4x32x32xbf16> to vector<512x32xbf16>
    %c5 = arith.constant 5 : index
    %c0_24 = arith.constant 0 : index
    %c0_25 = arith.constant 0 : index
    %54 = vector.load %arg4[%c5, %c0_24, %c0_25] : memref<9x32x64xbf16, #tpu.memory_space<vmem>>, vector<1x32x64xbf16>
    %55 = vector.shape_cast %54 : vector<1x32x64xbf16> to vector<32x64xbf16>
    %cst_26 = arith.constant dense<0.000000e+00> : vector<512x64xf32>
    %56 = tpu.matmul %53, %55, %cst_26 {dimension_numbers = #tpu.dot_dimension_numbers<[1], [0], [0], [1], [0, 0, 1, 1], [], []>} : vector<512x32xbf16>, vector<32x64xbf16>, vector<512x64xf32> -> vector<512x64xf32>
    %57 = arith.addf %51, %56 : vector<512x64xf32>
    %58 = vector.extract_strided_slice %22 {offsets = [2, 0, 0, 0], sizes = [4, 4, 32, 32], strides = [1, 1, 1, 1]} : vector<7x7x32x32xbf16> to vector<4x4x32x32xbf16>
    %59 = vector.shape_cast %58 : vector<4x4x32x32xbf16> to vector<512x32xbf16>
    %c6 = arith.constant 6 : index
    %c0_27 = arith.constant 0 : index
    %c0_28 = arith.constant 0 : index
    %60 = vector.load %arg4[%c6, %c0_27, %c0_28] : memref<9x32x64xbf16, #tpu.memory_space<vmem>>, vector<1x32x64xbf16>
    %61 = vector.shape_cast %60 : vector<1x32x64xbf16> to vector<32x64xbf16>
    %cst_29 = arith.constant dense<0.000000e+00> : vector<512x64xf32>
    %62 = tpu.matmul %59, %61, %cst_29 {dimension_numbers = #tpu.dot_dimension_numbers<[1], [0], [0], [1], [0, 0, 1, 1], [], []>} : vector<512x32xbf16>, vector<32x64xbf16>, vector<512x64xf32> -> vector<512x64xf32>
    %63 = arith.addf %57, %62 : vector<512x64xf32>
    %64 = vector.extract_strided_slice %22 {offsets = [2, 1, 0, 0], sizes = [4, 4, 32, 32], strides = [1, 1, 1, 1]} : vector<7x7x32x32xbf16> to vector<4x4x32x32xbf16>
    %65 = vector.shape_cast %64 : vector<4x4x32x32xbf16> to vector<512x32xbf16>
    %c7 = arith.constant 7 : index
    %c0_30 = arith.constant 0 : index
    %c0_31 = arith.constant 0 : index
    %66 = vector.load %arg4[%c7, %c0_30, %c0_31] : memref<9x32x64xbf16, #tpu.memory_space<vmem>>, vector<1x32x64xbf16>
    %67 = vector.shape_cast %66 : vector<1x32x64xbf16> to vector<32x64xbf16>
    %cst_32 = arith.constant dense<0.000000e+00> : vector<512x64xf32>
    %68 = tpu.matmul %65, %67, %cst_32 {dimension_numbers = #tpu.dot_dimension_numbers<[1], [0], [0], [1], [0, 0, 1, 1], [], []>} : vector<512x32xbf16>, vector<32x64xbf16>, vector<512x64xf32> -> vector<512x64xf32>
    %69 = arith.addf %63, %68 : vector<512x64xf32>
    %70 = vector.extract_strided_slice %22 {offsets = [2, 2, 0, 0], sizes = [4, 4, 32, 32], strides = [1, 1, 1, 1]} : vector<7x7x32x32xbf16> to vector<4x4x32x32xbf16>
    %71 = vector.shape_cast %70 : vector<4x4x32x32xbf16> to vector<512x32xbf16>
    %c8 = arith.constant 8 : index
    %c0_33 = arith.constant 0 : index
    %c0_34 = arith.constant 0 : index
    %72 = vector.load %arg4[%c8, %c0_33, %c0_34] : memref<9x32x64xbf16, #tpu.memory_space<vmem>>, vector<1x32x64xbf16>
    %73 = vector.shape_cast %72 : vector<1x32x64xbf16> to vector<32x64xbf16>
    %cst_35 = arith.constant dense<0.000000e+00> : vector<512x64xf32>
    %74 = tpu.matmul %71, %73, %cst_35 {dimension_numbers = #tpu.dot_dimension_numbers<[1], [0], [0], [1], [0, 0, 1, 1], [], []>} : vector<512x32xbf16>, vector<32x64xbf16>, vector<512x64xf32> -> vector<512x64xf32>
    %75 = arith.addf %69, %74 : vector<512x64xf32>
    %c0_36 = arith.constant 0 : index
    %c0_37 = arith.constant 0 : index
    %76 = vector.load %arg5[%c0_36, %c0_37] : memref<1x64xf32, #tpu.memory_space<vmem>>, vector<1x64xf32>
    %77 = vector.broadcast %76 : vector<1x64xf32> to vector<512x64xf32>
    %78 = arith.addf %75, %77 : vector<512x64xf32>
    %cst_38 = arith.constant 0.000000e+00 : f32
    %79 = vector.broadcast %cst_38 : f32 to vector<512x64xf32>
    %80 = arith.maximumf %78, %79 : vector<512x64xf32>
    %81 = vector.shape_cast %80 : vector<512x64xf32> to vector<4x4x32x64xf32>
    %82 = vector.extract_strided_slice %81 {offsets = [0, 0, 0, 0], sizes = [1, 1, 32, 64], strides = [1, 1, 1, 1]} : vector<4x4x32x64xf32> to vector<1x1x32x64xf32>
    %83 = vector.shape_cast %82 : vector<1x1x32x64xf32> to vector<32x64xf32>
    %84 = vector.extract_strided_slice %81 {offsets = [0, 1, 0, 0], sizes = [1, 1, 32, 64], strides = [1, 1, 1, 1]} : vector<4x4x32x64xf32> to vector<1x1x32x64xf32>
    %85 = vector.shape_cast %84 : vector<1x1x32x64xf32> to vector<32x64xf32>
    %86 = arith.maximumf %83, %85 : vector<32x64xf32>
    %87 = vector.extract_strided_slice %81 {offsets = [1, 0, 0, 0], sizes = [1, 1, 32, 64], strides = [1, 1, 1, 1]} : vector<4x4x32x64xf32> to vector<1x1x32x64xf32>
    %88 = vector.shape_cast %87 : vector<1x1x32x64xf32> to vector<32x64xf32>
    %89 = vector.extract_strided_slice %81 {offsets = [1, 1, 0, 0], sizes = [1, 1, 32, 64], strides = [1, 1, 1, 1]} : vector<4x4x32x64xf32> to vector<1x1x32x64xf32>
    %90 = vector.shape_cast %89 : vector<1x1x32x64xf32> to vector<32x64xf32>
    %91 = arith.maximumf %88, %90 : vector<32x64xf32>
    %92 = arith.maximumf %86, %91 : vector<32x64xf32>
    %93 = vector.extract_strided_slice %81 {offsets = [0, 2, 0, 0], sizes = [1, 1, 32, 64], strides = [1, 1, 1, 1]} : vector<4x4x32x64xf32> to vector<1x1x32x64xf32>
    %94 = vector.shape_cast %93 : vector<1x1x32x64xf32> to vector<32x64xf32>
    %95 = vector.extract_strided_slice %81 {offsets = [0, 3, 0, 0], sizes = [1, 1, 32, 64], strides = [1, 1, 1, 1]} : vector<4x4x32x64xf32> to vector<1x1x32x64xf32>
    %96 = vector.shape_cast %95 : vector<1x1x32x64xf32> to vector<32x64xf32>
    %97 = arith.maximumf %94, %96 : vector<32x64xf32>
    %98 = vector.extract_strided_slice %81 {offsets = [1, 2, 0, 0], sizes = [1, 1, 32, 64], strides = [1, 1, 1, 1]} : vector<4x4x32x64xf32> to vector<1x1x32x64xf32>
    %99 = vector.shape_cast %98 : vector<1x1x32x64xf32> to vector<32x64xf32>
    %100 = vector.extract_strided_slice %81 {offsets = [1, 3, 0, 0], sizes = [1, 1, 32, 64], strides = [1, 1, 1, 1]} : vector<4x4x32x64xf32> to vector<1x1x32x64xf32>
    %101 = vector.shape_cast %100 : vector<1x1x32x64xf32> to vector<32x64xf32>
    %102 = arith.maximumf %99, %101 : vector<32x64xf32>
    %103 = arith.maximumf %97, %102 : vector<32x64xf32>
    %104 = arith.addf %92, %103 : vector<32x64xf32>
    %105 = vector.extract_strided_slice %81 {offsets = [2, 0, 0, 0], sizes = [1, 1, 32, 64], strides = [1, 1, 1, 1]} : vector<4x4x32x64xf32> to vector<1x1x32x64xf32>
    %106 = vector.shape_cast %105 : vector<1x1x32x64xf32> to vector<32x64xf32>
    %107 = vector.extract_strided_slice %81 {offsets = [2, 1, 0, 0], sizes = [1, 1, 32, 64], strides = [1, 1, 1, 1]} : vector<4x4x32x64xf32> to vector<1x1x32x64xf32>
    %108 = vector.shape_cast %107 : vector<1x1x32x64xf32> to vector<32x64xf32>
    %109 = arith.maximumf %106, %108 : vector<32x64xf32>
    %110 = vector.extract_strided_slice %81 {offsets = [3, 0, 0, 0], sizes = [1, 1, 32, 64], strides = [1, 1, 1, 1]} : vector<4x4x32x64xf32> to vector<1x1x32x64xf32>
    %111 = vector.shape_cast %110 : vector<1x1x32x64xf32> to vector<32x64xf32>
    %112 = vector.extract_strided_slice %81 {offsets = [3, 1, 0, 0], sizes = [1, 1, 32, 64], strides = [1, 1, 1, 1]} : vector<4x4x32x64xf32> to vector<1x1x32x64xf32>
    %113 = vector.shape_cast %112 : vector<1x1x32x64xf32> to vector<32x64xf32>
    %114 = arith.maximumf %111, %113 : vector<32x64xf32>
    %115 = arith.maximumf %109, %114 : vector<32x64xf32>
    %116 = arith.addf %104, %115 : vector<32x64xf32>
    %117 = vector.extract_strided_slice %81 {offsets = [2, 2, 0, 0], sizes = [1, 1, 32, 64], strides = [1, 1, 1, 1]} : vector<4x4x32x64xf32> to vector<1x1x32x64xf32>
    %118 = vector.shape_cast %117 : vector<1x1x32x64xf32> to vector<32x64xf32>
    %119 = vector.extract_strided_slice %81 {offsets = [2, 3, 0, 0], sizes = [1, 1, 32, 64], strides = [1, 1, 1, 1]} : vector<4x4x32x64xf32> to vector<1x1x32x64xf32>
    %120 = vector.shape_cast %119 : vector<1x1x32x64xf32> to vector<32x64xf32>
    %121 = arith.maximumf %118, %120 : vector<32x64xf32>
    %122 = vector.extract_strided_slice %81 {offsets = [3, 2, 0, 0], sizes = [1, 1, 32, 64], strides = [1, 1, 1, 1]} : vector<4x4x32x64xf32> to vector<1x1x32x64xf32>
    %123 = vector.shape_cast %122 : vector<1x1x32x64xf32> to vector<32x64xf32>
    %124 = vector.extract_strided_slice %81 {offsets = [3, 3, 0, 0], sizes = [1, 1, 32, 64], strides = [1, 1, 1, 1]} : vector<4x4x32x64xf32> to vector<1x1x32x64xf32>
    %125 = vector.shape_cast %124 : vector<1x1x32x64xf32> to vector<32x64xf32>
    %126 = arith.maximumf %123, %125 : vector<32x64xf32>
    %127 = arith.maximumf %121, %126 : vector<32x64xf32>
    %128 = arith.addf %116, %127 : vector<32x64xf32>
    %cst_39 = arith.constant 2.500000e-01 : f32
    %129 = vector.broadcast %cst_39 : f32 to vector<32x64xf32>
    %130 = arith.mulf %128, %129 : vector<32x64xf32>
    %131 = arith.truncf %130 : vector<32x64xf32> to vector<32x64xbf16>
    %c0_40 = arith.constant 0 : index
    %c0_41 = arith.constant 0 : index
    %132 = vector.load %arg6[%c0_40, %c0_41] : memref<64x128xbf16, #tpu.memory_space<vmem>>, vector<64x128xbf16>
    %cst_42 = arith.constant dense<0.000000e+00> : vector<32x128xf32>
    %133 = tpu.matmul %131, %132, %cst_42 {dimension_numbers = #tpu.dot_dimension_numbers<[1], [0], [0], [1], [0, 0, 1, 1], [], []>} : vector<32x64xbf16>, vector<64x128xbf16>, vector<32x128xf32> -> vector<32x128xf32>
    %c0_43 = arith.constant 0 : index
    %c0_44 = arith.constant 0 : index
    %134 = vector.load %arg7[%c0_43, %c0_44] : memref<1x128xf32, #tpu.memory_space<vmem>>, vector<1x128xf32>
    %135 = vector.broadcast %134 : vector<1x128xf32> to vector<32x128xf32>
    %136 = arith.addf %133, %135 : vector<32x128xf32>
    %c0_45 = arith.constant 0 : index
    %c0_46 = arith.constant 0 : index
    %137 = vector.load %arg8[%c0_45, %c0_46] : memref<32x128xf32, #tpu.memory_space<vmem>>, vector<32x128xf32>
    tpu.vector_store %arg8[%c0_45, %c0_46], %136 {strides = array<i32>} : memref<32x128xf32, #tpu.memory_space<vmem>>, vector<32x128xf32>,
    return
  }
  func.func @transform_0(%arg0: i32) -> (i32, i32, i32, i32) {
    %c0_i32 = arith.constant 0 : i32
    %c0_i32_0 = arith.constant 0 : i32
    %c0_i32_1 = arith.constant 0 : i32
    %c0_i32_2 = arith.constant 0 : i32
    return %arg0, %c0_i32, %c0_i32_0, %c0_i32_1 : i32, i32, i32, i32
  }
  func.func @transform_1(%arg0: i32) -> (i32, i32) {
    %c0_i32 = arith.constant 0 : i32
    %c0_i32_0 = arith.constant 0 : i32
    %c0_i32_1 = arith.constant 0 : i32
    return %c0_i32, %c0_i32_0 : i32, i32
  }
  func.func @transform_2(%arg0: i32) -> (i32, i32) {
    %c0_i32 = arith.constant 0 : i32
    %c0_i32_0 = arith.constant 0 : i32
    %c0_i32_1 = arith.constant 0 : i32
    return %c0_i32, %c0_i32_0 : i32, i32
  }
  func.func @transform_3(%arg0: i32) -> (i32, i32, i32) {
    %c0_i32 = arith.constant 0 : i32
    %c0_i32_0 = arith.constant 0 : i32
    %c0_i32_1 = arith.constant 0 : i32
    %c0_i32_2 = arith.constant 0 : i32
    return %c0_i32, %c0_i32_0, %c0_i32_1 : i32, i32, i32
  }
  func.func @transform_4(%arg0: i32) -> (i32, i32) {
    %c0_i32 = arith.constant 0 : i32
    %c0_i32_0 = arith.constant 0 : i32
    %c0_i32_1 = arith.constant 0 : i32
    return %c0_i32, %c0_i32_0 : i32, i32
  }
  func.func @transform_5(%arg0: i32) -> (i32, i32) {
    %c0_i32 = arith.constant 0 : i32
    %c0_i32_0 = arith.constant 0 : i32
    %c0_i32_1 = arith.constant 0 : i32
    return %c0_i32, %c0_i32_0 : i32, i32
  }
  func.func @transform_6(%arg0: i32) -> (i32, i32) {
    %c0_i32 = arith.constant 0 : i32
    %c0_i32_0 = arith.constant 0 : i32
    %c0_i32_1 = arith.constant 0 : i32
    return %c0_i32, %c0_i32_0 : i32, i32
  }
  func.func @transform_7(%arg0: i32) -> (i32, i32) {
    %c0_i32 = arith.constant 0 : i32
    %c0_i32_0 = arith.constant 0 : i32
    return %arg0, %c0_i32 : i32, i32
  }
}

</mosaic_0001>

<bundles_post_ra>
// kernel: cnn_forward_pallas.1
= control target key start
LH: loop header
LB: loop body
LE: loop exit
PB: predicated region body
PF: predicated region fallthrough
CT: control target
= control target key end

     0   :  { %vm3963_vm0 = vcmask 1044480   ;;  %vm3964_vm1 = vcmask 1045504   ;;  %v12375_v2 = vmov 65535   ;;  %vm2786_vm2 = vcmask 220160   ;;  %s17029_s1 = inlined_call_operand.vmem [shape: bf16[27,32], index: 1, kind: input, shape index: {}]   ;;  %s17030_s0 = inlined_call_operand.vmem [shape: bf16[1,196,32,27], index: 0, kind: input, shape index: {}]   ;;  %s17031_s3 = inlined_call_operand.vmem [shape: bf16[9,32,64], index: 3, kind: input, shape index: {}]   ;;  %s17032_s2 = inlined_call_operand.vmem [shape: f32[1,32], index: 2, kind: input, shape index: {}]   ;;  %s17033_s4 = inlined_call_operand.vmem [shape: f32[1,64], index: 4, kind: input, shape index: {}]   ;;  %s17034_s5 = inlined_call_operand.vmem [shape: bf16[64,128], index: 5, kind: input, shape index: {}]   ;;  %s17035_s6 = inlined_call_operand.vmem [shape: f32[1,128], index: 6, kind: input, shape index: {}]   ;;  %s17036_s7 = inlined_call_operand.vmem [shape: f32[32,128], index: 7, kind: output, shape index: {}]  }
   0x1   :  { %v11139_v0 = vld [vmem:[%s17029_s1 + $0x8] sm:$0xf]  ;;  %v12336_v1 = vld [vmem:[%s17029_s1 + $0x8] sm:$0x30]  ;;  %v3965_v3 = vsel %vm3963_vm0, 4294967295, %v12375_v2  ;;  %v12335_v7 = vld [vmem:[%s17029_s1] sm:$0xff] }
   0x2   :  { %v11140_v4 = vor.u32 %v12336_v1, %v11139_v0  ;;  %v3966_v5 = vsel %vm3964_vm1, %v3965_v3, 0  ;;  %v11943_v8 = vld [vmem:[%s17030_s0] sm:$0xff]  ;;  %v11944_v9 = vld [vmem:[%s17030_s0 + $0x8] sm:$0xff]  ;;  %v11945_v10 = vld [vmem:[%s17030_s0 + $0x10] sm:$0xff]  ;;  %vm6780_vm3 = vcmask 261120   ;;  %vm9531_vm4 = vcmask 523264  }
   0x3   :  { %v11946_v11 = vld [vmem:[%s17030_s0 + $0x18] sm:$0xff]  ;;  %v11947_v12 = vld [vmem:[%s17030_s0 + $0x20] sm:$0xff]  ;;  %v11948_v14 = vld [vmem:[%s17030_s0 + $0x28] sm:$0xff] }
   0x4   :  { %v3968_v6 = vand.u32 %v11140_v4, %v3966_v5  ;;  %v12114_v13 = vld [vmem:[%s17030_s0 + $0x558] sm:$0xff]  ;;  %v12115_v15 = vld [vmem:[%s17030_s0 + $0x560] sm:$0xff]  ;;  %v11949_v16 = vld [vmem:[%s17030_s0 + $0x30] sm:$0xff] }
   0x5   :  { %v12116_v17 = vld [vmem:[%s17030_s0 + $0x568] sm:$0xff]  ;;  %v11950_v18 = vld [vmem:[%s17030_s0 + $0x38] sm:$0xff]  ;;  %v12117_v19 = vld [vmem:[%s17030_s0 + $0x570] sm:$0xff] }
   0x6   :  { %3976 = vmatpush.bf16.msra.mxu0 %v3968_v6  ;;  %12359 = vmatpush.bf16.msra.mxu1 %v3968_v6  ;;  %v11951_v20 = vld [vmem:[%s17030_s0 + $0x40] sm:$0xff]  ;;  %v12118_v22 = vld [vmem:[%s17030_s0 + $0x578] sm:$0xff]  ;;  %v11952_v24 = vld [vmem:[%s17030_s0 + $0x48] sm:$0xff] }
   0x7   :  { %12361 = vmatpush.bf16.msra.mxu3 %v3968_v6  ;;  %12360 = vmatpush.bf16.msra.mxu2 %v3968_v6  ;;  %v12119_v26 = vld [vmem:[%s17030_s0 + $0x580] sm:$0xff]  ;;  %v11953_v28 = vld [vmem:[%s17030_s0 + $0x50] sm:$0xff]  ;;  %v12120_v30 = vld [vmem:[%s17030_s0 + $0x588] sm:$0xff] }
   0x8   :  { %v11954_v32 = vld [vmem:[%s17030_s0 + $0x58] sm:$0xff]  ;;  %v12121_v34 = vld [vmem:[%s17030_s0 + $0x590] sm:$0xff]  ;;  %v11955_v36 = vld [vmem:[%s17030_s0 + $0x60] sm:$0xff] }
   0x9   :  { %v12122_v39 = vld [vmem:[%s17030_s0 + $0x598] sm:$0xff]  ;;  %v11956_v42 = vld [vmem:[%s17030_s0 + $0x68] sm:$0xff]  ;;  %v12123_v45 = vld [vmem:[%s17030_s0 + $0x5a0] sm:$0xff] }
   0xa   :  { %3977 = vmatpush.bf16.msra.mxu0 %v12335_v7  ;;  %12362 = vmatpush.bf16.msra.mxu1 %v12335_v7  ;;  %v11957_v48 = vld [vmem:[%s17030_s0 + $0x70] sm:$0xff]  ;;  %v12124_v51 = vld [vmem:[%s17030_s0 + $0x5a8] sm:$0xff]  ;;  %v11958_v54 = vld [vmem:[%s17030_s0 + $0x78] sm:$0xff] }
   0xb   :  { %12364 = vmatpush.bf16.msra.mxu3 %v12335_v7  ;;  %12363 = vmatpush.bf16.msra.mxu2 %v12335_v7  ;;  %v12125_v57 = vld [vmem:[%s17030_s0 + $0x5b0] sm:$0xff]  ;;  %v11959_v60 = vld [vmem:[%s17030_s0 + $0x80] sm:$0xff]  ;;  %v12126_v63 = vld [vmem:[%s17030_s0 + $0x5b8] sm:$0xff] }
   0xc   :  { %v11960_v2 = vld [vmem:[%s17030_s0 + $0x88] sm:$0xff]  ;;  %v12127_v5 = vld [vmem:[%s17030_s0 + $0x5c0] sm:$0xff] }
   0xd   :  { %11141 = vmatmul.msk.bf16.vlgmr.msra.gmra.mxu0 %vm2786_vm2, %v11943_v8  ;;  %11312 = vmatmul.msk.bf16.vlgmr.msra.gmra.mxu1 %vm2786_vm2, %v12114_v13  ;;  %v11961_v8 = vld [vmem:[%s17030_s0 + $0x90] sm:$0xff] }
  0x1d   :  { %11142 = vmatmul.msk.bf16.gmra.mxu0 %vm2786_vm2, %v11944_v9  ;;  %11313 = vmatmul.msk.bf16.gmra.mxu1 %vm2786_vm2, %v12115_v15 }
  0x2d   :  { %11143 = vmatmul.msk.bf16.gmra.mxu0 %vm2786_vm2, %v11945_v10  ;;  %11314 = vmatmul.msk.bf16.gmra.mxu1 %vm2786_vm2, %v12116_v17  ;;  %v12129_v17 = vld [vmem:[%s17030_s0 + $0x5d0] sm:$0xff] }
  0x3d   :  { %11144 = vmatmul.msk.bf16.gmra.mxu0 %vm2786_vm2, %v11946_v11  ;;  %11315 = vmatmul.msk.bf16.gmra.mxu1 %vm2786_vm2, %v12117_v19  ;;  %v12128_v11 = vld [vmem:[%s17030_s0 + $0x5c8] sm:$0xff] }
  0x4d   :  { %11145 = vmatmul.msk.bf16.gmra.mxu0 %vm2786_vm2, %v11947_v12  ;;  %11316 = vmatmul.msk.bf16.gmra.mxu1 %vm2786_vm2, %v12118_v22 }
  0x5d   :  { %11146 = vmatmul.msk.bf16.gmra.mxu0 %vm2786_vm2, %v11948_v14  ;;  %11317 = vmatmul.msk.bf16.gmra.mxu1 %vm2786_vm2, %v12119_v26  ;;  %v11962_v14 = vld [vmem:[%s17030_s0 + $0x98] sm:$0xff] }
  0x5e   :  { %v12130_v26 = vld [vmem:[%s17030_s0 + $0x5d8] sm:$0xff] }
  0x6d   :  { %11147 = vmatmul.msk.bf16.gmra.mxu0 %vm2786_vm2, %v11949_v16  ;;  %11318 = vmatmul.msk.bf16.gmra.mxu1 %vm2786_vm2, %v12120_v30  ;;  %v12260_v30 = vld [vmem:[%s17030_s0 + $0x9e8] sm:$0xff] }
  0x6e   :  { %11458 = vmatmul.msk.bf16.vlgmr.msra.gmra.mxu3 %vm2786_vm2, %v12260_v30  ;;  %v11967_v30 = vld [vmem:[%s17030_s0 + $0xc0] sm:$0xff] }
  0x7d   :  { %11148 = vmatmul.msk.bf16.gmra.mxu0 %vm2786_vm2, %v11950_v18  ;;  %11319 = vmatmul.msk.bf16.gmra.mxu1 %vm2786_vm2, %v12121_v34  ;;  %v11964_v34 = vld [vmem:[%s17030_s0 + $0xa8] sm:$0xff] }
  0x8a   :  { %v12476_v21 = vpop.f32.mrf.mxu0  ;;  %v12526_v38 = vpop.f32.mrf.mxu1 }
  0x8d   :  { %11149 = vmatmul.msk.bf16.gmra.mxu0 %vm2786_vm2, %v11951_v20  ;;  %11320 = vmatmul.msk.bf16.gmra.mxu1 %vm2786_vm2, %v12122_v39  ;;  %v11963_v20 = vld [vmem:[%s17030_s0 + $0xa0] sm:$0xff] }
  0x92   :  { %v12483_v23 = vpop.f32.mrf.mxu0  ;;  %v12535_v41 = vpop.f32.mrf.mxu1 }
  0x9a   :  { %v12488_v25 = vpop.f32.mrf.mxu0  ;;  %v12542_v44 = vpop.f32.mrf.mxu1 }
  0x9d   :  { %11150 = vmatmul.msk.bf16.gmra.mxu0 %vm2786_vm2, %v11952_v24  ;;  %11321 = vmatmul.msk.bf16.gmra.mxu1 %vm2786_vm2, %v12123_v45 }
  0xa2   :  { %v12495_v27 = vpop.f32.mrf.mxu0  ;;  %v12551_v47 = vpop.f32.mrf.mxu1 }
  0xaa   :  { %v12500_v29 = vpop.f32.mrf.mxu0  ;;  %v12558_v50 = vpop.f32.mrf.mxu1 }
  0xad   :  { %11151 = vmatmul.msk.bf16.gmra.mxu0 %vm2786_vm2, %v11953_v28  ;;  %11322 = vmatmul.msk.bf16.gmra.mxu1 %vm2786_vm2, %v12124_v51 }
  0xb2   :  { %v12507_v31 = vpop.f32.mrf.mxu0  ;;  %v12567_v53 = vpop.f32.mrf.mxu1 }
  0xba   :  { %v12512_v33 = vpop.f32.mrf.mxu0  ;;  %v12574_v56 = vpop.f32.mrf.mxu1 }
  0xbb   :  { %17069 = vst [vmem:[#allocation2_spill] sm:$0xff] %v12512_v33 }
  0xbd   :  { %11152 = vmatmul.msk.bf16.gmra.mxu0 %vm2786_vm2, %v11954_v32  ;;  %11323 = vmatmul.msk.bf16.gmra.mxu1 %vm2786_vm2, %v12125_v57 }
  0xc2   :  { %v12519_v35 = vpop.f32.mrf.mxu0  ;;  %v12583_v59 = vpop.f32.mrf.mxu1 }
  0xc3   :  { %17070 = vst [vmem:[#allocation3_spill] sm:$0xff] %v12519_v35 }
  0xca   :  { %v12524_v37 = vpop.f32.mrf.mxu0  ;;  %v12590_v62 = vpop.f32.mrf.mxu1 }
  0xcb   :  { %17071 = vst [vmem:[#allocation4_spill] sm:$0xff] %v12524_v37 }
  0xcd   :  { %11153 = vmatmul.msk.bf16.gmra.mxu0 %vm2786_vm2, %v11955_v36  ;;  %11324 = vmatmul.msk.bf16.gmra.mxu1 %vm2786_vm2, %v12126_v63  ;;  %v12132_v63 = vld [vmem:[%s17030_s0 + $0x5e8] sm:$0xff] }
  0xd2   :  { %v12533_v40 = vpop.f32.mrf.mxu0  ;;  %v12599_v1 = vpop.f32.mrf.mxu1 }
  0xd3   :  { %17072 = vst [vmem:[#allocation5_spill] sm:$0xff] %v12533_v40  ;;  %v12231_v40 = vld [vmem:[%s17030_s0 + $0x900] sm:$0xff] }
  0xda   :  { %v12540_v43 = vpop.f32.mrf.mxu0  ;;  %v12606_v4 = vpop.f32.mrf.mxu1 }
  0xdb   :  { %17073 = vst [vmem:[#allocation6_spill] sm:$0xff] %v12540_v43 }
  0xdd   :  { %11154 = vmatmul.msk.bf16.gmra.mxu0 %vm2786_vm2, %v11956_v42  ;;  %11325 = vmatmul.msk.bf16.gmra.mxu1 %vm2786_vm2, %v12127_v5  ;;  %v12131_v42 = vld [vmem:[%s17030_s0 + $0x5e0] sm:$0xff]  ;;  %v12262_v5 = vld [vmem:[%s17030_s0 + $0x9f8] sm:$0xff] }
  0xe2   :  { %v12549_v46 = vpop.f32.mrf.mxu0  ;;  %v12615_v7 = vpop.f32.mrf.mxu1 }
  0xe3   :  { %17074 = vst [vmem:[#allocation7_spill] sm:$0xff] %v12549_v46 }
  0xea   :  { %v12556_v49 = vpop.f32.mrf.mxu0  ;;  %v12622_v10 = vpop.f32.mrf.mxu1 }
  0xeb   :  { %17075 = vst [vmem:[#allocation8_spill] sm:$0xff] %v12556_v49 }
  0xed   :  { %11155 = vmatmul.msk.bf16.gmra.mxu0 %vm2786_vm2, %v11957_v48  ;;  %11326 = vmatmul.msk.bf16.gmra.mxu1 %vm2786_vm2, %v12128_v11  ;;  %v12261_v48 = vld [vmem:[%s17030_s0 + $0x9f0] sm:$0xff]  ;;  %v11966_v11 = vld [vmem:[%s17030_s0 + $0xb8] sm:$0xff] }
  0xee   :  { %11459 = vmatmul.msk.bf16.gmra.mxu3 %vm2786_vm2, %v12261_v48 }
  0xf2   :  { %v12565_v52 = vpop.f32.mrf.mxu0  ;;  %v12631_v13 = vpop.f32.mrf.mxu1 }
  0xf3   :  { %17076 = vst [vmem:[#allocation9_spill] sm:$0xff] %v12565_v52 }
  0xfa   :  { %v12572_v55 = vpop.f32.mrf.mxu0  ;;  %v12638_v16 = vpop.f32.mrf.mxu1 }
  0xfb   :  { %17077 = vst [vmem:[#allocation10_spill] sm:$0xff] %v12572_v55 }
  0xfd   :  { %11156 = vmatmul.msk.bf16.gmra.mxu0 %vm2786_vm2, %v11958_v54  ;;  %11327 = vmatmul.msk.bf16.gmra.mxu1 %vm2786_vm2, %v12129_v17  ;;  %v11965_v54 = vld [vmem:[%s17030_s0 + $0xb0] sm:$0xff] }
  0xfe   :  { %11460 = vmatmul.msk.bf16.gmra.mxu3 %vm2786_vm2, %v12262_v5 }
 0x102   :  { %v12581_v58 = vpop.f32.mrf.mxu0  ;;  %v12647_v19 = vpop.f32.mrf.mxu1 }
 0x103   :  { %17078 = vst [vmem:[#allocation11_spill] sm:$0xff] %v12581_v58 }
 0x10a   :  { %v12588_v61 = vpop.f32.mrf.mxu0  ;;  %v12652_v24 = vpop.f32.mrf.mxu1 }
 0x10b   :  { %17079 = vst [vmem:[#allocation12_spill] sm:$0xff] %v12588_v61 }
 0x10d   :  { %11157 = vmatmul.msk.bf16.gmra.mxu0 %vm2786_vm2, %v11959_v60  ;;  %11328 = vmatmul.msk.bf16.gmra.mxu1 %vm2786_vm2, %v12130_v26  ;;  %v12263_v26 = vld [vmem:[%s17030_s0 + $0xa00] sm:$0xff] }
 0x10e   :  { %11461 = vmatmul.msk.bf16.gmra.mxu3 %vm2786_vm2, %v12263_v26 }
 0x112   :  { %v12597_v0 = vpop.f32.mrf.mxu0  ;;  %v12662_v32 = vpop.f32.mrf.mxu1 }
 0x113   :  { %17080 = vst [vmem:[#allocation13_spill] sm:$0xff] %v12597_v0 }
 0x11a   :  { %v12604_v3 = vpop.f32.mrf.mxu0  ;;  %v4807_v39 = vpop.f32.mrf.mxu1 }
 0x11b   :  { %17081 = vst [vmem:[#allocation14_spill] sm:$0xff] %v12604_v3  ;;  %v12134_v39 = vld [vmem:[%s17030_s0 + $0x5f8] sm:$0xff] }
 0x11d   :  { %11158 = vmatmul.msk.bf16.gmra.mxu0 %vm2786_vm2, %v11960_v2  ;;  %11329 = vmatmul.msk.bf16.gmra.mxu1 %vm2786_vm2, %v12131_v42 }
 0x122   :  { %v12613_v6 = vpop.f32.mrf.mxu0  ;;  %v4808_v51 = vpop.f32.mrf.mxu1 }
 0x123   :  { %17082 = vst [vmem:[#allocation15_spill] sm:$0xff] %v12613_v6  ;;  %v11968_v51 = vld [vmem:[%s17030_s0 + $0xc8] sm:$0xff]  ;;  %v12203_v6 = vld [vmem:[%s17030_s0 + $0x820] sm:$0xff] }
 0x12a   :  { %v12620_v9 = vpop.f32.mrf.mxu0  ;;  %v4810_v60 = vpop.f32.mrf.mxu1 }
 0x12b   :  { %17083 = vst [vmem:[#allocation16_spill] sm:$0xff] %v12620_v9  ;;  %v12156_v9 = vld [vmem:[%s17030_s0 + $0x6a8] sm:$0xff] }
 0x12d   :  { %11159 = vmatmul.msk.bf16.gmra.mxu0 %vm2786_vm2, %v11961_v8  ;;  %11330 = vmatmul.msk.bf16.gmra.mxu1 %vm2786_vm2, %v12132_v63  ;;  %v12135_v63 = vld [vmem:[%s17030_s0 + $0x600] sm:$0xff] }
 0x132   :  { %v12629_v12 = vpop.f32.mrf.mxu0  ;;  %v4811_v8 = vpop.f32.mrf.mxu1 }
 0x133   :  { %17084 = vst [vmem:[#allocation17_spill] sm:$0xff] %v12629_v12  ;;  %v12265_v8 = vld [vmem:[%s17030_s0 + $0xa10] sm:$0xff] }
 0x13a   :  { %v12636_v15 = vpop.f32.mrf.mxu0  ;;  %v4813_v17 = vpop.f32.mrf.mxu1 }
 0x13b   :  { %17085 = vst [vmem:[#allocation18_spill] sm:$0xff] %v12636_v15  ;;  %v11969_v17 = vld [vmem:[%s17030_s0 + $0xd0] sm:$0xff]  ;;  %v12155_v15 = vld [vmem:[%s17030_s0 + $0x6a0] sm:$0xff] }
 0x13d   :  { %11160 = vmatmul.msk.bf16.gmra.mxu0 %vm2786_vm2, %v11962_v14 }
 0x142   :  { %v12645_v18 = vpop.f32.mrf.mxu0 }
 0x143   :  { %17086 = vst [vmem:[#allocation19_spill] sm:$0xff] %v12645_v18 }
 0x14a   :  { %v4039_v22 = vpop.f32.mrf.mxu0 }
 0x14d   :  { %11161 = vmatmul.msk.bf16.gmra.mxu0 %vm2786_vm2, %v11963_v20  ;;  %v12133_v20 = vld [vmem:[%s17030_s0 + $0x5f0] sm:$0xff] }
 0x14e   :  { %11331 = vmatmul.msk.bf16.gmra.mxu1 %vm2786_vm2, %v12133_v20 }
 0x152   :  { %v4040_v28 = vpop.f32.mrf.mxu0 }
 0x153   :  { %v4814_v28 = vpop.f32.mrf.mxu1 }
 0x154   :  { %v12136_v28 = vld [vmem:[%s17030_s0 + $0x608] sm:$0xff] }
 0x15a   :  { %v4042_v36 = vpop.f32.mrf.mxu0 }
 0x15b   :  { %v4816_v36 = vpop.f32.mrf.mxu1 }
 0x15c   :  { %v12266_v36 = vld [vmem:[%s17030_s0 + $0xa18] sm:$0xff] }
 0x15d   :  { %11162 = vmatmul.msk.bf16.gmra.mxu0 %vm2786_vm2, %v11964_v34 }
 0x15e   :  { %11332 = vmatmul.msk.bf16.gmra.mxu1 %vm2786_vm2, %v12134_v39 }
 0x162   :  { %v4043_v45 = vpop.f32.mrf.mxu0 }
 0x163   :  { %v12264_v45 = vld [vmem:[%s17030_s0 + $0xa08] sm:$0xff]  ;;  %v4817_v48 = vpop.f32.mrf.mxu1 }
 0x164   :  { %11462 = vmatmul.msk.bf16.gmra.mxu3 %vm2786_vm2, %v12264_v45  ;;  %v11970_v45 = vld [vmem:[%s17030_s0 + $0xd8] sm:$0xff] }
 0x16a   :  { %v12680_v57 = vpop.f32.mrf.mxu0 }
 0x16b   :  { %17087 = vst [vmem:[#allocation20_spill] sm:$0xff] %v12680_v57  ;;  %v4819_v60 = vpop.f32.mrf.mxu1 }
 0x16c   :  { %v12137_v60 = vld [vmem:[%s17030_s0 + $0x610] sm:$0xff] }
 0x16d   :  { %11163 = vmatmul.msk.bf16.gmra.mxu0 %vm2786_vm2, %v11965_v54 }
 0x16e   :  { %11333 = vmatmul.msk.bf16.gmra.mxu1 %vm2786_vm2, %v12135_v63 }
 0x172   :  { %v12687_v2 = vpop.f32.mrf.mxu0 }
 0x173   :  { %17088 = vst [vmem:[#allocation21_spill] sm:$0xff] %v12687_v2 }
 0x174   :  { %11463 = vmatmul.msk.bf16.gmra.mxu3 %vm2786_vm2, %v12265_v8  ;;  %v12267_v8 = vld [vmem:[%s17030_s0 + $0xa20] sm:$0xff] }
 0x17a   :  { %v12696_v14 = vpop.f32.mrf.mxu0 }
 0x17b   :  { %17089 = vst [vmem:[#allocation22_spill] sm:$0xff] %v12696_v14 }
 0x17d   :  { %11164 = vmatmul.msk.bf16.gmra.mxu0 %vm2786_vm2, %v11966_v11  ;;  %v4820_v11 = vpop.f32.mrf.mxu1 }
 0x17e   :  { %11334 = vmatmul.msk.bf16.gmra.mxu1 %vm2786_vm2, %v12136_v28 }
 0x182   :  { %v12703_v22 = vpop.f32.mrf.mxu0 }
 0x183   :  { %17090 = vst [vmem:[#allocation23_spill] sm:$0xff] %v12703_v22 }
 0x184   :  { %11464 = vmatmul.msk.bf16.gmra.mxu3 %vm2786_vm2, %v12266_v36  ;;  %v12138_v36 = vld [vmem:[%s17030_s0 + $0x618] sm:$0xff] }
 0x185   :  { %v4822_v26 = vpop.f32.mrf.mxu1 }
 0x18a   :  { %v12712_v34 = vpop.f32.mrf.mxu0 }
 0x18b   :  { %17091 = vst [vmem:[#allocation24_spill] sm:$0xff] %v12712_v34 }
 0x18d   :  { %11165 = vmatmul.msk.bf16.gmra.mxu0 %vm2786_vm2, %v11967_v30  ;;  %v4823_v39 = vpop.f32.mrf.mxu1 }
 0x18e   :  { %11335 = vmatmul.msk.bf16.gmra.mxu1 %vm2786_vm2, %v12137_v60 }
 0x192   :  { %v12719_v42 = vpop.f32.mrf.mxu0 }
 0x193   :  { %17092 = vst [vmem:[#allocation25_spill] sm:$0xff] %v12719_v42 }
 0x194   :  { %11465 = vmatmul.msk.bf16.gmra.mxu3 %vm2786_vm2, %v12267_v8  ;;  %v11972_v8 = vld [vmem:[%s17030_s0 + $0xe8] sm:$0xff] }
 0x19a   :  { %v12728_v54 = vpop.f32.mrf.mxu0 }
 0x19b   :  { %17093 = vst [vmem:[#allocation26_spill] sm:$0xff] %v12728_v54 }
 0x19d   :  { %11166 = vmatmul.msk.bf16.gmra.mxu0 %vm2786_vm2, %v11968_v51  ;;  %v4825_v51 = vpop.f32.mrf.mxu1 }
 0x19e   :  { %11336 = vmatmul.msk.bf16.gmra.mxu1 %vm2786_vm2, %v12138_v36  ;;  %v12268_v51 = vld [vmem:[%s17030_s0 + $0xa28] sm:$0xff]  ;;  %v12139_v36 = vld [vmem:[%s17030_s0 + $0x620] sm:$0xff] }
 0x1a2   :  { %v12735_v5 = vpop.f32.mrf.mxu0 }
 0x1a3   :  { %17094 = vst [vmem:[#allocation27_spill] sm:$0xff] %v12735_v5 }
 0x1a4   :  { %11466 = vmatmul.msk.bf16.gmra.mxu3 %vm2786_vm2, %v12268_v51 }
 0x1a5   :  { %v4826_v11 = vpop.f32.mrf.mxu1 }
 0x1aa   :  { %v12744_v20 = vpop.f32.mrf.mxu0 }
 0x1ab   :  { %17095 = vst [vmem:[#allocation28_spill] sm:$0xff] %v12744_v20 }
 0x1ad   :  { %11167 = vmatmul.msk.bf16.gmra.mxu0 %vm2786_vm2, %v11969_v17  ;;  %v11971_v17 = vld [vmem:[%s17030_s0 + $0xe0] sm:$0xff]  ;;  %v4828_v28 = vpop.f32.mrf.mxu1 }
 0x1ae   :  { %11337 = vmatmul.msk.bf16.gmra.mxu1 %vm2786_vm2, %v12139_v36 }
 0x1b2   :  { %v12751_v30 = vpop.f32.mrf.mxu0 }
 0x1b3   :  { %17096 = vst [vmem:[#allocation29_spill] sm:$0xff] %v12751_v30 }
 0x1b5   :  { %v4829_v60 = vpop.f32.mrf.mxu1 }
 0x1b6   :  { %v12186_v60 = vld [vmem:[%s17030_s0 + $0x798] sm:$0xff] }
 0x1ba   :  { %v12760_v48 = vpop.f32.mrf.mxu0 }
 0x1bb   :  { %17097 = vst [vmem:[#allocation30_spill] sm:$0xff] %v12760_v48 }
 0x1bd   :  { %11168 = vmatmul.msk.bf16.gmra.mxu0 %vm2786_vm2, %v11970_v45  ;;  %v12185_v45 = vld [vmem:[%s17030_s0 + $0x790] sm:$0xff]  ;;  %v4831_v28 = vpop.f32.mrf.mxu1 }
 0x1be   :  { %11383 = vmatmul.msk.bf16.vlgmr.msra.gmra.mxu2 %vm2786_vm2, %v12185_v45  ;;  %v12269_v28 = vld [vmem:[%s17030_s0 + $0xa30] sm:$0xff] }
 0x1bf   :  { %11467 = vmatmul.msk.bf16.gmra.mxu3 %vm2786_vm2, %v12269_v28  ;;  %v12187_v28 = vld [vmem:[%s17030_s0 + $0x7a0] sm:$0xff] }
 0x1c2   :  { %v12767_v63 = vpop.f32.mrf.mxu0 }
 0x1c3   :  { %17098 = vst [vmem:[#allocation31_spill] sm:$0xff] %v12767_v63 }
 0x1ca   :  { %v12776_v26 = vpop.f32.mrf.mxu0 }
 0x1cb   :  { %17099 = vst [vmem:[#allocation32_spill] sm:$0xff] %v12776_v26 }
 0x1cd   :  { %11169 = vmatmul.msk.bf16.gmra.mxu0 %vm2786_vm2, %v11971_v17  ;;  %v12798_v17 = vpop.f32.mrf.mxu3 }
 0x1ce   :  { %17102 = vst [vmem:[#allocation35_spill] sm:$0xff] %v12798_v17  ;;  %v4832_v17 = vpop.f32.mrf.mxu1  ;;  %11384 = vmatmul.msk.bf16.gmra.mxu2 %vm2786_vm2, %v12186_v60 }
 0x1d2   :  { %v12783_v39 = vpop.f32.mrf.mxu0 }
 0x1d3   :  { %17100 = vst [vmem:[#allocation33_spill] sm:$0xff] %v12783_v39 }
 0x1d5   :  { %v12807_v51 = vpop.f32.mrf.mxu3 }
 0x1d6   :  { %17104 = vst [vmem:[#allocation37_spill] sm:$0xff] %v12807_v51 }
 0x1da   :  { %v12796_v11 = vpop.f32.mrf.mxu0 }
 0x1db   :  { %17101 = vst [vmem:[#allocation34_spill] sm:$0xff] %v12796_v11  ;;  %v12140_v11 = vld [vmem:[%s17030_s0 + $0x628] sm:$0xff] }
 0x1dc   :  { %11338 = vmatmul.msk.bf16.gmra.mxu1 %vm2786_vm2, %v12140_v11  ;;  %v11974_v11 = vld [vmem:[%s17030_s0 + $0xf8] sm:$0xff] }
 0x1dd   :  { %11170 = vmatmul.msk.bf16.gmra.mxu0 %vm2786_vm2, %v11972_v8  ;;  %v11973_v8 = vld [vmem:[%s17030_s0 + $0xf0] sm:$0xff]  ;;  %v12822_v51 = vpop.f32.mrf.mxu3 }
 0x1de   :  { %17106 = vst [vmem:[#allocation39_spill] sm:$0xff] %v12822_v51  ;;  %11385 = vmatmul.msk.bf16.gmra.mxu2 %vm2786_vm2, %v12187_v28 }
 0x1e2   :  { %v12805_v45 = vpop.f32.mrf.mxu0 }
 0x1e3   :  { %17103 = vst [vmem:[#allocation36_spill] sm:$0xff] %v12805_v45  ;;  %v4834_v45 = vpop.f32.mrf.mxu1 }
 0x1e4   :  { %v12270_v45 = vld [vmem:[%s17030_s0 + $0xa38] sm:$0xff] }
 0x1e5   :  { %v12831_v60 = vpop.f32.mrf.mxu3  ;;  %11468 = vmatmul.msk.bf16.gmra.mxu3 %vm2786_vm2, %v12270_v45  ;;  %v12188_v45 = vld [vmem:[%s17030_s0 + $0x7a8] sm:$0xff] }
 0x1e6   :  { %17108 = vst [vmem:[#allocation41_spill] sm:$0xff] %v12831_v60 }
 0x1ea   :  { %v12820_v36 = vpop.f32.mrf.mxu0 }
 0x1eb   :  { %17105 = vst [vmem:[#allocation38_spill] sm:$0xff] %v12820_v36  ;;  %v4835_v51 = vpop.f32.mrf.mxu1  ;;  %v12141_v36 = vld [vmem:[%s17030_s0 + $0x630] sm:$0xff] }
 0x1ec   :  { %11339 = vmatmul.msk.bf16.gmra.mxu1 %vm2786_vm2, %v12141_v36  ;;  %v11975_v36 = vld [vmem:[%s17030_s0 + $0x100] sm:$0xff] }
 0x1ed   :  { %11171 = vmatmul.msk.bf16.gmra.mxu0 %vm2786_vm2, %v11973_v8  ;;  %v12846_v60 = vpop.f32.mrf.mxu3 }
 0x1ee   :  { %17110 = vst [vmem:[#allocation43_spill] sm:$0xff] %v12846_v60  ;;  %11386 = vmatmul.msk.bf16.gmra.mxu2 %vm2786_vm2, %v12188_v45 }
 0x1f2   :  { %v12829_v17 = vpop.f32.mrf.mxu0 }
 0x1f3   :  { %17107 = vst [vmem:[#allocation40_spill] sm:$0xff] %v12829_v17  ;;  %v4837_v17 = vpop.f32.mrf.mxu1 }
 0x1f4   :  { %v12271_v17 = vld [vmem:[%s17030_s0 + $0xa40] sm:$0xff] }
 0x1f5   :  { %v12855_v28 = vpop.f32.mrf.mxu3  ;;  %11469 = vmatmul.msk.bf16.gmra.mxu3 %vm2786_vm2, %v12271_v17  ;;  %v12189_v17 = vld [vmem:[%s17030_s0 + $0x7b0] sm:$0xff] }
 0x1f6   :  { %17112 = vst [vmem:[#allocation45_spill] sm:$0xff] %v12855_v28 }
 0x1fa   :  { %v12844_v8 = vpop.f32.mrf.mxu0 }
 0x1fb   :  { %17109 = vst [vmem:[#allocation42_spill] sm:$0xff] %v12844_v8  ;;  %v4838_v60 = vpop.f32.mrf.mxu1  ;;  %v12142_v8 = vld [vmem:[%s17030_s0 + $0x638] sm:$0xff] }
 0x1fc   :  { %11340 = vmatmul.msk.bf16.gmra.mxu1 %vm2786_vm2, %v12142_v8  ;;  %v11976_v8 = vld [vmem:[%s17030_s0 + $0x108] sm:$0xff] }
 0x1fd   :  { %11172 = vmatmul.msk.bf16.gmra.mxu0 %vm2786_vm2, %v11974_v11  ;;  %v5419_v28 = vpop.f32.mrf.mxu3 }
 0x1fe   :  { %v12272_v28 = vld [vmem:[%s17030_s0 + $0xa48] sm:$0xff]  ;;  %11387 = vmatmul.msk.bf16.gmra.mxu2 %vm2786_vm2, %v12189_v17 }
 0x202   :  { %v12853_v51 = vpop.f32.mrf.mxu0 }
 0x203   :  { %17111 = vst [vmem:[#allocation44_spill] sm:$0xff] %v12853_v51  ;;  %v4840_v51 = vpop.f32.mrf.mxu1 }
 0x205   :  { %v5420_v45 = vpop.f32.mrf.mxu3  ;;  %11470 = vmatmul.msk.bf16.gmra.mxu3 %vm2786_vm2, %v12272_v28  ;;  %v12190_v28 = vld [vmem:[%s17030_s0 + $0x7b8] sm:$0xff] }
 0x20a   :  { %v12868_v11 = vpop.f32.mrf.mxu0 }
 0x20b   :  { %17113 = vst [vmem:[#allocation46_spill] sm:$0xff] %v12868_v11  ;;  %v4841_v51 = vpop.f32.mrf.mxu1  ;;  %v12143_v11 = vld [vmem:[%s17030_s0 + $0x640] sm:$0xff] }
 0x20c   :  { %11341 = vmatmul.msk.bf16.gmra.mxu1 %vm2786_vm2, %v12143_v11  ;;  %v11977_v11 = vld [vmem:[%s17030_s0 + $0x110] sm:$0xff] }
 0x20d   :  { %11173 = vmatmul.msk.bf16.gmra.mxu0 %vm2786_vm2, %v11975_v36  ;;  %v5422_v45 = vpop.f32.mrf.mxu3 }
 0x20e   :  { %v12273_v45 = vld [vmem:[%s17030_s0 + $0xa50] sm:$0xff]  ;;  %11388 = vmatmul.msk.bf16.gmra.mxu2 %vm2786_vm2, %v12190_v28 }
 0x212   :  { %v12875_v60 = vpop.f32.mrf.mxu0 }
 0x213   :  { %17114 = vst [vmem:[#allocation47_spill] sm:$0xff] %v12875_v60  ;;  %v4843_v60 = vpop.f32.mrf.mxu1 }
 0x215   :  { %v5423_v17 = vpop.f32.mrf.mxu3  ;;  %11471 = vmatmul.msk.bf16.gmra.mxu3 %vm2786_vm2, %v12273_v45  ;;  %v12191_v45 = vld [vmem:[%s17030_s0 + $0x7c0] sm:$0xff] }
 0x21a   :  { %v12888_v36 = vpop.f32.mrf.mxu0 }
 0x21b   :  { %17115 = vst [vmem:[#allocation48_spill] sm:$0xff] %v12888_v36  ;;  %v4844_v60 = vpop.f32.mrf.mxu1  ;;  %v12144_v36 = vld [vmem:[%s17030_s0 + $0x648] sm:$0xff] }
 0x21c   :  { %11342 = vmatmul.msk.bf16.gmra.mxu1 %vm2786_vm2, %v12144_v36  ;;  %v11978_v36 = vld [vmem:[%s17030_s0 + $0x118] sm:$0xff] }
 0x21d   :  { %11174 = vmatmul.msk.bf16.gmra.mxu0 %vm2786_vm2, %v11976_v8 }
 0x21e   :  { %11389 = vmatmul.msk.bf16.gmra.mxu2 %vm2786_vm2, %v12191_v45 }
 0x222   :  { %v12895_v51 = vpop.f32.mrf.mxu0 }
 0x223   :  { %17116 = vst [vmem:[#allocation49_spill] sm:$0xff] %v12895_v51  ;;  %v12908_v51 = vpop.f32.mrf.mxu3  ;;  %v4846_v17 = vpop.f32.mrf.mxu1 }
 0x224   :  { %17117 = vst [vmem:[#allocation50_spill] sm:$0xff] %v12908_v51  ;;  %v12145_v51 = vld [vmem:[%s17030_s0 + $0x650] sm:$0xff] }
 0x22a   :  { %v4105_v8 = vpop.f32.mrf.mxu0 }
 0x22b   :  { %v12915_v28 = vpop.f32.mrf.mxu3  ;;  %v12274_v8 = vld [vmem:[%s17030_s0 + $0xa58] sm:$0xff]  ;;  %v4847_v17 = vpop.f32.mrf.mxu1 }
 0x22c   :  { %17118 = vst [vmem:[#allocation51_spill] sm:$0xff] %v12915_v28  ;;  %11472 = vmatmul.msk.bf16.gmra.mxu3 %vm2786_vm2, %v12274_v8  ;;  %11343 = vmatmul.msk.bf16.gmra.mxu1 %vm2786_vm2, %v12145_v51  ;;  %v12192_v8 = vld [vmem:[%s17030_s0 + $0x7c8] sm:$0xff]  ;;  %v11979_v51 = vld [vmem:[%s17030_s0 + $0x120] sm:$0xff] }
 0x22d   :  { %11175 = vmatmul.msk.bf16.gmra.mxu0 %vm2786_vm2, %v11977_v11 }
 0x22e   :  { %11390 = vmatmul.msk.bf16.gmra.mxu2 %vm2786_vm2, %v12192_v8 }
 0x232   :  { %v4106_v60 = vpop.f32.mrf.mxu0 }
 0x233   :  { %v12928_v60 = vpop.f32.mrf.mxu3  ;;  %v4849_v28 = vpop.f32.mrf.mxu1 }
 0x234   :  { %17119 = vst [vmem:[#allocation52_spill] sm:$0xff] %v12928_v60  ;;  %v12146_v60 = vld [vmem:[%s17030_s0 + $0x658] sm:$0xff] }
 0x23a   :  { %v4108_v11 = vpop.f32.mrf.mxu0 }
 0x23b   :  { %v12935_v45 = vpop.f32.mrf.mxu3  ;;  %v12275_v11 = vld [vmem:[%s17030_s0 + $0xa60] sm:$0xff]  ;;  %v4850_v28 = vpop.f32.mrf.mxu1 }
 0x23c   :  { %17120 = vst [vmem:[#allocation53_spill] sm:$0xff] %v12935_v45  ;;  %11473 = vmatmul.msk.bf16.gmra.mxu3 %vm2786_vm2, %v12275_v11  ;;  %11344 = vmatmul.msk.bf16.gmra.mxu1 %vm2786_vm2, %v12146_v60  ;;  %v12193_v28 = vld [vmem:[%s17030_s0 + $0x7d0] sm:$0xff]  ;;  %v11980_v60 = vld [vmem:[%s17030_s0 + $0x128] sm:$0xff] }
 0x23d   :  { %11176 = vmatmul.msk.bf16.gmra.mxu0 %vm2786_vm2, %v11978_v36 }
 0x23e   :  { %11391 = vmatmul.msk.bf16.gmra.mxu2 %vm2786_vm2, %v12193_v28 }
 0x242   :  { %v4109_v17 = vpop.f32.mrf.mxu0 }
 0x243   :  { %v12950_v17 = vpop.f32.mrf.mxu3  ;;  %v4852_v45 = vpop.f32.mrf.mxu1 }
 0x244   :  { %17122 = vst [vmem:[#allocation55_spill] sm:$0xff] %v12950_v17  ;;  %v12276_v45 = vld [vmem:[%s17030_s0 + $0xa68] sm:$0xff] }
 0x24a   :  { %v12948_v36 = vpop.f32.mrf.mxu0 }
 0x24b   :  { %17121 = vst [vmem:[#allocation54_spill] sm:$0xff] %v12948_v36  ;;  %v12959_v11 = vpop.f32.mrf.mxu3  ;;  %v4853_v17 = vpop.f32.mrf.mxu1 }
 0x24c   :  { %17124 = vst [vmem:[#allocation57_spill] sm:$0xff] %v12959_v11  ;;  %11474 = vmatmul.msk.bf16.gmra.mxu3 %vm2786_vm2, %v12276_v45  ;;  %v12147_v17 = vld [vmem:[%s17030_s0 + $0x660] sm:$0xff] }
 0x24d   :  { %11177 = vmatmul.msk.bf16.gmra.mxu0 %vm2786_vm2, %v11979_v51  ;;  %v12969_v51 = vpop.f32.mrf.mxu2  ;;  %11345 = vmatmul.msk.bf16.gmra.mxu1 %vm2786_vm2, %v12147_v17 }
 0x24e   :  { %17125 = vst [vmem:[#allocation58_spill] sm:$0xff] %v12969_v51 }
 0x252   :  { %v12957_v8 = vpop.f32.mrf.mxu0 }
 0x253   :  { %17123 = vst [vmem:[#allocation56_spill] sm:$0xff] %v12957_v8  ;;  %v12976_v8 = vpop.f32.mrf.mxu3  ;;  %v12978_v36 = vpop.f32.mrf.mxu1 }
 0x254   :  { %17127 = vst [vmem:[#allocation60_spill] sm:$0xff] %v12976_v8  ;;  %v12194_v8 = vld [vmem:[%s17030_s0 + $0x7d8] sm:$0xff] }
 0x255   :  { %v12985_v28 = vpop.f32.mrf.mxu2  ;;  %11392 = vmatmul.msk.bf16.gmra.mxu2 %vm2786_vm2, %v12194_v8  ;;  %v12148_v8 = vld [vmem:[%s17030_s0 + $0x668] sm:$0xff] }
 0x256   :  { %17128 = vst [vmem:[#allocation61_spill] sm:$0xff] %v12985_v28  ;;  %v11981_v28 = vld [vmem:[%s17030_s0 + $0x130] sm:$0xff] }
 0x25a   :  { %v12974_v11 = vpop.f32.mrf.mxu0 }
 0x25b   :  { %17126 = vst [vmem:[#allocation59_spill] sm:$0xff] %v12974_v11  ;;  %v12989_v51 = vpop.f32.mrf.mxu3  ;;  %v12997_v11 = vpop.f32.mrf.mxu1 }
 0x25c   :  { %17130 = vst [vmem:[#allocation63_spill] sm:$0xff] %v12989_v51 }
 0x25d   :  { %11178 = vmatmul.msk.bf16.gmra.mxu0 %vm2786_vm2, %v11980_v60  ;;  %v12277_v60 = vld [vmem:[%s17030_s0 + $0xa70] sm:$0xff]  ;;  %v13001_v17 = vpop.f32.mrf.mxu2  ;;  %11346 = vmatmul.msk.bf16.gmra.mxu1 %vm2786_vm2, %v12148_v8 }
 0x25e   :  { %11475 = vmatmul.msk.bf16.gmra.mxu3 %vm2786_vm2, %v12277_v60  ;;  %17131 = vst [vmem:[#allocation64_spill] sm:$0xff] %v13001_v17 }
 0x262   :  { %v12987_v45 = vpop.f32.mrf.mxu0 }
 0x263   :  { %17129 = vst [vmem:[#allocation62_spill] sm:$0xff] %v12987_v45  ;;  %v13008_v45 = vpop.f32.mrf.mxu3  ;;  %v13010_v39 = vpop.f32.mrf.mxu1 }
 0x264   :  { %17133 = vst [vmem:[#allocation66_spill] sm:$0xff] %v13008_v45  ;;  %v12195_v45 = vld [vmem:[%s17030_s0 + $0x7e0] sm:$0xff] }
 0x265   :  { %v13017_v60 = vpop.f32.mrf.mxu2  ;;  %11393 = vmatmul.msk.bf16.gmra.mxu2 %vm2786_vm2, %v12195_v45  ;;  %v12149_v45 = vld [vmem:[%s17030_s0 + $0x670] sm:$0xff] }
 0x266   :  { %17134 = vst [vmem:[#allocation67_spill] sm:$0xff] %v13017_v60  ;;  %v11982_v60 = vld [vmem:[%s17030_s0 + $0x138] sm:$0xff] }
 0x26a   :  { %v13006_v51 = vpop.f32.mrf.mxu0 }
 0x26b   :  { %17132 = vst [vmem:[#allocation65_spill] sm:$0xff] %v13006_v51  ;;  %v13021_v26 = vpop.f32.mrf.mxu3  ;;  %v13029_v51 = vpop.f32.mrf.mxu1 }
 0x26c   :  { %17136 = vst [vmem:[#allocation69_spill] sm:$0xff] %v13021_v26 }
 0x26d   :  { %11179 = vmatmul.msk.bf16.gmra.mxu0 %vm2786_vm2, %v11981_v28  ;;  %v12278_v28 = vld [vmem:[%s17030_s0 + $0xa78] sm:$0xff]  ;;  %v13033_v8 = vpop.f32.mrf.mxu2  ;;  %11347 = vmatmul.msk.bf16.gmra.mxu1 %vm2786_vm2, %v12149_v45 }
 0x26e   :  { %11476 = vmatmul.msk.bf16.gmra.mxu3 %vm2786_vm2, %v12278_v28  ;;  %17137 = vst [vmem:[#allocation70_spill] sm:$0xff] %v13033_v8 }
 0x272   :  { %v13019_v17 = vpop.f32.mrf.mxu0 }
 0x273   :  { %17135 = vst [vmem:[#allocation68_spill] sm:$0xff] %v13019_v17  ;;  %v13040_v17 = vpop.f32.mrf.mxu3  ;;  %v13042_v63 = vpop.f32.mrf.mxu1 }
 0x274   :  { %17139 = vst [vmem:[#allocation72_spill] sm:$0xff] %v13040_v17  ;;  %v12196_v17 = vld [vmem:[%s17030_s0 + $0x7e8] sm:$0xff] }
 0x275   :  { %v13049_v28 = vpop.f32.mrf.mxu2  ;;  %11394 = vmatmul.msk.bf16.gmra.mxu2 %vm2786_vm2, %v12196_v17  ;;  %v12150_v17 = vld [vmem:[%s17030_s0 + $0x678] sm:$0xff] }
 0x276   :  { %17140 = vst [vmem:[#allocation73_spill] sm:$0xff] %v13049_v28  ;;  %v11983_v28 = vld [vmem:[%s17030_s0 + $0x140] sm:$0xff] }
 0x27a   :  { %v13038_v26 = vpop.f32.mrf.mxu0 }
 0x27b   :  { %17138 = vst [vmem:[#allocation71_spill] sm:$0xff] %v13038_v26  ;;  %v13053_v48 = vpop.f32.mrf.mxu3  ;;  %v13061_v26 = vpop.f32.mrf.mxu1 }
 0x27c   :  { %17142 = vst [vmem:[#allocation75_spill] sm:$0xff] %v13053_v48 }
 0x27d   :  { %11180 = vmatmul.msk.bf16.gmra.mxu0 %vm2786_vm2, %v11982_v60  ;;  %v12279_v60 = vld [vmem:[%s17030_s0 + $0xa80] sm:$0xff]  ;;  %v13065_v45 = vpop.f32.mrf.mxu2  ;;  %11348 = vmatmul.msk.bf16.gmra.mxu1 %vm2786_vm2, %v12150_v17 }
 0x27e   :  { %11477 = vmatmul.msk.bf16.gmra.mxu3 %vm2786_vm2, %v12279_v60  ;;  %17143 = vst [vmem:[#allocation76_spill] sm:$0xff] %v13065_v45 }
 0x282   :  { %v13051_v8 = vpop.f32.mrf.mxu0 }
 0x283   :  { %17141 = vst [vmem:[#allocation74_spill] sm:$0xff] %v13051_v8  ;;  %v13072_v8 = vpop.f32.mrf.mxu3  ;;  %v13074_v30 = vpop.f32.mrf.mxu1 }
 0x284   :  { %17145 = vst [vmem:[#allocation78_spill] sm:$0xff] %v13072_v8  ;;  %v12197_v8 = vld [vmem:[%s17030_s0 + $0x7f0] sm:$0xff] }
 0x285   :  { %17146 = vst [vmem:[#allocation79_spill] sm:$0xff] %v13074_v30  ;;  %v13081_v60 = vpop.f32.mrf.mxu2  ;;  %11395 = vmatmul.msk.bf16.gmra.mxu2 %vm2786_vm2, %v12197_v8  ;;  %v12151_v8 = vld [vmem:[%s17030_s0 + $0x680] sm:$0xff] }
 0x286   :  { %17147 = vst [vmem:[#allocation80_spill] sm:$0xff] %v13081_v60  ;;  %v11984_v60 = vld [vmem:[%s17030_s0 + $0x148] sm:$0xff] }
 0x28a   :  { %v13070_v48 = vpop.f32.mrf.mxu0 }
 0x28b   :  { %17144 = vst [vmem:[#allocation77_spill] sm:$0xff] %v13070_v48  ;;  %v13085_v20 = vpop.f32.mrf.mxu3  ;;  %v13093_v48 = vpop.f32.mrf.mxu1 }
 0x28c   :  { %17149 = vst [vmem:[#allocation82_spill] sm:$0xff] %v13085_v20 }
 0x28d   :  { %11181 = vmatmul.msk.bf16.gmra.mxu0 %vm2786_vm2, %v11983_v28  ;;  %v12280_v28 = vld [vmem:[%s17030_s0 + $0xa88] sm:$0xff]  ;;  %17150 = vst [vmem:[#allocation83_spill] sm:$0xff] %v13093_v48  ;;  %v13097_v17 = vpop.f32.mrf.mxu2  ;;  %11349 = vmatmul.msk.bf16.gmra.mxu1 %vm2786_vm2, %v12151_v8 }
 0x28e   :  { %11478 = vmatmul.msk.bf16.gmra.mxu3 %vm2786_vm2, %v12280_v28  ;;  %17151 = vst [vmem:[#allocation84_spill] sm:$0xff] %v13097_v17 }
 0x292   :  { %v13083_v45 = vpop.f32.mrf.mxu0 }
 0x293   :  { %17148 = vst [vmem:[#allocation81_spill] sm:$0xff] %v13083_v45  ;;  %v13104_v45 = vpop.f32.mrf.mxu3  ;;  %v13106_v5 = vpop.f32.mrf.mxu1 }
 0x294   :  { %17153 = vst [vmem:[#allocation86_spill] sm:$0xff] %v13104_v45  ;;  %v12198_v45 = vld [vmem:[%s17030_s0 + $0x7f8] sm:$0xff] }
 0x295   :  { %17154 = vst [vmem:[#allocation87_spill] sm:$0xff] %v13106_v5  ;;  %v13113_v28 = vpop.f32.mrf.mxu2  ;;  %11396 = vmatmul.msk.bf16.gmra.mxu2 %vm2786_vm2, %v12198_v45  ;;  %v12152_v45 = vld [vmem:[%s17030_s0 + $0x688] sm:$0xff] }
 0x296   :  { %17155 = vst [vmem:[#allocation88_spill] sm:$0xff] %v13113_v28  ;;  %v11985_v28 = vld [vmem:[%s17030_s0 + $0x150] sm:$0xff] }
 0x29a   :  { %v13102_v20 = vpop.f32.mrf.mxu0 }
 0x29b   :  { %17152 = vst [vmem:[#allocation85_spill] sm:$0xff] %v13102_v20  ;;  %v13117_v54 = vpop.f32.mrf.mxu3  ;;  %v13125_v20 = vpop.f32.mrf.mxu1 }
 0x29c   :  { %17157 = vst [vmem:[#allocation90_spill] sm:$0xff] %v13117_v54 }
 0x29d   :  { %11182 = vmatmul.msk.bf16.gmra.mxu0 %vm2786_vm2, %v11984_v60  ;;  %v12281_v60 = vld [vmem:[%s17030_s0 + $0xa90] sm:$0xff]  ;;  %17158 = vst [vmem:[#allocation91_spill] sm:$0xff] %v13125_v20  ;;  %v13129_v8 = vpop.f32.mrf.mxu2  ;;  %11350 = vmatmul.msk.bf16.gmra.mxu1 %vm2786_vm2, %v12152_v45 }
 0x29e   :  { %11479 = vmatmul.msk.bf16.gmra.mxu3 %vm2786_vm2, %v12281_v60  ;;  %17159 = vst [vmem:[#allocation92_spill] sm:$0xff] %v13129_v8 }
 0x2a2   :  { %v13115_v17 = vpop.f32.mrf.mxu0 }
 0x2a3   :  { %17156 = vst [vmem:[#allocation89_spill] sm:$0xff] %v13115_v17  ;;  %v13136_v17 = vpop.f32.mrf.mxu3  ;;  %v13138_v42 = vpop.f32.mrf.mxu1 }
 0x2a4   :  { %17161 = vst [vmem:[#allocation94_spill] sm:$0xff] %v13136_v17  ;;  %v12199_v17 = vld [vmem:[%s17030_s0 + $0x800] sm:$0xff] }
 0x2a5   :  { %17162 = vst [vmem:[#allocation95_spill] sm:$0xff] %v13138_v42  ;;  %v13145_v60 = vpop.f32.mrf.mxu2  ;;  %11397 = vmatmul.msk.bf16.gmra.mxu2 %vm2786_vm2, %v12199_v17  ;;  %v12153_v17 = vld [vmem:[%s17030_s0 + $0x690] sm:$0xff] }
 0x2a6   :  { %17163 = vst [vmem:[#allocation96_spill] sm:$0xff] %v13145_v60  ;;  %v11986_v60 = vld [vmem:[%s17030_s0 + $0x158] sm:$0xff] }
 0x2aa   :  { %v13134_v54 = vpop.f32.mrf.mxu0 }
 0x2ab   :  { %17160 = vst [vmem:[#allocation93_spill] sm:$0xff] %v13134_v54  ;;  %v13149_v34 = vpop.f32.mrf.mxu3  ;;  %v13157_v54 = vpop.f32.mrf.mxu1 }
 0x2ac   :  { %17165 = vst [vmem:[#allocation98_spill] sm:$0xff] %v13149_v34 }
 0x2ad   :  { %11183 = vmatmul.msk.bf16.gmra.mxu0 %vm2786_vm2, %v11985_v28  ;;  %v12282_v28 = vld [vmem:[%s17030_s0 + $0xa98] sm:$0xff]  ;;  %17166 = vst [vmem:[#allocation99_spill] sm:$0xff] %v13157_v54  ;;  %v13161_v45 = vpop.f32.mrf.mxu2  ;;  %11351 = vmatmul.msk.bf16.gmra.mxu1 %vm2786_vm2, %v12153_v17 }
 0x2ae   :  { %11480 = vmatmul.msk.bf16.gmra.mxu3 %vm2786_vm2, %v12282_v28  ;;  %17167 = vst [vmem:[#allocation100_spill] sm:$0xff] %v13161_v45 }
 0x2b2   :  { %v13147_v8 = vpop.f32.mrf.mxu0 }
 0x2b3   :  { %17164 = vst [vmem:[#allocation97_spill] sm:$0xff] %v13147_v8  ;;  %v13168_v8 = vpop.f32.mrf.mxu3  ;;  %v13170_v22 = vpop.f32.mrf.mxu1 }
 0x2b4   :  { %17169 = vst [vmem:[#allocation102_spill] sm:$0xff] %v13168_v8  ;;  %v12200_v8 = vld [vmem:[%s17030_s0 + $0x808] sm:$0xff] }
 0x2b5   :  { %17170 = vst [vmem:[#allocation103_spill] sm:$0xff] %v13170_v22  ;;  %v13177_v28 = vpop.f32.mrf.mxu2  ;;  %11398 = vmatmul.msk.bf16.gmra.mxu2 %vm2786_vm2, %v12200_v8  ;;  %v12154_v8 = vld [vmem:[%s17030_s0 + $0x698] sm:$0xff] }
 0x2b6   :  { %17171 = vst [vmem:[#allocation104_spill] sm:$0xff] %v13177_v28  ;;  %v11987_v28 = vld [vmem:[%s17030_s0 + $0x160] sm:$0xff] }
 0x2ba   :  { %v13166_v34 = vpop.f32.mrf.mxu0 }
 0x2bb   :  { %17168 = vst [vmem:[#allocation101_spill] sm:$0xff] %v13166_v34  ;;  %v13181_v14 = vpop.f32.mrf.mxu3  ;;  %v13189_v34 = vpop.f32.mrf.mxu1 }
 0x2bc   :  { %17173 = vst [vmem:[#allocation106_spill] sm:$0xff] %v13181_v14 }
 0x2bd   :  { %11184 = vmatmul.msk.bf16.gmra.mxu0 %vm2786_vm2, %v11986_v60  ;;  %v12283_v60 = vld [vmem:[%s17030_s0 + $0xaa0] sm:$0xff]  ;;  %17174 = vst [vmem:[#allocation107_spill] sm:$0xff] %v13189_v34  ;;  %v13193_v17 = vpop.f32.mrf.mxu2  ;;  %11352 = vmatmul.msk.bf16.gmra.mxu1 %vm2786_vm2, %v12154_v8 }
 0x2be   :  { %11481 = vmatmul.msk.bf16.gmra.mxu3 %vm2786_vm2, %v12283_v60  ;;  %17175 = vst [vmem:[#allocation108_spill] sm:$0xff] %v13193_v17 }
 0x2c2   :  { %v13179_v45 = vpop.f32.mrf.mxu0 }
 0x2c3   :  { %17172 = vst [vmem:[#allocation105_spill] sm:$0xff] %v13179_v45  ;;  %v13200_v45 = vpop.f32.mrf.mxu3  ;;  %v13202_v2 = vpop.f32.mrf.mxu1 }
 0x2c4   :  { %17177 = vst [vmem:[#allocation110_spill] sm:$0xff] %v13200_v45  ;;  %v12201_v45 = vld [vmem:[%s17030_s0 + $0x810] sm:$0xff] }
 0x2c5   :  { %17178 = vst [vmem:[#allocation111_spill] sm:$0xff] %v13202_v2  ;;  %v13209_v60 = vpop.f32.mrf.mxu2  ;;  %11399 = vmatmul.msk.bf16.gmra.mxu2 %vm2786_vm2, %v12201_v45 }
 0x2c6   :  { %17179 = vst [vmem:[#allocation112_spill] sm:$0xff] %v13209_v60  ;;  %v11988_v60 = vld [vmem:[%s17030_s0 + $0x168] sm:$0xff] }
 0x2ca   :  { %v13198_v14 = vpop.f32.mrf.mxu0 }
 0x2cb   :  { %17176 = vst [vmem:[#allocation109_spill] sm:$0xff] %v13198_v14  ;;  %v13213_v57 = vpop.f32.mrf.mxu3  ;;  %v13221_v14 = vpop.f32.mrf.mxu1 }
 0x2cc   :  { %17181 = vst [vmem:[#allocation114_spill] sm:$0xff] %v13213_v57 }
 0x2cd   :  { %11185 = vmatmul.msk.bf16.gmra.mxu0 %vm2786_vm2, %v11987_v28  ;;  %v12284_v28 = vld [vmem:[%s17030_s0 + $0xaa8] sm:$0xff]  ;;  %17182 = vst [vmem:[#allocation115_spill] sm:$0xff] %v13221_v14  ;;  %v5113_v8 = vpop.f32.mrf.mxu2  ;;  %11353 = vmatmul.msk.bf16.gmra.mxu1 %vm2786_vm2, %v12155_v15 }
 0x2ce   :  { %11482 = vmatmul.msk.bf16.gmra.mxu3 %vm2786_vm2, %v12284_v28 }
 0x2d2   :  { %v13211_v17 = vpop.f32.mrf.mxu0 }
 0x2d3   :  { %17180 = vst [vmem:[#allocation113_spill] sm:$0xff] %v13211_v17  ;;  %v13230_v17 = vpop.f32.mrf.mxu3  ;;  %v13232_v18 = vpop.f32.mrf.mxu1 }
 0x2d4   :  { %17184 = vst [vmem:[#allocation117_spill] sm:$0xff] %v13230_v17  ;;  %v12285_v17 = vld [vmem:[%s17030_s0 + $0xab0] sm:$0xff] }
 0x2d5   :  { %17185 = vst [vmem:[#allocation118_spill] sm:$0xff] %v13232_v18  ;;  %v5114_v45 = vpop.f32.mrf.mxu2 }
 0x2d6   :  { %v11989_v45 = vld [vmem:[%s17030_s0 + $0x170] sm:$0xff] }
 0x2da   :  { %v13228_v57 = vpop.f32.mrf.mxu0 }
 0x2db   :  { %17183 = vst [vmem:[#allocation116_spill] sm:$0xff] %v13228_v57  ;;  %v13241_v8 = vpop.f32.mrf.mxu3  ;;  %v12202_v57 = vld [vmem:[%s17030_s0 + $0x818] sm:$0xff] }
 0x2dc   :  { %17187 = vst [vmem:[#allocation120_spill] sm:$0xff] %v13241_v8  ;;  %11400 = vmatmul.msk.bf16.gmra.mxu2 %vm2786_vm2, %v12202_v57 }
 0x2dd   :  { %11186 = vmatmul.msk.bf16.gmra.mxu0 %vm2786_vm2, %v11988_v60  ;;  %v13249_v60 = vpop.f32.mrf.mxu1  ;;  %v5116_v15 = vpop.f32.mrf.mxu2  ;;  %11354 = vmatmul.msk.bf16.gmra.mxu1 %vm2786_vm2, %v12156_v9  ;;  %v11990_v9 = vld [vmem:[%s17030_s0 + $0x178] sm:$0xff] }
 0x2de   :  { %17188 = vst [vmem:[#allocation121_spill] sm:$0xff] %v13249_v60  ;;  %11483 = vmatmul.msk.bf16.gmra.mxu3 %vm2786_vm2, %v12285_v17 }
 0x2e2   :  { %v13239_v28 = vpop.f32.mrf.mxu0 }
 0x2e3   :  { %17186 = vst [vmem:[#allocation119_spill] sm:$0xff] %v13239_v28  ;;  %v5485_v28 = vpop.f32.mrf.mxu3 }
 0x2e4   :  { %v12286_v28 = vld [vmem:[%s17030_s0 + $0xab8] sm:$0xff] }
 0x2e5   :  { %v13258_v12 = vpop.f32.mrf.mxu1  ;;  %v5117_v57 = vpop.f32.mrf.mxu2 }
 0x2e6   :  { %17190 = vst [vmem:[#allocation123_spill] sm:$0xff] %v13258_v12 }
 0x2ea   :  { %v13256_v8 = vpop.f32.mrf.mxu0 }
 0x2eb   :  { %17189 = vst [vmem:[#allocation122_spill] sm:$0xff] %v13256_v8  ;;  %v5486_v15 = vpop.f32.mrf.mxu3 }
 0x2ec   :  { %11401 = vmatmul.msk.bf16.gmra.mxu2 %vm2786_vm2, %v12203_v6 }
 0x2ed   :  { %11187 = vmatmul.msk.bf16.gmra.mxu0 %vm2786_vm2, %v11989_v45  ;;  %v13273_v8 = vpop.f32.mrf.mxu1  ;;  %v13277_v45 = vpop.f32.mrf.mxu2 }
 0x2ee   :  { %17192 = vst [vmem:[#allocation125_spill] sm:$0xff] %v13273_v8  ;;  %11484 = vmatmul.msk.bf16.gmra.mxu3 %vm2786_vm2, %v12286_v28  ;;  %v12157_v8 = vld [vmem:[%s17030_s0 + $0x6b0] sm:$0xff] }
 0x2ef   :  { %17193 = vst [vmem:[#allocation126_spill] sm:$0xff] %v13277_v45  ;;  %11355 = vmatmul.msk.bf16.gmra.mxu1 %vm2786_vm2, %v12157_v8 }
 0x2f2   :  { %v13265_v17 = vpop.f32.mrf.mxu0 }
 0x2f3   :  { %17191 = vst [vmem:[#allocation124_spill] sm:$0xff] %v13265_v17  ;;  %v5488_v15 = vpop.f32.mrf.mxu3 }
 0x2f4   :  { %v12287_v15 = vld [vmem:[%s17030_s0 + $0xac0] sm:$0xff] }
 0x2f5   :  { %v13284_v17 = vpop.f32.mrf.mxu1  ;;  %v13291_v6 = vpop.f32.mrf.mxu2 }
 0x2f6   :  { %17195 = vst [vmem:[#allocation128_spill] sm:$0xff] %v13284_v17 }
 0x2f7   :  { %17196 = vst [vmem:[#allocation129_spill] sm:$0xff] %v13291_v6 }
 0x2fa   :  { %v13282_v57 = vpop.f32.mrf.mxu0 }
 0x2fb   :  { %17194 = vst [vmem:[#allocation127_spill] sm:$0xff] %v13282_v57  ;;  %v5489_v45 = vpop.f32.mrf.mxu3  ;;  %v12204_v57 = vld [vmem:[%s17030_s0 + $0x828] sm:$0xff] }
 0x2fc   :  { %11402 = vmatmul.msk.bf16.gmra.mxu2 %vm2786_vm2, %v12204_v57  ;;  %v11991_v45 = vld [vmem:[%s17030_s0 + $0x180] sm:$0xff] }
 0x2fd   :  { %11188 = vmatmul.msk.bf16.gmra.mxu0 %vm2786_vm2, %v11990_v9  ;;  %v13301_v9 = vpop.f32.mrf.mxu1  ;;  %v13305_v8 = vpop.f32.mrf.mxu2 }
 0x2fe   :  { %17198 = vst [vmem:[#allocation131_spill] sm:$0xff] %v13301_v9  ;;  %11485 = vmatmul.msk.bf16.gmra.mxu3 %vm2786_vm2, %v12287_v15  ;;  %v12158_v9 = vld [vmem:[%s17030_s0 + $0x6b8] sm:$0xff] }
 0x2ff   :  { %17199 = vst [vmem:[#allocation132_spill] sm:$0xff] %v13305_v8  ;;  %11356 = vmatmul.msk.bf16.gmra.mxu1 %vm2786_vm2, %v12158_v9 }
 0x302   :  { %v13293_v28 = vpop.f32.mrf.mxu0 }
 0x303   :  { %17197 = vst [vmem:[#allocation130_spill] sm:$0xff] %v13293_v28  ;;  %v13310_v28 = vpop.f32.mrf.mxu3 }
 0x304   :  { %17200 = vst [vmem:[#allocation133_spill] sm:$0xff] %v13310_v28  ;;  %v12288_v28 = vld [vmem:[%s17030_s0 + $0xac8] sm:$0xff] }
 0x305   :  { %v13312_v17 = vpop.f32.mrf.mxu1  ;;  %v13319_v57 = vpop.f32.mrf.mxu2 }
 0x306   :  { %17201 = vst [vmem:[#allocation134_spill] sm:$0xff] %v13312_v17 }
 0x307   :  { %17202 = vst [vmem:[#allocation135_spill] sm:$0xff] %v13319_v57 }
 0x30a   :  { %v4171_v6 = vpop.f32.mrf.mxu0 }
 0x30b   :  { %v13321_v8 = vpop.f32.mrf.mxu3  ;;  %v12205_v6 = vld [vmem:[%s17030_s0 + $0x830] sm:$0xff] }
 0x30c   :  { %17203 = vst [vmem:[#allocation136_spill] sm:$0xff] %v13321_v8  ;;  %11403 = vmatmul.msk.bf16.gmra.mxu2 %vm2786_vm2, %v12205_v6 }
 0x30d   :  { %11189 = vmatmul.msk.bf16.gmra.mxu0 %vm2786_vm2, %v11991_v45  ;;  %v13329_v45 = vpop.f32.mrf.mxu1  ;;  %v13333_v9 = vpop.f32.mrf.mxu2 }
 0x30e   :  { %17204 = vst [vmem:[#allocation137_spill] sm:$0xff] %v13329_v45  ;;  %11486 = vmatmul.msk.bf16.gmra.mxu3 %vm2786_vm2, %v12288_v28  ;;  %v12159_v45 = vld [vmem:[%s17030_s0 + $0x6c0] sm:$0xff] }
 0x30f   :  { %17205 = vst [vmem:[#allocation138_spill] sm:$0xff] %v13333_v9  ;;  %11357 = vmatmul.msk.bf16.gmra.mxu1 %vm2786_vm2, %v12159_v45  ;;  %v11993_v45 = vld [vmem:[%s17030_s0 + $0x190] sm:$0xff] }
 0x312   :  { %v4172_v15 = vpop.f32.mrf.mxu0 }
 0x313   :  { %v11992_v15 = vld [vmem:[%s17030_s0 + $0x188] sm:$0xff]  ;;  %v13338_v8 = vpop.f32.mrf.mxu3 }
 0x314   :  { %17206 = vst [vmem:[#allocation139_spill] sm:$0xff] %v13338_v8 }
 0x315   :  { %v4915_v17 = vpop.f32.mrf.mxu1  ;;  %v13345_v6 = vpop.f32.mrf.mxu2 }
 0x316   :  { %17207 = vst [vmem:[#allocation140_spill] sm:$0xff] %v13345_v6  ;;  %v12289_v17 = vld [vmem:[%s17030_s0 + $0xad0] sm:$0xff] }
 0x31a   :  { %v4174_v57 = vpop.f32.mrf.mxu0 }
 0x31b   :  { %v13347_v9 = vpop.f32.mrf.mxu3  ;;  %v12206_v57 = vld [vmem:[%s17030_s0 + $0x838] sm:$0xff] }
 0x31c   :  { %17208 = vst [vmem:[#allocation141_spill] sm:$0xff] %v13347_v9  ;;  %11404 = vmatmul.msk.bf16.gmra.mxu2 %vm2786_vm2, %v12206_v57 }
 0x31d   :  { %11190 = vmatmul.msk.bf16.gmra.mxu0 %vm2786_vm2, %v11992_v15  ;;  %v4916_v15 = vpop.f32.mrf.mxu1  ;;  %v13357_v8 = vpop.f32.mrf.mxu2 }
 0x31e   :  { %11487 = vmatmul.msk.bf16.gmra.mxu3 %vm2786_vm2, %v12289_v17  ;;  %17209 = vst [vmem:[#allocation142_spill] sm:$0xff] %v13357_v8  ;;  %v12160_v15 = vld [vmem:[%s17030_s0 + $0x6c8] sm:$0xff] }
 0x31f   :  { %11358 = vmatmul.msk.bf16.gmra.mxu1 %vm2786_vm2, %v12160_v15 }
 0x322   :  { %v4175_v28 = vpop.f32.mrf.mxu0 }
 0x323   :  { %v13364_v6 = vpop.f32.mrf.mxu3 }
 0x324   :  { %17211 = vst [vmem:[#allocation144_spill] sm:$0xff] %v13364_v6 }
 0x325   :  { %v4918_v9 = vpop.f32.mrf.mxu1  ;;  %v13371_v57 = vpop.f32.mrf.mxu2 }
 0x326   :  { %17212 = vst [vmem:[#allocation145_spill] sm:$0xff] %v13371_v57  ;;  %v12290_v9 = vld [vmem:[%s17030_s0 + $0xad8] sm:$0xff] }
 0x327   :  { %v11994_v57 = vld [vmem:[%s17030_s0 + $0x198] sm:$0xff] }
 0x32a   :  { %v13362_v28 = vpop.f32.mrf.mxu0 }
 0x32b   :  { %17210 = vst [vmem:[#allocation143_spill] sm:$0xff] %v13362_v28  ;;  %v13375_v8 = vpop.f32.mrf.mxu3  ;;  %v12207_v28 = vld [vmem:[%s17030_s0 + $0x840] sm:$0xff] }
 0x32c   :  { %17214 = vst [vmem:[#allocation147_spill] sm:$0xff] %v13375_v8  ;;  %11405 = vmatmul.msk.bf16.gmra.mxu2 %vm2786_vm2, %v12207_v28  ;;  %v12161_v28 = vld [vmem:[%s17030_s0 + $0x6d0] sm:$0xff] }
 0x32d   :  { %11191 = vmatmul.msk.bf16.gmra.mxu0 %vm2786_vm2, %v11993_v45  ;;  %v4919_v45 = vpop.f32.mrf.mxu1  ;;  %v13385_v15 = vpop.f32.mrf.mxu2 }
 0x32e   :  { %11488 = vmatmul.msk.bf16.gmra.mxu3 %vm2786_vm2, %v12290_v9  ;;  %17215 = vst [vmem:[#allocation148_spill] sm:$0xff] %v13385_v15 }
 0x32f   :  { %11359 = vmatmul.msk.bf16.gmra.mxu1 %vm2786_vm2, %v12161_v28 }
 0x332   :  { %v13373_v17 = vpop.f32.mrf.mxu0 }
 0x333   :  { %17213 = vst [vmem:[#allocation146_spill] sm:$0xff] %v13373_v17  ;;  %v13392_v6 = vpop.f32.mrf.mxu3 }
 0x334   :  { %17217 = vst [vmem:[#allocation150_spill] sm:$0xff] %v13392_v6  ;;  %v12208_v6 = vld [vmem:[%s17030_s0 + $0x848] sm:$0xff] }
 0x335   :  { %v13394_v17 = vpop.f32.mrf.mxu1  ;;  %v13401_v9 = vpop.f32.mrf.mxu2 }
 0x336   :  { %17218 = vst [vmem:[#allocation151_spill] sm:$0xff] %v13394_v17 }
 0x337   :  { %17219 = vst [vmem:[#allocation152_spill] sm:$0xff] %v13401_v9  ;;  %v11995_v9 = vld [vmem:[%s17030_s0 + $0x1a0] sm:$0xff] }
 0x33a   :  { %v13390_v8 = vpop.f32.mrf.mxu0 }
 0x33b   :  { %17216 = vst [vmem:[#allocation149_spill] sm:$0xff] %v13390_v8  ;;  %v13405_v15 = vpop.f32.mrf.mxu3 }
 0x33c   :  { %17221 = vst [vmem:[#allocation154_spill] sm:$0xff] %v13405_v15  ;;  %11406 = vmatmul.msk.bf16.gmra.mxu2 %vm2786_vm2, %v12208_v6  ;;  %v12162_v6 = vld [vmem:[%s17030_s0 + $0x6d8] sm:$0xff] }
 0x33d   :  { %11192 = vmatmul.msk.bf16.gmra.mxu0 %vm2786_vm2, %v11994_v57  ;;  %v12291_v57 = vld [vmem:[%s17030_s0 + $0xae0] sm:$0xff]  ;;  %v13413_v8 = vpop.f32.mrf.mxu1  ;;  %v13417_v28 = vpop.f32.mrf.mxu2 }
 0x33e   :  { %17222 = vst [vmem:[#allocation155_spill] sm:$0xff] %v13413_v8  ;;  %11489 = vmatmul.msk.bf16.gmra.mxu3 %vm2786_vm2, %v12291_v57  ;;  %v12338_v57 = vld [vmem:[%s17031_s3 + $0x8] sm:$0xff] }
 0x33f   :  { %17223 = vst [vmem:[#allocation156_spill] sm:$0xff] %v13417_v28  ;;  %v12342_v28 = vld [vmem:[%s17031_s3 + $0x28] sm:$0xff]  ;;  %11360 = vmatmul.msk.bf16.gmra.mxu1 %vm2786_vm2, %v12162_v6  ;;  %7128 = vmatpush.bf16.msrb.mxu2 %v12338_v57 }
 0x340   :  { %7378 = vmatpush.bf16.msrb.mxu3 %v12342_v28  ;;  %v12292_v8 = vld [vmem:[%s17030_s0 + $0xae8] sm:$0xff] }
 0x341   :  { %v11996_v28 = vld [vmem:[%s17030_s0 + $0x1a8] sm:$0xff] }
 0x342   :  { %v13403_v45 = vpop.f32.mrf.mxu0 }
 0x343   :  { %17220 = vst [vmem:[#allocation153_spill] sm:$0xff] %v13403_v45  ;;  %v13424_v45 = vpop.f32.mrf.mxu3 }
 0x344   :  { %17225 = vst [vmem:[#allocation158_spill] sm:$0xff] %v13424_v45 }
 0x345   :  { %v13426_v17 = vpop.f32.mrf.mxu1  ;;  %v13439_v45 = vpop.f32.mrf.mxu2 }
 0x346   :  { %17226 = vst [vmem:[#allocation159_spill] sm:$0xff] %v13426_v17  ;;  %v12209_v17 = vld [vmem:[%s17030_s0 + $0x850] sm:$0xff] }
 0x347   :  { %17227 = vst [vmem:[#allocation160_spill] sm:$0xff] %v13439_v45 }
 0x34a   :  { %v13422_v15 = vpop.f32.mrf.mxu0 }
 0x34b   :  { %17224 = vst [vmem:[#allocation157_spill] sm:$0xff] %v13422_v15 }
 0x34c   :  { %11407 = vmatmul.msk.bf16.gmra.mxu2 %vm2786_vm2, %v12209_v17  ;;  %v12163_v17 = vld [vmem:[%s17030_s0 + $0x6e0] sm:$0xff] }
 0x34d   :  { %11193 = vmatmul.msk.bf16.gmra.mxu0 %vm2786_vm2, %v11995_v9  ;;  %v13443_v9 = vpop.f32.mrf.mxu3  ;;  %v13451_v3 = vpop.f32.mrf.mxu1 }
 0x34e   :  { %17229 = vst [vmem:[#allocation162_spill] sm:$0xff] %v13443_v9  ;;  %11490 = vmatmul.msk.bf16.gmra.mxu3 %vm2786_vm2, %v12292_v8  ;;  %v13455_v6 = vpop.f32.mrf.mxu2 }
 0x34f   :  { %17230 = vst [vmem:[#allocation163_spill] sm:$0xff] %v13451_v3  ;;  %11361 = vmatmul.msk.bf16.gmra.mxu1 %vm2786_vm2, %v12163_v17 }
 0x350   :  { %17231 = vst [vmem:[#allocation164_spill] sm:$0xff] %v13455_v6 }
 0x352   :  { %v13441_v15 = vpop.f32.mrf.mxu0 }
 0x353   :  { %17228 = vst [vmem:[#allocation161_spill] sm:$0xff] %v13441_v15 }
 0x355   :  { %v13462_v45 = vpop.f32.mrf.mxu3  ;;  %v13464_v9 = vpop.f32.mrf.mxu1 }
 0x356   :  { %17233 = vst [vmem:[#allocation166_spill] sm:$0xff] %v13462_v45  ;;  %v13471_v8 = vpop.f32.mrf.mxu2  ;;  %v12210_v45 = vld [vmem:[%s17030_s0 + $0x858] sm:$0xff] }
 0x357   :  { %17234 = vst [vmem:[#allocation167_spill] sm:$0xff] %v13464_v9 }
 0x358   :  { %17235 = vst [vmem:[#allocation168_spill] sm:$0xff] %v13471_v8  ;;  %v11997_v8 = vld [vmem:[%s17030_s0 + $0x1b0] sm:$0xff] }
 0x35a   :  { %v13460_v57 = vpop.f32.mrf.mxu0 }
 0x35b   :  { %17232 = vst [vmem:[#allocation165_spill] sm:$0xff] %v13460_v57 }
 0x35c   :  { %11408 = vmatmul.msk.bf16.gmra.mxu2 %vm2786_vm2, %v12210_v45  ;;  %v12164_v45 = vld [vmem:[%s17030_s0 + $0x6e8] sm:$0xff] }
 0x35d   :  { %11194 = vmatmul.msk.bf16.gmra.mxu0 %vm2786_vm2, %v11996_v28  ;;  %v13475_v15 = vpop.f32.mrf.mxu3  ;;  %v12293_v28 = vld [vmem:[%s17030_s0 + $0xaf0] sm:$0xff]  ;;  %v13483_v57 = vpop.f32.mrf.mxu1 }
 0x35e   :  { %17237 = vst [vmem:[#allocation170_spill] sm:$0xff] %v13475_v15  ;;  %11491 = vmatmul.msk.bf16.gmra.mxu3 %vm2786_vm2, %v12293_v28 }
 0x35f   :  { %17238 = vst [vmem:[#allocation171_spill] sm:$0xff] %v13483_v57  ;;  %v13487_v17 = vpop.f32.mrf.mxu2  ;;  %11362 = vmatmul.msk.bf16.gmra.mxu1 %vm2786_vm2, %v12164_v45 }
 0x360   :  { %17239 = vst [vmem:[#allocation172_spill] sm:$0xff] %v13487_v17 }
 0x362   :  { %v13473_v6 = vpop.f32.mrf.mxu0 }
 0x363   :  { %17236 = vst [vmem:[#allocation169_spill] sm:$0xff] %v13473_v6 }
 0x365   :  { %v13494_v6 = vpop.f32.mrf.mxu3  ;;  %v13496_v9 = vpop.f32.mrf.mxu1 }
 0x366   :  { %17241 = vst [vmem:[#allocation174_spill] sm:$0xff] %v13494_v6  ;;  %v12211_v6 = vld [vmem:[%s17030_s0 + $0x860] sm:$0xff] }
 0x367   :  { %17242 = vst [vmem:[#allocation175_spill] sm:$0xff] %v13496_v9  ;;  %v13503_v28 = vpop.f32.mrf.mxu2 }
 0x368   :  { %17243 = vst [vmem:[#allocation176_spill] sm:$0xff] %v13503_v28  ;;  %v11998_v28 = vld [vmem:[%s17030_s0 + $0x1b8] sm:$0xff] }
 0x36a   :  { %v13492_v15 = vpop.f32.mrf.mxu0 }
 0x36b   :  { %17240 = vst [vmem:[#allocation173_spill] sm:$0xff] %v13492_v15 }
 0x36c   :  { %11409 = vmatmul.msk.bf16.gmra.mxu2 %vm2786_vm2, %v12211_v6  ;;  %v12165_v6 = vld [vmem:[%s17030_s0 + $0x6f0] sm:$0xff] }
 0x36d   :  { %11195 = vmatmul.msk.bf16.gmra.mxu0 %vm2786_vm2, %v11997_v8  ;;  %v13507_v57 = vpop.f32.mrf.mxu3  ;;  %v12294_v8 = vld [vmem:[%s17030_s0 + $0xaf8] sm:$0xff]  ;;  %v13515_v15 = vpop.f32.mrf.mxu1 }
 0x36e   :  { %17245 = vst [vmem:[#allocation178_spill] sm:$0xff] %v13507_v57  ;;  %11492 = vmatmul.msk.bf16.gmra.mxu3 %vm2786_vm2, %v12294_v8 }
 0x36f   :  { %17246 = vst [vmem:[#allocation179_spill] sm:$0xff] %v13515_v15  ;;  %v13519_v45 = vpop.f32.mrf.mxu2  ;;  %11363 = vmatmul.msk.bf16.gmra.mxu1 %vm2786_vm2, %v12165_v6 }
 0x370   :  { %17247 = vst [vmem:[#allocation180_spill] sm:$0xff] %v13519_v45 }
 0x372   :  { %v13505_v17 = vpop.f32.mrf.mxu0 }
 0x373   :  { %17244 = vst [vmem:[#allocation177_spill] sm:$0xff] %v13505_v17 }
 0x375   :  { %v13526_v17 = vpop.f32.mrf.mxu3  ;;  %v13528_v9 = vpop.f32.mrf.mxu1 }
 0x376   :  { %17249 = vst [vmem:[#allocation182_spill] sm:$0xff] %v13526_v17  ;;  %v12212_v17 = vld [vmem:[%s17030_s0 + $0x868] sm:$0xff] }
 0x377   :  { %17250 = vst [vmem:[#allocation183_spill] sm:$0xff] %v13528_v9  ;;  %v13535_v8 = vpop.f32.mrf.mxu2 }
 0x378   :  { %17251 = vst [vmem:[#allocation184_spill] sm:$0xff] %v13535_v8  ;;  %v11999_v8 = vld [vmem:[%s17030_s0 + $0x1c0] sm:$0xff] }
 0x37a   :  { %v13524_v57 = vpop.f32.mrf.mxu0 }
 0x37b   :  { %17248 = vst [vmem:[#allocation181_spill] sm:$0xff] %v13524_v57 }
 0x37c   :  { %11410 = vmatmul.msk.bf16.gmra.mxu2 %vm2786_vm2, %v12212_v17  ;;  %v12166_v17 = vld [vmem:[%s17030_s0 + $0x6f8] sm:$0xff] }
 0x37d   :  { %11196 = vmatmul.msk.bf16.gmra.mxu0 %vm2786_vm2, %v11998_v28  ;;  %v13539_v15 = vpop.f32.mrf.mxu3  ;;  %v12295_v28 = vld [vmem:[%s17030_s0 + $0xb00] sm:$0xff]  ;;  %v13547_v57 = vpop.f32.mrf.mxu1 }
 0x37e   :  { %17253 = vst [vmem:[#allocation186_spill] sm:$0xff] %v13539_v15  ;;  %11493 = vmatmul.msk.bf16.gmra.mxu3 %vm2786_vm2, %v12295_v28 }
 0x37f   :  { %17254 = vst [vmem:[#allocation187_spill] sm:$0xff] %v13547_v57  ;;  %v13551_v6 = vpop.f32.mrf.mxu2  ;;  %11364 = vmatmul.msk.bf16.gmra.mxu1 %vm2786_vm2, %v12166_v17 }
 0x380   :  { %17255 = vst [vmem:[#allocation188_spill] sm:$0xff] %v13551_v6 }
 0x382   :  { %v13537_v45 = vpop.f32.mrf.mxu0 }
 0x383   :  { %17252 = vst [vmem:[#allocation185_spill] sm:$0xff] %v13537_v45 }
 0x385   :  { %v13558_v45 = vpop.f32.mrf.mxu3  ;;  %v13560_v9 = vpop.f32.mrf.mxu1 }
 0x386   :  { %17257 = vst [vmem:[#allocation190_spill] sm:$0xff] %v13558_v45  ;;  %v12340_v45 = vld [vmem:[%s17031_s3 + $0x18] sm:$0xff] }
 0x387   :  { %17258 = vst [vmem:[#allocation191_spill] sm:$0xff] %v13560_v9  ;;  %v13567_v28 = vpop.f32.mrf.mxu2  ;;  %6883 = vmatpush.bf16.msrb.mxu1 %v12340_v45  ;;  %v12167_v45 = vld [vmem:[%s17030_s0 + $0x700] sm:$0xff] }
 0x388   :  { %17259 = vst [vmem:[#allocation192_spill] sm:$0xff] %v13567_v28 }
 0x38a   :  { %v13556_v15 = vpop.f32.mrf.mxu0 }
 0x38b   :  { %17256 = vst [vmem:[#allocation189_spill] sm:$0xff] %v13556_v15  ;;  %v12296_v15 = vld [vmem:[%s17030_s0 + $0xb08] sm:$0xff] }
 0x38d   :  { %11197 = vmatmul.msk.bf16.gmra.mxu0 %vm2786_vm2, %v11999_v8  ;;  %v13571_v57 = vpop.f32.mrf.mxu3  ;;  %v12213_v8 = vld [vmem:[%s17030_s0 + $0x870] sm:$0xff]  ;;  %v13582_v17 = vpop.f32.mrf.mxu1 }
 0x38e   :  { %17261 = vst [vmem:[#allocation194_spill] sm:$0xff] %v13571_v57  ;;  %11411 = vmatmul.msk.bf16.gmra.mxu2 %vm2786_vm2, %v12213_v8  ;;  %11494 = vmatmul.msk.bf16.gmra.mxu3 %vm2786_vm2, %v12296_v15  ;;  %v12000_v57 = vld [vmem:[%s17030_s0 + $0x1c8] sm:$0xff] }
 0x38f   :  { %17262 = vst [vmem:[#allocation195_spill] sm:$0xff] %v13582_v17  ;;  %v13586_v28 = vpop.f32.mrf.mxu2  ;;  %11365 = vmatmul.msk.bf16.gmra.mxu1 %vm2786_vm2, %v12167_v45  ;;  %v12217_v17 = vld [vmem:[%s17030_s0 + $0x890] sm:$0xff] }
 0x390   :  { %17263 = vst [vmem:[#allocation196_spill] sm:$0xff] %v13586_v28 }
 0x392   :  { %v13569_v6 = vpop.f32.mrf.mxu0 }
 0x393   :  { %17260 = vst [vmem:[#allocation193_spill] sm:$0xff] %v13569_v6 }
 0x395   :  { %v13593_v9 = vpop.f32.mrf.mxu3  ;;  %v13595_v3 = vpop.f32.mrf.mxu1 }
 0x396   :  { %17265 = vst [vmem:[#allocation198_spill] sm:$0xff] %v13593_v9  ;;  %v12214_v9 = vld [vmem:[%s17030_s0 + $0x878] sm:$0xff] }
 0x397   :  { %17266 = vst [vmem:[#allocation199_spill] sm:$0xff] %v13595_v3  ;;  %v13602_v15 = vpop.f32.mrf.mxu2 }
 0x398   :  { %17267 = vst [vmem:[#allocation200_spill] sm:$0xff] %v13602_v15  ;;  %v12001_v15 = vld [vmem:[%s17030_s0 + $0x1d0] sm:$0xff] }
 0x39a   :  { %v13591_v6 = vpop.f32.mrf.mxu0 }
 0x39b   :  { %17264 = vst [vmem:[#allocation197_spill] sm:$0xff] %v13591_v6 }
 0x39d   :  { %11198 = vmatmul.msk.bf16.gmra.mxu0 %vm2786_vm2, %v12000_v57  ;;  %v13606_v28 = vpop.f32.mrf.mxu3  ;;  %v12297_v57 = vld [vmem:[%s17030_s0 + $0xb10] sm:$0xff]  ;;  %v13614_v6 = vpop.f32.mrf.mxu1 }
 0x39e   :  { %17269 = vst [vmem:[#allocation202_spill] sm:$0xff] %v13606_v28  ;;  %11412 = vmatmul.msk.bf16.gmra.mxu2 %vm2786_vm2, %v12214_v9  ;;  %11495 = vmatmul.msk.bf16.gmra.mxu3 %vm2786_vm2, %v12297_v57  ;;  %v12168_v9 = vld [vmem:[%s17030_s0 + $0x708] sm:$0xff] }
 0x39f   :  { %17270 = vst [vmem:[#allocation203_spill] sm:$0xff] %v13614_v6  ;;  %v13618_v45 = vpop.f32.mrf.mxu2  ;;  %11366 = vmatmul.msk.bf16.gmra.mxu1 %vm2786_vm2, %v12168_v9 }
 0x3a0   :  { %17271 = vst [vmem:[#allocation204_spill] sm:$0xff] %v13618_v45 }
 0x3a2   :  { %v13604_v8 = vpop.f32.mrf.mxu0 }
 0x3a3   :  { %17268 = vst [vmem:[#allocation201_spill] sm:$0xff] %v13604_v8 }
 0x3a5   :  { %v13625_v8 = vpop.f32.mrf.mxu3  ;;  %v13627_v3 = vpop.f32.mrf.mxu1 }
 0x3a6   :  { %17273 = vst [vmem:[#allocation206_spill] sm:$0xff] %v13625_v8  ;;  %v12215_v8 = vld [vmem:[%s17030_s0 + $0x880] sm:$0xff] }
 0x3a7   :  { %17274 = vst [vmem:[#allocation207_spill] sm:$0xff] %v13627_v3  ;;  %v13634_v57 = vpop.f32.mrf.mxu2 }
 0x3a8   :  { %17275 = vst [vmem:[#allocation208_spill] sm:$0xff] %v13634_v57  ;;  %v12002_v57 = vld [vmem:[%s17030_s0 + $0x1d8] sm:$0xff] }
 0x3aa   :  { %v13623_v28 = vpop.f32.mrf.mxu0 }
 0x3ab   :  { %17272 = vst [vmem:[#allocation205_spill] sm:$0xff] %v13623_v28 }
 0x3ad   :  { %11199 = vmatmul.msk.bf16.gmra.mxu0 %vm2786_vm2, %v12001_v15  ;;  %v13638_v6 = vpop.f32.mrf.mxu3  ;;  %v12298_v15 = vld [vmem:[%s17030_s0 + $0xb18] sm:$0xff]  ;;  %v13646_v28 = vpop.f32.mrf.mxu1 }
 0x3ae   :  { %17277 = vst [vmem:[#allocation210_spill] sm:$0xff] %v13638_v6  ;;  %11413 = vmatmul.msk.bf16.gmra.mxu2 %vm2786_vm2, %v12215_v8  ;;  %11496 = vmatmul.msk.bf16.gmra.mxu3 %vm2786_vm2, %v12298_v15 }
 0x3af   :  { %17278 = vst [vmem:[#allocation211_spill] sm:$0xff] %v13646_v28  ;;  %v5179_v9 = vpop.f32.mrf.mxu2  ;;  %v12169_v28 = vld [vmem:[%s17030_s0 + $0x710] sm:$0xff] }
 0x3b0   :  { %11367 = vmatmul.msk.bf16.gmra.mxu1 %vm2786_vm2, %v12169_v28 }
 0x3b2   :  { %v13636_v45 = vpop.f32.mrf.mxu0 }
 0x3b3   :  { %17276 = vst [vmem:[#allocation209_spill] sm:$0xff] %v13636_v45 }
 0x3b5   :  { %v13655_v45 = vpop.f32.mrf.mxu3  ;;  %v13657_v3 = vpop.f32.mrf.mxu1 }
 0x3b6   :  { %17280 = vst [vmem:[#allocation213_spill] sm:$0xff] %v13655_v45  ;;  %v12299_v45 = vld [vmem:[%s17030_s0 + $0xb20] sm:$0xff] }
 0x3b7   :  { %17281 = vst [vmem:[#allocation214_spill] sm:$0xff] %v13657_v3  ;;  %v5180_v8 = vpop.f32.mrf.mxu2 }
 0x3b8   :  { %v12003_v8 = vld [vmem:[%s17030_s0 + $0x1e0] sm:$0xff] }
 0x3ba   :  { %v13653_v6 = vpop.f32.mrf.mxu0 }
 0x3bb   :  { %17279 = vst [vmem:[#allocation212_spill] sm:$0xff] %v13653_v6  ;;  %v12216_v6 = vld [vmem:[%s17030_s0 + $0x888] sm:$0xff] }
 0x3bd   :  { %11200 = vmatmul.msk.bf16.gmra.mxu0 %vm2786_vm2, %v12002_v57  ;;  %v13666_v9 = vpop.f32.mrf.mxu3  ;;  %v13674_v57 = vpop.f32.mrf.mxu1 }
 0x3be   :  { %17283 = vst [vmem:[#allocation216_spill] sm:$0xff] %v13666_v9  ;;  %11414 = vmatmul.msk.bf16.gmra.mxu2 %vm2786_vm2, %v12216_v6  ;;  %11497 = vmatmul.msk.bf16.gmra.mxu3 %vm2786_vm2, %v12299_v45 }
 0x3bf   :  { %17284 = vst [vmem:[#allocation217_spill] sm:$0xff] %v13674_v57  ;;  %v5182_v28 = vpop.f32.mrf.mxu2  ;;  %v12170_v57 = vld [vmem:[%s17030_s0 + $0x718] sm:$0xff] }
 0x3c0   :  { %11368 = vmatmul.msk.bf16.gmra.mxu1 %vm2786_vm2, %v12170_v57  ;;  %v12004_v57 = vld [vmem:[%s17030_s0 + $0x1e8] sm:$0xff] }
 0x3c2   :  { %v13664_v15 = vpop.f32.mrf.mxu0 }
 0x3c3   :  { %17282 = vst [vmem:[#allocation215_spill] sm:$0xff] %v13664_v15 }
 0x3c5   :  { %v5551_v15 = vpop.f32.mrf.mxu3  ;;  %v13683_v3 = vpop.f32.mrf.mxu1 }
 0x3c6   :  { %17286 = vst [vmem:[#allocation219_spill] sm:$0xff] %v13683_v3  ;;  %v12300_v15 = vld [vmem:[%s17030_s0 + $0xb28] sm:$0xff] }
 0x3c7   :  { %v5183_v6 = vpop.f32.mrf.mxu2 }
 0x3ca   :  { %v13681_v9 = vpop.f32.mrf.mxu0 }
 0x3cb   :  { %17285 = vst [vmem:[#allocation218_spill] sm:$0xff] %v13681_v9 }
 0x3cd   :  { %11201 = vmatmul.msk.bf16.gmra.mxu0 %vm2786_vm2, %v12003_v8  ;;  %v5552_v28 = vpop.f32.mrf.mxu3  ;;  %v13698_v9 = vpop.f32.mrf.mxu1 }
 0x3ce   :  { %17288 = vst [vmem:[#allocation221_spill] sm:$0xff] %v13698_v9  ;;  %11415 = vmatmul.msk.bf16.gmra.mxu2 %vm2786_vm2, %v12217_v17  ;;  %11498 = vmatmul.msk.bf16.gmra.mxu3 %vm2786_vm2, %v12300_v15  ;;  %v12171_v9 = vld [vmem:[%s17030_s0 + $0x720] sm:$0xff] }
 0x3cf   :  { %v13702_v8 = vpop.f32.mrf.mxu2 }
 0x3d0   :  { %17289 = vst [vmem:[#allocation222_spill] sm:$0xff] %v13702_v8  ;;  %11369 = vmatmul.msk.bf16.gmra.mxu1 %vm2786_vm2, %v12171_v9 }
 0x3d2   :  { %v13690_v45 = vpop.f32.mrf.mxu0 }
 0x3d3   :  { %17287 = vst [vmem:[#allocation220_spill] sm:$0xff] %v13690_v45 }
 0x3d5   :  { %v5554_v28 = vpop.f32.mrf.mxu3  ;;  %v13709_v45 = vpop.f32.mrf.mxu1 }
 0x3d6   :  { %17291 = vst [vmem:[#allocation224_spill] sm:$0xff] %v13709_v45  ;;  %v12301_v28 = vld [vmem:[%s17030_s0 + $0xb30] sm:$0xff] }
 0x3d7   :  { %v13716_v17 = vpop.f32.mrf.mxu2 }
 0x3d8   :  { %17292 = vst [vmem:[#allocation225_spill] sm:$0xff] %v13716_v17 }
 0x3da   :  { %v13707_v6 = vpop.f32.mrf.mxu0 }
 0x3db   :  { %17290 = vst [vmem:[#allocation223_spill] sm:$0xff] %v13707_v6  ;;  %v12218_v6 = vld [vmem:[%s17030_s0 + $0x898] sm:$0xff] }
 0x3dd   :  { %11202 = vmatmul.msk.bf16.gmra.mxu0 %vm2786_vm2, %v12004_v57  ;;  %v5555_v8 = vpop.f32.mrf.mxu3  ;;  %v13726_v57 = vpop.f32.mrf.mxu1 }
 0x3de   :  { %17294 = vst [vmem:[#allocation227_spill] sm:$0xff] %v13726_v57  ;;  %11416 = vmatmul.msk.bf16.gmra.mxu2 %vm2786_vm2, %v12218_v6  ;;  %11499 = vmatmul.msk.bf16.gmra.mxu3 %vm2786_vm2, %v12301_v28  ;;  %v12005_v8 = vld [vmem:[%s17030_s0 + $0x1f0] sm:$0xff]  ;;  %v12172_v57 = vld [vmem:[%s17030_s0 + $0x728] sm:$0xff] }
 0x3df   :  { %v13730_v9 = vpop.f32.mrf.mxu2 }
 0x3e0   :  { %17295 = vst [vmem:[#allocation228_spill] sm:$0xff] %v13730_v9  ;;  %11370 = vmatmul.msk.bf16.gmra.mxu1 %vm2786_vm2, %v12172_v57 }
 0x3e2   :  { %v13718_v15 = vpop.f32.mrf.mxu0 }
 0x3e3   :  { %17293 = vst [vmem:[#allocation226_spill] sm:$0xff] %v13718_v15 }
 0x3e5   :  { %v13735_v15 = vpop.f32.mrf.mxu3  ;;  %v13737_v45 = vpop.f32.mrf.mxu1 }
 0x3e6   :  { %17296 = vst [vmem:[#allocation229_spill] sm:$0xff] %v13735_v15  ;;  %v12302_v15 = vld [vmem:[%s17030_s0 + $0xb38] sm:$0xff] }
 0x3e7   :  { %17297 = vst [vmem:[#allocation230_spill] sm:$0xff] %v13737_v45  ;;  %v13744_v6 = vpop.f32.mrf.mxu2 }
 0x3e8   :  { %17298 = vst [vmem:[#allocation231_spill] sm:$0xff] %v13744_v6 }
 0x3ea   :  { %v4237_v17 = vpop.f32.mrf.mxu0 }
 0x3eb   :  { %v12219_v17 = vld [vmem:[%s17030_s0 + $0x8a0] sm:$0xff] }
 0x3ed   :  { %11203 = vmatmul.msk.bf16.gmra.mxu0 %vm2786_vm2, %v12005_v8  ;;  %v13746_v9 = vpop.f32.mrf.mxu3  ;;  %v13754_v8 = vpop.f32.mrf.mxu1 }
 0x3ee   :  { %17299 = vst [vmem:[#allocation232_spill] sm:$0xff] %v13746_v9  ;;  %11417 = vmatmul.msk.bf16.gmra.mxu2 %vm2786_vm2, %v12219_v17  ;;  %11500 = vmatmul.msk.bf16.gmra.mxu3 %vm2786_vm2, %v12302_v15 }
 0x3ef   :  { %17300 = vst [vmem:[#allocation233_spill] sm:$0xff] %v13754_v8  ;;  %v13758_v57 = vpop.f32.mrf.mxu2  ;;  %v12173_v8 = vld [vmem:[%s17030_s0 + $0x730] sm:$0xff] }
 0x3f0   :  { %17301 = vst [vmem:[#allocation234_spill] sm:$0xff] %v13758_v57  ;;  %11371 = vmatmul.msk.bf16.gmra.mxu1 %vm2786_vm2, %v12173_v8  ;;  %v12007_v8 = vld [vmem:[%s17030_s0 + $0x200] sm:$0xff] }
 0x3f2   :  { %v4238_v28 = vpop.f32.mrf.mxu0 }
 0x3f3   :  { %v12006_v28 = vld [vmem:[%s17030_s0 + $0x1f8] sm:$0xff] }
 0x3f5   :  { %v13763_v9 = vpop.f32.mrf.mxu3  ;;  %v4981_v45 = vpop.f32.mrf.mxu1 }
 0x3f6   :  { %17302 = vst [vmem:[#allocation235_spill] sm:$0xff] %v13763_v9  ;;  %v12303_v45 = vld [vmem:[%s17030_s0 + $0xb40] sm:$0xff] }
 0x3f7   :  { %v13770_v17 = vpop.f32.mrf.mxu2 }
 0x3f8   :  { %17303 = vst [vmem:[#allocation236_spill] sm:$0xff] %v13770_v17 }
 0x3fa   :  { %v4240_v6 = vpop.f32.mrf.mxu0 }
 0x3fb   :  { %v12220_v6 = vld [vmem:[%s17030_s0 + $0x8a8] sm:$0xff] }
 0x3fd   :  { %11204 = vmatmul.msk.bf16.gmra.mxu0 %vm2786_vm2, %v12006_v28  ;;  %v13772_v57 = vpop.f32.mrf.mxu3  ;;  %v4982_v28 = vpop.f32.mrf.mxu1 }
 0x3fe   :  { %17304 = vst [vmem:[#allocation237_spill] sm:$0xff] %v13772_v57  ;;  %11418 = vmatmul.msk.bf16.gmra.mxu2 %vm2786_vm2, %v12220_v6  ;;  %11501 = vmatmul.msk.bf16.gmra.mxu3 %vm2786_vm2, %v12303_v45  ;;  %v12174_v28 = vld [vmem:[%s17030_s0 + $0x738] sm:$0xff] }
 0x3ff   :  { %v13782_v9 = vpop.f32.mrf.mxu2 }
 0x400   :  { %11372 = vmatmul.msk.bf16.gmra.mxu1 %vm2786_vm2, %v12174_v28 }
 0x402   :  { %v4241_v15 = vpop.f32.mrf.mxu0 }
 0x405   :  { %v13789_v17 = vpop.f32.mrf.mxu3  ;;  %v4984_v57 = vpop.f32.mrf.mxu1 }
 0x406   :  { %17306 = vst [vmem:[#allocation239_spill] sm:$0xff] %v13789_v17  ;;  %v12304_v57 = vld [vmem:[%s17030_s0 + $0xb48] sm:$0xff] }
 0x407   :  { %v13796_v6 = vpop.f32.mrf.mxu2  ;;  %v12008_v17 = vld [vmem:[%s17030_s0 + $0x208] sm:$0xff] }
 0x40a   :  { %v13787_v15 = vpop.f32.mrf.mxu0 }
 0x40b   :  { %17305 = vst [vmem:[#allocation238_spill] sm:$0xff] %v13787_v15  ;;  %v12221_v15 = vld [vmem:[%s17030_s0 + $0x8b0] sm:$0xff] }
 0x40d   :  { %11205 = vmatmul.msk.bf16.gmra.mxu0 %vm2786_vm2, %v12007_v8  ;;  %v13800_v3 = vpop.f32.mrf.mxu3  ;;  %v4985_v8 = vpop.f32.mrf.mxu1 }
 0x40e   :  { %17308 = vst [vmem:[#allocation241_spill] sm:$0xff] %v13800_v3  ;;  %11419 = vmatmul.msk.bf16.gmra.mxu2 %vm2786_vm2, %v12221_v15  ;;  %11502 = vmatmul.msk.bf16.gmra.mxu3 %vm2786_vm2, %v12304_v57  ;;  %v12175_v15 = vld [vmem:[%s17030_s0 + $0x740] sm:$0xff] }
 0x410   :  { %11373 = vmatmul.msk.bf16.gmra.mxu1 %vm2786_vm2, %v12175_v15 }
 0x411   :  { %v13810_v28 = vpop.f32.mrf.mxu2 }
 0x412   :  { %v13798_v45 = vpop.f32.mrf.mxu0 }
 0x413   :  { %17307 = vst [vmem:[#allocation240_spill] sm:$0xff] %v13798_v45 }
 0x415   :  { %v13817_v45 = vpop.f32.mrf.mxu3  ;;  %v13819_v12 = vpop.f32.mrf.mxu1 }
 0x416   :  { %17310 = vst [vmem:[#allocation243_spill] sm:$0xff] %v13817_v45  ;;  %v12222_v45 = vld [vmem:[%s17030_s0 + $0x8b8] sm:$0xff] }
 0x417   :  { %17311 = vst [vmem:[#allocation244_spill] sm:$0xff] %v13819_v12 }
 0x419   :  { %v13826_v57 = vpop.f32.mrf.mxu2 }
 0x41a   :  { %v13815_v3 = vpop.f32.mrf.mxu0 }
 0x41b   :  { %17309 = vst [vmem:[#allocation242_spill] sm:$0xff] %v13815_v3 }
 0x41d   :  { %11206 = vmatmul.msk.bf16.gmra.mxu0 %vm2786_vm2, %v12008_v17  ;;  %v13830_v0 = vpop.f32.mrf.mxu3  ;;  %v12305_v17 = vld [vmem:[%s17030_s0 + $0xb50] sm:$0xff]  ;;  %v13838_v3 = vpop.f32.mrf.mxu1 }
 0x41e   :  { %17313 = vst [vmem:[#allocation246_spill] sm:$0xff] %v13830_v0  ;;  %11420 = vmatmul.msk.bf16.gmra.mxu2 %vm2786_vm2, %v12222_v45  ;;  %11503 = vmatmul.msk.bf16.gmra.mxu3 %vm2786_vm2, %v12305_v17  ;;  %v12009_v0 = vld [vmem:[%s17030_s0 + $0x210] sm:$0xff]  ;;  %v12176_v45 = vld [vmem:[%s17030_s0 + $0x748] sm:$0xff] }
 0x41f   :  { %17314 = vst [vmem:[#allocation247_spill] sm:$0xff] %v13838_v3 }
 0x420   :  { %11374 = vmatmul.msk.bf16.gmra.mxu1 %vm2786_vm2, %v12176_v45 }
 0x421   :  { %v13842_v15 = vpop.f32.mrf.mxu2 }
 0x422   :  { %v13828_v8 = vpop.f32.mrf.mxu0 }
 0x423   :  { %17312 = vst [vmem:[#allocation245_spill] sm:$0xff] %v13828_v8 }
 0x425   :  { %v13849_v12 = vpop.f32.mrf.mxu3  ;;  %v13851_v60 = vpop.f32.mrf.mxu1 }
 0x426   :  { %17316 = vst [vmem:[#allocation249_spill] sm:$0xff] %v13849_v12  ;;  %v12223_v12 = vld [vmem:[%s17030_s0 + $0x8c0] sm:$0xff] }
 0x427   :  { %17317 = vst [vmem:[#allocation250_spill] sm:$0xff] %v13851_v60 }
 0x429   :  { %v13858_v17 = vpop.f32.mrf.mxu2 }
 0x42a   :  { %v13847_v8 = vpop.f32.mrf.mxu0 }
 0x42b   :  { %17315 = vst [vmem:[#allocation248_spill] sm:$0xff] %v13847_v8 }
 0x42d   :  { %11207 = vmatmul.msk.bf16.gmra.mxu0 %vm2786_vm2, %v12009_v0  ;;  %v13862_v61 = vpop.f32.mrf.mxu3  ;;  %v12306_v0 = vld [vmem:[%s17030_s0 + $0xb58] sm:$0xff]  ;;  %v13870_v8 = vpop.f32.mrf.mxu1 }
 0x42e   :  { %17319 = vst [vmem:[#allocation252_spill] sm:$0xff] %v13862_v61  ;;  %11421 = vmatmul.msk.bf16.gmra.mxu2 %vm2786_vm2, %v12223_v12  ;;  %11504 = vmatmul.msk.bf16.gmra.mxu3 %vm2786_vm2, %v12306_v0  ;;  %v12010_v61 = vld [vmem:[%s17030_s0 + $0x218] sm:$0xff]  ;;  %v12177_v12 = vld [vmem:[%s17030_s0 + $0x750] sm:$0xff] }
 0x42f   :  { %17320 = vst [vmem:[#allocation253_spill] sm:$0xff] %v13870_v8 }
 0x430   :  { %11375 = vmatmul.msk.bf16.gmra.mxu1 %vm2786_vm2, %v12177_v12 }
 0x431   :  { %v13874_v45 = vpop.f32.mrf.mxu2 }
 0x432   :  { %v13860_v3 = vpop.f32.mrf.mxu0 }
 0x433   :  { %17318 = vst [vmem:[#allocation251_spill] sm:$0xff] %v13860_v3 }
 0x435   :  { %v13881_v60 = vpop.f32.mrf.mxu3  ;;  %v13883_v18 = vpop.f32.mrf.mxu1 }
 0x436   :  { %17322 = vst [vmem:[#allocation255_spill] sm:$0xff] %v13881_v60  ;;  %v12224_v60 = vld [vmem:[%s17030_s0 + $0x8c8] sm:$0xff] }
 0x437   :  { %17323 = vst [vmem:[#allocation256_spill] sm:$0xff] %v13883_v18 }
 0x439   :  { %v13890_v0 = vpop.f32.mrf.mxu2 }
 0x43a   :  { %v13879_v3 = vpop.f32.mrf.mxu0 }
 0x43b   :  { %17321 = vst [vmem:[#allocation254_spill] sm:$0xff] %v13879_v3 }
 0x43d   :  { %11208 = vmatmul.msk.bf16.gmra.mxu0 %vm2786_vm2, %v12010_v61  ;;  %v13894_v58 = vpop.f32.mrf.mxu3  ;;  %v12307_v61 = vld [vmem:[%s17030_s0 + $0xb60] sm:$0xff]  ;;  %v13902_v3 = vpop.f32.mrf.mxu1 }
 0x43e   :  { %17325 = vst [vmem:[#allocation258_spill] sm:$0xff] %v13894_v58  ;;  %11422 = vmatmul.msk.bf16.gmra.mxu2 %vm2786_vm2, %v12224_v60  ;;  %11505 = vmatmul.msk.bf16.gmra.mxu3 %vm2786_vm2, %v12307_v61  ;;  %v12011_v58 = vld [vmem:[%s17030_s0 + $0x220] sm:$0xff]  ;;  %v12178_v60 = vld [vmem:[%s17030_s0 + $0x758] sm:$0xff] }
 0x43f   :  { %17326 = vst [vmem:[#allocation259_spill] sm:$0xff] %v13902_v3 }
 0x440   :  { %11376 = vmatmul.msk.bf16.gmra.mxu1 %vm2786_vm2, %v12178_v60 }
 0x441   :  { %v13906_v12 = vpop.f32.mrf.mxu2 }
 0x442   :  { %v13892_v8 = vpop.f32.mrf.mxu0 }
 0x443   :  { %17324 = vst [vmem:[#allocation257_spill] sm:$0xff] %v13892_v8 }
 0x445   :  { %v13913_v18 = vpop.f32.mrf.mxu3  ;;  %v13915_v14 = vpop.f32.mrf.mxu1 }
 0x446   :  { %17328 = vst [vmem:[#allocation261_spill] sm:$0xff] %v13913_v18  ;;  %v12225_v18 = vld [vmem:[%s17030_s0 + $0x8d0] sm:$0xff] }
 0x447   :  { %17329 = vst [vmem:[#allocation262_spill] sm:$0xff] %v13915_v14 }
 0x449   :  { %v13922_v61 = vpop.f32.mrf.mxu2 }
 0x44a   :  { %v13911_v8 = vpop.f32.mrf.mxu0 }
 0x44b   :  { %17327 = vst [vmem:[#allocation260_spill] sm:$0xff] %v13911_v8 }
 0x44d   :  { %11209 = vmatmul.msk.bf16.gmra.mxu0 %vm2786_vm2, %v12011_v58  ;;  %v13926_v55 = vpop.f32.mrf.mxu3  ;;  %v12308_v58 = vld [vmem:[%s17030_s0 + $0xb68] sm:$0xff]  ;;  %v13934_v8 = vpop.f32.mrf.mxu1 }
 0x44e   :  { %17331 = vst [vmem:[#allocation264_spill] sm:$0xff] %v13926_v55  ;;  %11423 = vmatmul.msk.bf16.gmra.mxu2 %vm2786_vm2, %v12225_v18  ;;  %11506 = vmatmul.msk.bf16.gmra.mxu3 %vm2786_vm2, %v12308_v58  ;;  %v12012_v55 = vld [vmem:[%s17030_s0 + $0x228] sm:$0xff]  ;;  %v12179_v18 = vld [vmem:[%s17030_s0 + $0x760] sm:$0xff] }
 0x44f   :  { %17332 = vst [vmem:[#allocation265_spill] sm:$0xff] %v13934_v8 }
 0x450   :  { %11377 = vmatmul.msk.bf16.gmra.mxu1 %vm2786_vm2, %v12179_v18 }
 0x451   :  { %v13938_v60 = vpop.f32.mrf.mxu2 }
 0x452   :  { %v13924_v3 = vpop.f32.mrf.mxu0 }
 0x453   :  { %17330 = vst [vmem:[#allocation263_spill] sm:$0xff] %v13924_v3 }
 0x455   :  { %v13945_v14 = vpop.f32.mrf.mxu3  ;;  %v13947_v2 = vpop.f32.mrf.mxu1 }
 0x456   :  { %17334 = vst [vmem:[#allocation267_spill] sm:$0xff] %v13945_v14  ;;  %v12226_v14 = vld [vmem:[%s17030_s0 + $0x8d8] sm:$0xff] }
 0x457   :  { %17335 = vst [vmem:[#allocation268_spill] sm:$0xff] %v13947_v2 }
 0x459   :  { %v13954_v58 = vpop.f32.mrf.mxu2 }
 0x45a   :  { %v13943_v3 = vpop.f32.mrf.mxu0 }
 0x45b   :  { %17333 = vst [vmem:[#allocation266_spill] sm:$0xff] %v13943_v3 }
 0x45d   :  { %11210 = vmatmul.msk.bf16.gmra.mxu0 %vm2786_vm2, %v12012_v55  ;;  %v13958_v52 = vpop.f32.mrf.mxu3  ;;  %v12309_v55 = vld [vmem:[%s17030_s0 + $0xb70] sm:$0xff]  ;;  %v13966_v3 = vpop.f32.mrf.mxu1 }
 0x45e   :  { %17337 = vst [vmem:[#allocation270_spill] sm:$0xff] %v13958_v52  ;;  %11424 = vmatmul.msk.bf16.gmra.mxu2 %vm2786_vm2, %v12226_v14  ;;  %11507 = vmatmul.msk.bf16.gmra.mxu3 %vm2786_vm2, %v12309_v55  ;;  %v12013_v52 = vld [vmem:[%s17030_s0 + $0x230] sm:$0xff]  ;;  %v12180_v14 = vld [vmem:[%s17030_s0 + $0x768] sm:$0xff] }
 0x45f   :  { %17338 = vst [vmem:[#allocation271_spill] sm:$0xff] %v13966_v3 }
 0x460   :  { %11378 = vmatmul.msk.bf16.gmra.mxu1 %vm2786_vm2, %v12180_v14 }
 0x461   :  { %v13970_v18 = vpop.f32.mrf.mxu2 }
 0x462   :  { %v13956_v8 = vpop.f32.mrf.mxu0 }
 0x463   :  { %17336 = vst [vmem:[#allocation269_spill] sm:$0xff] %v13956_v8 }
 0x465   :  { %v13977_v2 = vpop.f32.mrf.mxu3  ;;  %v13979_v34 = vpop.f32.mrf.mxu1 }
 0x466   :  { %17340 = vst [vmem:[#allocation273_spill] sm:$0xff] %v13977_v2  ;;  %v12227_v2 = vld [vmem:[%s17030_s0 + $0x8e0] sm:$0xff] }
 0x467   :  { %17341 = vst [vmem:[#allocation274_spill] sm:$0xff] %v13979_v34 }
 0x469   :  { %v13986_v55 = vpop.f32.mrf.mxu2 }
 0x46a   :  { %v13975_v8 = vpop.f32.mrf.mxu0 }
 0x46b   :  { %17339 = vst [vmem:[#allocation272_spill] sm:$0xff] %v13975_v8 }
 0x46d   :  { %11211 = vmatmul.msk.bf16.gmra.mxu0 %vm2786_vm2, %v12013_v52  ;;  %v13990_v49 = vpop.f32.mrf.mxu3  ;;  %v12310_v52 = vld [vmem:[%s17030_s0 + $0xb78] sm:$0xff]  ;;  %v13998_v8 = vpop.f32.mrf.mxu1 }
 0x46e   :  { %17343 = vst [vmem:[#allocation276_spill] sm:$0xff] %v13990_v49  ;;  %11425 = vmatmul.msk.bf16.gmra.mxu2 %vm2786_vm2, %v12227_v2  ;;  %11508 = vmatmul.msk.bf16.gmra.mxu3 %vm2786_vm2, %v12310_v52  ;;  %v12014_v49 = vld [vmem:[%s17030_s0 + $0x238] sm:$0xff]  ;;  %v12181_v2 = vld [vmem:[%s17030_s0 + $0x770] sm:$0xff] }
 0x46f   :  { %17344 = vst [vmem:[#allocation277_spill] sm:$0xff] %v13998_v8 }
 0x470   :  { %11379 = vmatmul.msk.bf16.gmra.mxu1 %vm2786_vm2, %v12181_v2 }
 0x471   :  { %v14002_v14 = vpop.f32.mrf.mxu2 }
 0x472   :  { %v13988_v3 = vpop.f32.mrf.mxu0 }
 0x473   :  { %17342 = vst [vmem:[#allocation275_spill] sm:$0xff] %v13988_v3 }
 0x475   :  { %v14009_v34 = vpop.f32.mrf.mxu3  ;;  %v14011_v22 = vpop.f32.mrf.mxu1 }
 0x476   :  { %17346 = vst [vmem:[#allocation279_spill] sm:$0xff] %v14009_v34  ;;  %v12228_v34 = vld [vmem:[%s17030_s0 + $0x8e8] sm:$0xff] }
 0x477   :  { %17347 = vst [vmem:[#allocation280_spill] sm:$0xff] %v14011_v22 }
 0x479   :  { %v14018_v52 = vpop.f32.mrf.mxu2 }
 0x47a   :  { %v14007_v3 = vpop.f32.mrf.mxu0 }
 0x47b   :  { %17345 = vst [vmem:[#allocation278_spill] sm:$0xff] %v14007_v3 }
 0x47d   :  { %11212 = vmatmul.msk.bf16.gmra.mxu0 %vm2786_vm2, %v12014_v49  ;;  %v14022_v46 = vpop.f32.mrf.mxu3  ;;  %v12311_v49 = vld [vmem:[%s17030_s0 + $0xb80] sm:$0xff]  ;;  %v14030_v3 = vpop.f32.mrf.mxu1 }
 0x47e   :  { %17349 = vst [vmem:[#allocation282_spill] sm:$0xff] %v14022_v46  ;;  %11426 = vmatmul.msk.bf16.gmra.mxu2 %vm2786_vm2, %v12228_v34  ;;  %11509 = vmatmul.msk.bf16.gmra.mxu3 %vm2786_vm2, %v12311_v49  ;;  %v12015_v46 = vld [vmem:[%s17030_s0 + $0x240] sm:$0xff]  ;;  %v12182_v34 = vld [vmem:[%s17030_s0 + $0x778] sm:$0xff] }
 0x47f   :  { %17350 = vst [vmem:[#allocation283_spill] sm:$0xff] %v14030_v3 }
 0x480   :  { %11380 = vmatmul.msk.bf16.gmra.mxu1 %vm2786_vm2, %v12182_v34 }
 0x481   :  { %v14034_v2 = vpop.f32.mrf.mxu2 }
 0x482   :  { %v14020_v8 = vpop.f32.mrf.mxu0 }
 0x483   :  { %17348 = vst [vmem:[#allocation281_spill] sm:$0xff] %v14020_v8 }
 0x485   :  { %v14041_v22 = vpop.f32.mrf.mxu3  ;;  %v14043_v54 = vpop.f32.mrf.mxu1 }
 0x486   :  { %17352 = vst [vmem:[#allocation285_spill] sm:$0xff] %v14041_v22  ;;  %v12229_v22 = vld [vmem:[%s17030_s0 + $0x8f0] sm:$0xff] }
 0x487   :  { %17353 = vst [vmem:[#allocation286_spill] sm:$0xff] %v14043_v54 }
 0x489   :  { %v14050_v49 = vpop.f32.mrf.mxu2 }
 0x48a   :  { %v14039_v8 = vpop.f32.mrf.mxu0 }
 0x48b   :  { %17351 = vst [vmem:[#allocation284_spill] sm:$0xff] %v14039_v8 }
 0x48d   :  { %11213 = vmatmul.msk.bf16.gmra.mxu0 %vm2786_vm2, %v12015_v46  ;;  %v14054_v43 = vpop.f32.mrf.mxu3  ;;  %v12312_v46 = vld [vmem:[%s17030_s0 + $0xb88] sm:$0xff]  ;;  %v14062_v8 = vpop.f32.mrf.mxu1 }
 0x48e   :  { %17355 = vst [vmem:[#allocation288_spill] sm:$0xff] %v14054_v43  ;;  %11427 = vmatmul.msk.bf16.gmra.mxu2 %vm2786_vm2, %v12229_v22  ;;  %11510 = vmatmul.msk.bf16.gmra.mxu3 %vm2786_vm2, %v12312_v46 }
 0x48f   :  { %17356 = vst [vmem:[#allocation289_spill] sm:$0xff] %v14062_v8  ;;  %v12183_v8 = vld [vmem:[%s17030_s0 + $0x780] sm:$0xff] }
 0x490   :  { %11381 = vmatmul.msk.bf16.gmra.mxu1 %vm2786_vm2, %v12183_v8 }
 0x491   :  { %v5245_v34 = vpop.f32.mrf.mxu2 }
 0x492   :  { %v14052_v3 = vpop.f32.mrf.mxu0 }
 0x493   :  { %17354 = vst [vmem:[#allocation287_spill] sm:$0xff] %v14052_v3  ;;  %v12016_v3 = vld [vmem:[%s17030_s0 + $0x248] sm:$0xff] }
 0x495   :  { %v14071_v54 = vpop.f32.mrf.mxu3  ;;  %v14073_v42 = vpop.f32.mrf.mxu1 }
 0x496   :  { %17358 = vst [vmem:[#allocation291_spill] sm:$0xff] %v14071_v54  ;;  %v12313_v54 = vld [vmem:[%s17030_s0 + $0xb90] sm:$0xff] }
 0x497   :  { %17359 = vst [vmem:[#allocation292_spill] sm:$0xff] %v14073_v42 }
 0x499   :  { %v5246_v22 = vpop.f32.mrf.mxu2 }
 0x49a   :  { %v14069_v43 = vpop.f32.mrf.mxu0  ;;  %v12017_v22 = vld [vmem:[%s17030_s0 + $0x250] sm:$0xff] }
 0x49b   :  { %17357 = vst [vmem:[#allocation290_spill] sm:$0xff] %v14069_v43  ;;  %v12230_v43 = vld [vmem:[%s17030_s0 + $0x8f8] sm:$0xff] }
 0x49d   :  { %11214 = vmatmul.msk.bf16.gmra.mxu0 %vm2786_vm2, %v12016_v3  ;;  %v14082_v34 = vpop.f32.mrf.mxu3  ;;  %v14090_v3 = vpop.f32.mrf.mxu1 }
 0x49e   :  { %17361 = vst [vmem:[#allocation294_spill] sm:$0xff] %v14082_v34  ;;  %11428 = vmatmul.msk.bf16.gmra.mxu2 %vm2786_vm2, %v12230_v43  ;;  %11511 = vmatmul.msk.bf16.gmra.mxu3 %vm2786_vm2, %v12313_v54 }
 0x49f   :  { %17362 = vst [vmem:[#allocation295_spill] sm:$0xff] %v14090_v3  ;;  %v12184_v3 = vld [vmem:[%s17030_s0 + $0x788] sm:$0xff] }
 0x4a0   :  { %11382 = vmatmul.msk.bf16.gmra.mxu1 %vm2786_vm2, %v12184_v3  ;;  %v12018_v3 = vld [vmem:[%s17030_s0 + $0x258] sm:$0xff] }
 0x4a1   :  { %v5248_v8 = vpop.f32.mrf.mxu2 }
 0x4a2   :  { %v14080_v46 = vpop.f32.mrf.mxu0 }
 0x4a3   :  { %17360 = vst [vmem:[#allocation293_spill] sm:$0xff] %v14080_v46 }
 0x4a5   :  { %v5617_v46 = vpop.f32.mrf.mxu3  ;;  %v14099_v42 = vpop.f32.mrf.mxu1 }
 0x4a6   :  { %17364 = vst [vmem:[#allocation297_spill] sm:$0xff] %v14099_v42  ;;  %v12314_v46 = vld [vmem:[%s17030_s0 + $0xb98] sm:$0xff] }
 0x4a9   :  { %v5249_v43 = vpop.f32.mrf.mxu2 }
 0x4aa   :  { %v14097_v34 = vpop.f32.mrf.mxu0 }
 0x4ab   :  { %17363 = vst [vmem:[#allocation296_spill] sm:$0xff] %v14097_v34 }
 0x4ad   :  { %11215 = vmatmul.msk.bf16.gmra.mxu0 %vm2786_vm2, %v12017_v22  ;;  %v5618_v8 = vpop.f32.mrf.mxu3  ;;  %v14114_v34 = vpop.f32.mrf.mxu1 }
 0x4ae   :  { %17366 = vst [vmem:[#allocation299_spill] sm:$0xff] %v14114_v34  ;;  %11429 = vmatmul.msk.bf16.gmra.mxu2 %vm2786_vm2, %v12231_v40  ;;  %11512 = vmatmul.msk.bf16.gmra.mxu3 %vm2786_vm2, %v12314_v46  ;;  %v12232_v40 = vld [vmem:[%s17030_s0 + $0x908] sm:$0xff]  ;;  %v12315_v46 = vld [vmem:[%s17030_s0 + $0xba0] sm:$0xff] }
 0x4b1   :  { %v5251_v22 = vpop.f32.mrf.mxu2 }
 0x4b2   :  { %v14106_v54 = vpop.f32.mrf.mxu0 }
 0x4b3   :  { %17365 = vst [vmem:[#allocation298_spill] sm:$0xff] %v14106_v54 }
 0x4b5   :  { %v5620_v8 = vpop.f32.mrf.mxu3  ;;  %v14123_v54 = vpop.f32.mrf.mxu1 }
 0x4b6   :  { %17368 = vst [vmem:[#allocation301_spill] sm:$0xff] %v14123_v54 }
 0x4b9   :  { %v5252_v42 = vpop.f32.mrf.mxu2 }
 0x4ba   :  { %v14121_v43 = vpop.f32.mrf.mxu0  ;;  %v12019_v42 = vld [vmem:[%s17030_s0 + $0x260] sm:$0xff] }
 0x4bb   :  { %17367 = vst [vmem:[#allocation300_spill] sm:$0xff] %v14121_v43 }
 0x4bd   :  { %11216 = vmatmul.msk.bf16.gmra.mxu0 %vm2786_vm2, %v12018_v3  ;;  %v5621_v34 = vpop.f32.mrf.mxu3  ;;  %v14134_v22 = vpop.f32.mrf.mxu1 }
 0x4be   :  { %17370 = vst [vmem:[#allocation303_spill] sm:$0xff] %v14134_v22  ;;  %11430 = vmatmul.msk.bf16.gmra.mxu2 %vm2786_vm2, %v12232_v40  ;;  %11513 = vmatmul.msk.bf16.gmra.mxu3 %vm2786_vm2, %v12315_v46  ;;  %v12233_v40 = vld [vmem:[%s17030_s0 + $0x910] sm:$0xff]  ;;  %v12316_v46 = vld [vmem:[%s17030_s0 + $0xba8] sm:$0xff] }
 0x4c1   :  { %v5254_v8 = vpop.f32.mrf.mxu2 }
 0x4c2   :  { %v14126_v20 = vpop.f32.mrf.mxu0 }
 0x4c3   :  { %17369 = vst [vmem:[#allocation302_spill] sm:$0xff] %v14126_v20 }
 0x4c5   :  { %v14141_v3 = vpop.f32.mrf.mxu3  ;;  %v14143_v20 = vpop.f32.mrf.mxu1 }
 0x4c6   :  { %17371 = vst [vmem:[#allocation304_spill] sm:$0xff] %v14141_v3 }
 0x4c7   :  { %17372 = vst [vmem:[#allocation305_spill] sm:$0xff] %v14143_v20 }
 0x4c9   :  { %v5255_v43 = vpop.f32.mrf.mxu2 }
 0x4ca   :  { %v4303_v34 = vpop.f32.mrf.mxu0 }
 0x4cd   :  { %11217 = vmatmul.msk.bf16.gmra.mxu0 %vm2786_vm2, %v12019_v42  ;;  %v14146_v37 = vpop.f32.mrf.mxu3  ;;  %v14154_v8 = vpop.f32.mrf.mxu1 }
 0x4ce   :  { %17373 = vst [vmem:[#allocation306_spill] sm:$0xff] %v14146_v37  ;;  %11431 = vmatmul.msk.bf16.gmra.mxu2 %vm2786_vm2, %v12233_v40  ;;  %11514 = vmatmul.msk.bf16.gmra.mxu3 %vm2786_vm2, %v12316_v46  ;;  %v12234_v40 = vld [vmem:[%s17030_s0 + $0x918] sm:$0xff]  ;;  %v12317_v46 = vld [vmem:[%s17030_s0 + $0xbb0] sm:$0xff] }
 0x4cf   :  { %17374 = vst [vmem:[#allocation307_spill] sm:$0xff] %v14154_v8  ;;  %v12237_v8 = vld [vmem:[%s17030_s0 + $0x930] sm:$0xff] }
 0x4d1   :  { %v5257_v34 = vpop.f32.mrf.mxu2 }
 0x4d2   :  { %v4304_v54 = vpop.f32.mrf.mxu0 }
 0x4d3   :  { %v12020_v54 = vld [vmem:[%s17030_s0 + $0x268] sm:$0xff] }
 0x4d5   :  { %v14161_v42 = vpop.f32.mrf.mxu3  ;;  %v5047_v37 = vpop.f32.mrf.mxu1 }
 0x4d6   :  { %17375 = vst [vmem:[#allocation308_spill] sm:$0xff] %v14161_v42 }
 0x4d9   :  { %v5258_v3 = vpop.f32.mrf.mxu2 }
 0x4da   :  { %v4306_v43 = vpop.f32.mrf.mxu0 }
 0x4dd   :  { %11218 = vmatmul.msk.bf16.gmra.mxu0 %vm2786_vm2, %v12020_v54  ;;  %v14164_v22 = vpop.f32.mrf.mxu3  ;;  %v5048_v34 = vpop.f32.mrf.mxu1 }
 0x4de   :  { %17376 = vst [vmem:[#allocation309_spill] sm:$0xff] %v14164_v22  ;;  %11432 = vmatmul.msk.bf16.gmra.mxu2 %vm2786_vm2, %v12234_v40  ;;  %11515 = vmatmul.msk.bf16.gmra.mxu3 %vm2786_vm2, %v12317_v46  ;;  %v12235_v40 = vld [vmem:[%s17030_s0 + $0x920] sm:$0xff]  ;;  %v12318_v46 = vld [vmem:[%s17030_s0 + $0xbb8] sm:$0xff] }
 0x4e1   :  { %v5260_v37 = vpop.f32.mrf.mxu2 }
 0x4e2   :  { %v4307_v20 = vpop.f32.mrf.mxu0 }
 0x4e3   :  { %v12021_v20 = vld [vmem:[%s17030_s0 + $0x270] sm:$0xff] }
 0x4e5   :  { %v14179_v54 = vpop.f32.mrf.mxu3  ;;  %v5050_v43 = vpop.f32.mrf.mxu1 }
 0x4e6   :  { %17378 = vst [vmem:[#allocation311_spill] sm:$0xff] %v14179_v54 }
 0x4e9   :  { %v5261_v22 = vpop.f32.mrf.mxu2 }
 0x4ea   :  { %v14177_v3 = vpop.f32.mrf.mxu0  ;;  %v12022_v22 = vld [vmem:[%s17030_s0 + $0x278] sm:$0xff] }
 0x4eb   :  { %17377 = vst [vmem:[#allocation310_spill] sm:$0xff] %v14177_v3 }
 0x4ed   :  { %11219 = vmatmul.msk.bf16.gmra.mxu0 %vm2786_vm2, %v12021_v20  ;;  %v14184_v34 = vpop.f32.mrf.mxu3  ;;  %v5051_v37 = vpop.f32.mrf.mxu1 }
 0x4ee   :  { %17380 = vst [vmem:[#allocation313_spill] sm:$0xff] %v14184_v34  ;;  %11433 = vmatmul.msk.bf16.gmra.mxu2 %vm2786_vm2, %v12235_v40  ;;  %11516 = vmatmul.msk.bf16.gmra.mxu3 %vm2786_vm2, %v12318_v46  ;;  %v12236_v40 = vld [vmem:[%s17030_s0 + $0x928] sm:$0xff]  ;;  %v12023_v37 = vld [vmem:[%s17030_s0 + $0x280] sm:$0xff] }
 0x4f1   :  { %v5263_v43 = vpop.f32.mrf.mxu2 }
 0x4f2   :  { %v14182_v42 = vpop.f32.mrf.mxu0 }
 0x4f3   :  { %17379 = vst [vmem:[#allocation312_spill] sm:$0xff] %v14182_v42 }
 0x4f5   :  { %v5638_v54 = vpop.f32.mrf.mxu3 }
 0x4f9   :  { %v5264_v34 = vpop.f32.mrf.mxu2 }
 0x4fa   :  { %v14197_v20 = vpop.f32.mrf.mxu0 }
 0x4fb   :  { %17381 = vst [vmem:[#allocation314_spill] sm:$0xff] %v14197_v20 }
 0x4fd   :  { %11220 = vmatmul.msk.bf16.gmra.mxu0 %vm2786_vm2, %v12022_v22  ;;  %v5640_v3 = vpop.f32.mrf.mxu3 }
 0x4fe   :  { %11434 = vmatmul.msk.bf16.gmra.mxu2 %vm2786_vm2, %v12236_v40 }
 0x501   :  { %v5266_v46 = vpop.f32.mrf.mxu2 }
 0x502   :  { %v14200_v42 = vpop.f32.mrf.mxu0  ;;  %v6001_v46 = vmax.f32 %v13782_v9, %v5638_v54  ;;  %v6002_v9 = vmax.f32 %v13796_v6, %v5640_v3 }
 0x503   :  { %17382 = vst [vmem:[#allocation315_spill] sm:$0xff] %v14200_v42 }
 0x505   :  { %v5643_v20 = vpop.f32.mrf.mxu3 }
 0x509   :  { %v5267_v34 = vpop.f32.mrf.mxu2 }
 0x50a   :  { %v14209_v43 = vpop.f32.mrf.mxu0 }
 0x50b   :  { %17383 = vst [vmem:[#allocation316_spill] sm:$0xff] %v14209_v43  ;;  %v12024_v43 = vld [vmem:[%s17030_s0 + $0x288] sm:$0xff] }
 0x50d   :  { %11221 = vmatmul.msk.bf16.gmra.mxu0 %vm2786_vm2, %v12023_v37  ;;  %v5645_v42 = vpop.f32.mrf.mxu3 }
 0x50e   :  { %11435 = vmatmul.msk.bf16.gmra.mxu2 %vm2786_vm2, %v12237_v8 }
 0x511   :  { %v5269_v40 = vpop.f32.mrf.mxu2 }
 0x512   :  { %v14212_v22 = vpop.f32.mrf.mxu0 }
 0x513   :  { %17384 = vst [vmem:[#allocation317_spill] sm:$0xff] %v14212_v22  ;;  %v14226_v22 = vld [vmem:[%s17032_s2] ss:$0 sm:$0xff] }
 0x515   :  { %v5648_v34 = vpop.f32.mrf.mxu3 }
 0x519   :  { %v5270_v8 = vpop.f32.mrf.mxu2 }
 0x51a   :  { %v4324_v5 = vpop.f32.mrf.mxu0 }
 0x51b   :  { %v5857_v37 = vmax.f32 %v4324_v5, %v12526_v38  ;;  %v12238_v38 = vld [vmem:[%s17030_s0 + $0x938] sm:$0xff] }
 0x51d   :  { %v6145_v35 = vmax.f32 %v5857_v37, %v6001_v46  ;;  %11222 = vmatmul.msk.bf16.gmra.mxu0 %vm2786_vm2, %v12024_v43  ;;  %v5650_v37 = vpop.f32.mrf.mxu3 }
 0x51e   :  { %11436 = vmatmul.msk.bf16.gmra.mxu2 %vm2786_vm2, %v12238_v38 }
 0x51f   :  { %v6293_v40 = vadd.f32 %v14226_v22, %v6145_v35  ;;  %v6003_v35 = vmax.f32 %v13810_v28, %v5643_v20  ;;  %v6004_v28 = vmax.f32 %v13826_v57, %v5645_v42  ;;  %v12026_v57 = vld [vmem:[%s17030_s0 + $0x298] sm:$0xff] }
 0x521   :  { %v6437_v5 = vmax.f32 %v6293_v40, 0.0  ;;  %v5272_v43 = vpop.f32.mrf.mxu2 }
 0x522   :  { %v4326_v54 = vpop.f32.mrf.mxu0 }
 0x523   :  { %v5858_v48 = vmax.f32 %v4326_v54, %v12535_v41  ;;  %v6581_v8 = vpack.c.bf16 %v6437_v5, %v6437_v5  ;;  %v12025_v41 = vld [vmem:[%s17030_s0 + $0x290] sm:$0xff] }
 0x525   :  { %v6146_v46 = vmax.f32 %v5858_v48, %v6002_v9  ;;  %v8478_v40 = vunpack.c.l.b16 %v6581_v8  ;;  %v5653_v5 = vpop.f32.mrf.mxu3 }
 0x527   :  { %v6294_v33 = vadd.f32 %v14226_v22, %v6146_v46 }
 0x529   :  { %v6438_v30 = vmax.f32 %v6294_v33, 0.0  ;;  %v5273_v38 = vpop.f32.mrf.mxu2 }
 0x52a   :  { %v4329_v6 = vpop.f32.mrf.mxu0 }
 0x52b   :  { %v6582_v3 = vpack.c.bf16 %v6438_v30, %v6438_v30  ;;  %v5859_v54 = vmax.f32 %v4329_v6, %v12542_v44  ;;  %v12239_v44 = vld [vmem:[%s17030_s0 + $0x940] sm:$0xff] }
 0x52d   :  { %v8479_v48 = vunpack.c.l.b16 %v6582_v3  ;;  %v6147_v9 = vmax.f32 %v5859_v54, %v6003_v35  ;;  %11223 = vmatmul.msk.bf16.gmra.mxu0 %vm2786_vm2, %v12025_v41  ;;  %v6005_v54 = vmax.f32 %v13842_v15, %v5648_v34  ;;  %v5655_v42 = vpop.f32.mrf.mxu3  ;;  %v6006_v15 = vmax.f32 %v13858_v17, %v5650_v37 }
 0x52e   :  { %11437 = vmatmul.msk.bf16.gmra.mxu2 %vm2786_vm2, %v12239_v44 }
 0x52f   :  { %v14243_v46 = vpack.c.b16 %v8479_v48, %v8478_v40  ;;  %v6295_v33 = vadd.f32 %v14226_v22, %v6147_v9 }
 0x531   :  { %17385 = vst [vmem:[#allocation318_spill] sm:$0xff] %v14243_v46  ;;  %v6439_v30 = vmax.f32 %v6295_v33, 0.0  ;;  %v5275_v41 = vpop.f32.mrf.mxu2 }
 0x532   :  { %v4331_v20 = vpop.f32.mrf.mxu0 }
 0x533   :  { %v5860_v43 = vmax.f32 %v4331_v20, %v12551_v47  ;;  %v6583_v6 = vpack.c.bf16 %v6439_v30, %v6439_v30  ;;  %v12240_v30 = vld [vmem:[%s17030_s0 + $0x948] sm:$0xff] }
 0x535   :  { %v6148_v8 = vmax.f32 %v5860_v43, %v6004_v28  ;;  %v8480_v9 = vunpack.c.l.b16 %v6583_v6 }
 0x537   :  { %v6296_v35 = vadd.f32 %v14226_v22, %v6148_v8 }
 0x539   :  { %v6440_v3 = vmax.f32 %v6296_v35, 0.0  ;;  %v5276_v28 = vpop.f32.mrf.mxu2 }
 0x53a   :  { %v4334_v47 = vpop.f32.mrf.mxu0 }
 0x53b   :  { %v6584_v40 = vpack.c.bf16 %v6440_v3, %v6440_v3  ;;  %v5861_v48 = vmax.f32 %v4334_v47, %v12558_v50  ;;  %v5658_v50 = vpop.f32.mrf.mxu3 }
 0x53d   :  { %v8481_v38 = vunpack.c.l.b16 %v6584_v40  ;;  %v6149_v33 = vmax.f32 %v5861_v48, %v6005_v54  ;;  %11224 = vmatmul.msk.bf16.gmra.mxu0 %vm2786_vm2, %v12026_v57  ;;  %v6007_v57 = vmax.f32 %v13874_v45, %v5653_v5  ;;  %v6008_v45 = vmax.f32 %v13890_v0, %v5655_v42 }
 0x53e   :  { %11438 = vmatmul.msk.bf16.gmra.mxu2 %vm2786_vm2, %v12240_v30 }
 0x53f   :  { %v14259_v20 = vpack.c.b16 %v8481_v38, %v8480_v9  ;;  %v6297_v43 = vadd.f32 %v14226_v22, %v6149_v33 }
 0x541   :  { %17386 = vst [vmem:[#allocation319_spill] sm:$0xff] %v14259_v20  ;;  %v6441_v8 = vmax.f32 %v6297_v43, 0.0  ;;  %v5278_v6 = vpop.f32.mrf.mxu2 }
 0x542   :  { %v4336_v34 = vpop.f32.mrf.mxu0 }
 0x543   :  { %v5862_v44 = vmax.f32 %v4336_v34, %v12567_v53  ;;  %v6585_v3 = vpack.c.bf16 %v6441_v8, %v6441_v8  ;;  %v12027_v53 = vld [vmem:[%s17030_s0 + $0x2a0] sm:$0xff]  ;;  %v5660_v38 = vpop.f32.mrf.mxu3 }
 0x545   :  { %v6150_v35 = vmax.f32 %v5862_v44, %v6006_v15  ;;  %v8482_v40 = vunpack.c.l.b16 %v6585_v3  ;;  %v6009_v3 = vmax.f32 %v13906_v12, %v5658_v50  ;;  %v6010_v12 = vmax.f32 %v13922_v61, %v5660_v38  ;;  %v12029_v61 = vld [vmem:[%s17030_s0 + $0x2b0] sm:$0xff] }
 0x547   :  { %v6298_v41 = vadd.f32 %v14226_v22, %v6150_v35 }
 0x549   :  { %v6442_v54 = vmax.f32 %v6298_v41, 0.0  ;;  %v5279_v33 = vpop.f32.mrf.mxu2 }
 0x54a   :  { %v4339_v17 = vpop.f32.mrf.mxu0 }
 0x54b   :  { %v6586_v37 = vpack.c.bf16 %v6442_v54, %v6442_v54  ;;  %v5863_v47 = vmax.f32 %v4339_v17, %v12574_v56  ;;  %v12241_v56 = vld [vmem:[%s17030_s0 + $0x950] sm:$0xff]  ;;  %v5663_v35 = vpop.f32.mrf.mxu3 }
 0x54d   :  { %v8483_v48 = vunpack.c.l.b16 %v6586_v37  ;;  %v6151_v9 = vmax.f32 %v5863_v47, %v6007_v57  ;;  %11225 = vmatmul.msk.bf16.gmra.mxu0 %vm2786_vm2, %v12027_v53 }
 0x54e   :  { %11439 = vmatmul.msk.bf16.gmra.mxu2 %vm2786_vm2, %v12241_v56 }
 0x54f   :  { %v14275_v28 = vpack.c.b16 %v8483_v48, %v8482_v40  ;;  %v6299_v43 = vadd.f32 %v14226_v22, %v6151_v9 }
 0x551   :  { %17387 = vst [vmem:[#allocation320_spill] sm:$0xff] %v14275_v28  ;;  %v6443_v34 = vmax.f32 %v6299_v43, 0.0  ;;  %v5281_v8 = vpop.f32.mrf.mxu2 }
 0x552   :  { %v4341_v5 = vpop.f32.mrf.mxu0 }
 0x553   :  { %v5864_v15 = vmax.f32 %v4341_v5, %v12583_v59  ;;  %v6587_v41 = vpack.c.bf16 %v6443_v34, %v6443_v34  ;;  %v12028_v59 = vld [vmem:[%s17030_s0 + $0x2a8] sm:$0xff]  ;;  %v5665_v48 = vpop.f32.mrf.mxu3  ;;  %v6011_v34 = vmax.f32 %v13938_v60, %v5663_v35 }
 0x554   :  { %v6012_v60 = vmax.f32 %v13954_v58, %v5665_v48 }
 0x555   :  { %v6152_v44 = vmax.f32 %v5864_v15, %v6008_v45  ;;  %v8484_v57 = vunpack.c.l.b16 %v6587_v41 }
 0x557   :  { %v6300_v30 = vadd.f32 %v14226_v22, %v6152_v44 }
 0x559   :  { %v6444_v6 = vmax.f32 %v6300_v30, 0.0  ;;  %v5282_v37 = vpop.f32.mrf.mxu2 }
 0x55a   :  { %v4344_v0 = vpop.f32.mrf.mxu0 }
 0x55b   :  { %v6588_v42 = vpack.c.bf16 %v6444_v6, %v6444_v6  ;;  %v5865_v54 = vmax.f32 %v4344_v0, %v12590_v62  ;;  %v12242_v62 = vld [vmem:[%s17030_s0 + $0x958] sm:$0xff]  ;;  %v5668_v30 = vpop.f32.mrf.mxu3 }
 0x55d   :  { %v8485_v53 = vunpack.c.l.b16 %v6588_v42  ;;  %v6153_v17 = vmax.f32 %v5865_v54, %v6009_v3  ;;  %11226 = vmatmul.msk.bf16.gmra.mxu0 %vm2786_vm2, %v12028_v59 }
 0x55e   :  { %11440 = vmatmul.msk.bf16.gmra.mxu2 %vm2786_vm2, %v12242_v62 }
 0x55f   :  { %v14291_v47 = vpack.c.b16 %v8485_v53, %v8484_v57  ;;  %v6301_v40 = vadd.f32 %v14226_v22, %v6153_v17 }
 0x561   :  { %17388 = vst [vmem:[#allocation321_spill] sm:$0xff] %v14291_v47  ;;  %v6445_v33 = vmax.f32 %v6301_v40, 0.0  ;;  %v5284_v5 = vpop.f32.mrf.mxu2 }
 0x562   :  { %v4346_v50 = vpop.f32.mrf.mxu0 }
 0x563   :  { %v5866_v9 = vmax.f32 %v4346_v50, %v12599_v1  ;;  %v6589_v15 = vpack.c.bf16 %v6445_v33, %v6445_v33  ;;  %v5670_v53 = vpop.f32.mrf.mxu3  ;;  %v6013_v50 = vmax.f32 %v13970_v18, %v5668_v30 }
 0x564   :  { %v6014_v18 = vmax.f32 %v13986_v55, %v5670_v53  ;;  %v12031_v55 = vld [vmem:[%s17030_s0 + $0x2c0] sm:$0xff] }
 0x565   :  { %v6154_v43 = vmax.f32 %v5866_v9, %v6010_v12  ;;  %v8486_v8 = vunpack.c.l.b16 %v6589_v15 }
 0x567   :  { %v6302_v45 = vadd.f32 %v14226_v22, %v6154_v43 }
 0x569   :  { %v6446_v56 = vmax.f32 %v6302_v45, 0.0  ;;  %v5285_v3 = vpop.f32.mrf.mxu2 }
 0x56a   :  { %v4349_v1 = vpop.f32.mrf.mxu0 }
 0x56b   :  { %v6590_v38 = vpack.c.bf16 %v6446_v56, %v6446_v56  ;;  %v5867_v44 = vmax.f32 %v4349_v1, %v12606_v4  ;;  %v12243_v4 = vld [vmem:[%s17030_s0 + $0x960] sm:$0xff]  ;;  %v5673_v15 = vpop.f32.mrf.mxu3 }
 0x56d   :  { %v8487_v41 = vunpack.c.l.b16 %v6590_v38  ;;  %v6155_v6 = vmax.f32 %v5867_v44, %v6011_v34  ;;  %11227 = vmatmul.msk.bf16.gmra.mxu0 %vm2786_vm2, %v12029_v61 }
 0x56e   :  { %11441 = vmatmul.msk.bf16.gmra.mxu2 %vm2786_vm2, %v12243_v4 }
 0x56f   :  { %v14307_v59 = vpack.c.b16 %v8487_v41, %v8486_v8  ;;  %v6303_v0 = vadd.f32 %v14226_v22, %v6155_v6  ;;  %v6015_v6 = vmax.f32 %v14002_v14, %v5673_v15 }
 0x571   :  { %17389 = vst [vmem:[#allocation322_spill] sm:$0xff] %v14307_v59  ;;  %v6447_v54 = vmax.f32 %v6303_v0, 0.0  ;;  %v5287_v37 = vpop.f32.mrf.mxu2 }
 0x572   :  { %v4351_v35 = vpop.f32.mrf.mxu0  ;;  %v12245_v37 = vld [vmem:[%s17030_s0 + $0x970] sm:$0xff] }
 0x573   :  { %v5868_v42 = vmax.f32 %v4351_v35, %v12615_v7  ;;  %v6591_v40 = vpack.c.bf16 %v6447_v54, %v6447_v54  ;;  %v12030_v7 = vld [vmem:[%s17030_s0 + $0x2b8] sm:$0xff]  ;;  %v5675_v3 = vpop.f32.mrf.mxu3 }
 0x574   :  { %v6016_v14 = vmax.f32 %v14018_v52, %v5675_v3  ;;  %v12033_v3 = vld [vmem:[%s17030_s0 + $0x2d0] sm:$0xff] }
 0x575   :  { %v6156_v57 = vmax.f32 %v5868_v42, %v6012_v60  ;;  %v8774_v62 = vunpack.c.l.b16 %v6591_v40 }
 0x577   :  { %v6304_v17 = vadd.f32 %v14226_v22, %v6156_v57 }
 0x579   :  { %v6448_v12 = vmax.f32 %v6304_v17, 0.0  ;;  %v5288_v45 = vpop.f32.mrf.mxu2 }
 0x57a   :  { %v4354_v58 = vpop.f32.mrf.mxu0 }
 0x57b   :  { %v6592_v48 = vpack.c.bf16 %v6448_v12, %v6448_v12  ;;  %v5869_v9 = vmax.f32 %v4354_v58, %v12622_v10  ;;  %v12244_v10 = vld [vmem:[%s17030_s0 + $0x968] sm:$0xff] }
 0x57d   :  { %v8775_v33 = vunpack.c.l.b16 %v6592_v48  ;;  %v6157_v43 = vmax.f32 %v5869_v9, %v6013_v50  ;;  %11228 = vmatmul.msk.bf16.gmra.mxu0 %vm2786_vm2, %v12030_v7 }
 0x57e   :  { %11442 = vmatmul.msk.bf16.gmra.mxu2 %vm2786_vm2, %v12244_v10 }
 0x57f   :  { %v14323_v5 = vpack.c.b16 %v8775_v33, %v8774_v62  ;;  %v6305_v56 = vadd.f32 %v14226_v22, %v6157_v43  ;;  %v12032_v62 = vld [vmem:[%s17030_s0 + $0x2c8] sm:$0xff] }
 0x581   :  { %17390 = vst [vmem:[#allocation323_spill] sm:$0xff] %v14323_v5  ;;  %v6449_v1 = vmax.f32 %v6305_v56, 0.0  ;;  %v5290_v30 = vpop.f32.mrf.mxu2 }
 0x582   :  { %v4356_v34 = vpop.f32.mrf.mxu0 }
 0x583   :  { %v5870_v61 = vmax.f32 %v4356_v34, %v12631_v13  ;;  %v6593_v8 = vpack.c.bf16 %v6449_v1, %v6449_v1 }
 0x585   :  { %v6158_v38 = vmax.f32 %v5870_v61, %v6014_v18  ;;  %v8776_v35 = vunpack.c.l.b16 %v6593_v8 }
 0x587   :  { %v6306_v44 = vadd.f32 %v14226_v22, %v6158_v38  ;;  %v12246_v38 = vld [vmem:[%s17030_s0 + $0x978] sm:$0xff] }
 0x589   :  { %v6450_v41 = vmax.f32 %v6306_v44, 0.0  ;;  %v5291_v57 = vpop.f32.mrf.mxu2  ;;  %v12341_v44 = vld [vmem:[%s17031_s3 + $0x20] sm:$0xff] }
 0x58a   :  { %v4359_v13 = vpop.f32.mrf.mxu0  ;;  %7379 = vmatpush.bf16.msrb.mxu3 %v12341_v44 }
 0x58b   :  { %v6594_v0 = vpack.c.bf16 %v6450_v41, %v6450_v41  ;;  %v5871_v60 = vmax.f32 %v4359_v13, %v12638_v16  ;;  %v5678_v16 = vpop.f32.mrf.mxu3 }
 0x58c   :  { %v6017_v52 = vmax.f32 %v14034_v2, %v5678_v16 }
 0x58d   :  { %v8777_v42 = vunpack.c.l.b16 %v6594_v0  ;;  %v6159_v4 = vmax.f32 %v5871_v60, %v6015_v6  ;;  %11229 = vmatmul.msk.bf16.gmra.mxu0 %vm2786_vm2, %v12031_v55 }
 0x58e   :  { %11443 = vmatmul.msk.bf16.gmra.mxu2 %vm2786_vm2, %v12245_v37 }
 0x58f   :  { %v14339_v54 = vpack.c.b16 %v8777_v42, %v8776_v35  ;;  %v6307_v53 = vadd.f32 %v14226_v22, %v6159_v4 }
 0x591   :  { %17391 = vst [vmem:[#allocation324_spill] sm:$0xff] %v14339_v54  ;;  %v6451_v12 = vmax.f32 %v6307_v53, 0.0  ;;  %v14349_v58 = vpop.f32.mrf.mxu2  ;;  %v12247_v53 = vld [vmem:[%s17030_s0 + $0x980] sm:$0xff] }
 0x592   :  { %v4361_v17 = vpop.f32.mrf.mxu0 }
 0x593   :  { %v5872_v40 = vmax.f32 %v4361_v17, %v12647_v19  ;;  %v6595_v48 = vpack.c.bf16 %v6451_v12, %v6451_v12  ;;  %v5680_v18 = vpop.f32.mrf.mxu3  ;;  %v12034_v17 = vld [vmem:[%s17030_s0 + $0x2d8] sm:$0xff]  ;;  %v12248_v12 = vld [vmem:[%s17030_s0 + $0x988] sm:$0xff] }
 0x594   :  { %v6018_v10 = vmax.f32 %v14050_v49, %v5680_v18 }
 0x595   :  { %v6160_v50 = vmax.f32 %v5872_v40, %v6016_v14  ;;  %v9040_v45 = vunpack.c.l.b16 %v6595_v48 }
 0x597   :  { %v6308_v7 = vadd.f32 %v14226_v22, %v6160_v50 }
 0x599   :  { %v6452_v9 = vmax.f32 %v6308_v7, 0.0  ;;  %v14359_v61 = vpop.f32.mrf.mxu2  ;;  %v12035_v7 = vld [vmem:[%s17030_s0 + $0x2e0] sm:$0xff] }
 0x59a   :  { %v4364_v33 = vpop.f32.mrf.mxu0 }
 0x59b   :  { %v6596_v43 = vpack.c.bf16 %v6452_v9, %v6452_v9  ;;  %v5873_v19 = vmax.f32 %v4364_v33, %v12652_v24  ;;  %v12337_v24 = vld [vmem:[%s17031_s3] sm:$0xff]  ;;  %v12339_v9 = vld [vmem:[%s17031_s3 + $0x10] sm:$0xff] }
 0x59c   :  { %7129 = vmatpush.bf16.msrb.mxu2 %v12337_v24  ;;  %6884 = vmatpush.bf16.msrb.mxu1 %v12339_v9  ;;  %v12249_v33 = vld [vmem:[%s17030_s0 + $0x990] sm:$0xff]  ;;  %v12320_v24 = vld [vmem:[%s17030_s0 + $0xbc8] sm:$0xff]  ;;  %v12323_v9 = vld [vmem:[%s17030_s0 + $0xbe0] sm:$0xff] }
 0x59d   :  { %v9041_v15 = vunpack.c.l.b16 %v6596_v43  ;;  %v6161_v56 = vmax.f32 %v5873_v19, %v6017_v52  ;;  %11230 = vmatmul.msk.bf16.gmra.mxu0 %vm2786_vm2, %v12032_v62  ;;  %v12036_v19 = vld [vmem:[%s17030_s0 + $0x2e8] sm:$0xff] }
 0x59e   :  { %11444 = vmatmul.msk.bf16.gmra.mxu2 %vm2786_vm2, %v12246_v38 }
 0x59f   :  { %v14357_v34 = vpack.c.b16 %v9041_v15, %v9040_v45  ;;  %v6309_v2 = vadd.f32 %v14226_v22, %v6161_v56  ;;  %v12319_v15 = vld [vmem:[%s17030_s0 + $0xbc0] sm:$0xff] }
 0x5a0   :  { %11517 = vmatmul.msk.bf16.gmra.mxu3 %vm2786_vm2, %v12319_v15  ;;  %v12041_v15 = vld [vmem:[%s17030_s0 + $0x310] sm:$0xff] }
 0x5a1   :  { %17392 = vst [vmem:[#allocation325_spill] sm:$0xff] %v14357_v34  ;;  %v6453_v8 = vmax.f32 %v6309_v2, 0.0  ;;  %v14375_v6 = vpop.f32.mrf.mxu2  ;;  %v12250_v2 = vld [vmem:[%s17030_s0 + $0x998] sm:$0xff] }
 0x5a2   :  { %v4366_v1 = vpop.f32.mrf.mxu0 }
 0x5a3   :  { %v5874_v30 = vmax.f32 %v4366_v1, %v12662_v32  ;;  %v6597_v55 = vpack.c.bf16 %v6453_v8, %v6453_v8  ;;  %v12037_v1 = vld [vmem:[%s17030_s0 + $0x2f0] sm:$0xff]  ;;  %v12251_v8 = vld [vmem:[%s17030_s0 + $0x9a0] sm:$0xff] }
 0x5a5   :  { %v6162_v41 = vmax.f32 %v5874_v30, %v6018_v10  ;;  %v9042_v35 = vunpack.c.l.b16 %v6597_v55 }
 0x5a7   :  { %v6310_v49 = vadd.f32 %v14226_v22, %v6162_v41 }
 0x5a9   :  { %v6454_v13 = vmax.f32 %v6310_v49, 0.0  ;;  %v14383_v4 = vpop.f32.mrf.mxu2  ;;  %v12038_v49 = vld [vmem:[%s17030_s0 + $0x2f8] sm:$0xff] }
 0x5aa   :  { %v4369_v0 = vpop.f32.mrf.mxu0 }
 0x5ab   :  { %v6598_v60 = vpack.c.bf16 %v6454_v13, %v6454_v13  ;;  %v12321_v13 = vld [vmem:[%s17030_s0 + $0xbd0] sm:$0xff] }
 0x5ad   :  { %v9043_v32 = vunpack.c.l.b16 %v6598_v60  ;;  %11231 = vmatmul.msk.bf16.gmra.mxu0 %vm2786_vm2, %v12033_v3  ;;  %v12252_v60 = vld [vmem:[%s17030_s0 + $0x9a8] sm:$0xff] }
 0x5ae   :  { %11445 = vmatmul.msk.bf16.gmra.mxu2 %vm2786_vm2, %v12247_v53  ;;  %v12322_v53 = vld [vmem:[%s17030_s0 + $0xbd8] sm:$0xff] }
 0x5af   :  { %v14381_v42 = vpack.c.b16 %v9043_v32, %v9042_v35  ;;  %v12039_v32 = vld [vmem:[%s17030_s0 + $0x300] sm:$0xff] }
 0x5b0   :  { %11518 = vmatmul.msk.bf16.gmra.mxu3 %vm2786_vm2, %v12320_v24  ;;  %v12255_v24 = vld [vmem:[%s17030_s0 + $0x9c0] sm:$0xff] }
 0x5b1   :  { %17393 = vst [vmem:[#allocation326_spill] sm:$0xff] %v14381_v42  ;;  %v14389_v14 = vpop.f32.mrf.mxu2 }
 0x5b2   :  { %v4370_v57 = vpop.f32.mrf.mxu0 }
 0x5b9   :  { %v14395_v40 = vpop.f32.mrf.mxu2 }
 0x5ba   :  { %v4372_v37 = vpop.f32.mrf.mxu0 }
 0x5bd   :  { %11232 = vmatmul.msk.bf16.gmra.mxu0 %vm2786_vm2, %v12034_v17 }
 0x5be   :  { %11446 = vmatmul.msk.bf16.gmra.mxu2 %vm2786_vm2, %v12248_v12 }
 0x5c0   :  { %11519 = vmatmul.msk.bf16.gmra.mxu3 %vm2786_vm2, %v12321_v13 }
 0x5c1   :  { %v14401_v50 = vpop.f32.mrf.mxu2 }
 0x5c2   :  { %v4373_v16 = vpop.f32.mrf.mxu0 }
 0x5c3   :  { %v12253_v16 = vld [vmem:[%s17030_s0 + $0x9b0] sm:$0xff] }
 0x5c9   :  { %v14410_v52 = vpop.f32.mrf.mxu2 }
 0x5ca   :  { %v4375_v48 = vpop.f32.mrf.mxu0 }
 0x5cd   :  { %11233 = vmatmul.msk.bf16.gmra.mxu0 %vm2786_vm2, %v12035_v7  ;;  %v12040_v7 = vld [vmem:[%s17030_s0 + $0x308] sm:$0xff] }
 0x5ce   :  { %11447 = vmatmul.msk.bf16.gmra.mxu2 %vm2786_vm2, %v12249_v33 }
 0x5d0   :  { %11520 = vmatmul.msk.bf16.gmra.mxu3 %vm2786_vm2, %v12322_v53 }
 0x5d1   :  { %v14416_v43 = vpop.f32.mrf.mxu2 }
 0x5d2   :  { %v4376_v62 = vpop.f32.mrf.mxu0 }
 0x5d9   :  { %v14426_v56 = vpop.f32.mrf.mxu2 }
 0x5da   :  { %v4378_v45 = vpop.f32.mrf.mxu0 }
 0x5dd   :  { %11234 = vmatmul.msk.bf16.gmra.mxu0 %vm2786_vm2, %v12036_v19  ;;  %v12254_v19 = vld [vmem:[%s17030_s0 + $0x9b8] sm:$0xff] }
 0x5de   :  { %11448 = vmatmul.msk.bf16.gmra.mxu2 %vm2786_vm2, %v12250_v2  ;;  %v12324_v2 = vld [vmem:[%s17030_s0 + $0xbe8] sm:$0xff] }
 0x5e0   :  { %11521 = vmatmul.msk.bf16.gmra.mxu3 %vm2786_vm2, %v12323_v9 }
 0x5e1   :  { %v14432_v10 = vpop.f32.mrf.mxu2 }
 0x5e2   :  { %v4379_v18 = vpop.f32.mrf.mxu0 }
 0x5e9   :  { %v14442_v44 = vpop.f32.mrf.mxu2 }
 0x5ea   :  { %v4381_v38 = vpop.f32.mrf.mxu0 }
 0x5ed   :  { %11235 = vmatmul.msk.bf16.gmra.mxu0 %vm2786_vm2, %v12037_v1 }
 0x5ee   :  { %11449 = vmatmul.msk.bf16.gmra.mxu2 %vm2786_vm2, %v12251_v8  ;;  %v12042_v8 = vld [vmem:[%s17030_s0 + $0x318] sm:$0xff] }
 0x5f0   :  { %11522 = vmatmul.msk.bf16.gmra.mxu3 %vm2786_vm2, %v12324_v2 }
 0x5f1   :  { %v14448_v41 = vpop.f32.mrf.mxu2 }
 0x5f2   :  { %v4382_v30 = vpop.f32.mrf.mxu0 }
 0x5f9   :  { %v14458_v3 = vpop.f32.mrf.mxu2 }
 0x5fa   :  { %v4384_v55 = vpop.f32.mrf.mxu0 }
 0x5fb   :  { %v12325_v55 = vld [vmem:[%s17030_s0 + $0xbf0] sm:$0xff] }
 0x5fd   :  { %11236 = vmatmul.msk.bf16.gmra.mxu0 %vm2786_vm2, %v12038_v49 }
 0x5fe   :  { %11450 = vmatmul.msk.bf16.gmra.mxu2 %vm2786_vm2, %v12252_v60  ;;  %v12256_v60 = vld [vmem:[%s17030_s0 + $0x9c8] sm:$0xff] }
 0x600   :  { %11523 = vmatmul.msk.bf16.gmra.mxu3 %vm2786_vm2, %v12325_v55 }
 0x601   :  { %v14464_v35 = vpop.f32.mrf.mxu2 }
 0x602   :  { %v4385_v0 = vpop.f32.mrf.mxu0 }
 0x609   :  { %v14474_v17 = vpop.f32.mrf.mxu2 }
 0x60a   :  { %v4387_v57 = vpop.f32.mrf.mxu0 }
 0x60b   :  { %v12043_v57 = vld [vmem:[%s17030_s0 + $0x320] sm:$0xff] }
 0x60d   :  { %11237 = vmatmul.msk.bf16.gmra.mxu0 %vm2786_vm2, %v12039_v32 }
 0x60e   :  { %11451 = vmatmul.msk.bf16.gmra.mxu2 %vm2786_vm2, %v12253_v16 }
 0x611   :  { %v14480_v12 = vpop.f32.mrf.mxu2 }
 0x612   :  { %v4388_v37 = vpop.f32.mrf.mxu0 }
 0x613   :  { %v12326_v37 = vld [vmem:[%s17030_s0 + $0xbf8] sm:$0xff] }
 0x614   :  { %11524 = vmatmul.msk.bf16.gmra.mxu3 %vm2786_vm2, %v12326_v37 }
 0x619   :  { %v14490_v62 = vpop.f32.mrf.mxu2 }
 0x61a   :  { %v4390_v48 = vpop.f32.mrf.mxu0 }
 0x61b   :  { %v12257_v48 = vld [vmem:[%s17030_s0 + $0x9d0] sm:$0xff] }
 0x61d   :  { %11238 = vmatmul.msk.bf16.gmra.mxu0 %vm2786_vm2, %v12040_v7 }
 0x61e   :  { %11452 = vmatmul.msk.bf16.gmra.mxu2 %vm2786_vm2, %v12254_v19 }
 0x621   :  { %v14496_v45 = vpop.f32.mrf.mxu2 }
 0x622   :  { %v4391_v33 = vpop.f32.mrf.mxu0 }
 0x623   :  { %v12044_v33 = vld [vmem:[%s17030_s0 + $0x328] sm:$0xff] }
 0x629   :  { %v14506_v1 = vpop.f32.mrf.mxu2 }
 0x62a   :  { %v4393_v18 = vpop.f32.mrf.mxu0 }
 0x62d   :  { %11239 = vmatmul.msk.bf16.gmra.mxu0 %vm2786_vm2, %v12041_v15  ;;  %v12327_v15 = vld [vmem:[%s17030_s0 + $0xc00] sm:$0xff] }
 0x62e   :  { %11453 = vmatmul.msk.bf16.gmra.mxu2 %vm2786_vm2, %v12255_v24  ;;  %11525 = vmatmul.msk.bf16.gmra.mxu3 %vm2786_vm2, %v12327_v15  ;;  %v12258_v24 = vld [vmem:[%s17030_s0 + $0x9d8] sm:$0xff] }
 0x631   :  { %v14512_v30 = vpop.f32.mrf.mxu2 }
 0x632   :  { %v4394_v38 = vpop.f32.mrf.mxu0 }
 0x633   :  { %v5683_v38 = vpop.f32.mrf.mxu3 }
 0x639   :  { %v14522_v13 = vpop.f32.mrf.mxu2 }
 0x63a   :  { %v4396_v49 = vpop.f32.mrf.mxu0 }
 0x63b   :  { %v12045_v49 = vld [vmem:[%s17030_s0 + $0x330] sm:$0xff] }
 0x63d   :  { %11240 = vmatmul.msk.bf16.gmra.mxu0 %vm2786_vm2, %v12042_v8 }
 0x63e   :  { %11454 = vmatmul.msk.bf16.gmra.mxu2 %vm2786_vm2, %v12256_v60  ;;  %v12328_v60 = vld [vmem:[%s17030_s0 + $0xc08] sm:$0xff] }
 0x63f   :  { %11526 = vmatmul.msk.bf16.gmra.mxu3 %vm2786_vm2, %v12328_v60  ;;  %v12048_v60 = vld [vmem:[%s17030_s0 + $0x348] sm:$0xff] }
 0x641   :  { %v14528_v32 = vpop.f32.mrf.mxu2 }
 0x642   :  { %v4397_v0 = vpop.f32.mrf.mxu0 }
 0x643   :  { %v5684_v0 = vpop.f32.mrf.mxu3 }
 0x649   :  { %v14538_v16 = vpop.f32.mrf.mxu2 }
 0x64a   :  { %v4399_v53 = vpop.f32.mrf.mxu0 }
 0x64b   :  { %v5686_v37 = vpop.f32.mrf.mxu3 }
 0x64d   :  { %11241 = vmatmul.msk.bf16.gmra.mxu0 %vm2786_vm2, %v12043_v57 }
 0x64e   :  { %11455 = vmatmul.msk.bf16.gmra.mxu2 %vm2786_vm2, %v12257_v48  ;;  %v12046_v48 = vld [vmem:[%s17030_s0 + $0x338] sm:$0xff] }
 0x651   :  { %v5353_v9 = vpop.f32.mrf.mxu2 }
 0x652   :  { %v4400_v7 = vpop.f32.mrf.mxu0 }
 0x653   :  { %v12259_v7 = vld [vmem:[%s17030_s0 + $0x9e0] sm:$0xff] }
 0x659   :  { %v5354_v18 = vpop.f32.mrf.mxu2 }
 0x65a   :  { %v4402_v19 = vpop.f32.mrf.mxu0 }
 0x65b   :  { %v12329_v19 = vld [vmem:[%s17030_s0 + $0xc10] sm:$0xff] }
 0x65c   :  { %11527 = vmatmul.msk.bf16.gmra.mxu3 %vm2786_vm2, %v12329_v19  ;;  %v12049_v19 = vld [vmem:[%s17030_s0 + $0x350] sm:$0xff] }
 0x65d   :  { %11242 = vmatmul.msk.bf16.gmra.mxu0 %vm2786_vm2, %v12044_v33  ;;  %v5687_v33 = vpop.f32.mrf.mxu3 }
 0x65e   :  { %11456 = vmatmul.msk.bf16.gmra.mxu2 %vm2786_vm2, %v12258_v24 }
 0x661   :  { %v5356_v8 = vpop.f32.mrf.mxu2 }
 0x662   :  { %v4403_v2 = vpop.f32.mrf.mxu0  ;;  %v12330_v8 = vld [vmem:[%s17030_s0 + $0xc18] sm:$0xff] }
 0x663   :  { %v12047_v2 = vld [vmem:[%s17030_s0 + $0x340] sm:$0xff] }
 0x665   :  { %v5689_v18 = vpop.f32.mrf.mxu3 }
 0x669   :  { %v5357_v57 = vpop.f32.mrf.mxu2 }
 0x66a   :  { %v4405_v55 = vpop.f32.mrf.mxu0 }
 0x66c   :  { %11528 = vmatmul.msk.bf16.gmra.mxu3 %vm2786_vm2, %v12330_v8 }
 0x66d   :  { %11243 = vmatmul.msk.bf16.gmra.mxu0 %vm2786_vm2, %v12045_v49  ;;  %v5690_v24 = vpop.f32.mrf.mxu3 }
 0x66e   :  { %11457 = vmatmul.msk.bf16.gmra.mxu2 %vm2786_vm2, %v12259_v7  ;;  %v12331_v7 = vld [vmem:[%s17030_s0 + $0xc20] sm:$0xff] }
 0x671   :  { %v14583_v49 = vpop.f32.mrf.mxu2 }
 0x672   :  { %v4406_v53 = vpop.f32.mrf.mxu0 }
 0x675   :  { %v5692_v0 = vpop.f32.mrf.mxu3 }
 0x679   :  { %v14589_v37 = vpop.f32.mrf.mxu2 }
 0x67a   :  { %v4408_v9 = vpop.f32.mrf.mxu0 }
 0x67c   :  { %11529 = vmatmul.msk.bf16.gmra.mxu3 %vm2786_vm2, %v12331_v7 }
 0x67d   :  { %11244 = vmatmul.msk.bf16.gmra.mxu0 %vm2786_vm2, %v12046_v48  ;;  %v5693_v53 = vpop.f32.mrf.mxu3 }
 0x681   :  { %v14596_v33 = vpop.f32.mrf.mxu2 }
 0x682   :  { %v4409_v15 = vpop.f32.mrf.mxu0 }
 0x685   :  { %v5695_v9 = vpop.f32.mrf.mxu3 }
 0x689   :  { %v14605_v8 = vpop.f32.mrf.mxu2 }
 0x68a   :  { %v4411_v38 = vpop.f32.mrf.mxu0 }
 0x68d   :  { %11245 = vmatmul.msk.bf16.gmra.mxu0 %vm2786_vm2, %v12047_v2  ;;  %v5696_v18 = vpop.f32.mrf.mxu3  ;;  %v5875_v2 = vmax.f32 %v12978_v36, %v14349_v58  ;;  %v5876_v36 = vmax.f32 %v12997_v11, %v14359_v61 }
 0x692   :  { %v4412_v55 = vpop.f32.mrf.mxu0 }
 0x693   :  { %v12332_v55 = vld [vmem:[%s17030_s0 + $0xc28] sm:$0xff] }
 0x694   :  { %11530 = vmatmul.msk.bf16.gmra.mxu3 %vm2786_vm2, %v12332_v55 }
 0x69a   :  { %v4414_v57 = vpop.f32.mrf.mxu0 }
 0x69b   :  { %v5698_v57 = vpop.f32.mrf.mxu3 }
 0x69d   :  { %11246 = vmatmul.msk.bf16.gmra.mxu0 %vm2786_vm2, %v12048_v60 }
 0x6a2   :  { %v4415_v48 = vpop.f32.mrf.mxu0 }
 0x6aa   :  { %v4417_v15 = vpop.f32.mrf.mxu0 }
 0x6ab   :  { %v5731_v38 = vmax.f32 %v12476_v21, %v4417_v15  ;;  %v12050_v15 = vld [vmem:[%s17030_s0 + $0x358] sm:$0xff] }
 0x6ad   :  { %v6019_v24 = vmax.f32 %v5731_v38, %v5875_v2  ;;  %11247 = vmatmul.msk.bf16.gmra.mxu0 %vm2786_vm2, %v12049_v19  ;;  %v14616_v19 = vpop.f32.mrf.mxu2  ;;  %v5699_v2 = vpop.f32.mrf.mxu3  ;;  %v5877_v38 = vmax.f32 %v13010_v39, %v14375_v6 }
 0x6af   :  { %v6167_v0 = vadd.f32 %v14226_v22, %v6019_v24 }
 0x6b1   :  { %v6311_v58 = vmax.f32 %v6167_v0, 0.0 }
 0x6b2   :  { %v4419_v60 = vpop.f32.mrf.mxu0 }
 0x6b3   :  { %v5732_v21 = vmax.f32 %v12483_v23, %v4419_v60  ;;  %v6455_v48 = vpack.c.bf16 %v6311_v58, %v6311_v58  ;;  %v12333_v60 = vld [vmem:[%s17030_s0 + $0xc30] sm:$0xff] }
 0x6b4   :  { %11531 = vmatmul.msk.bf16.gmra.mxu3 %vm2786_vm2, %v12333_v60 }
 0x6b5   :  { %v6020_v53 = vmax.f32 %v5732_v21, %v5876_v36  ;;  %v7062_v61 = vunpack.c.l.b16 %v6455_v48  ;;  %v5701_v6 = vpop.f32.mrf.mxu3  ;;  %v14633_v36 = vpop.f32.mrf.mxu2 }
 0x6b7   :  { %v6168_v7 = vadd.f32 %v14226_v22, %v6020_v53 }
 0x6b9   :  { %v6312_v9 = vmax.f32 %v6168_v7, 0.0 }
 0x6ba   :  { %v4422_v18 = vpop.f32.mrf.mxu0 }
 0x6bb   :  { %v6456_v11 = vpack.c.bf16 %v6312_v9, %v6312_v9  ;;  %v5733_v23 = vmax.f32 %v12488_v25, %v4422_v18  ;;  %v5878_v25 = vmax.f32 %v13029_v51, %v14383_v4 }
 0x6bd   :  { %v7063_v24 = vunpack.c.l.b16 %v6456_v11  ;;  %v6021_v55 = vmax.f32 %v5733_v23, %v5877_v38  ;;  %11248 = vmatmul.msk.bf16.gmra.mxu0 %vm2786_vm2, %v12050_v15  ;;  %v12051_v15 = vld [vmem:[%s17030_s0 + $0x360] sm:$0xff]  ;;  %v5702_v2 = vpop.f32.mrf.mxu3  ;;  %v5879_v38 = vmax.f32 %v13042_v63, %v14389_v14  ;;  %v14643_v23 = vpop.f32.mrf.mxu2  ;;  %v5880_v14 = vmax.f32 %v13061_v26, %v14395_v40 }
 0x6be   :  { %v17395_v40 = vld [vmem:[#allocation2_spill] sm:$0xff] }
 0x6bf   :  { %v7078_v0 = vpack.c.b16 %v7063_v24, %v7062_v61  ;;  %v6169_v57 = vadd.f32 %v14226_v22, %v6021_v55  ;;  %v12334_v55 = vld [vmem:[%s17030_s0 + $0xc38] sm:$0xff] }
 0x6c1   :  { %11585 = vmatmul.msk.bf16.vlgmr.msrb.gmra.mxu2 %vm6780_vm3, %v7078_v0  ;;  %v6313_v58 = vmax.f32 %v6169_v57, 0.0 }
 0x6c2   :  { %v4424_v39 = vpop.f32.mrf.mxu0 }
 0x6c3   :  { %v5734_v21 = vmax.f32 %v12495_v27, %v4424_v39  ;;  %v6457_v48 = vpack.c.bf16 %v6313_v58, %v6313_v58 }
 0x6c4   :  { %11532 = vmatmul.msk.bf16.gmra.mxu3 %vm2786_vm2, %v12334_v55  ;;  %v17397_v55 = vld [vmem:[#allocation3_spill] sm:$0xff] }
 0x6c5   :  { %v6022_v53 = vmax.f32 %v5734_v21, %v5878_v25  ;;  %v7064_v11 = vunpack.c.l.b16 %v6457_v48  ;;  %v14655_v6 = vpop.f32.mrf.mxu2 }
 0x6c7   :  { %v6170_v7 = vadd.f32 %v14226_v22, %v6022_v53  ;;  %v12052_v53 = vld [vmem:[%s17030_s0 + $0x368] sm:$0xff] }
 0x6c9   :  { %v6314_v9 = vmax.f32 %v6170_v7, 0.0 }
 0x6ca   :  { %v4427_v18 = vpop.f32.mrf.mxu0 }
 0x6cb   :  { %v6458_v51 = vpack.c.bf16 %v6314_v9, %v6314_v9  ;;  %v5735_v4 = vmax.f32 %v12500_v29, %v4427_v18  ;;  %v5704_v29 = vpop.f32.mrf.mxu3  ;;  %v17394_v9 = vld [vmem:[#allocation79_spill] sm:$0xff] }
 0x6cd   :  { %v7065_v27 = vunpack.c.l.b16 %v6458_v51  ;;  %v6023_v61 = vmax.f32 %v5735_v4, %v5879_v38  ;;  %11249 = vmatmul.msk.bf16.gmra.mxu0 %vm2786_vm2, %v12051_v15  ;;  %v5881_v15 = vmax.f32 %v17394_v9, %v14401_v50  ;;  %v14665_v4 = vpop.f32.mrf.mxu2  ;;  %v17396_v50 = vld [vmem:[#allocation83_spill] sm:$0xff] }
 0x6cf   :  { %v7079_v24 = vpack.c.b16 %v7065_v27, %v7064_v11  ;;  %v6171_v0 = vadd.f32 %v14226_v22, %v6023_v61 }
 0x6d1   :  { %11586 = vmatmul.msk.bf16.gmra.mxu2 %vm6780_vm3, %v7079_v24  ;;  %v6315_v57 = vmax.f32 %v6171_v0, 0.0  ;;  %v5882_v24 = vmax.f32 %v17396_v50, %v14410_v52 }
 0x6d2   :  { %v4429_v63 = vpop.f32.mrf.mxu0 }
 0x6d3   :  { %v5736_v60 = vmax.f32 %v12507_v31, %v4429_v63  ;;  %v6459_v21 = vpack.c.bf16 %v6315_v57, %v6315_v57  ;;  %v5705_v48 = vpop.f32.mrf.mxu3 }
 0x6d4   :  { %v17399_v48 = vld [vmem:[#allocation4_spill] sm:$0xff] }
 0x6d5   :  { %v6024_v39 = vmax.f32 %v5736_v60, %v5880_v14  ;;  %v6672_v18 = vunpack.c.l.b16 %v6459_v21 }
 0x6d7   :  { %v6172_v25 = vadd.f32 %v14226_v22, %v6024_v39  ;;  %v12053_v39 = vld [vmem:[%s17030_s0 + $0x370] sm:$0xff] }
 0x6d9   :  { %v6316_v58 = vmax.f32 %v6172_v25, 0.0 }
 0x6da   :  { %v4432_v7 = vpop.f32.mrf.mxu0 }
 0x6db   :  { %v6460_v26 = vpack.c.bf16 %v6316_v58, %v6316_v58  ;;  %v5737_v31 = vmax.f32 %v17395_v40, %v4432_v7  ;;  %v5707_v61 = vpop.f32.mrf.mxu3  ;;  %v17398_v58 = vld [vmem:[#allocation87_spill] sm:$0xff]  ;;  %v14679_v7 = vpop.f32.mrf.mxu2 }
 0x6dd   :  { %v6673_v2 = vunpack.c.l.b16 %v6460_v26  ;;  %v6025_v38 = vmax.f32 %v5737_v31, %v5881_v15  ;;  %11250 = vmatmul.msk.bf16.gmra.mxu0 %vm2786_vm2, %v12052_v53  ;;  %v5883_v53 = vmax.f32 %v17398_v58, %v14416_v43  ;;  %v17400_v43 = vld [vmem:[#allocation91_spill] sm:$0xff] }
 0x6df   :  { %v6736_v51 = vpack.c.b16 %v6673_v2, %v6672_v18  ;;  %v6173_v11 = vadd.f32 %v14226_v22, %v6025_v38 }
 0x6e1   :  { %11545 = vmatmul.msk.bf16.vlgmr.msrb.gmra.mxu1 %vm6780_vm3, %v6736_v51  ;;  %11587 = vmatmul.msk.bf16.gmra.mxu2 %vm6780_vm3, %v6736_v51  ;;  %v6317_v63 = vmax.f32 %v6173_v11, 0.0  ;;  %v5884_v51 = vmax.f32 %v17400_v43, %v14426_v56  ;;  %v17401_v11 = vld [vmem:[#allocation5_spill] sm:$0xff] }
 0x6e2   :  { %v4434_v27 = vpop.f32.mrf.mxu0 }
 0x6e3   :  { %v5738_v0 = vmax.f32 %v17397_v55, %v4434_v27  ;;  %v6461_v60 = vpack.c.bf16 %v6317_v63, %v6317_v63  ;;  %v5708_v21 = vpop.f32.mrf.mxu3  ;;  %v14689_v61 = vpop.f32.mrf.mxu2 }
 0x6e5   :  { %v6026_v29 = vmax.f32 %v5738_v0, %v5882_v24  ;;  %v6674_v15 = vunpack.c.l.b16 %v6461_v60 }
 0x6e7   :  { %v6174_v14 = vadd.f32 %v14226_v22, %v6026_v29  ;;  %v12054_v29 = vld [vmem:[%s17030_s0 + $0x378] sm:$0xff] }
 0x6e9   :  { %v6318_v57 = vmax.f32 %v6174_v14, 0.0 }
 0x6ea   :  { %v4437_v25 = vpop.f32.mrf.mxu0 }
 0x6eb   :  { %v6462_v52 = vpack.c.bf16 %v6318_v57, %v6318_v57  ;;  %v5739_v9 = vmax.f32 %v17399_v48, %v4437_v25  ;;  %v5710_v38 = vpop.f32.mrf.mxu3  ;;  %v17402_v57 = vld [vmem:[#allocation95_spill] sm:$0xff]  ;;  %v17403_v25 = vld [vmem:[#allocation6_spill] sm:$0xff]  ;;  %v14699_v48 = vpop.f32.mrf.mxu2 }
 0x6ed   :  { %v6675_v26 = vunpack.c.l.b16 %v6462_v52  ;;  %v6027_v40 = vmax.f32 %v5739_v9, %v5883_v53  ;;  %11251 = vmatmul.msk.bf16.gmra.mxu0 %vm2786_vm2, %v12053_v39  ;;  %v5885_v39 = vmax.f32 %v17402_v57, %v14432_v10 }
 0x6ef   :  { %v6737_v31 = vpack.c.b16 %v6675_v26, %v6674_v15  ;;  %v6175_v18 = vadd.f32 %v14226_v22, %v6027_v40  ;;  %v17404_v40 = vld [vmem:[#allocation99_spill] sm:$0xff] }
 0x6f1   :  { %11546 = vmatmul.msk.bf16.gmra.mxu1 %vm6780_vm3, %v6737_v31  ;;  %11588 = vmatmul.msk.bf16.gmra.mxu2 %vm6780_vm3, %v6737_v31  ;;  %v6319_v50 = vmax.f32 %v6175_v18, 0.0  ;;  %v5886_v31 = vmax.f32 %v17404_v40, %v14442_v44  ;;  %v17405_v18 = vld [vmem:[#allocation7_spill] sm:$0xff] }
 0x6f2   :  { %v4439_v2 = vpop.f32.mrf.mxu0 }
 0x6f3   :  { %v5740_v27 = vmax.f32 %v17401_v11, %v4439_v2  ;;  %v6463_v0 = vpack.c.bf16 %v6319_v50, %v6319_v50  ;;  %v5711_v60 = vpop.f32.mrf.mxu3  ;;  %v14714_v11 = vpop.f32.mrf.mxu2 }
 0x6f5   :  { %v6028_v24 = vmax.f32 %v5740_v27, %v5884_v51  ;;  %v6676_v58 = vunpack.c.l.b16 %v6463_v0  ;;  %v14711_v51 = vld [vmem:[%s17032_s2] ss:$0 sm:$0xff]  ;;  %v17406_v0 = vld [vmem:[#allocation103_spill] sm:$0xff] }
 0x6f7   :  { %v6176_v55 = vadd.f32 %v14226_v22, %v6028_v24  ;;  %v12055_v24 = vld [vmem:[%s17030_s0 + $0x380] sm:$0xff] }
 0x6f9   :  { %v6320_v63 = vmax.f32 %v6176_v55, 0.0 }
 0x6fa   :  { %v4442_v14 = vpop.f32.mrf.mxu0 }
 0x6fb   :  { %v6464_v56 = vpack.c.bf16 %v6320_v63, %v6320_v63  ;;  %v5741_v21 = vmax.f32 %v17403_v25, %v4442_v14  ;;  %v5713_v26 = vpop.f32.mrf.mxu3  ;;  %v5887_v63 = vmax.f32 %v17406_v0, %v14448_v41  ;;  %v17407_v14 = vld [vmem:[#allocation8_spill] sm:$0xff]  ;;  %v14723_v25 = vpop.f32.mrf.mxu1 }
 0x6fd   :  { %v6677_v53 = vunpack.c.l.b16 %v6464_v56  ;;  %v6029_v52 = vmax.f32 %v5741_v21, %v5885_v39  ;;  %11252 = vmatmul.msk.bf16.gmra.mxu0 %vm2786_vm2, %v12054_v29 }
 0x6ff   :  { %v6738_v9 = vpack.c.b16 %v6677_v53, %v6676_v58  ;;  %v6177_v15 = vadd.f32 %v14226_v22, %v6029_v52  ;;  %v17408_v53 = vld [vmem:[#allocation107_spill] sm:$0xff] }
 0x700   :  { %v5888_v52 = vmax.f32 %v17408_v53, %v14458_v3  ;;  %v17410_v3 = vld [vmem:[#allocation111_spill] sm:$0xff] }
 0x701   :  { %11547 = vmatmul.msk.bf16.gmra.mxu1 %vm6780_vm3, %v6738_v9  ;;  %11589 = vmatmul.msk.bf16.gmra.mxu2 %vm6780_vm3, %v6738_v9  ;;  %v6321_v38 = vmax.f32 %v6177_v15, 0.0 }
 0x702   :  { %11629 = vmatmul.msk.bf16.vlgmr.msrb.gmra.mxu3 %vm6780_vm3, %v6738_v9  ;;  %v4444_v10 = vpop.f32.mrf.mxu0  ;;  %v17409_v9 = vld [vmem:[#allocation9_spill] sm:$0xff] }
 0x703   :  { %v5742_v2 = vmax.f32 %v17405_v18, %v4444_v10  ;;  %v6465_v27 = vpack.c.bf16 %v6321_v38, %v6321_v38  ;;  %v5714_v55 = vpop.f32.mrf.mxu3  ;;  %v14732_v10 = vpop.f32.mrf.mxu2 }
 0x705   :  { %v6030_v43 = vmax.f32 %v5742_v2, %v5886_v31  ;;  %v6678_v57 = vunpack.c.l.b16 %v6465_v27  ;;  %v14735_v2 = vpop.f32.mrf.mxu1 }
 0x707   :  { %v6178_v22 = vadd.f32 %v14711_v51, %v6030_v43 }
 0x709   :  { %v6322_v50 = vmax.f32 %v6178_v22, 0.0  ;;  %v12056_v22 = vld [vmem:[%s17030_s0 + $0x388] sm:$0xff] }
 0x70a   :  { %v4447_v44 = vpop.f32.mrf.mxu0 }
 0x70b   :  { %v6466_v29 = vpack.c.bf16 %v6322_v50, %v6322_v50  ;;  %v5743_v60 = vmax.f32 %v17407_v14, %v4447_v44  ;;  %v5716_v26 = vpop.f32.mrf.mxu3  ;;  %v5889_v50 = vmax.f32 %v17410_v3, %v14464_v35  ;;  %v17411_v44 = vld [vmem:[#allocation10_spill] sm:$0xff]  ;;  %v17415_v3 = vld [vmem:[#allocation12_spill] sm:$0xff] }
 0x70d   :  { %v6679_v39 = vunpack.c.l.b16 %v6466_v29  ;;  %v6031_v56 = vmax.f32 %v5743_v60, %v5887_v63  ;;  %11253 = vmatmul.msk.bf16.gmra.mxu0 %vm2786_vm2, %v12055_v24  ;;  %v14744_v60 = vpop.f32.mrf.mxu2 }
 0x70f   :  { %v6739_v21 = vpack.c.b16 %v6679_v39, %v6678_v57  ;;  %v6179_v58 = vadd.f32 %v14711_v51, %v6031_v56  ;;  %v14750_v56 = vpop.f32.mrf.mxu1 }
 0x711   :  { %11548 = vmatmul.msk.bf16.gmra.mxu1 %vm6780_vm3, %v6739_v21  ;;  %11590 = vmatmul.msk.bf16.gmra.mxu2 %vm6780_vm3, %v6739_v21  ;;  %v6323_v40 = vmax.f32 %v6179_v58, 0.0 }
 0x712   :  { %11630 = vmatmul.msk.bf16.gmra.mxu3 %vm6780_vm3, %v6739_v21  ;;  %v4449_v41 = vpop.f32.mrf.mxu0  ;;  %v17412_v21 = vld [vmem:[#allocation115_spill] sm:$0xff] }
 0x713   :  { %v5744_v15 = vmax.f32 %v17409_v9, %v4449_v41  ;;  %v6467_v38 = vpack.c.bf16 %v6323_v40, %v6323_v40  ;;  %v5717_v0 = vpop.f32.mrf.mxu3  ;;  %v5890_v58 = vmax.f32 %v17412_v21, %v14474_v17  ;;  %v17413_v41 = vld [vmem:[#allocation11_spill] sm:$0xff]  ;;  %v17417_v21 = vld [vmem:[#allocation13_spill] sm:$0xff] }
 0x715   :  { %v6032_v31 = vmax.f32 %v5744_v15, %v5888_v52  ;;  %v6680_v63 = vunpack.c.l.b16 %v6467_v38  ;;  %v14756_v40 = vpop.f32.mrf.mxu2  ;;  %v12057_v38 = vld [vmem:[%s17030_s0 + $0x390] sm:$0xff] }
 0x717   :  { %v6180_v18 = vadd.f32 %v14711_v51, %v6032_v31 }
 0x719   :  { %v6324_v43 = vmax.f32 %v6180_v18, 0.0 }
 0x71a   :  { %v4452_v27 = vpop.f32.mrf.mxu0 }
 0x71b   :  { %v6468_v24 = vpack.c.bf16 %v6324_v43, %v6324_v43  ;;  %v5745_v55 = vmax.f32 %v17411_v44, %v4452_v27  ;;  %v5719_v52 = vpop.f32.mrf.mxu3  ;;  %v14764_v44 = vpop.f32.mrf.mxu1 }
 0x71d   :  { %v6681_v29 = vunpack.c.l.b16 %v6468_v24  ;;  %v6033_v14 = vmax.f32 %v5745_v55, %v5889_v50  ;;  %11254 = vmatmul.msk.bf16.gmra.mxu0 %vm2786_vm2, %v12056_v22  ;;  %v17414_v22 = vld [vmem:[#allocation118_spill] sm:$0xff] }
 0x71e   :  { %v5891_v27 = vmax.f32 %v17414_v22, %v14480_v12 }
 0x71f   :  { %v6740_v57 = vpack.c.b16 %v6681_v29, %v6680_v63  ;;  %v6181_v39 = vadd.f32 %v14711_v51, %v6033_v14 }
 0x721   :  { %11549 = vmatmul.msk.bf16.gmra.mxu1 %vm6780_vm3, %v6740_v57  ;;  %11591 = vmatmul.msk.bf16.gmra.mxu2 %vm6780_vm3, %v6740_v57  ;;  %v6325_v9 = vmax.f32 %v6181_v39, 0.0  ;;  %v17416_v39 = vld [vmem:[#allocation121_spill] sm:$0xff] }
 0x722   :  { %11631 = vmatmul.msk.bf16.gmra.mxu3 %vm6780_vm3, %v6740_v57  ;;  %v4454_v35 = vpop.f32.mrf.mxu0  ;;  %v14770_v57 = vpop.f32.mrf.mxu2 }
 0x723   :  { %v5746_v53 = vmax.f32 %v17413_v41, %v4454_v35  ;;  %v6469_v31 = vpack.c.bf16 %v6325_v9, %v6325_v9  ;;  %v5720_v24 = vpop.f32.mrf.mxu3  ;;  %v5892_v35 = vmax.f32 %v17416_v39, %v14490_v62  ;;  %v14776_v9 = vpop.f32.mrf.mxu1 }
 0x725   :  { %v6034_v15 = vmax.f32 %v5746_v53, %v5890_v58  ;;  %v6682_v55 = vunpack.c.l.b16 %v6469_v31 }
 0x727   :  { %v6182_v26 = vadd.f32 %v14711_v51, %v6034_v15 }
 0x729   :  { %v6326_v18 = vmax.f32 %v6182_v26, 0.0 }
 0x72a   :  { %v4457_v43 = vpop.f32.mrf.mxu0 }
 0x72b   :  { %v6470_v17 = vpack.c.bf16 %v6326_v18, %v6326_v18  ;;  %v5747_v50 = vmax.f32 %v17415_v3, %v4457_v43  ;;  %v5722_v41 = vpop.f32.mrf.mxu3  ;;  %v12058_v18 = vld [vmem:[%s17030_s0 + $0x398] sm:$0xff]  ;;  %v17418_v43 = vld [vmem:[#allocation123_spill] sm:$0xff]  ;;  %v14785_v3 = vpop.f32.mrf.mxu2 }
 0x72c   :  { %v5893_v22 = vmax.f32 %v17418_v43, %v14496_v45 }
 0x72d   :  { %v6683_v0 = vunpack.c.l.b16 %v6470_v17  ;;  %v6035_v63 = vmax.f32 %v5747_v50, %v5891_v27  ;;  %11255 = vmatmul.msk.bf16.gmra.mxu0 %vm2786_vm2, %v12057_v38  ;;  %v17419_v27 = vld [vmem:[#allocation14_spill] sm:$0xff] }
 0x72f   :  { %v6741_v29 = vpack.c.b16 %v6683_v0, %v6682_v55  ;;  %v6183_v14 = vadd.f32 %v14711_v51, %v6035_v63 }
 0x731   :  { %11550 = vmatmul.msk.bf16.gmra.mxu1 %vm6780_vm3, %v6741_v29  ;;  %11592 = vmatmul.msk.bf16.gmra.mxu2 %vm6780_vm3, %v6741_v29  ;;  %v6327_v53 = vmax.f32 %v6183_v14, 0.0 }
 0x732   :  { %11632 = vmatmul.msk.bf16.gmra.mxu3 %vm6780_vm3, %v6741_v29  ;;  %v4459_v12 = vpop.f32.mrf.mxu0  ;;  %v14788_v29 = vpop.f32.mrf.mxu1 }
 0x733   :  { %v5748_v58 = vmax.f32 %v17417_v21, %v4459_v12  ;;  %v6471_v26 = vpack.c.bf16 %v6327_v53, %v6327_v53  ;;  %v5723_v50 = vpop.f32.mrf.mxu3  ;;  %v17420_v12 = vld [vmem:[#allocation125_spill] sm:$0xff] }
 0x734   :  { %v5894_v39 = vmax.f32 %v17420_v12, %v14506_v1 }
 0x735   :  { %v6036_v52 = vmax.f32 %v5748_v58, %v5892_v35  ;;  %v6684_v24 = vunpack.c.l.b16 %v6471_v26  ;;  %v17421_v35 = vld [vmem:[#allocation15_spill] sm:$0xff] }
 0x737   :  { %v6184_v15 = vadd.f32 %v14711_v51, %v6036_v52 }
 0x739   :  { %v6328_v31 = vmax.f32 %v6184_v15, 0.0 }
 0x73a   :  { %v4462_v38 = vpop.f32.mrf.mxu0  ;;  %v14800_v43 = vpop.f32.mrf.mxu1 }
 0x73b   :  { %v6472_v62 = vpack.c.bf16 %v6328_v31, %v6328_v31  ;;  %v5749_v17 = vmax.f32 %v17419_v27, %v4462_v38  ;;  %v5725_v41 = vpop.f32.mrf.mxu3  ;;  %v17423_v27 = vld [vmem:[#allocation16_spill] sm:$0xff] }
 0x73d   :  { %v6685_v55 = vunpack.c.l.b16 %v6472_v62  ;;  %v6037_v0 = vmax.f32 %v5749_v17, %v5893_v22  ;;  %11256 = vmatmul.msk.bf16.gmra.mxu0 %vm2786_vm2, %v12058_v18  ;;  %v12059_v18 = vld [vmem:[%s17030_s0 + $0x3a0] sm:$0xff]  ;;  %v17422_v22 = vld [vmem:[#allocation128_spill] sm:$0xff] }
 0x73e   :  { %v5895_v1 = vmax.f32 %v17422_v22, %v14512_v30  ;;  %v17424_v30 = vld [vmem:[#allocation131_spill] sm:$0xff] }
 0x73f   :  { %v6742_v63 = vpack.c.b16 %v6685_v55, %v6684_v24  ;;  %v6185_v14 = vadd.f32 %v14711_v51, %v6037_v0  ;;  %v12060_v22 = vld [vmem:[%s17030_s0 + $0x3a8] sm:$0xff] }
 0x741   :  { %11551 = vmatmul.msk.bf16.gmra.mxu1 %vm6780_vm3, %v6742_v63  ;;  %v6329_v53 = vmax.f32 %v6185_v14, 0.0 }
 0x742   :  { %11633 = vmatmul.msk.bf16.gmra.mxu3 %vm6780_vm3, %v6742_v63  ;;  %v4464_v45 = vpop.f32.mrf.mxu0 }
 0x743   :  { %v5750_v21 = vmax.f32 %v17421_v35, %v4464_v45  ;;  %v6473_v26 = vpack.c.bf16 %v6329_v53, %v6329_v53  ;;  %v5726_v24 = vpop.f32.mrf.mxu3  ;;  %v17425_v35 = vld [vmem:[#allocation17_spill] sm:$0xff] }
 0x744   :  { %v7131_v58 = vpop.f32.mrf.mxu2 }
 0x745   :  { %v6038_v52 = vmax.f32 %v5750_v21, %v5894_v39  ;;  %v6686_v55 = vunpack.c.l.b16 %v6473_v26  ;;  %v5896_v39 = vmax.f32 %v17424_v30, %v14522_v13 }
 0x747   :  { %v6186_v15 = vadd.f32 %v14711_v51, %v6038_v52 }
 0x749   :  { %v6330_v31 = vmax.f32 %v6186_v15, 0.0  ;;  %v14814_v15 = vpop.f32.mrf.mxu1 }
 0x74a   :  { %v4467_v38 = vpop.f32.mrf.mxu0 }
 0x74b   :  { %v6474_v62 = vpack.c.bf16 %v6330_v31, %v6330_v31  ;;  %v5751_v17 = vmax.f32 %v17423_v27, %v4467_v38  ;;  %v5728_v41 = vpop.f32.mrf.mxu3 }
 0x74c   :  { %v14805_v50 = vpop.f32.mrf.mxu2 }
 0x74d   :  { %v6687_v0 = vunpack.c.l.b16 %v6474_v62  ;;  %v6039_v63 = vmax.f32 %v5751_v17, %v5895_v1  ;;  %11257 = vmatmul.msk.bf16.gmra.mxu0 %vm2786_vm2, %v12059_v18  ;;  %v17426_v62 = vld [vmem:[#allocation134_spill] sm:$0xff] }
 0x74e   :  { %v5897_v13 = vmax.f32 %v17426_v62, %v14528_v32  ;;  %v17427_v17 = vld [vmem:[#allocation18_spill] sm:$0xff]  ;;  %v17428_v32 = vld [vmem:[#allocation137_spill] sm:$0xff]  ;;  %v12061_v62 = vld [vmem:[%s17030_s0 + $0x3b0] sm:$0xff] }
 0x74f   :  { %v6743_v14 = vpack.c.b16 %v6687_v0, %v6686_v55  ;;  %v6187_v45 = vadd.f32 %v14711_v51, %v6039_v63  ;;  %v5898_v41 = vmax.f32 %v17428_v32, %v14538_v16 }
 0x751   :  { %11552 = vmatmul.msk.bf16.gmra.mxu1 %vm6780_vm3, %v6743_v14  ;;  %v6331_v53 = vmax.f32 %v6187_v45, 0.0 }
 0x752   :  { %11634 = vmatmul.msk.bf16.gmra.mxu3 %vm6780_vm3, %v6743_v14  ;;  %v4469_v12 = vpop.f32.mrf.mxu0 }
 0x753   :  { %v5752_v21 = vmax.f32 %v17425_v35, %v4469_v12  ;;  %v6475_v18 = vpack.c.bf16 %v6331_v53, %v6331_v53  ;;  %v5729_v55 = vpop.f32.mrf.mxu3  ;;  %v17429_v53 = vld [vmem:[#allocation19_spill] sm:$0xff] }
 0x754   :  { %v7136_v26 = vpop.f32.mrf.mxu2 }
 0x755   :  { %v6040_v52 = vmax.f32 %v5752_v21, %v5896_v39  ;;  %v7312_v0 = vunpack.c.l.b16 %v6475_v18 }
 0x757   :  { %v6188_v31 = vadd.f32 %v14711_v51, %v6040_v52 }
 0x759   :  { %v6332_v38 = vmax.f32 %v6188_v31, 0.0 }
 0x75a   :  { %v4472_v1 = vpop.f32.mrf.mxu0 }
 0x75b   :  { %v6476_v27 = vpack.c.bf16 %v6332_v38, %v6332_v38  ;;  %v5753_v24 = vmax.f32 %v17427_v17, %v4472_v1 }
 0x75c   :  { %v14824_v39 = vpop.f32.mrf.mxu2 }
 0x75d   :  { %v7313_v63 = vunpack.c.l.b16 %v6476_v27  ;;  %v6041_v14 = vmax.f32 %v5753_v24, %v5897_v13  ;;  %11258 = vmatmul.msk.bf16.gmra.mxu0 %vm2786_vm2, %v12060_v22 }
 0x75e   :  { %v6886_v45 = vpop.f32.mrf.mxu1 }
 0x75f   :  { %v7132_v12 = vadd.f32 %v7131_v58, %v6886_v45  ;;  %v7328_v30 = vpack.c.b16 %v7313_v63, %v7312_v0  ;;  %v6189_v35 = vadd.f32 %v14711_v51, %v6041_v14 }
 0x761   :  { %v6333_v31 = vmax.f32 %v6189_v35, 0.0  ;;  %v12062_v35 = vld [vmem:[%s17030_s0 + $0x3b8] sm:$0xff] }
 0x762   :  { %11635 = vmatmul.msk.bf16.gmra.mxu3 %vm6780_vm3, %v7328_v30  ;;  %v4474_v21 = vpop.f32.mrf.mxu0 }
 0x763   :  { %v5754_v52 = vmax.f32 %v17429_v53, %v4474_v21  ;;  %v6477_v58 = vpack.c.bf16 %v6333_v31, %v6333_v31 }
 0x764   :  { %v7141_v13 = vpop.f32.mrf.mxu2 }
 0x765   :  { %v6042_v18 = vmax.f32 %v5754_v52, %v5898_v41  ;;  %v7314_v24 = vunpack.c.l.b16 %v6477_v58  ;;  %v12063_v58 = vld [vmem:[%s17030_s0 + $0x3c0] sm:$0xff] }
 0x766   :  { %v14831_v38 = vpop.f32.mrf.mxu1 }
 0x767   :  { %v6190_v22 = vadd.f32 %v14711_v51, %v6042_v18 }
 0x769   :  { %v6334_v1 = vmax.f32 %v6190_v22, 0.0 }
 0x76a   :  { %v4477_v27 = vpop.f32.mrf.mxu0 }
 0x76b   :  { %v6478_v17 = vpack.c.bf16 %v6334_v1, %v6334_v1 }
 0x76c   :  { %v14839_v45 = vpop.f32.mrf.mxu2 }
 0x76d   :  { %v7315_v55 = vunpack.c.l.b16 %v6478_v17  ;;  %11259 = vmatmul.msk.bf16.gmra.mxu0 %vm2786_vm2, %v12061_v62  ;;  %v17431_v62 = vld [vmem:[#allocation151_spill] sm:$0xff]  ;;  %v17432_v17 = vld [vmem:[#allocation20_spill] sm:$0xff] }
 0x76e   :  { %v6891_v16 = vpop.f32.mrf.mxu1  ;;  %v5899_v27 = vmax.f32 %v17431_v62, %v14583_v49 }
 0x76f   :  { %v7137_v0 = vadd.f32 %v7136_v26, %v6891_v16  ;;  %v7329_v63 = vpack.c.b16 %v7315_v55, %v7314_v24 }
 0x772   :  { %11636 = vmatmul.msk.bf16.gmra.mxu3 %vm6780_vm3, %v7329_v63  ;;  %v4478_v14 = vpop.f32.mrf.mxu0 }
 0x774   :  { %v7146_v32 = vpop.f32.mrf.mxu2 }
 0x776   :  { %v14841_v30 = vpop.f32.mrf.mxu1 }
 0x77a   :  { %v4480_v21 = vpop.f32.mrf.mxu0 }
 0x77b   :  { %v17433_v21 = vld [vmem:[#allocation155_spill] sm:$0xff] }
 0x77c   :  { %v14851_v22 = vpop.f32.mrf.mxu2 }
 0x77d   :  { %11260 = vmatmul.msk.bf16.gmra.mxu0 %vm2786_vm2, %v12062_v35  ;;  %17430 = vst [vmem:[#allocation79_spill] sm:$0xff] %v14851_v22 }
 0x77e   :  { %v6896_v41 = vpop.f32.mrf.mxu1 }
 0x77f   :  { %v7142_v53 = vadd.f32 %v7141_v13, %v6896_v41  ;;  %v5900_v41 = vmax.f32 %v17433_v21, %v14589_v37  ;;  %v17435_v37 = vld [vmem:[#allocation159_spill] sm:$0xff] }
 0x780   :  { %v5901_v21 = vmax.f32 %v17435_v37, %v14596_v33 }
 0x782   :  { %v4481_v52 = vpop.f32.mrf.mxu0 }
 0x783   :  { %v17434_v52 = vld [vmem:[#allocation21_spill] sm:$0xff] }
 0x784   :  { %v7151_v14 = vpop.f32.mrf.mxu2 }
 0x785   :  { %v7381_v26 = vpop.f32.mrf.mxu3 }
 0x786   :  { %v14847_v31 = vadd.f32 %v7381_v26, %v7132_v12  ;;  %v14849_v18 = vpop.f32.mrf.mxu1 }
 0x78a   :  { %v4483_v1 = vpop.f32.mrf.mxu0 }
 0x78b   :  { %v5755_v24 = vmax.f32 %v17432_v17, %v4483_v1 }
 0x78d   :  { %v6043_v55 = vmax.f32 %v5755_v24, %v5899_v27  ;;  %v14859_v13 = vpop.f32.mrf.mxu3  ;;  %11261 = vmatmul.msk.bf16.gmra.mxu0 %vm2786_vm2, %v12063_v58 }
 0x78e   :  { %v6901_v12 = vpop.f32.mrf.mxu1 }
 0x78f   :  { %v14862_v16 = vadd.f32 %v7146_v32, %v6901_v12  ;;  %v6191_v63 = vadd.f32 %v14711_v51, %v6043_v55  ;;  %v12064_v55 = vld [vmem:[%s17030_s0 + $0x3c8] sm:$0xff] }
 0x791   :  { %v6335_v49 = vmax.f32 %v6191_v63, 0.0  ;;  %v17436_v63 = vld [vmem:[#allocation22_spill] sm:$0xff] }
 0x792   :  { %v4485_v35 = vpop.f32.mrf.mxu0 }
 0x793   :  { %v5756_v26 = vmax.f32 %v17434_v52, %v4485_v35  ;;  %v6479_v32 = vpack.c.bf16 %v6335_v49, %v6335_v49  ;;  %v14879_v52 = vpop.f32.mrf.mxu2 }
 0x794   :  { %17437 = vst [vmem:[#allocation2_spill] sm:$0xff] %v14879_v52  ;;  %v17558_v52 = vld [vmem:[#allocation274_spill] sm:$0xff] }
 0x795   :  { %v6044_v62 = vmax.f32 %v5756_v26, %v5900_v41  ;;  %v7386_v1 = vpop.f32.mrf.mxu3 }
 0x796   :  { %v14868_v27 = vadd.f32 %v7386_v1, %v7137_v0  ;;  %v14870_v17 = vpop.f32.mrf.mxu1  ;;  %v7066_v0 = vunpack.c.l.b16 %v6479_v32 }
 0x797   :  { %v6192_v58 = vadd.f32 %v14711_v51, %v6044_v62 }
 0x799   :  { %v6336_v24 = vmax.f32 %v6192_v58, 0.0 }
 0x79a   :  { %v4488_v12 = vpop.f32.mrf.mxu0 }
 0x79b   :  { %v6480_v35 = vpack.c.bf16 %v6336_v24, %v6336_v24  ;;  %v5757_v41 = vmax.f32 %v17436_v63, %v4488_v12  ;;  %v17438_v24 = vld [vmem:[#allocation163_spill] sm:$0xff] }
 0x79c   :  { %v5902_v32 = vmax.f32 %v17438_v24, %v14605_v8  ;;  %v17439_v12 = vld [vmem:[#allocation23_spill] sm:$0xff]  ;;  %v17442_v24 = vld [vmem:[#allocation24_spill] sm:$0xff] }
 0x79d   :  { %v7067_v26 = vunpack.c.l.b16 %v6480_v35  ;;  %v6045_v1 = vmax.f32 %v5757_v41, %v5901_v21  ;;  %v14881_v42 = vpop.f32.mrf.mxu3  ;;  %11262 = vmatmul.msk.bf16.gmra.mxu0 %vm2786_vm2, %v12064_v55  ;;  %v7156_v55 = vpop.f32.mrf.mxu2  ;;  %v17441_v8 = vld [vmem:[#allocation167_spill] sm:$0xff] }
 0x79e   :  { %v6906_v49 = vpop.f32.mrf.mxu1 }
 0x79f   :  { %v14884_v62 = vadd.f32 %v7151_v14, %v6906_v49  ;;  %v14886_v58 = vpack.c.b16 %v7067_v26, %v7066_v0  ;;  %v6193_v34 = vadd.f32 %v14711_v51, %v6045_v1  ;;  %v12065_v49 = vld [vmem:[%s17030_s0 + $0x3d0] sm:$0xff] }
 0x7a1   :  { %11593 = vmatmul.msk.bf16.gmra.mxu2 %vm6780_vm3, %v14886_v58  ;;  %v6337_v21 = vmax.f32 %v6193_v34, 0.0 }
 0x7a2   :  { %v4490_v33 = vpop.f32.mrf.mxu0 }
 0x7a3   :  { %v5758_v37 = vmax.f32 %v17439_v12, %v4490_v33  ;;  %v6481_v26 = vpack.c.bf16 %v6337_v21, %v6337_v21  ;;  %v5903_v33 = vmax.f32 %v17441_v8, %v14616_v19  ;;  %v17444_v19 = vld [vmem:[#allocation171_spill] sm:$0xff] }
 0x7a5   :  { %v6046_v35 = vmax.f32 %v5758_v37, %v5902_v32  ;;  %v7391_v63 = vpop.f32.mrf.mxu3  ;;  %v7068_v12 = vunpack.c.l.b16 %v6481_v26  ;;  %v14912_v5 = vpop.f32.mrf.mxu2  ;;  %v5904_v26 = vmax.f32 %v17444_v19, %v14633_v36 }
 0x7a6   :  { %v14894_v41 = vadd.f32 %v7391_v63, %v7142_v53  ;;  %v14896_v14 = vpop.f32.mrf.mxu1  ;;  %17443 = vst [vmem:[#allocation3_spill] sm:$0xff] %v14912_v5 }
 0x7a7   :  { %17440 = vst [vmem:[#allocation83_spill] sm:$0xff] %v14896_v14  ;;  %v6194_v0 = vadd.f32 %v14711_v51, %v6046_v35 }
 0x7a9   :  { %v6338_v1 = vmax.f32 %v6194_v0, 0.0 }
 0x7aa   :  { %v4493_v54 = vpop.f32.mrf.mxu0 }
 0x7ab   :  { %v6482_v34 = vpack.c.bf16 %v6338_v1, %v6338_v1  ;;  %v5759_v32 = vmax.f32 %v17442_v24, %v4493_v54  ;;  %v17445_v1 = vld [vmem:[#allocation25_spill] sm:$0xff] }
 0x7ad   :  { %v7069_v53 = vunpack.c.l.b16 %v6482_v34  ;;  %v6047_v37 = vmax.f32 %v5759_v32, %v5903_v33  ;;  %v14905_v63 = vpop.f32.mrf.mxu3  ;;  %11263 = vmatmul.msk.bf16.gmra.mxu0 %vm2786_vm2, %v12065_v49 }
 0x7ae   :  { %v6911_v21 = vpop.f32.mrf.mxu1 }
 0x7af   :  { %v14908_v35 = vadd.f32 %v7156_v55, %v6911_v21  ;;  %v14910_v0 = vpack.c.b16 %v7069_v53, %v7068_v12  ;;  %v6195_v59 = vadd.f32 %v14711_v51, %v6047_v37  ;;  %v12066_v37 = vld [vmem:[%s17030_s0 + $0x3d8] sm:$0xff]  ;;  %v7161_v21 = vpop.f32.mrf.mxu2 }
 0x7b1   :  { %11594 = vmatmul.msk.bf16.gmra.mxu2 %vm6780_vm3, %v14910_v0  ;;  %v6339_v33 = vmax.f32 %v6195_v59, 0.0 }
 0x7b2   :  { %v4495_v54 = vpop.f32.mrf.mxu0 }
 0x7b3   :  { %v5760_v8 = vmax.f32 %v17445_v1, %v4495_v54  ;;  %v6483_v12 = vpack.c.bf16 %v6339_v33, %v6339_v33  ;;  %v17447_v54 = vld [vmem:[#allocation175_spill] sm:$0xff] }
 0x7b4   :  { %v5905_v59 = vmax.f32 %v17447_v54, %v14643_v23 }
 0x7b5   :  { %v6048_v49 = vmax.f32 %v5760_v8, %v5904_v26  ;;  %v7396_v34 = vpop.f32.mrf.mxu3  ;;  %v17448_v26 = vld [vmem:[#allocation26_spill] sm:$0xff] }
 0x7b6   :  { %v14921_v55 = vadd.f32 %v7396_v34, %v14862_v16  ;;  %v14923_v24 = vpop.f32.mrf.mxu1  ;;  %v6688_v16 = vunpack.c.l.b16 %v6483_v12  ;;  %v17450_v12 = vld [vmem:[#allocation179_spill] sm:$0xff] }
 0x7b7   :  { %17446 = vst [vmem:[#allocation87_spill] sm:$0xff] %v14923_v24  ;;  %v6196_v32 = vadd.f32 %v14711_v51, %v6048_v49  ;;  %v17519_v24 = vld [vmem:[#allocation52_spill] sm:$0xff] }
 0x7b9   :  { %v6340_v53 = vmax.f32 %v6196_v32, 0.0 }
 0x7ba   :  { %v4498_v36 = vpop.f32.mrf.mxu0 }
 0x7bb   :  { %v6484_v19 = vpack.c.bf16 %v6340_v53, %v6340_v53  ;;  %v5761_v1 = vmax.f32 %v17448_v26, %v4498_v36  ;;  %v5906_v53 = vmax.f32 %v17450_v12, %v14655_v6  ;;  %v17451_v36 = vld [vmem:[#allocation27_spill] sm:$0xff]  ;;  %v12067_v6 = vld [vmem:[%s17030_s0 + $0x3e0] sm:$0xff] }
 0x7bd   :  { %v6689_v8 = vunpack.c.l.b16 %v6484_v19  ;;  %v6049_v34 = vmax.f32 %v5761_v1, %v5905_v59  ;;  %v14932_v47 = vpop.f32.mrf.mxu3  ;;  %11264 = vmatmul.msk.bf16.gmra.mxu0 %vm2786_vm2, %v12066_v37  ;;  %v14947_v37 = vpop.f32.mrf.mxu2 }
 0x7be   :  { %17449 = vst [vmem:[#allocation4_spill] sm:$0xff] %v14932_v47  ;;  %v6916_v33 = vpop.f32.mrf.mxu1 }
 0x7bf   :  { %v14935_v49 = vadd.f32 %v7161_v21, %v6916_v33  ;;  %v14937_v32 = vpack.c.b16 %v6689_v8, %v6688_v16  ;;  %v6197_v28 = vadd.f32 %v14711_v51, %v6049_v34  ;;  %17452 = vst [vmem:[#allocation91_spill] sm:$0xff] %v14947_v37 }
 0x7c1   :  { %11553 = vmatmul.msk.bf16.gmra.mxu1 %vm6780_vm3, %v14937_v32  ;;  %11595 = vmatmul.msk.bf16.gmra.mxu2 %vm6780_vm3, %v14937_v32  ;;  %v6341_v21 = vmax.f32 %v6197_v28, 0.0 }
 0x7c2   :  { %v4500_v23 = vpop.f32.mrf.mxu0 }
 0x7c3   :  { %v5762_v54 = vmax.f32 %v17451_v36, %v4500_v23  ;;  %v6485_v8 = vpack.c.bf16 %v6341_v21, %v6341_v21  ;;  %v17455_v23 = vld [vmem:[#allocation183_spill] sm:$0xff] }
 0x7c4   :  { %v5907_v12 = vmax.f32 %v17455_v23, %v14665_v4 }
 0x7c5   :  { %v6050_v59 = vmax.f32 %v5762_v54, %v5906_v53  ;;  %v7401_v19 = vpop.f32.mrf.mxu3  ;;  %v17456_v53 = vld [vmem:[#allocation28_spill] sm:$0xff]  ;;  %v6690_v54 = vunpack.c.l.b16 %v6485_v8  ;;  %v7166_v21 = vpop.f32.mrf.mxu2  ;;  %v17458_v8 = vld [vmem:[#allocation187_spill] sm:$0xff] }
 0x7c6   :  { %v14950_v26 = vadd.f32 %v7401_v19, %v14884_v62  ;;  %v14952_v1 = vpop.f32.mrf.mxu1 }
 0x7c7   :  { %17454 = vst [vmem:[#allocation95_spill] sm:$0xff] %v14952_v1  ;;  %v6198_v16 = vadd.f32 %v14711_v51, %v6050_v59 }
 0x7c8   :  { %17453 = vst [vmem:[#allocation5_spill] sm:$0xff] %v14950_v26 }
 0x7c9   :  { %v6342_v34 = vmax.f32 %v6198_v16, 0.0 }
 0x7ca   :  { %v4503_v33 = vpop.f32.mrf.mxu0 }
 0x7cb   :  { %v6486_v28 = vpack.c.bf16 %v6342_v34, %v6342_v34  ;;  %v5763_v36 = vmax.f32 %v17456_v53, %v4503_v33  ;;  %v5908_v34 = vmax.f32 %v17458_v8, %v14679_v7  ;;  %v17459_v33 = vld [vmem:[#allocation29_spill] sm:$0xff] }
 0x7cd   :  { %v6691_v62 = vunpack.c.l.b16 %v6486_v28  ;;  %v6051_v19 = vmax.f32 %v5763_v36, %v5907_v12  ;;  %v14961_v20 = vpop.f32.mrf.mxu3  ;;  %11265 = vmatmul.msk.bf16.gmra.mxu0 %vm2786_vm2, %v12067_v6 }
 0x7ce   :  { %17457 = vst [vmem:[#allocation6_spill] sm:$0xff] %v14961_v20  ;;  %v6921_v59 = vpop.f32.mrf.mxu1 }
 0x7cf   :  { %v7167_v16 = vadd.f32 %v7166_v21, %v6921_v59  ;;  %v14964_v46 = vpack.c.b16 %v6691_v62, %v6690_v54  ;;  %v6199_v37 = vadd.f32 %v14711_v51, %v6051_v19  ;;  %v12068_v19 = vld [vmem:[%s17030_s0 + $0x3e8] sm:$0xff] }
 0x7d0   :  { %v17461_v59 = vld [vmem:[#allocation191_spill] sm:$0xff] }
 0x7d1   :  { %11554 = vmatmul.msk.bf16.gmra.mxu1 %vm6780_vm3, %v14964_v46  ;;  %11596 = vmatmul.msk.bf16.gmra.mxu2 %vm6780_vm3, %v14964_v46  ;;  %v6343_v6 = vmax.f32 %v6199_v37, 0.0  ;;  %v5909_v7 = vmax.f32 %v17461_v59, %v14689_v61 }
 0x7d2   :  { %v4505_v4 = vpop.f32.mrf.mxu0 }
 0x7d3   :  { %v5764_v23 = vmax.f32 %v17459_v33, %v4505_v4  ;;  %v6487_v54 = vpack.c.bf16 %v6343_v6, %v6343_v6  ;;  %v17462_v4 = vld [vmem:[#allocation30_spill] sm:$0xff] }
 0x7d5   :  { %v6052_v12 = vmax.f32 %v5764_v23, %v5908_v34  ;;  %v7406_v28 = vpop.f32.mrf.mxu3  ;;  %v6692_v34 = vunpack.c.l.b16 %v6487_v54  ;;  %v17465_v54 = vld [vmem:[#allocation31_spill] sm:$0xff] }
 0x7d6   :  { %v14975_v53 = vadd.f32 %v7406_v28, %v14908_v35  ;;  %v17464_v28 = vld [vmem:[#allocation195_spill] sm:$0xff] }
 0x7d7   :  { %v6200_v36 = vadd.f32 %v14711_v51, %v6052_v12 }
 0x7d8   :  { %17460 = vst [vmem:[#allocation99_spill] sm:$0xff] %v14975_v53 }
 0x7d9   :  { %v6344_v62 = vmax.f32 %v6200_v36, 0.0  ;;  %v5910_v36 = vmax.f32 %v17464_v28, %v14699_v48 }
 0x7da   :  { %v4508_v21 = vpop.f32.mrf.mxu0 }
 0x7db   :  { %v6488_v8 = vpack.c.bf16 %v6344_v62, %v6344_v62  ;;  %v5765_v37 = vmax.f32 %v17462_v4, %v4508_v21 }
 0x7dd   :  { %v6693_v33 = vunpack.c.l.b16 %v6488_v8  ;;  %v6053_v23 = vmax.f32 %v5765_v37, %v5909_v7  ;;  %v14984_v35 = vpop.f32.mrf.mxu3  ;;  %11266 = vmatmul.msk.bf16.gmra.mxu0 %vm2786_vm2, %v12068_v19 }
 0x7de   :  { %17463 = vst [vmem:[#allocation7_spill] sm:$0xff] %v14984_v35 }
 0x7df   :  { %v14987_v6 = vpack.c.b16 %v6693_v33, %v6692_v34  ;;  %v6201_v12 = vadd.f32 %v14711_v51, %v6053_v23  ;;  %v12069_v34 = vld [vmem:[%s17030_s0 + $0x3f0] sm:$0xff]  ;;  %v17467_v23 = vld [vmem:[#allocation199_spill] sm:$0xff] }
 0x7e0   :  { %v5911_v48 = vmax.f32 %v17467_v23, %v14714_v11 }
 0x7e1   :  { %11555 = vmatmul.msk.bf16.gmra.mxu1 %vm6780_vm3, %v14987_v6  ;;  %11597 = vmatmul.msk.bf16.gmra.mxu2 %vm6780_vm3, %v14987_v6  ;;  %v6345_v19 = vmax.f32 %v6201_v12, 0.0 }
 0x7e2   :  { %11637 = vmatmul.msk.bf16.gmra.mxu3 %vm6780_vm3, %v14987_v6  ;;  %v4510_v61 = vpop.f32.mrf.mxu0 }
 0x7e3   :  { %v5766_v62 = vmax.f32 %v17465_v54, %v4510_v61  ;;  %v6489_v4 = vpack.c.bf16 %v6345_v19, %v6345_v19  ;;  %v17468_v61 = vld [vmem:[#allocation32_spill] sm:$0xff] }
 0x7e5   :  { %v6054_v21 = vmax.f32 %v5766_v62, %v5910_v36  ;;  %v7411_v59 = vpop.f32.mrf.mxu3  ;;  %v6694_v36 = vunpack.c.l.b16 %v6489_v4  ;;  %v17471_v4 = vld [vmem:[#allocation33_spill] sm:$0xff] }
 0x7e6   :  { %v15000_v7 = vadd.f32 %v7411_v59, %v14935_v49  ;;  %v17470_v59 = vld [vmem:[#allocation203_spill] sm:$0xff] }
 0x7e7   :  { %v6202_v8 = vadd.f32 %v14711_v51, %v6054_v21 }
 0x7e8   :  { %17466 = vst [vmem:[#allocation103_spill] sm:$0xff] %v15000_v7 }
 0x7e9   :  { %v6346_v37 = vmax.f32 %v6202_v8, 0.0  ;;  %v5912_v8 = vmax.f32 %v17470_v59, %v14732_v10  ;;  %v17474_v59 = vld [vmem:[#allocation34_spill] sm:$0xff] }
 0x7ea   :  { %v4513_v33 = vpop.f32.mrf.mxu0 }
 0x7eb   :  { %v6490_v28 = vpack.c.bf16 %v6346_v37, %v6346_v37  ;;  %v5767_v12 = vmax.f32 %v17468_v61, %v4513_v33 }
 0x7ed   :  { %v6695_v54 = vunpack.c.l.b16 %v6490_v28  ;;  %v6055_v62 = vmax.f32 %v5767_v12, %v5911_v48  ;;  %v15009_v49 = vpop.f32.mrf.mxu3  ;;  %11267 = vmatmul.msk.bf16.gmra.mxu0 %vm2786_vm2, %v12069_v34 }
 0x7ee   :  { %17469 = vst [vmem:[#allocation8_spill] sm:$0xff] %v15009_v49 }
 0x7ef   :  { %v15012_v19 = vpack.c.b16 %v6695_v54, %v6694_v36  ;;  %v6203_v21 = vadd.f32 %v14711_v51, %v6055_v62  ;;  %v12070_v36 = vld [vmem:[%s17030_s0 + $0x3f8] sm:$0xff]  ;;  %v17473_v62 = vld [vmem:[#allocation207_spill] sm:$0xff] }
 0x7f0   :  { %v5913_v49 = vmax.f32 %v17473_v62, %v14744_v60 }
 0x7f1   :  { %11556 = vmatmul.msk.bf16.gmra.mxu1 %vm6780_vm3, %v15012_v19  ;;  %11598 = vmatmul.msk.bf16.gmra.mxu2 %vm6780_vm3, %v15012_v19  ;;  %v6347_v34 = vmax.f32 %v6203_v21, 0.0 }
 0x7f2   :  { %11638 = vmatmul.msk.bf16.gmra.mxu3 %vm6780_vm3, %v15012_v19  ;;  %v4515_v11 = vpop.f32.mrf.mxu0 }
 0x7f3   :  { %v5768_v37 = vmax.f32 %v17471_v4, %v4515_v11  ;;  %v6491_v61 = vpack.c.bf16 %v6347_v34, %v6347_v34  ;;  %v17475_v34 = vld [vmem:[#allocation211_spill] sm:$0xff] }
 0x7f5   :  { %v6056_v33 = vmax.f32 %v5768_v37, %v5912_v8  ;;  %v7416_v23 = vpop.f32.mrf.mxu3  ;;  %v6696_v21 = vunpack.c.l.b16 %v6491_v61 }
 0x7f6   :  { %v15024_v48 = vadd.f32 %v7416_v23, %v7167_v16 }
 0x7f7   :  { %v6204_v28 = vadd.f32 %v14711_v51, %v6056_v33  ;;  %v5914_v33 = vmax.f32 %v17475_v34, %v14756_v40  ;;  %v12071_v40 = vld [vmem:[%s17030_s0 + $0x400] sm:$0xff] }
 0x7f8   :  { %17472 = vst [vmem:[#allocation107_spill] sm:$0xff] %v15024_v48  ;;  %v17490_v48 = vld [vmem:[#allocation46_spill] sm:$0xff] }
 0x7f9   :  { %v6348_v12 = vmax.f32 %v6204_v28, 0.0 }
 0x7fa   :  { %v4518_v54 = vpop.f32.mrf.mxu0 }
 0x7fb   :  { %v6492_v10 = vpack.c.bf16 %v6348_v12, %v6348_v12  ;;  %v5769_v11 = vmax.f32 %v17474_v59, %v4518_v54  ;;  %v12346_v12 = vld [vmem:[%s17031_s3 + $0x48] sm:$0xff] }
 0x7fc   :  { %7958 = vmatpush.bf16.msra.mxu2 %v12346_v12 }
 0x7fd   :  { %v6697_v8 = vunpack.c.l.b16 %v6492_v10  ;;  %v6057_v4 = vmax.f32 %v5769_v11, %v5913_v49  ;;  %11268 = vmatmul.msk.bf16.gmra.mxu0 %vm2786_vm2, %v12070_v36  ;;  %v17476_v49 = vld [vmem:[#allocation36_spill] sm:$0xff]  ;;  %v12348_v36 = vld [vmem:[%s17031_s3 + $0x58] sm:$0xff]  ;;  %v17477_v11 = vld [vmem:[#allocation214_spill] sm:$0xff] }
 0x7fe   :  { %8224 = vmatpush.bf16.msra.mxu3 %v12348_v36  ;;  %v17480_v36 = vld [vmem:[#allocation40_spill] sm:$0xff] }
 0x7ff   :  { %v15034_v16 = vpack.c.b16 %v6697_v8, %v6696_v21  ;;  %v6205_v37 = vadd.f32 %v14711_v51, %v6057_v4  ;;  %v5915_v21 = vmax.f32 %v17477_v11, %v14770_v57  ;;  %v17478_v4 = vld [vmem:[#allocation38_spill] sm:$0xff] }
 0x801   :  { %11557 = vmatmul.msk.bf16.gmra.mxu1 %vm6780_vm3, %v15034_v16  ;;  %11599 = vmatmul.msk.bf16.gmra.mxu2 %vm6780_vm3, %v15034_v16  ;;  %v6349_v28 = vmax.f32 %v6205_v37, 0.0 }
 0x802   :  { %11639 = vmatmul.msk.bf16.gmra.mxu3 %vm6780_vm3, %v15034_v16  ;;  %v4520_v60 = vpop.f32.mrf.mxu0 }
 0x803   :  { %v5770_v23 = vmax.f32 %v17476_v49, %v4520_v60  ;;  %v6493_v62 = vpack.c.bf16 %v6349_v28, %v6349_v28  ;;  %v12344_v49 = vld [vmem:[%s17031_s3 + $0x38] sm:$0xff] }
 0x804   :  { %7692 = vmatpush.bf16.msra.mxu1 %v12344_v49 }
 0x805   :  { %v6058_v61 = vmax.f32 %v5770_v23, %v5914_v33  ;;  %v6698_v60 = vunpack.c.l.b16 %v6493_v62 }
 0x807   :  { %v6206_v54 = vadd.f32 %v14711_v51, %v6058_v61  ;;  %v17479_v61 = vld [vmem:[#allocation217_spill] sm:$0xff] }
 0x808   :  { %v5916_v12 = vmax.f32 %v17479_v61, %v14785_v3  ;;  %v15082_v3 = vpop.f32.mrf.mxu2 }
 0x809   :  { %v6350_v10 = vmax.f32 %v6206_v54, 0.0  ;;  %17484 = vst [vmem:[#allocation9_spill] sm:$0xff] %v15082_v3 }
 0x80a   :  { %v4523_v59 = vpop.f32.mrf.mxu0 }
 0x80b   :  { %v6494_v8 = vpack.c.bf16 %v6350_v10, %v6350_v10  ;;  %v5771_v37 = vmax.f32 %v17478_v4, %v4523_v59  ;;  %v17481_v4 = vld [vmem:[#allocation35_spill] sm:$0xff] }
 0x80d   :  { %v6699_v34 = vunpack.c.l.b16 %v6494_v8  ;;  %v6059_v33 = vmax.f32 %v5771_v37, %v5915_v21  ;;  %11269 = vmatmul.msk.bf16.gmra.mxu0 %vm2786_vm2, %v12071_v40  ;;  %v12072_v21 = vld [vmem:[%s17030_s0 + $0x408] sm:$0xff] }
 0x80e   :  { %v17482_v37 = vld [vmem:[#allocation219_spill] sm:$0xff] }
 0x80f   :  { %v15063_v23 = vpack.c.b16 %v6699_v34, %v6698_v60  ;;  %v6207_v28 = vadd.f32 %v14711_v51, %v6059_v33  ;;  %v5917_v60 = vmax.f32 %v17482_v37, %v17481_v4  ;;  %v17483_v33 = vld [vmem:[#allocation42_spill] sm:$0xff] }
 0x811   :  { %11558 = vmatmul.msk.bf16.gmra.mxu1 %vm6780_vm3, %v15063_v23  ;;  %11600 = vmatmul.msk.bf16.gmra.mxu2 %vm6780_vm3, %v15063_v23  ;;  %v6351_v62 = vmax.f32 %v6207_v28, 0.0 }
 0x812   :  { %11640 = vmatmul.msk.bf16.gmra.mxu3 %vm6780_vm3, %v15063_v23  ;;  %v4525_v57 = vpop.f32.mrf.mxu0 }
 0x813   :  { %v5772_v54 = vmax.f32 %v17480_v36, %v4525_v57  ;;  %v6495_v59 = vpack.c.bf16 %v6351_v62, %v6351_v62  ;;  %v17485_v62 = vld [vmem:[#allocation37_spill] sm:$0xff] }
 0x815   :  { %v6060_v10 = vmax.f32 %v5772_v54, %v5916_v12  ;;  %v6700_v57 = vunpack.c.l.b16 %v6495_v59 }
 0x817   :  { %v6208_v40 = vadd.f32 %v14711_v51, %v6060_v10  ;;  %v17486_v10 = vld [vmem:[#allocation221_spill] sm:$0xff] }
 0x819   :  { %v6352_v11 = vmax.f32 %v6208_v40, 0.0  ;;  %v5918_v40 = vmax.f32 %v17486_v10, %v17485_v62 }
 0x81a   :  { %v4528_v8 = vpop.f32.mrf.mxu0 }
 0x81b   :  { %v6496_v34 = vpack.c.bf16 %v6352_v11, %v6352_v11  ;;  %v5773_v49 = vmax.f32 %v17483_v33, %v4528_v8  ;;  %v17487_v11 = vld [vmem:[#allocation44_spill] sm:$0xff] }
 0x81c   :  { %v12073_v33 = vld [vmem:[%s17030_s0 + $0x410] sm:$0xff] }
 0x81d   :  { %v6701_v28 = vunpack.c.l.b16 %v6496_v34  ;;  %v6061_v61 = vmax.f32 %v5773_v49, %v5917_v60  ;;  %11270 = vmatmul.msk.bf16.gmra.mxu0 %vm2786_vm2, %v12072_v21 }
 0x81f   :  { %v15085_v12 = vpack.c.b16 %v6701_v28, %v6700_v57  ;;  %v6209_v36 = vadd.f32 %v14711_v51, %v6061_v61  ;;  %v17488_v57 = vld [vmem:[#allocation39_spill] sm:$0xff]  ;;  %v17489_v28 = vld [vmem:[#allocation224_spill] sm:$0xff] }
 0x820   :  { %v5919_v61 = vmax.f32 %v17489_v28, %v17488_v57  ;;  %v15115_v57 = vpop.f32.mrf.mxu1 }
 0x821   :  { %11559 = vmatmul.msk.bf16.gmra.mxu1 %vm6780_vm3, %v15085_v12  ;;  %v6353_v4 = vmax.f32 %v6209_v36, 0.0  ;;  %17495 = vst [vmem:[#allocation10_spill] sm:$0xff] %v15115_v57 }
 0x822   :  { %11641 = vmatmul.msk.bf16.gmra.mxu3 %vm6780_vm3, %v15085_v12  ;;  %v4530_v54 = vpop.f32.mrf.mxu0 }
 0x823   :  { %v5774_v59 = vmax.f32 %v17487_v11, %v4530_v54  ;;  %v6497_v60 = vpack.c.bf16 %v6353_v4, %v6353_v4 }
 0x824   :  { %v7171_v8 = vpop.f32.mrf.mxu2 }
 0x825   :  { %v6062_v37 = vmax.f32 %v5774_v59, %v5918_v40  ;;  %v6702_v54 = vunpack.c.l.b16 %v6497_v60 }
 0x827   :  { %v6210_v21 = vadd.f32 %v14711_v51, %v6062_v37  ;;  %v17492_v37 = vld [vmem:[#allocation41_spill] sm:$0xff] }
 0x829   :  { %v6354_v34 = vmax.f32 %v6210_v21, 0.0 }
 0x82a   :  { %v4533_v49 = vpop.f32.mrf.mxu0 }
 0x82b   :  { %v6498_v3 = vpack.c.bf16 %v6354_v34, %v6354_v34  ;;  %v5775_v62 = vmax.f32 %v17490_v48, %v4533_v49  ;;  %v17493_v48 = vld [vmem:[#allocation227_spill] sm:$0xff] }
 0x82c   :  { %v15102_v10 = vpop.f32.mrf.mxu2  ;;  %v5920_v21 = vmax.f32 %v17493_v48, %v17492_v37  ;;  %v17494_v34 = vld [vmem:[#allocation47_spill] sm:$0xff]  ;;  %v17498_v48 = vld [vmem:[#allocation48_spill] sm:$0xff] }
 0x82d   :  { %17491 = vst [vmem:[#allocation111_spill] sm:$0xff] %v15102_v10  ;;  %v6703_v36 = vunpack.c.l.b16 %v6498_v3  ;;  %v6063_v40 = vmax.f32 %v5775_v62, %v5919_v61  ;;  %11271 = vmatmul.msk.bf16.gmra.mxu0 %vm2786_vm2, %v12073_v33  ;;  %v17497_v10 = vld [vmem:[#allocation230_spill] sm:$0xff] }
 0x82f   :  { %v15105_v11 = vpack.c.b16 %v6703_v36, %v6702_v54  ;;  %v6211_v59 = vadd.f32 %v14711_v51, %v6063_v40  ;;  %v12074_v54 = vld [vmem:[%s17030_s0 + $0x418] sm:$0xff]  ;;  %v17496_v40 = vld [vmem:[#allocation43_spill] sm:$0xff] }
 0x830   :  { %v5921_v1 = vmax.f32 %v17497_v10, %v17496_v40  ;;  %v17501_v40 = vld [vmem:[#allocation233_spill] sm:$0xff] }
 0x831   :  { %11560 = vmatmul.msk.bf16.gmra.mxu1 %vm6780_vm3, %v15105_v11  ;;  %v6355_v3 = vmax.f32 %v6211_v59, 0.0 }
 0x832   :  { %11642 = vmatmul.msk.bf16.gmra.mxu3 %vm6780_vm3, %v15105_v11  ;;  %v4535_v4 = vpop.f32.mrf.mxu0 }
 0x833   :  { %v5776_v60 = vmax.f32 %v17494_v34, %v4535_v4  ;;  %v6499_v61 = vpack.c.bf16 %v6355_v3, %v6355_v3 }
 0x834   :  { %v7176_v33 = vpop.f32.mrf.mxu2 }
 0x835   :  { %v6064_v49 = vmax.f32 %v5776_v60, %v5920_v21  ;;  %v7316_v59 = vunpack.c.l.b16 %v6499_v61  ;;  %v17502_v61 = vld [vmem:[#allocation49_spill] sm:$0xff] }
 0x837   :  { %v6212_v28 = vadd.f32 %v14711_v51, %v6064_v49 }
 0x839   :  { %v6356_v62 = vmax.f32 %v6212_v28, 0.0 }
 0x83a   :  { %v4538_v36 = vpop.f32.mrf.mxu0 }
 0x83b   :  { %v6500_v37 = vpack.c.bf16 %v6356_v62, %v6356_v62  ;;  %v5777_v4 = vmax.f32 %v17498_v48, %v4538_v36  ;;  %v17500_v62 = vld [vmem:[#allocation45_spill] sm:$0xff] }
 0x83c   :  { %v15127_v28 = vpop.f32.mrf.mxu2  ;;  %v5922_v36 = vmax.f32 %v17501_v40, %v17500_v62 }
 0x83d   :  { %v7317_v21 = vunpack.c.l.b16 %v6500_v37  ;;  %v6065_v34 = vmax.f32 %v5777_v4, %v5921_v1  ;;  %11272 = vmatmul.msk.bf16.gmra.mxu0 %vm2786_vm2, %v12074_v54  ;;  %17499 = vst [vmem:[#allocation115_spill] sm:$0xff] %v15127_v28 }
 0x83e   :  { %v6926_v60 = vpop.f32.mrf.mxu1 }
 0x83f   :  { %v7172_v49 = vadd.f32 %v7171_v8, %v6926_v60  ;;  %v15125_v3 = vpack.c.b16 %v7317_v21, %v7316_v59  ;;  %v6213_v57 = vadd.f32 %v14711_v51, %v6065_v34  ;;  %v12075_v21 = vld [vmem:[%s17030_s0 + $0x420] sm:$0xff] }
 0x841   :  { %v6357_v1 = vmax.f32 %v6213_v57, 0.0 }
 0x842   :  { %11643 = vmatmul.msk.bf16.gmra.mxu3 %vm6780_vm3, %v15125_v3  ;;  %v4540_v10 = vpop.f32.mrf.mxu0 }
 0x843   :  { %v5778_v37 = vmax.f32 %v17502_v61, %v4540_v10  ;;  %v6501_v4 = vpack.c.bf16 %v6357_v1, %v6357_v1  ;;  %v12076_v61 = vld [vmem:[%s17030_s0 + $0x428] sm:$0xff] }
 0x844   :  { %v7181_v34 = vpop.f32.mrf.mxu2 }
 0x845   :  { %v6066_v48 = vmax.f32 %v5778_v37, %v5922_v36  ;;  %v7318_v7 = vunpack.c.l.b16 %v6501_v4 }
 0x846   :  { %v15135_v54 = vpop.f32.mrf.mxu1 }
 0x847   :  { %17503 = vst [vmem:[#allocation11_spill] sm:$0xff] %v15135_v54  ;;  %v6214_v8 = vadd.f32 %v14711_v51, %v6066_v48 }
 0x849   :  { %v6358_v59 = vmax.f32 %v6214_v8, 0.0 }
 0x84a   :  { %v4543_v60 = vpop.f32.mrf.mxu0 }
 0x84b   :  { %v6502_v28 = vpack.c.bf16 %v6358_v59, %v6358_v59 }
 0x84c   :  { %v15146_v40 = vpop.f32.mrf.mxu2 }
 0x84d   :  { %v7319_v35 = vunpack.c.l.b16 %v6502_v28  ;;  %11273 = vmatmul.msk.bf16.gmra.mxu0 %vm2786_vm2, %v12075_v21  ;;  %17504 = vst [vmem:[#allocation118_spill] sm:$0xff] %v15146_v40  ;;  %v15153_v28 = vpop.f32.mrf.mxu3  ;;  %v12077_v21 = vld [vmem:[%s17030_s0 + $0x430] sm:$0xff] }
 0x84e   :  { %v6931_v10 = vpop.f32.mrf.mxu1  ;;  %17506 = vst [vmem:[#allocation121_spill] sm:$0xff] %v15153_v28 }
 0x84f   :  { %v7177_v57 = vadd.f32 %v7176_v33, %v6931_v10  ;;  %v15142_v62 = vpack.c.b16 %v7319_v35, %v7318_v7  ;;  %v17510_v10 = vld [vmem:[#allocation50_spill] sm:$0xff] }
 0x852   :  { %11644 = vmatmul.msk.bf16.gmra.mxu3 %vm6780_vm3, %v15142_v62  ;;  %v4544_v51 = vpop.f32.mrf.mxu0 }
 0x853   :  { %v17511_v51 = vld [vmem:[#allocation244_spill] sm:$0xff] }
 0x854   :  { %v7186_v33 = vpop.f32.mrf.mxu2 }
 0x856   :  { %v15148_v36 = vpop.f32.mrf.mxu1 }
 0x857   :  { %17505 = vst [vmem:[#allocation12_spill] sm:$0xff] %v15148_v36 }
 0x85a   :  { %v4546_v37 = vpop.f32.mrf.mxu0 }
 0x85b   :  { %v5923_v37 = vmax.f32 %v17511_v51, %v17510_v10  ;;  %v17514_v10 = vld [vmem:[#allocation51_spill] sm:$0xff] }
 0x85c   :  { %v15160_v59 = vpop.f32.mrf.mxu2  ;;  %v17515_v51 = vld [vmem:[#allocation247_spill] sm:$0xff] }
 0x85d   :  { %11274 = vmatmul.msk.bf16.gmra.mxu0 %vm2786_vm2, %v12076_v61  ;;  %17509 = vst [vmem:[#allocation14_spill] sm:$0xff] %v15160_v59  ;;  %v17512_v61 = vld [vmem:[#allocation54_spill] sm:$0xff] }
 0x85e   :  { %v6936_v35 = vpop.f32.mrf.mxu1 }
 0x85f   :  { %v7182_v7 = vadd.f32 %v7181_v34, %v6936_v35 }
 0x862   :  { %v4547_v1 = vpop.f32.mrf.mxu0 }
 0x863   :  { %v15176_v1 = vld [vmem:[%s17032_s2] ss:$0 sm:$0xff] }
 0x864   :  { %v7191_v59 = vpop.f32.mrf.mxu2 }
 0x865   :  { %v7421_v48 = vpop.f32.mrf.mxu3 }
 0x866   :  { %v15156_v8 = vadd.f32 %v7421_v48, %v7172_v49  ;;  %v15158_v4 = vpop.f32.mrf.mxu1 }
 0x867   :  { %17508 = vst [vmem:[#allocation123_spill] sm:$0xff] %v15158_v4 }
 0x868   :  { %17507 = vst [vmem:[#allocation13_spill] sm:$0xff] %v15156_v8 }
 0x86a   :  { %v4549_v60 = vpop.f32.mrf.mxu0 }
 0x86b   :  { %v5779_v40 = vmax.f32 %v17512_v61, %v4549_v60  ;;  %v5924_v60 = vmax.f32 %v17515_v51, %v17514_v10  ;;  %v17520_v10 = vld [vmem:[#allocation250_spill] sm:$0xff] }
 0x86c   :  { %v5925_v51 = vmax.f32 %v17520_v10, %v17519_v24  ;;  %v17524_v24 = vld [vmem:[#allocation53_spill] sm:$0xff]  ;;  %v17526_v10 = vld [vmem:[#allocation62_spill] sm:$0xff] }
 0x86d   :  { %v6067_v36 = vmax.f32 %v5779_v40, %v5923_v37  ;;  %v15168_v34 = vpop.f32.mrf.mxu3  ;;  %11275 = vmatmul.msk.bf16.gmra.mxu0 %vm2786_vm2, %v12077_v21  ;;  %v17516_v40 = vld [vmem:[#allocation56_spill] sm:$0xff] }
 0x86e   :  { %17513 = vst [vmem:[#allocation125_spill] sm:$0xff] %v15168_v34  ;;  %v6941_v49 = vpop.f32.mrf.mxu1 }
 0x86f   :  { %v15171_v35 = vadd.f32 %v7186_v33, %v6941_v49  ;;  %v6215_v48 = vadd.f32 %v15176_v1, %v6067_v36  ;;  %v12078_v36 = vld [vmem:[%s17030_s0 + $0x438] sm:$0xff] }
 0x871   :  { %v6359_v61 = vmax.f32 %v6215_v48, 0.0  ;;  %v17521_v48 = vld [vmem:[#allocation59_spill] sm:$0xff] }
 0x872   :  { %v4551_v4 = vpop.f32.mrf.mxu0 }
 0x873   :  { %v5780_v37 = vmax.f32 %v17516_v40, %v4551_v4  ;;  %v6503_v8 = vpack.c.bf16 %v6359_v61, %v6359_v61  ;;  %v15193_v40 = vpop.f32.mrf.mxu2 }
 0x874   :  { %17522 = vst [vmem:[#allocation16_spill] sm:$0xff] %v15193_v40 }
 0x875   :  { %v6068_v34 = vmax.f32 %v5780_v37, %v5924_v60  ;;  %v7426_v21 = vpop.f32.mrf.mxu3 }
 0x876   :  { %v15182_v54 = vadd.f32 %v7426_v21, %v7177_v57  ;;  %v15184_v33 = vpop.f32.mrf.mxu1  ;;  %v7070_v57 = vunpack.c.l.b16 %v6503_v8 }
 0x877   :  { %17518 = vst [vmem:[#allocation128_spill] sm:$0xff] %v15184_v33  ;;  %v6216_v49 = vadd.f32 %v15176_v1, %v6068_v34 }
 0x878   :  { %17517 = vst [vmem:[#allocation15_spill] sm:$0xff] %v15182_v54 }
 0x879   :  { %v6360_v28 = vmax.f32 %v6216_v49, 0.0 }
 0x87a   :  { %v4554_v5 = vpop.f32.mrf.mxu0 }
 0x87b   :  { %v6504_v4 = vpack.c.bf16 %v6360_v28, %v6360_v28  ;;  %v5781_v60 = vmax.f32 %v17521_v48, %v4554_v5  ;;  %v17525_v28 = vld [vmem:[#allocation253_spill] sm:$0xff] }
 0x87c   :  { %v5926_v8 = vmax.f32 %v17525_v28, %v17524_v24  ;;  %v17529_v24 = vld [vmem:[#allocation55_spill] sm:$0xff]  ;;  %v17530_v28 = vld [vmem:[#allocation256_spill] sm:$0xff] }
 0x87d   :  { %v7071_v37 = vunpack.c.l.b16 %v6504_v4  ;;  %v6069_v21 = vmax.f32 %v5781_v60, %v5925_v51  ;;  %v15195_v33 = vpop.f32.mrf.mxu3  ;;  %11276 = vmatmul.msk.bf16.gmra.mxu0 %vm2786_vm2, %v12078_v36  ;;  %v7196_v36 = vpop.f32.mrf.mxu2 }
 0x87e   :  { %17523 = vst [vmem:[#allocation131_spill] sm:$0xff] %v15195_v33  ;;  %v6946_v34 = vpop.f32.mrf.mxu1 }
 0x87f   :  { %v15198_v61 = vadd.f32 %v7191_v59, %v6946_v34  ;;  %v15200_v49 = vpack.c.b16 %v7071_v37, %v7070_v57  ;;  %v6217_v54 = vadd.f32 %v15176_v1, %v6069_v21  ;;  %v12079_v34 = vld [vmem:[%s17030_s0 + $0x440] sm:$0xff] }
 0x881   :  { %11601 = vmatmul.msk.bf16.gmra.mxu2 %vm6780_vm3, %v15200_v49  ;;  %v6361_v4 = vmax.f32 %v6217_v54, 0.0 }
 0x882   :  { %v4556_v5 = vpop.f32.mrf.mxu0 }
 0x883   :  { %v5782_v51 = vmax.f32 %v17526_v10, %v4556_v5  ;;  %v6505_v37 = vpack.c.bf16 %v6361_v4, %v6361_v4  ;;  %v5927_v5 = vmax.f32 %v17530_v28, %v17529_v24  ;;  %v17536_v28 = vld [vmem:[#allocation68_spill] sm:$0xff] }
 0x885   :  { %v6070_v48 = vmax.f32 %v5782_v51, %v5926_v8  ;;  %v7431_v60 = vpop.f32.mrf.mxu3  ;;  %v17531_v8 = vld [vmem:[#allocation65_spill] sm:$0xff]  ;;  %v7072_v51 = vunpack.c.l.b16 %v6505_v37 }
 0x886   :  { %v15208_v40 = vadd.f32 %v7431_v60, %v7182_v7  ;;  %v15210_v59 = vpop.f32.mrf.mxu1  ;;  %v17534_v37 = vld [vmem:[#allocation57_spill] sm:$0xff] }
 0x887   :  { %17528 = vst [vmem:[#allocation134_spill] sm:$0xff] %v15210_v59  ;;  %v6218_v57 = vadd.f32 %v15176_v1, %v6070_v48  ;;  %v15226_v59 = vpop.f32.mrf.mxu2 }
 0x888   :  { %17527 = vst [vmem:[#allocation17_spill] sm:$0xff] %v15208_v40 }
 0x889   :  { %v6362_v21 = vmax.f32 %v6218_v57, 0.0  ;;  %17533 = vst [vmem:[#allocation137_spill] sm:$0xff] %v15226_v59 }
 0x88a   :  { %v4559_v33 = vpop.f32.mrf.mxu0 }
 0x88b   :  { %v6506_v54 = vpack.c.bf16 %v6362_v21, %v6362_v21  ;;  %v5783_v10 = vmax.f32 %v17531_v8, %v4559_v33  ;;  %v17535_v21 = vld [vmem:[#allocation259_spill] sm:$0xff] }
 0x88c   :  { %v5928_v24 = vmax.f32 %v17535_v21, %v17534_v37  ;;  %v17539_v21 = vld [vmem:[#allocation60_spill] sm:$0xff] }
 0x88d   :  { %v7073_v7 = vunpack.c.l.b16 %v6506_v54  ;;  %v6071_v60 = vmax.f32 %v5783_v10, %v5927_v5  ;;  %v15219_v40 = vpop.f32.mrf.mxu3  ;;  %11277 = vmatmul.msk.bf16.gmra.mxu0 %vm2786_vm2, %v12079_v34 }
 0x88e   :  { %17532 = vst [vmem:[#allocation18_spill] sm:$0xff] %v15219_v40  ;;  %v6951_v4 = vpop.f32.mrf.mxu1 }
 0x88f   :  { %v15222_v48 = vadd.f32 %v7196_v36, %v6951_v4  ;;  %v15224_v57 = vpack.c.b16 %v7073_v7, %v7072_v51  ;;  %v6219_v53 = vadd.f32 %v15176_v1, %v6071_v60  ;;  %v12080_v4 = vld [vmem:[%s17030_s0 + $0x448] sm:$0xff]  ;;  %v7201_v59 = vpop.f32.mrf.mxu2 }
 0x891   :  { %11602 = vmatmul.msk.bf16.gmra.mxu2 %vm6780_vm3, %v15224_v57  ;;  %v6363_v54 = vmax.f32 %v6219_v53, 0.0 }
 0x892   :  { %v4561_v33 = vpop.f32.mrf.mxu0 }
 0x893   :  { %v5784_v5 = vmax.f32 %v17536_v28, %v4561_v33  ;;  %v6507_v7 = vpack.c.bf16 %v6363_v54, %v6363_v54  ;;  %v17540_v33 = vld [vmem:[#allocation262_spill] sm:$0xff]  ;;  %v17541_v28 = vld [vmem:[#allocation71_spill] sm:$0xff] }
 0x894   :  { %v5929_v53 = vmax.f32 %v17540_v33, %v17539_v21  ;;  %v17545_v33 = vld [vmem:[#allocation74_spill] sm:$0xff] }
 0x895   :  { %v6072_v34 = vmax.f32 %v5784_v5, %v5928_v24  ;;  %v7436_v8 = vpop.f32.mrf.mxu3 }
 0x896   :  { %v15235_v36 = vadd.f32 %v7436_v8, %v15171_v35  ;;  %v15237_v10 = vpop.f32.mrf.mxu1  ;;  %v6704_v35 = vunpack.c.l.b16 %v6507_v7 }
 0x897   :  { %17538 = vst [vmem:[#allocation151_spill] sm:$0xff] %v15237_v10  ;;  %v6220_v51 = vadd.f32 %v15176_v1, %v6072_v34 }
 0x898   :  { %17537 = vst [vmem:[#allocation19_spill] sm:$0xff] %v15235_v36 }
 0x899   :  { %v6364_v60 = vmax.f32 %v6220_v51, 0.0 }
 0x89a   :  { %v4564_v37 = vpop.f32.mrf.mxu0 }
 0x89b   :  { %v6508_v24 = vpack.c.bf16 %v6364_v60, %v6364_v60  ;;  %v5785_v5 = vmax.f32 %v17541_v28, %v4564_v37  ;;  %v17543_v60 = vld [vmem:[#allocation63_spill] sm:$0xff]  ;;  %v17544_v37 = vld [vmem:[#allocation265_spill] sm:$0xff] }
 0x89c   :  { %v5930_v21 = vmax.f32 %v17544_v37, %v17543_v60  ;;  %v12081_v60 = vld [vmem:[%s17030_s0 + $0x450] sm:$0xff] }
 0x89d   :  { %v6705_v8 = vunpack.c.l.b16 %v6508_v24  ;;  %v6073_v36 = vmax.f32 %v5785_v5, %v5929_v53  ;;  %v15246_v10 = vpop.f32.mrf.mxu3  ;;  %11278 = vmatmul.msk.bf16.gmra.mxu0 %vm2786_vm2, %v12080_v4  ;;  %v15261_v4 = vpop.f32.mrf.mxu2 }
 0x89e   :  { %17542 = vst [vmem:[#allocation20_spill] sm:$0xff] %v15246_v10  ;;  %v6956_v54 = vpop.f32.mrf.mxu1 }
 0x89f   :  { %v15249_v34 = vpack.c.b16 %v6705_v8, %v6704_v35  ;;  %v15251_v51 = vadd.f32 %v7201_v59, %v6956_v54  ;;  %v6221_v40 = vadd.f32 %v15176_v1, %v6073_v36  ;;  %17546 = vst [vmem:[#allocation155_spill] sm:$0xff] %v15261_v4 }
 0x8a1   :  { %11561 = vmatmul.msk.bf16.gmra.mxu1 %vm6780_vm3, %v15249_v34  ;;  %11603 = vmatmul.msk.bf16.gmra.mxu2 %vm6780_vm3, %v15249_v34  ;;  %v6365_v24 = vmax.f32 %v6221_v40, 0.0 }
 0x8a2   :  { %v4566_v7 = vpop.f32.mrf.mxu0 }
 0x8a3   :  { %v5786_v53 = vmax.f32 %v17545_v33, %v4566_v7  ;;  %v6509_v8 = vpack.c.bf16 %v6365_v24, %v6365_v24  ;;  %v17549_v7 = vld [vmem:[#allocation66_spill] sm:$0xff]  ;;  %v17550_v33 = vld [vmem:[#allocation268_spill] sm:$0xff] }
 0x8a4   :  { %v5931_v4 = vmax.f32 %v17550_v33, %v17549_v7  ;;  %v17555_v7 = vld [vmem:[#allocation81_spill] sm:$0xff] }
 0x8a5   :  { %v6074_v28 = vmax.f32 %v5786_v53, %v5930_v21  ;;  %v7441_v59 = vpop.f32.mrf.mxu3  ;;  %v17551_v21 = vld [vmem:[#allocation77_spill] sm:$0xff]  ;;  %v6706_v10 = vunpack.c.l.b16 %v6509_v8  ;;  %v7206_v24 = vpop.f32.mrf.mxu2 }
 0x8a6   :  { %v15264_v5 = vadd.f32 %v7441_v59, %v15198_v61  ;;  %v15266_v36 = vpop.f32.mrf.mxu1 }
 0x8a7   :  { %17548 = vst [vmem:[#allocation159_spill] sm:$0xff] %v15266_v36  ;;  %v6222_v35 = vadd.f32 %v15176_v1, %v6074_v28 }
 0x8a8   :  { %17547 = vst [vmem:[#allocation21_spill] sm:$0xff] %v15264_v5 }
 0x8a9   :  { %v6366_v54 = vmax.f32 %v6222_v35, 0.0 }
 0x8aa   :  { %v4569_v37 = vpop.f32.mrf.mxu0 }
 0x8ab   :  { %v6510_v40 = vpack.c.bf16 %v6366_v54, %v6366_v54  ;;  %v5787_v53 = vmax.f32 %v17551_v21, %v4569_v37  ;;  %v17553_v54 = vld [vmem:[#allocation69_spill] sm:$0xff] }
 0x8ad   :  { %v6707_v61 = vunpack.c.l.b16 %v6510_v40  ;;  %v6075_v59 = vmax.f32 %v5787_v53, %v5931_v4  ;;  %v15275_v5 = vpop.f32.mrf.mxu3  ;;  %11279 = vmatmul.msk.bf16.gmra.mxu0 %vm2786_vm2, %v12081_v60  ;;  %v17554_v4 = vld [vmem:[#allocation271_spill] sm:$0xff] }
 0x8ae   :  { %17552 = vst [vmem:[#allocation22_spill] sm:$0xff] %v15275_v5  ;;  %v6961_v28 = vpop.f32.mrf.mxu1  ;;  %v5932_v37 = vmax.f32 %v17554_v4, %v17553_v54  ;;  %v17557_v5 = vld [vmem:[#allocation72_spill] sm:$0xff] }
 0x8af   :  { %v15278_v35 = vpack.c.b16 %v6707_v61, %v6706_v10  ;;  %v7207_v36 = vadd.f32 %v7206_v24, %v6961_v28  ;;  %v6223_v20 = vadd.f32 %v15176_v1, %v6075_v59  ;;  %v12082_v24 = vld [vmem:[%s17030_s0 + $0x458] sm:$0xff]  ;;  %v5933_v54 = vmax.f32 %v17558_v52, %v17557_v5  ;;  %v17561_v5 = vld [vmem:[#allocation75_spill] sm:$0xff] }
 0x8b1   :  { %11562 = vmatmul.msk.bf16.gmra.mxu1 %vm6780_vm3, %v15278_v35  ;;  %11604 = vmatmul.msk.bf16.gmra.mxu2 %vm6780_vm3, %v15278_v35  ;;  %v6367_v60 = vmax.f32 %v6223_v20, 0.0 }
 0x8b2   :  { %v4571_v8 = vpop.f32.mrf.mxu0 }
 0x8b3   :  { %v5788_v33 = vmax.f32 %v17555_v7, %v4571_v8  ;;  %v6511_v61 = vpack.c.bf16 %v6367_v60, %v6367_v60  ;;  %v17559_v8 = vld [vmem:[#allocation85_spill] sm:$0xff] }
 0x8b5   :  { %v6076_v40 = vmax.f32 %v5788_v33, %v5932_v37  ;;  %v7446_v21 = vpop.f32.mrf.mxu3  ;;  %v6708_v37 = vunpack.c.l.b16 %v6511_v61  ;;  %v17563_v61 = vld [vmem:[#allocation89_spill] sm:$0xff] }
 0x8b6   :  { %v15289_v10 = vadd.f32 %v7446_v21, %v15222_v48  ;;  %v17562_v21 = vld [vmem:[#allocation277_spill] sm:$0xff] }
 0x8b7   :  { %v6224_v53 = vadd.f32 %v15176_v1, %v6076_v40 }
 0x8b8   :  { %17556 = vst [vmem:[#allocation163_spill] sm:$0xff] %v15289_v10  ;;  %v17566_v10 = vld [vmem:[#allocation280_spill] sm:$0xff] }
 0x8b9   :  { %v6368_v59 = vmax.f32 %v6224_v53, 0.0  ;;  %v5934_v53 = vmax.f32 %v17562_v21, %v17561_v5 }
 0x8ba   :  { %v4574_v28 = vpop.f32.mrf.mxu0 }
 0x8bb   :  { %v6512_v4 = vpack.c.bf16 %v6368_v59, %v6368_v59  ;;  %v5789_v20 = vmax.f32 %v17559_v8, %v4574_v28 }
 0x8bd   :  { %v6709_v7 = vunpack.c.l.b16 %v6512_v4  ;;  %v6077_v33 = vmax.f32 %v5789_v20, %v5933_v54  ;;  %v15298_v48 = vpop.f32.mrf.mxu3  ;;  %11280 = vmatmul.msk.bf16.gmra.mxu0 %vm2786_vm2, %v12082_v24 }
 0x8be   :  { %17560 = vst [vmem:[#allocation23_spill] sm:$0xff] %v15298_v48  ;;  %v17565_v48 = vld [vmem:[#allocation78_spill] sm:$0xff] }
 0x8bf   :  { %v15301_v60 = vpack.c.b16 %v6709_v7, %v6708_v37  ;;  %v6225_v40 = vadd.f32 %v15176_v1, %v6077_v33  ;;  %v12083_v7 = vld [vmem:[%s17030_s0 + $0x460] sm:$0xff]  ;;  %v5935_v5 = vmax.f32 %v17566_v10, %v17565_v48 }
 0x8c0   :  { %v17569_v48 = vld [vmem:[#allocation82_spill] sm:$0xff] }
 0x8c1   :  { %11563 = vmatmul.msk.bf16.gmra.mxu1 %vm6780_vm3, %v15301_v60  ;;  %11605 = vmatmul.msk.bf16.gmra.mxu2 %vm6780_vm3, %v15301_v60  ;;  %v6369_v24 = vmax.f32 %v6225_v40, 0.0 }
 0x8c2   :  { %11645 = vmatmul.msk.bf16.gmra.mxu3 %vm6780_vm3, %v15301_v60  ;;  %v4576_v52 = vpop.f32.mrf.mxu0 }
 0x8c3   :  { %v5790_v59 = vmax.f32 %v17563_v61, %v4576_v52  ;;  %v6513_v20 = vpack.c.bf16 %v6369_v24, %v6369_v24  ;;  %v17567_v52 = vld [vmem:[#allocation93_spill] sm:$0xff] }
 0x8c5   :  { %v6078_v28 = vmax.f32 %v5790_v59, %v5934_v53  ;;  %v7451_v54 = vpop.f32.mrf.mxu3  ;;  %v6710_v53 = vunpack.c.l.b16 %v6513_v20  ;;  %v17571_v20 = vld [vmem:[#allocation97_spill] sm:$0xff] }
 0x8c6   :  { %v15314_v4 = vadd.f32 %v7451_v54, %v15251_v51  ;;  %v17570_v54 = vld [vmem:[#allocation283_spill] sm:$0xff] }
 0x8c7   :  { %v6226_v8 = vadd.f32 %v15176_v1, %v6078_v28 }
 0x8c8   :  { %17564 = vst [vmem:[#allocation167_spill] sm:$0xff] %v15314_v4  ;;  %v17574_v4 = vld [vmem:[#allocation286_spill] sm:$0xff] }
 0x8c9   :  { %v6370_v37 = vmax.f32 %v6226_v8, 0.0  ;;  %v5936_v8 = vmax.f32 %v17570_v54, %v17569_v48  ;;  %v17575_v54 = vld [vmem:[#allocation101_spill] sm:$0xff] }
 0x8ca   :  { %v4579_v33 = vpop.f32.mrf.mxu0 }
 0x8cb   :  { %v6514_v21 = vpack.c.bf16 %v6370_v37, %v6370_v37  ;;  %v5791_v40 = vmax.f32 %v17567_v52, %v4579_v33 }
 0x8cd   :  { %v6711_v61 = vunpack.c.l.b16 %v6514_v21  ;;  %v6079_v59 = vmax.f32 %v5791_v40, %v5935_v5  ;;  %v15323_v51 = vpop.f32.mrf.mxu3  ;;  %11281 = vmatmul.msk.bf16.gmra.mxu0 %vm2786_vm2, %v12083_v7 }
 0x8ce   :  { %17568 = vst [vmem:[#allocation24_spill] sm:$0xff] %v15323_v51  ;;  %v17573_v51 = vld [vmem:[#allocation86_spill] sm:$0xff] }
 0x8cf   :  { %v15326_v24 = vpack.c.b16 %v6711_v61, %v6710_v53  ;;  %v6227_v28 = vadd.f32 %v15176_v1, %v6079_v59  ;;  %v12084_v61 = vld [vmem:[%s17030_s0 + $0x468] sm:$0xff]  ;;  %v5937_v14 = vmax.f32 %v17574_v4, %v17573_v51  ;;  %v17576_v51 = vld [vmem:[#allocation90_spill] sm:$0xff] }
 0x8d1   :  { %11564 = vmatmul.msk.bf16.gmra.mxu1 %vm6780_vm3, %v15326_v24  ;;  %11606 = vmatmul.msk.bf16.gmra.mxu2 %vm6780_vm3, %v15326_v24  ;;  %v6371_v7 = vmax.f32 %v6227_v28, 0.0 }
 0x8d2   :  { %11646 = vmatmul.msk.bf16.gmra.mxu3 %vm6780_vm3, %v15326_v24  ;;  %v4581_v10 = vpop.f32.mrf.mxu0 }
 0x8d3   :  { %v5792_v37 = vmax.f32 %v17571_v20, %v4581_v10  ;;  %v6515_v40 = vpack.c.bf16 %v6371_v7, %v6371_v7  ;;  %v17577_v7 = vld [vmem:[#allocation289_spill] sm:$0xff] }
 0x8d5   :  { %v6080_v33 = vmax.f32 %v5792_v37, %v5936_v8  ;;  %v7456_v5 = vpop.f32.mrf.mxu3  ;;  %v6712_v28 = vunpack.c.l.b16 %v6515_v40 }
 0x8d6   :  { %v15338_v21 = vadd.f32 %v7456_v5, %v7207_v36 }
 0x8d7   :  { %v6228_v52 = vadd.f32 %v15176_v1, %v6080_v33  ;;  %v5938_v33 = vmax.f32 %v17577_v7, %v17576_v51 }
 0x8d8   :  { %17572 = vst [vmem:[#allocation171_spill] sm:$0xff] %v15338_v21  ;;  %v17581_v21 = vld [vmem:[#allocation109_spill] sm:$0xff] }
 0x8d9   :  { %v6372_v53 = vmax.f32 %v6228_v52, 0.0 }
 0x8da   :  { %v4584_v59 = vpop.f32.mrf.mxu0 }
 0x8db   :  { %v6516_v48 = vpack.c.bf16 %v6372_v53, %v6372_v53  ;;  %v5793_v10 = vmax.f32 %v17575_v54, %v4584_v59 }
 0x8dd   :  { %v6713_v8 = vunpack.c.l.b16 %v6516_v48  ;;  %v6081_v20 = vmax.f32 %v5793_v10, %v5937_v14  ;;  %11282 = vmatmul.msk.bf16.gmra.mxu0 %vm2786_vm2, %v12084_v61  ;;  %v17578_v14 = vld [vmem:[#allocation105_spill] sm:$0xff]  ;;  %v12085_v48 = vld [vmem:[%s17030_s0 + $0x470] sm:$0xff]  ;;  %v17579_v10 = vld [vmem:[#allocation94_spill] sm:$0xff] }
 0x8df   :  { %v15348_v36 = vpack.c.b16 %v6713_v8, %v6712_v28  ;;  %v6229_v37 = vadd.f32 %v15176_v1, %v6081_v20  ;;  %v17580_v28 = vld [vmem:[#allocation292_spill] sm:$0xff] }
 0x8e0   :  { %v5939_v8 = vmax.f32 %v17580_v28, %v17579_v10  ;;  %v12086_v10 = vld [vmem:[%s17030_s0 + $0x478] sm:$0xff] }
 0x8e1   :  { %11565 = vmatmul.msk.bf16.gmra.mxu1 %vm6780_vm3, %v15348_v36  ;;  %11607 = vmatmul.msk.bf16.gmra.mxu2 %vm6780_vm3, %v15348_v36  ;;  %v6373_v52 = vmax.f32 %v6229_v37, 0.0 }
 0x8e2   :  { %11647 = vmatmul.msk.bf16.gmra.mxu3 %vm6780_vm3, %v15348_v36  ;;  %v4586_v4 = vpop.f32.mrf.mxu0 }
 0x8e3   :  { %v5794_v5 = vmax.f32 %v17578_v14, %v4586_v4  ;;  %v6517_v61 = vpack.c.bf16 %v6373_v52, %v6373_v52 }
 0x8e5   :  { %v6082_v40 = vmax.f32 %v5794_v5, %v5938_v33  ;;  %v6714_v51 = vunpack.c.l.b16 %v6517_v61  ;;  %v17583_v5 = vld [vmem:[#allocation295_spill] sm:$0xff] }
 0x8e7   :  { %v6230_v53 = vadd.f32 %v15176_v1, %v6082_v40 }
 0x8e9   :  { %v6374_v59 = vmax.f32 %v6230_v53, 0.0 }
 0x8ea   :  { %v4589_v54 = vpop.f32.mrf.mxu0 }
 0x8eb   :  { %v6518_v20 = vpack.c.bf16 %v6374_v59, %v6374_v59  ;;  %v5795_v26 = vmax.f32 %v17581_v21, %v4589_v54  ;;  %v17582_v21 = vld [vmem:[#allocation98_spill] sm:$0xff] }
 0x8ec   :  { %v5940_v52 = vmax.f32 %v17583_v5, %v17582_v21  ;;  %v15387_v21 = vpop.f32.mrf.mxu2 }
 0x8ed   :  { %v6715_v7 = vunpack.c.l.b16 %v6518_v20  ;;  %v6083_v4 = vmax.f32 %v5795_v26, %v5939_v8  ;;  %11283 = vmatmul.msk.bf16.gmra.mxu0 %vm2786_vm2, %v12085_v48  ;;  %v17584_v26 = vld [vmem:[#allocation113_spill] sm:$0xff]  ;;  %v17585_v8 = vld [vmem:[#allocation102_spill] sm:$0xff]  ;;  %17588 = vst [vmem:[#allocation25_spill] sm:$0xff] %v15387_v21 }
 0x8ee   :  { %v17586_v20 = vld [vmem:[#allocation297_spill] sm:$0xff] }
 0x8ef   :  { %v15368_v37 = vpack.c.b16 %v6715_v7, %v6714_v51  ;;  %v6231_v33 = vadd.f32 %v15176_v1, %v6083_v4  ;;  %v5941_v51 = vmax.f32 %v17586_v20, %v17585_v8  ;;  %v17587_v4 = vld [vmem:[#allocation116_spill] sm:$0xff] }
 0x8f0   :  { %v12347_v20 = vld [vmem:[%s17031_s3 + $0x50] sm:$0xff] }
 0x8f1   :  { %11566 = vmatmul.msk.bf16.gmra.mxu1 %vm6780_vm3, %v15368_v37  ;;  %11608 = vmatmul.msk.bf16.gmra.mxu2 %vm6780_vm3, %v15368_v37  ;;  %v6375_v53 = vmax.f32 %v6231_v33, 0.0 }
 0x8f2   :  { %11648 = vmatmul.msk.bf16.gmra.mxu3 %vm6780_vm3, %v15368_v37  ;;  %v4591_v14 = vpop.f32.mrf.mxu0 }
 0x8f3   :  { %v5796_v40 = vmax.f32 %v17584_v26, %v4591_v14  ;;  %v6519_v48 = vpack.c.bf16 %v6375_v53, %v6375_v53  ;;  %v17590_v53 = vld [vmem:[#allocation106_spill] sm:$0xff]  ;;  %8225 = vmatpush.bf16.msra.mxu3 %v12347_v20 }
 0x8f5   :  { %v6084_v61 = vmax.f32 %v5796_v40, %v5940_v52  ;;  %v6716_v14 = vunpack.c.l.b16 %v6519_v48 }
 0x8f7   :  { %v6232_v59 = vadd.f32 %v15176_v1, %v6084_v61  ;;  %v17591_v61 = vld [vmem:[#allocation299_spill] sm:$0xff] }
 0x8f9   :  { %v6376_v54 = vmax.f32 %v6232_v59, 0.0  ;;  %v5942_v59 = vmax.f32 %v17591_v61, %v17590_v53  ;;  %v17595_v61 = vld [vmem:[#allocation122_spill] sm:$0xff] }
 0x8fa   :  { %v4594_v28 = vpop.f32.mrf.mxu0 }
 0x8fb   :  { %v6520_v7 = vpack.c.bf16 %v6376_v54, %v6376_v54  ;;  %v5797_v47 = vmax.f32 %v17587_v4, %v4594_v28  ;;  %v17592_v54 = vld [vmem:[#allocation119_spill] sm:$0xff] }
 0x8fd   :  { %v6717_v33 = vunpack.c.l.b16 %v6520_v7  ;;  %v6085_v5 = vmax.f32 %v5797_v47, %v5941_v51  ;;  %11284 = vmatmul.msk.bf16.gmra.mxu0 %vm2786_vm2, %v12086_v10  ;;  %v12345_v10 = vld [vmem:[%s17031_s3 + $0x40] sm:$0xff] }
 0x8fe   :  { %7959 = vmatpush.bf16.msra.mxu2 %v12345_v10 }
 0x8ff   :  { %v15390_v52 = vpack.c.b16 %v6717_v33, %v6716_v14  ;;  %v6233_v26 = vadd.f32 %v15176_v1, %v6085_v5  ;;  %v12087_v14 = vld [vmem:[%s17030_s0 + $0x480] sm:$0xff] }
 0x900   :  { %v17593_v5 = vld [vmem:[#allocation110_spill] sm:$0xff] }
 0x901   :  { %17589 = vst [vmem:[#allocation175_spill] sm:$0xff] %v15390_v52  ;;  %11567 = vmatmul.msk.bf16.gmra.mxu1 %vm6780_vm3, %v15390_v52  ;;  %v6377_v47 = vmax.f32 %v6233_v26, 0.0  ;;  %v17594_v26 = vld [vmem:[#allocation301_spill] sm:$0xff] }
 0x902   :  { %11649 = vmatmul.msk.bf16.gmra.mxu3 %vm6780_vm3, %v15390_v52  ;;  %v4596_v40 = vpop.f32.mrf.mxu0 }
 0x903   :  { %v5798_v48 = vmax.f32 %v17592_v54, %v4596_v40  ;;  %v6521_v7 = vpack.c.bf16 %v6377_v47, %v6377_v47  ;;  %v5943_v40 = vmax.f32 %v17594_v26, %v17593_v5  ;;  %v12343_v47 = vld [vmem:[%s17031_s3 + $0x30] sm:$0xff] }
 0x904   :  { %v7211_v28 = vpop.f32.mrf.mxu2  ;;  %7693 = vmatpush.bf16.msra.mxu1 %v12343_v47 }
 0x905   :  { %v6086_v8 = vmax.f32 %v5798_v48, %v5942_v59  ;;  %v6718_v48 = vunpack.c.l.b16 %v6521_v7  ;;  %v17598_v7 = vld [vmem:[#allocation114_spill] sm:$0xff] }
 0x907   :  { %v6234_v51 = vadd.f32 %v15176_v1, %v6086_v8 }
 0x909   :  { %v6378_v4 = vmax.f32 %v6234_v51, 0.0 }
 0x90a   :  { %v4599_v33 = vpop.f32.mrf.mxu0 }
 0x90b   :  { %v6522_v53 = vpack.c.bf16 %v6378_v4, %v6378_v4  ;;  %v5799_v59 = vmax.f32 %v17595_v61, %v4599_v33  ;;  %v17599_v4 = vld [vmem:[#allocation303_spill] sm:$0xff] }
 0x90c   :  { %v15413_v54 = vpop.f32.mrf.mxu2  ;;  %v5944_v33 = vmax.f32 %v17599_v4, %v17598_v7  ;;  %v17604_v4 = vld [vmem:[#allocation127_spill] sm:$0xff] }
 0x90d   :  { %17596 = vst [vmem:[#allocation26_spill] sm:$0xff] %v15413_v54  ;;  %v6719_v21 = vunpack.c.l.b16 %v6522_v53  ;;  %v6087_v8 = vmax.f32 %v5799_v59, %v5943_v40  ;;  %11285 = vmatmul.msk.bf16.gmra.mxu0 %vm2786_vm2, %v12087_v14  ;;  %v17600_v14 = vld [vmem:[#allocation124_spill] sm:$0xff]  ;;  %v15429_v53 = vpop.f32.mrf.mxu1  ;;  %v17602_v54 = vld [vmem:[#allocation117_spill] sm:$0xff] }
 0x90e   :  { %17601 = vst [vmem:[#allocation27_spill] sm:$0xff] %v15429_v53 }
 0x90f   :  { %v15419_v10 = vpack.c.b16 %v6719_v21, %v6718_v48  ;;  %v6235_v20 = vadd.f32 %v15176_v1, %v6087_v8  ;;  %v12088_v8 = vld [vmem:[%s17030_s0 + $0x488] sm:$0xff] }
 0x911   :  { %17597 = vst [vmem:[#allocation179_spill] sm:$0xff] %v15419_v10  ;;  %11568 = vmatmul.msk.bf16.gmra.mxu1 %vm6780_vm3, %v15419_v10  ;;  %v6379_v26 = vmax.f32 %v6235_v20, 0.0 }
 0x912   :  { %11650 = vmatmul.msk.bf16.gmra.mxu3 %vm6780_vm3, %v15419_v10  ;;  %v4601_v51 = vpop.f32.mrf.mxu0  ;;  %v17603_v10 = vld [vmem:[#allocation305_spill] sm:$0xff] }
 0x913   :  { %v5800_v5 = vmax.f32 %v17600_v14, %v4601_v51  ;;  %v6523_v59 = vpack.c.bf16 %v6379_v26, %v6379_v26  ;;  %v5945_v52 = vmax.f32 %v17603_v10, %v17602_v54  ;;  %v17607_v10 = vld [vmem:[#allocation120_spill] sm:$0xff] }
 0x914   :  { %v7216_v21 = vpop.f32.mrf.mxu2 }
 0x915   :  { %v6088_v40 = vmax.f32 %v5800_v5, %v5944_v33  ;;  %v7320_v20 = vunpack.c.l.b16 %v6523_v59  ;;  %v17609_v59 = vld [vmem:[#allocation130_spill] sm:$0xff] }
 0x917   :  { %v6236_v61 = vadd.f32 %v15176_v1, %v6088_v40 }
 0x919   :  { %v6380_v48 = vmax.f32 %v6236_v61, 0.0 }
 0x91a   :  { %v4604_v47 = vpop.f32.mrf.mxu0 }
 0x91b   :  { %v6524_v7 = vpack.c.bf16 %v6380_v48, %v6380_v48  ;;  %v5801_v51 = vmax.f32 %v17604_v4, %v4604_v47  ;;  %v17608_v48 = vld [vmem:[#allocation307_spill] sm:$0xff] }
 0x91c   :  { %v15441_v61 = vpop.f32.mrf.mxu2  ;;  %v5946_v47 = vmax.f32 %v17608_v48, %v17607_v10 }
 0x91d   :  { %v7321_v33 = vunpack.c.l.b16 %v6524_v7  ;;  %v6089_v14 = vmax.f32 %v5801_v51, %v5945_v52  ;;  %11286 = vmatmul.msk.bf16.gmra.mxu0 %vm2786_vm2, %v12088_v8  ;;  %17606 = vst [vmem:[#allocation28_spill] sm:$0xff] %v15441_v61 }
 0x91e   :  { %v6966_v5 = vpop.f32.mrf.mxu1 }
 0x91f   :  { %v7212_v40 = vadd.f32 %v7211_v28, %v6966_v5  ;;  %v15439_v26 = vpack.c.b16 %v7321_v33, %v7320_v20  ;;  %v6237_v53 = vadd.f32 %v15176_v1, %v6089_v14  ;;  %v12089_v33 = vld [vmem:[%s17030_s0 + $0x490] sm:$0xff] }
 0x921   :  { %17605 = vst [vmem:[#allocation183_spill] sm:$0xff] %v15439_v26  ;;  %v6381_v52 = vmax.f32 %v6237_v53, 0.0 }
 0x922   :  { %11651 = vmatmul.msk.bf16.gmra.mxu3 %vm6780_vm3, %v15439_v26  ;;  %v4606_v54 = vpop.f32.mrf.mxu0 }
 0x923   :  { %v5802_v7 = vmax.f32 %v17609_v59, %v4606_v54  ;;  %v6525_v51 = vpack.c.bf16 %v6381_v52, %v6381_v52 }
 0x924   :  { %v7221_v14 = vpop.f32.mrf.mxu2 }
 0x925   :  { %v6090_v4 = vmax.f32 %v5802_v7, %v5946_v47  ;;  %v7322_v26 = vunpack.c.l.b16 %v6525_v51  ;;  %v12090_v7 = vld [vmem:[%s17030_s0 + $0x498] sm:$0xff] }
 0x926   :  { %v15449_v8 = vpop.f32.mrf.mxu1 }
 0x927   :  { %17610 = vst [vmem:[#allocation187_spill] sm:$0xff] %v15449_v8  ;;  %v6238_v28 = vadd.f32 %v15176_v1, %v6090_v4 }
 0x929   :  { %v6382_v20 = vmax.f32 %v6238_v28, 0.0 }
 0x92a   :  { %v4609_v5 = vpop.f32.mrf.mxu0 }
 0x92b   :  { %v6526_v61 = vpack.c.bf16 %v6382_v20, %v6382_v20  ;;  %v12091_v5 = vld [vmem:[%s17030_s0 + $0x4a0] sm:$0xff] }
 0x92c   :  { %v15460_v47 = vpop.f32.mrf.mxu2 }
 0x92d   :  { %v7323_v22 = vunpack.c.l.b16 %v6526_v61  ;;  %11287 = vmatmul.msk.bf16.gmra.mxu0 %vm2786_vm2, %v12089_v33  ;;  %17612 = vst [vmem:[#allocation191_spill] sm:$0xff] %v15460_v47  ;;  %v15467_v61 = vpop.f32.mrf.mxu3 }
 0x92e   :  { %v6971_v54 = vpop.f32.mrf.mxu1  ;;  %17614 = vst [vmem:[#allocation195_spill] sm:$0xff] %v15467_v61 }
 0x92f   :  { %v7217_v53 = vadd.f32 %v7216_v21, %v6971_v54  ;;  %v15456_v10 = vpack.c.b16 %v7323_v22, %v7322_v26 }
 0x931   :  { %17611 = vst [vmem:[#allocation29_spill] sm:$0xff] %v15456_v10 }
 0x932   :  { %11652 = vmatmul.msk.bf16.gmra.mxu3 %vm6780_vm3, %v15456_v10  ;;  %v4610_v48 = vpop.f32.mrf.mxu0 }
 0x933   :  { %v17618_v48 = vld [vmem:[#allocation133_spill] sm:$0xff] }
 0x934   :  { %v7226_v21 = vpop.f32.mrf.mxu2 }
 0x936   :  { %v15462_v59 = vpop.f32.mrf.mxu1 }
 0x937   :  { %17613 = vst [vmem:[#allocation30_spill] sm:$0xff] %v15462_v59 }
 0x93a   :  { %v4612_v52 = vpop.f32.mrf.mxu0 }
 0x93b   :  { %v5947_v52 = vmax.f32 %v14723_v25, %v17618_v48 }
 0x93c   :  { %v15474_v33 = vpop.f32.mrf.mxu2 }
 0x93d   :  { %11288 = vmatmul.msk.bf16.gmra.mxu0 %vm2786_vm2, %v12090_v7  ;;  %17617 = vst [vmem:[#allocation32_spill] sm:$0xff] %v15474_v33  ;;  %v17619_v7 = vld [vmem:[#allocation143_spill] sm:$0xff] }
 0x93e   :  { %v6976_v22 = vpop.f32.mrf.mxu1 }
 0x93f   :  { %v7222_v26 = vadd.f32 %v7221_v14, %v6976_v22 }
 0x942   :  { %v4613_v4 = vpop.f32.mrf.mxu0 }
 0x945   :  { %v7461_v28 = vpop.f32.mrf.mxu3 }
 0x946   :  { %v15470_v51 = vadd.f32 %v7461_v28, %v7212_v40  ;;  %v15472_v20 = vpop.f32.mrf.mxu1  ;;  %v7231_v28 = vpop.f32.mrf.mxu2 }
 0x947   :  { %17616 = vst [vmem:[#allocation199_spill] sm:$0xff] %v15472_v20  ;;  %v17621_v20 = vld [vmem:[#allocation136_spill] sm:$0xff] }
 0x948   :  { %17615 = vst [vmem:[#allocation31_spill] sm:$0xff] %v15470_v51  ;;  %v5948_v8 = vmax.f32 %v14735_v2, %v17621_v20  ;;  %v17622_v51 = vld [vmem:[#allocation146_spill] sm:$0xff]  ;;  %v17626_v20 = vld [vmem:[#allocation149_spill] sm:$0xff] }
 0x94a   :  { %v4615_v54 = vpop.f32.mrf.mxu0 }
 0x94b   :  { %v5803_v47 = vmax.f32 %v17619_v7, %v4615_v54 }
 0x94d   :  { %v6091_v59 = vmax.f32 %v5803_v47, %v5947_v52  ;;  %v15482_v14 = vpop.f32.mrf.mxu3  ;;  %11289 = vmatmul.msk.bf16.gmra.mxu0 %vm2786_vm2, %v12091_v5 }
 0x94e   :  { %17620 = vst [vmem:[#allocation203_spill] sm:$0xff] %v15482_v14  ;;  %v6981_v40 = vpop.f32.mrf.mxu1  ;;  %v17625_v14 = vld [vmem:[#allocation139_spill] sm:$0xff] }
 0x94f   :  { %v15485_v22 = vadd.f32 %v7226_v21, %v6981_v40  ;;  %v6239_v4 = vadd.f32 %v15176_v1, %v6091_v59  ;;  %v12092_v59 = vld [vmem:[%s17030_s0 + $0x4a8] sm:$0xff]  ;;  %v5949_v2 = vmax.f32 %v14750_v56, %v17625_v14  ;;  %v17630_v14 = vld [vmem:[#allocation141_spill] sm:$0xff] }
 0x951   :  { %v6383_v25 = vmax.f32 %v6239_v4, 0.0 }
 0x952   :  { %v4617_v33 = vpop.f32.mrf.mxu0 }
 0x953   :  { %v5804_v61 = vmax.f32 %v17622_v51, %v4617_v33  ;;  %v6527_v21 = vpack.c.bf16 %v6383_v25, %v6383_v25 }
 0x955   :  { %v6092_v48 = vmax.f32 %v5804_v61, %v5948_v8  ;;  %v7466_v54 = vpop.f32.mrf.mxu3  ;;  %v15502_v61 = vpop.f32.mrf.mxu2 }
 0x956   :  { %v15491_v47 = vadd.f32 %v7466_v54, %v7217_v53  ;;  %v15493_v52 = vpop.f32.mrf.mxu1  ;;  %17627 = vst [vmem:[#allocation34_spill] sm:$0xff] %v15502_v61  ;;  %v7074_v53 = vunpack.c.l.b16 %v6527_v21  ;;  %v5950_v21 = vmax.f32 %v14764_v44, %v17630_v14  ;;  %v17634_v44 = vld [vmem:[#allocation144_spill] sm:$0xff]  ;;  %v17635_v14 = vld [vmem:[#allocation157_spill] sm:$0xff] }
 0x957   :  { %17624 = vst [vmem:[#allocation207_spill] sm:$0xff] %v15493_v52  ;;  %v6240_v5 = vadd.f32 %v15176_v1, %v6092_v48 }
 0x958   :  { %17623 = vst [vmem:[#allocation33_spill] sm:$0xff] %v15491_v47 }
 0x959   :  { %v6384_v7 = vmax.f32 %v6240_v5, 0.0 }
 0x95a   :  { %v4620_v40 = vpop.f32.mrf.mxu0 }
 0x95b   :  { %v6528_v51 = vpack.c.bf16 %v6384_v7, %v6384_v7  ;;  %v5805_v8 = vmax.f32 %v17626_v20, %v4620_v40  ;;  %v17631_v7 = vld [vmem:[#allocation153_spill] sm:$0xff] }
 0x95d   :  { %v7075_v33 = vunpack.c.l.b16 %v6528_v51  ;;  %v6093_v4 = vmax.f32 %v5805_v8, %v5949_v2  ;;  %v15504_v54 = vpop.f32.mrf.mxu3  ;;  %11290 = vmatmul.msk.bf16.gmra.mxu0 %vm2786_vm2, %v12092_v59  ;;  %v7236_v59 = vpop.f32.mrf.mxu2 }
 0x95e   :  { %17628 = vst [vmem:[#allocation211_spill] sm:$0xff] %v15504_v54  ;;  %v6986_v25 = vpop.f32.mrf.mxu1 }
 0x95f   :  { %v15507_v48 = vadd.f32 %v7231_v28, %v6986_v25  ;;  %v15509_v5 = vpack.c.b16 %v7075_v33, %v7074_v53  ;;  %v6241_v52 = vadd.f32 %v15176_v1, %v6093_v4  ;;  %v12093_v25 = vld [vmem:[%s17030_s0 + $0x4b0] sm:$0xff] }
 0x961   :  { %17629 = vst [vmem:[#allocation36_spill] sm:$0xff] %v15509_v5  ;;  %11609 = vmatmul.msk.bf16.gmra.mxu2 %vm6780_vm3, %v15509_v5  ;;  %v6385_v2 = vmax.f32 %v6241_v52, 0.0 }
 0x962   :  { %v4622_v56 = vpop.f32.mrf.mxu0 }
 0x963   :  { %v5806_v40 = vmax.f32 %v17631_v7, %v4622_v56  ;;  %v6529_v33 = vpack.c.bf16 %v6385_v2, %v6385_v2  ;;  %v5951_v56 = vmax.f32 %v14776_v9, %v17634_v44 }
 0x965   :  { %v6094_v51 = vmax.f32 %v5806_v40, %v5950_v21  ;;  %v7471_v20 = vpop.f32.mrf.mxu3  ;;  %v7076_v7 = vunpack.c.l.b16 %v6529_v33 }
 0x966   :  { %v15517_v8 = vadd.f32 %v7471_v20, %v7222_v26  ;;  %v15519_v28 = vpop.f32.mrf.mxu1 }
 0x967   :  { %17633 = vst [vmem:[#allocation38_spill] sm:$0xff] %v15519_v28  ;;  %v6242_v53 = vadd.f32 %v15176_v1, %v6094_v51  ;;  %v15535_v28 = vpop.f32.mrf.mxu2 }
 0x968   :  { %17632 = vst [vmem:[#allocation214_spill] sm:$0xff] %v15517_v8 }
 0x969   :  { %v6386_v4 = vmax.f32 %v6242_v53, 0.0  ;;  %17638 = vst [vmem:[#allocation35_spill] sm:$0xff] %v15535_v28 }
 0x96a   :  { %v4625_v61 = vpop.f32.mrf.mxu0 }
 0x96b   :  { %v6530_v52 = vpack.c.bf16 %v6386_v4, %v6386_v4  ;;  %v5807_v21 = vmax.f32 %v17635_v14, %v4625_v61  ;;  %v17639_v61 = vld [vmem:[#allocation147_spill] sm:$0xff]  ;;  %v17640_v4 = vld [vmem:[#allocation161_spill] sm:$0xff] }
 0x96c   :  { %v5952_v33 = vmax.f32 %v14788_v29, %v17639_v61  ;;  %v17643_v61 = vld [vmem:[#allocation150_spill] sm:$0xff] }
 0x96d   :  { %v7077_v26 = vunpack.c.l.b16 %v6530_v52  ;;  %v6095_v40 = vmax.f32 %v5807_v21, %v5951_v56  ;;  %v15528_v20 = vpop.f32.mrf.mxu3  ;;  %11291 = vmatmul.msk.bf16.gmra.mxu0 %vm2786_vm2, %v12093_v25 }
 0x96e   :  { %17636 = vst [vmem:[#allocation217_spill] sm:$0xff] %v15528_v20  ;;  %v6991_v2 = vpop.f32.mrf.mxu1 }
 0x96f   :  { %v15531_v51 = vadd.f32 %v7236_v59, %v6991_v2  ;;  %v15533_v53 = vpack.c.b16 %v7077_v26, %v7076_v7  ;;  %v6243_v8 = vadd.f32 %v15176_v1, %v6095_v40  ;;  %v12094_v40 = vld [vmem:[%s17030_s0 + $0x4b8] sm:$0xff]  ;;  %v7241_v2 = vpop.f32.mrf.mxu2 }
 0x971   :  { %17637 = vst [vmem:[#allocation40_spill] sm:$0xff] %v15533_v53  ;;  %11610 = vmatmul.msk.bf16.gmra.mxu2 %vm6780_vm3, %v15533_v53  ;;  %v6387_v56 = vmax.f32 %v6243_v8, 0.0  ;;  %v5953_v8 = vmax.f32 %v14800_v43, %v17643_v61 }
 0x972   :  { %v4627_v9 = vpop.f32.mrf.mxu0 }
 0x973   :  { %v5808_v44 = vmax.f32 %v17640_v4, %v4627_v9  ;;  %v6531_v7 = vpack.c.bf16 %v6387_v56, %v6387_v56 }
 0x975   :  { %v6096_v25 = vmax.f32 %v5808_v44, %v5952_v33  ;;  %v7476_v52 = vpop.f32.mrf.mxu3  ;;  %v17644_v33 = vld [vmem:[#allocation165_spill] sm:$0xff] }
 0x976   :  { %v15544_v59 = vadd.f32 %v7476_v52, %v15485_v22  ;;  %v15546_v14 = vpop.f32.mrf.mxu1  ;;  %v6720_v22 = vunpack.c.l.b16 %v6531_v7  ;;  %v17646_v7 = vld [vmem:[#allocation154_spill] sm:$0xff] }
 0x977   :  { %17642 = vst [vmem:[#allocation42_spill] sm:$0xff] %v15546_v14  ;;  %v6244_v21 = vadd.f32 %v15176_v1, %v6096_v25 }
 0x978   :  { %17641 = vst [vmem:[#allocation219_spill] sm:$0xff] %v15544_v59  ;;  %v17660_v59 = vld [vmem:[#allocation64_spill] sm:$0xff] }
 0x979   :  { %v6388_v26 = vmax.f32 %v6244_v21, 0.0 }
 0x97a   :  { %v4630_v29 = vpop.f32.mrf.mxu0 }
 0x97b   :  { %v6532_v9 = vpack.c.bf16 %v6388_v26, %v6388_v26  ;;  %v5809_v4 = vmax.f32 %v17644_v33, %v4630_v29  ;;  %v5954_v26 = vmax.f32 %v14814_v15, %v17646_v7  ;;  %v17647_v29 = vld [vmem:[#allocation169_spill] sm:$0xff]  ;;  %v12095_v15 = vld [vmem:[%s17030_s0 + $0x4c0] sm:$0xff] }
 0x97c   :  { %v17652_v7 = vld [vmem:[#allocation58_spill] sm:$0xff] }
 0x97d   :  { %v6721_v44 = vunpack.c.l.b16 %v6532_v9  ;;  %v6097_v52 = vmax.f32 %v5809_v4, %v5953_v8  ;;  %v15555_v28 = vpop.f32.mrf.mxu3  ;;  %11292 = vmatmul.msk.bf16.gmra.mxu0 %vm2786_vm2, %v12094_v40  ;;  %v15570_v40 = vpop.f32.mrf.mxu2 }
 0x97e   :  { %17645 = vst [vmem:[#allocation37_spill] sm:$0xff] %v15555_v28  ;;  %v6996_v56 = vpop.f32.mrf.mxu1 }
 0x97f   :  { %v15558_v25 = vpack.c.b16 %v6721_v44, %v6720_v22  ;;  %v15560_v21 = vadd.f32 %v7241_v2, %v6996_v56  ;;  %v6245_v14 = vadd.f32 %v15176_v1, %v6097_v52  ;;  %17648 = vst [vmem:[#allocation221_spill] sm:$0xff] %v15570_v40 }
 0x981   :  { %11569 = vmatmul.msk.bf16.gmra.mxu1 %vm6780_vm3, %v15558_v25  ;;  %11611 = vmatmul.msk.bf16.gmra.mxu2 %vm6780_vm3, %v15558_v25  ;;  %v6389_v8 = vmax.f32 %v6245_v14, 0.0 }
 0x982   :  { %v4632_v43 = vpop.f32.mrf.mxu0 }
 0x983   :  { %v5810_v61 = vmax.f32 %v17647_v29, %v4632_v43  ;;  %v6533_v44 = vpack.c.bf16 %v6389_v8, %v6389_v8  ;;  %v17651_v43 = vld [vmem:[#allocation158_spill] sm:$0xff] }
 0x984   :  { %v5955_v29 = vmax.f32 %v17652_v7, %v17651_v43  ;;  %v17657_v7 = vld [vmem:[#allocation177_spill] sm:$0xff] }
 0x985   :  { %v6098_v9 = vmax.f32 %v5810_v61, %v5954_v26  ;;  %v7481_v2 = vpop.f32.mrf.mxu3  ;;  %v17653_v26 = vld [vmem:[#allocation173_spill] sm:$0xff]  ;;  %v6722_v40 = vunpack.c.l.b16 %v6533_v44  ;;  %v7246_v8 = vpop.f32.mrf.mxu2 }
 0x986   :  { %v15573_v33 = vadd.f32 %v7481_v2, %v15507_v48  ;;  %v15575_v4 = vpop.f32.mrf.mxu1 }
 0x987   :  { %17650 = vst [vmem:[#allocation39_spill] sm:$0xff] %v15575_v4  ;;  %v6246_v22 = vadd.f32 %v15176_v1, %v6098_v9 }
 0x988   :  { %17649 = vst [vmem:[#allocation44_spill] sm:$0xff] %v15573_v33 }
 0x989   :  { %v6390_v52 = vmax.f32 %v6246_v22, 0.0 }
 0x98a   :  { %v4635_v56 = vpop.f32.mrf.mxu0 }
 0x98b   :  { %v6534_v14 = vpack.c.bf16 %v6390_v52, %v6390_v52  ;;  %v5811_v61 = vmax.f32 %v17653_v26, %v4635_v56  ;;  %v17655_v52 = vld [vmem:[#allocation162_spill] sm:$0xff]  ;;  %v17656_v56 = vld [vmem:[#allocation61_spill] sm:$0xff] }
 0x98c   :  { %v5956_v43 = vmax.f32 %v17656_v56, %v17655_v52 }
 0x98d   :  { %v6723_v48 = vunpack.c.l.b16 %v6534_v14  ;;  %v6099_v2 = vmax.f32 %v5811_v61, %v5955_v29  ;;  %v15584_v33 = vpop.f32.mrf.mxu3  ;;  %11293 = vmatmul.msk.bf16.gmra.mxu0 %vm2786_vm2, %v12095_v15 }
 0x98e   :  { %17654 = vst [vmem:[#allocation224_spill] sm:$0xff] %v15584_v33  ;;  %v7001_v9 = vpop.f32.mrf.mxu1  ;;  %v17659_v33 = vld [vmem:[#allocation166_spill] sm:$0xff] }
 0x98f   :  { %v15587_v22 = vpack.c.b16 %v6723_v48, %v6722_v40  ;;  %v7247_v4 = vadd.f32 %v7246_v8, %v7001_v9  ;;  %v6247_v28 = vadd.f32 %v15176_v1, %v6099_v2  ;;  %v12096_v8 = vld [vmem:[%s17030_s0 + $0x4c8] sm:$0xff]  ;;  %v5957_v52 = vmax.f32 %v17660_v59, %v17659_v33  ;;  %v17663_v33 = vld [vmem:[#allocation170_spill] sm:$0xff] }
 0x991   :  { %11570 = vmatmul.msk.bf16.gmra.mxu1 %vm6780_vm3, %v15587_v22  ;;  %11612 = vmatmul.msk.bf16.gmra.mxu2 %vm6780_vm3, %v15587_v22  ;;  %v6391_v15 = vmax.f32 %v6247_v28, 0.0 }
 0x992   :  { %v4637_v44 = vpop.f32.mrf.mxu0 }
 0x993   :  { %v5812_v29 = vmax.f32 %v17657_v7, %v4637_v44  ;;  %v6535_v48 = vpack.c.bf16 %v6391_v15, %v6391_v15  ;;  %v17661_v44 = vld [vmem:[#allocation181_spill] sm:$0xff] }
 0x995   :  { %v6100_v14 = vmax.f32 %v5812_v29, %v5956_v43  ;;  %v7486_v26 = vpop.f32.mrf.mxu3  ;;  %v6724_v43 = vunpack.c.l.b16 %v6535_v48  ;;  %v17665_v48 = vld [vmem:[#allocation185_spill] sm:$0xff] }
 0x996   :  { %v15598_v40 = vadd.f32 %v7486_v26, %v15531_v51  ;;  %v17664_v26 = vld [vmem:[#allocation67_spill] sm:$0xff] }
 0x997   :  { %v6248_v61 = vadd.f32 %v15176_v1, %v6100_v14 }
 0x998   :  { %17658 = vst [vmem:[#allocation46_spill] sm:$0xff] %v15598_v40  ;;  %v17668_v40 = vld [vmem:[#allocation70_spill] sm:$0xff] }
 0x999   :  { %v6392_v2 = vmax.f32 %v6248_v61, 0.0  ;;  %v5958_v61 = vmax.f32 %v17664_v26, %v17663_v33 }
 0x99a   :  { %v4640_v9 = vpop.f32.mrf.mxu0 }
 0x99b   :  { %v6536_v56 = vpack.c.bf16 %v6392_v2, %v6392_v2  ;;  %v5813_v28 = vmax.f32 %v17661_v44, %v4640_v9 }
 0x99d   :  { %v6725_v7 = vunpack.c.l.b16 %v6536_v56  ;;  %v6101_v29 = vmax.f32 %v5813_v28, %v5957_v52  ;;  %v15607_v51 = vpop.f32.mrf.mxu3  ;;  %11294 = vmatmul.msk.bf16.gmra.mxu0 %vm2786_vm2, %v12096_v8 }
 0x99e   :  { %17662 = vst [vmem:[#allocation41_spill] sm:$0xff] %v15607_v51  ;;  %v17667_v51 = vld [vmem:[#allocation174_spill] sm:$0xff] }
 0x99f   :  { %v15610_v15 = vpack.c.b16 %v6725_v7, %v6724_v43  ;;  %v6249_v14 = vadd.f32 %v15176_v1, %v6101_v29  ;;  %v12097_v7 = vld [vmem:[%s17030_s0 + $0x4d0] sm:$0xff]  ;;  %v5959_v33 = vmax.f32 %v17668_v40, %v17667_v51  ;;  %v17672_v51 = vld [vmem:[#allocation178_spill] sm:$0xff] }
 0x9a1   :  { %11571 = vmatmul.msk.bf16.gmra.mxu1 %vm6780_vm3, %v15610_v15  ;;  %11613 = vmatmul.msk.bf16.gmra.mxu2 %vm6780_vm3, %v15610_v15  ;;  %v6393_v8 = vmax.f32 %v6249_v14, 0.0 }
 0x9a2   :  { %11653 = vmatmul.msk.bf16.gmra.mxu3 %vm6780_vm3, %v15610_v15  ;;  %v4642_v59 = vpop.f32.mrf.mxu0 }
 0x9a3   :  { %v5814_v2 = vmax.f32 %v17665_v48, %v4642_v59  ;;  %v6537_v28 = vpack.c.bf16 %v6393_v8, %v6393_v8  ;;  %v17669_v59 = vld [vmem:[#allocation189_spill] sm:$0xff] }
 0x9a5   :  { %v6102_v9 = vmax.f32 %v5814_v2, %v5958_v61  ;;  %v7491_v52 = vpop.f32.mrf.mxu3  ;;  %v6726_v61 = vunpack.c.l.b16 %v6537_v28  ;;  %v17674_v28 = vld [vmem:[#allocation193_spill] sm:$0xff] }
 0x9a6   :  { %v15623_v56 = vadd.f32 %v7491_v52, %v15560_v21  ;;  %v17673_v52 = vld [vmem:[#allocation73_spill] sm:$0xff] }
 0x9a7   :  { %v6250_v44 = vadd.f32 %v15176_v1, %v6102_v9 }
 0x9a8   :  { %17666 = vst [vmem:[#allocation227_spill] sm:$0xff] %v15623_v56  ;;  %v17677_v56 = vld [vmem:[#allocation76_spill] sm:$0xff] }
 0x9a9   :  { %v6394_v43 = vmax.f32 %v6250_v44, 0.0  ;;  %v5960_v44 = vmax.f32 %v17673_v52, %v17672_v51  ;;  %v17678_v52 = vld [vmem:[#allocation197_spill] sm:$0xff] }
 0x9aa   :  { %v4645_v29 = vpop.f32.mrf.mxu0 }
 0x9ab   :  { %v6538_v26 = vpack.c.bf16 %v6394_v43, %v6394_v43  ;;  %v5815_v14 = vmax.f32 %v17669_v59, %v4645_v29 }
 0x9ad   :  { %v6727_v48 = vunpack.c.l.b16 %v6538_v26  ;;  %v6103_v2 = vmax.f32 %v5815_v14, %v5959_v33  ;;  %v15632_v21 = vpop.f32.mrf.mxu3  ;;  %11295 = vmatmul.msk.bf16.gmra.mxu0 %vm2786_vm2, %v12097_v7 }
 0x9ae   :  { %17670 = vst [vmem:[#allocation47_spill] sm:$0xff] %v15632_v21  ;;  %v17676_v21 = vld [vmem:[#allocation182_spill] sm:$0xff] }
 0x9af   :  { %v15635_v8 = vpack.c.b16 %v6727_v48, %v6726_v61  ;;  %v6251_v9 = vadd.f32 %v15176_v1, %v6103_v2  ;;  %v12098_v48 = vld [vmem:[%s17030_s0 + $0x4d8] sm:$0xff]  ;;  %v5961_v20 = vmax.f32 %v17677_v56, %v17676_v21  ;;  %v17680_v56 = vld [vmem:[#allocation186_spill] sm:$0xff]  ;;  %v17681_v21 = vld [vmem:[#allocation80_spill] sm:$0xff] }
 0x9b1   :  { %17671 = vst [vmem:[#allocation43_spill] sm:$0xff] %v15635_v8  ;;  %11572 = vmatmul.msk.bf16.gmra.mxu1 %vm6780_vm3, %v15635_v8  ;;  %11614 = vmatmul.msk.bf16.gmra.mxu2 %vm6780_vm3, %v15635_v8  ;;  %v6395_v7 = vmax.f32 %v6251_v9, 0.0 }
 0x9b2   :  { %11654 = vmatmul.msk.bf16.gmra.mxu3 %vm6780_vm3, %v15635_v8  ;;  %v4647_v40 = vpop.f32.mrf.mxu0 }
 0x9b3   :  { %v5816_v43 = vmax.f32 %v17674_v28, %v4647_v40  ;;  %v6539_v14 = vpack.c.bf16 %v6395_v7, %v6395_v7  ;;  %v5962_v7 = vmax.f32 %v17681_v21, %v17680_v56 }
 0x9b5   :  { %v6104_v29 = vmax.f32 %v5816_v43, %v5960_v44  ;;  %v7496_v33 = vpop.f32.mrf.mxu3  ;;  %v6728_v9 = vunpack.c.l.b16 %v6539_v14 }
 0x9b6   :  { %v15647_v26 = vadd.f32 %v7496_v33, %v7247_v4 }
 0x9b7   :  { %v6252_v59 = vadd.f32 %v15176_v1, %v6104_v29  ;;  %v15662_v1 = vld [vmem:[%s17032_s2] ss:$0 sm:$0xff]  ;;  %v17682_v29 = vld [vmem:[#allocation201_spill] sm:$0xff] }
 0x9b8   :  { %17675 = vst [vmem:[#allocation230_spill] sm:$0xff] %v15647_v26  ;;  %v17685_v26 = vld [vmem:[#allocation205_spill] sm:$0xff] }
 0x9b9   :  { %v6396_v61 = vmax.f32 %v6252_v59, 0.0 }
 0x9ba   :  { %v4650_v2 = vpop.f32.mrf.mxu0 }
 0x9bb   :  { %v6540_v51 = vpack.c.bf16 %v6396_v61, %v6396_v61  ;;  %v5817_v40 = vmax.f32 %v17678_v52, %v4650_v2 }
 0x9bd   :  { %v6729_v44 = vunpack.c.l.b16 %v6540_v51  ;;  %v6105_v28 = vmax.f32 %v5817_v40, %v5961_v20  ;;  %11296 = vmatmul.msk.bf16.gmra.mxu0 %vm2786_vm2, %v12098_v48  ;;  %v12099_v51 = vld [vmem:[%s17030_s0 + $0x4e0] sm:$0xff] }
 0x9be   :  { %v17683_v40 = vld [vmem:[#allocation190_spill] sm:$0xff] }
 0x9bf   :  { %v15657_v4 = vpack.c.b16 %v6729_v44, %v6728_v9  ;;  %v6253_v43 = vadd.f32 %v15662_v1, %v6105_v28  ;;  %v17684_v9 = vld [vmem:[#allocation84_spill] sm:$0xff] }
 0x9c0   :  { %v5963_v44 = vmax.f32 %v17684_v9, %v17683_v40  ;;  %v12100_v40 = vld [vmem:[%s17030_s0 + $0x4e8] sm:$0xff] }
 0x9c1   :  { %17679 = vst [vmem:[#allocation48_spill] sm:$0xff] %v15657_v4  ;;  %11573 = vmatmul.msk.bf16.gmra.mxu1 %vm6780_vm3, %v15657_v4  ;;  %11615 = vmatmul.msk.bf16.gmra.mxu2 %vm6780_vm3, %v15657_v4  ;;  %v6397_v59 = vmax.f32 %v6253_v43, 0.0 }
 0x9c2   :  { %11655 = vmatmul.msk.bf16.gmra.mxu3 %vm6780_vm3, %v15657_v4  ;;  %v4652_v20 = vpop.f32.mrf.mxu0 }
 0x9c3   :  { %v5818_v33 = vmax.f32 %v17682_v29, %v4652_v20  ;;  %v6541_v48 = vpack.c.bf16 %v6397_v59, %v6397_v59 }
 0x9c5   :  { %v6106_v14 = vmax.f32 %v5818_v33, %v5962_v7  ;;  %v6730_v56 = vunpack.c.l.b16 %v6541_v48  ;;  %v17688_v33 = vld [vmem:[#allocation88_spill] sm:$0xff] }
 0x9c7   :  { %v6254_v61 = vadd.f32 %v15662_v1, %v6106_v14 }
 0x9c9   :  { %v6398_v2 = vmax.f32 %v6254_v61, 0.0 }
 0x9ca   :  { %v4655_v52 = vpop.f32.mrf.mxu0 }
 0x9cb   :  { %v6542_v28 = vpack.c.bf16 %v6398_v2, %v6398_v2  ;;  %v5819_v54 = vmax.f32 %v17685_v26, %v4655_v52  ;;  %v17687_v26 = vld [vmem:[#allocation194_spill] sm:$0xff] }
 0x9cc   :  { %v5964_v59 = vmax.f32 %v17688_v33, %v17687_v26  ;;  %v15701_v26 = vpop.f32.mrf.mxu2 }
 0x9cd   :  { %v6731_v21 = vunpack.c.l.b16 %v6542_v28  ;;  %v6107_v20 = vmax.f32 %v5819_v54, %v5963_v44  ;;  %11297 = vmatmul.msk.bf16.gmra.mxu0 %vm2786_vm2, %v12099_v51  ;;  %v17689_v54 = vld [vmem:[#allocation209_spill] sm:$0xff]  ;;  %v17690_v44 = vld [vmem:[#allocation198_spill] sm:$0xff]  ;;  %v17691_v28 = vld [vmem:[#allocation92_spill] sm:$0xff]  ;;  %17693 = vst [vmem:[#allocation233_spill] sm:$0xff] %v15701_v26 }
 0x9cf   :  { %v15682_v43 = vpack.c.b16 %v6731_v21, %v6730_v56  ;;  %v6255_v7 = vadd.f32 %v15662_v1, %v6107_v20  ;;  %v5965_v56 = vmax.f32 %v17691_v28, %v17690_v44  ;;  %v17692_v20 = vld [vmem:[#allocation212_spill] sm:$0xff] }
 0x9d1   :  { %17686 = vst [vmem:[#allocation45_spill] sm:$0xff] %v15682_v43  ;;  %11574 = vmatmul.msk.bf16.gmra.mxu1 %vm6780_vm3, %v15682_v43  ;;  %11616 = vmatmul.msk.bf16.gmra.mxu2 %vm6780_vm3, %v15682_v43  ;;  %v6399_v61 = vmax.f32 %v6255_v7, 0.0 }
 0x9d2   :  { %11656 = vmatmul.msk.bf16.gmra.mxu3 %vm6780_vm3, %v15682_v43  ;;  %v4657_v29 = vpop.f32.mrf.mxu0 }
 0x9d3   :  { %v5820_v14 = vmax.f32 %v17689_v54, %v4657_v29  ;;  %v6543_v51 = vpack.c.bf16 %v6399_v61, %v6399_v61  ;;  %v17695_v61 = vld [vmem:[#allocation202_spill] sm:$0xff] }
 0x9d5   :  { %v6108_v48 = vmax.f32 %v5820_v14, %v5964_v59  ;;  %v6732_v29 = vunpack.c.l.b16 %v6543_v51 }
 0x9d7   :  { %v6256_v2 = vadd.f32 %v15662_v1, %v6108_v48  ;;  %v17696_v48 = vld [vmem:[#allocation96_spill] sm:$0xff] }
 0x9d9   :  { %v6400_v52 = vmax.f32 %v6256_v2, 0.0  ;;  %v5966_v2 = vmax.f32 %v17696_v48, %v17695_v61 }
 0x9da   :  { %v4660_v9 = vpop.f32.mrf.mxu0 }
 0x9db   :  { %v6544_v21 = vpack.c.bf16 %v6400_v52, %v6400_v52  ;;  %v5821_v47 = vmax.f32 %v17692_v20, %v4660_v9 }
 0x9dd   :  { %v6733_v7 = vunpack.c.l.b16 %v6544_v21  ;;  %v6109_v33 = vmax.f32 %v5821_v47, %v5965_v56  ;;  %11298 = vmatmul.msk.bf16.gmra.mxu0 %vm2786_vm2, %v12100_v40  ;;  %v17697_v47 = vld [vmem:[#allocation215_spill] sm:$0xff]  ;;  %v12101_v21 = vld [vmem:[%s17030_s0 + $0x4f0] sm:$0xff] }
 0x9df   :  { %v15704_v59 = vpack.c.b16 %v6733_v7, %v6732_v29  ;;  %v6257_v54 = vadd.f32 %v15662_v1, %v6109_v33  ;;  %v17698_v29 = vld [vmem:[#allocation206_spill] sm:$0xff]  ;;  %v17699_v7 = vld [vmem:[#allocation100_spill] sm:$0xff] }
 0x9e0   :  { %v5967_v33 = vmax.f32 %v17699_v7, %v17698_v29  ;;  %v15736_v29 = vpop.f32.mrf.mxu1 }
 0x9e1   :  { %17694 = vst [vmem:[#allocation49_spill] sm:$0xff] %v15704_v59  ;;  %11575 = vmatmul.msk.bf16.gmra.mxu1 %vm6780_vm3, %v15704_v59  ;;  %11717 = vmatmul.msk.bf16.vlgmr.msra.gmra.mxu2 %vm6780_vm3, %v14937_v32  ;;  %v6401_v40 = vmax.f32 %v6257_v54, 0.0 }
 0x9e2   :  { %11657 = vmatmul.msk.bf16.gmra.mxu3 %vm6780_vm3, %v15704_v59  ;;  %v4662_v14 = vpop.f32.mrf.mxu0  ;;  %v17700_v59 = vld [vmem:[#allocation218_spill] sm:$0xff]  ;;  %17705 = vst [vmem:[#allocation244_spill] sm:$0xff] %v15736_v29  ;;  %v12352_v29 = vld [vmem:[%s17031_s3 + $0x78] sm:$0xff] }
 0x9e3   :  { %v5822_v51 = vmax.f32 %v17697_v47, %v4662_v14  ;;  %v6545_v28 = vpack.c.bf16 %v6401_v40, %v6401_v40  ;;  %v17702_v40 = vld [vmem:[#allocation210_spill] sm:$0xff]  ;;  %8804 = vmatpush.bf16.msrb.mxu2 %v12352_v29 }
 0x9e4   :  { %v7251_v52 = vpop.f32.mrf.mxu2 }
 0x9e5   :  { %v6110_v9 = vmax.f32 %v5822_v51, %v5966_v2  ;;  %v6734_v14 = vunpack.c.l.b16 %v6545_v28 }
 0x9e7   :  { %v6258_v44 = vadd.f32 %v15662_v1, %v6110_v9  ;;  %v17703_v9 = vld [vmem:[#allocation104_spill] sm:$0xff] }
 0x9e9   :  { %v6402_v56 = vmax.f32 %v6258_v44, 0.0  ;;  %v17704_v44 = vld [vmem:[#allocation220_spill] sm:$0xff] }
 0x9ea   :  { %v4665_v20 = vpop.f32.mrf.mxu0 }
 0x9eb   :  { %v6546_v26 = vpack.c.bf16 %v6402_v56, %v6402_v56  ;;  %v5823_v61 = vmax.f32 %v17700_v59, %v4665_v20 }
 0x9ec   :  { %v7253_v48 = vpop.f32.mrf.mxu2 }
 0x9ed   :  { %v6735_v47 = vunpack.c.l.b16 %v6546_v26  ;;  %v6111_v54 = vmax.f32 %v5823_v61, %v5967_v33  ;;  %11299 = vmatmul.msk.bf16.gmra.mxu0 %vm2786_vm2, %v12101_v21  ;;  %v5968_v26 = vmax.f32 %v17703_v9, %v17702_v40  ;;  %v17708_v9 = vld [vmem:[#allocation223_spill] sm:$0xff] }
 0x9ef   :  { %v15724_v2 = vpack.c.b16 %v6735_v47, %v6734_v14  ;;  %v6259_v51 = vadd.f32 %v15662_v1, %v6111_v54  ;;  %v12102_v14 = vld [vmem:[%s17030_s0 + $0x4f8] sm:$0xff] }
 0x9f0   :  { %v17706_v54 = vld [vmem:[#allocation213_spill] sm:$0xff] }
 0x9f1   :  { %17701 = vst [vmem:[#allocation50_spill] sm:$0xff] %v15724_v2  ;;  %11576 = vmatmul.msk.bf16.gmra.mxu1 %vm6780_vm3, %v15724_v2  ;;  %11718 = vmatmul.msk.bf16.gmra.mxu2 %vm6780_vm3, %v14964_v46  ;;  %v6403_v21 = vmax.f32 %v6259_v51, 0.0 }
 0x9f2   :  { %11658 = vmatmul.msk.bf16.gmra.mxu3 %vm6780_vm3, %v15724_v2  ;;  %v4667_v59 = vpop.f32.mrf.mxu0  ;;  %v17707_v2 = vld [vmem:[#allocation108_spill] sm:$0xff] }
 0x9f3   :  { %v5824_v28 = vmax.f32 %v17704_v44, %v4667_v59  ;;  %v6547_v33 = vpack.c.bf16 %v6403_v21, %v6403_v21  ;;  %v5969_v43 = vmax.f32 %v17707_v2, %v17706_v54  ;;  %v12350_v2 = vld [vmem:[%s17031_s3 + $0x68] sm:$0xff] }
 0x9f4   :  { %v7256_v56 = vpop.f32.mrf.mxu2  ;;  %8538 = vmatpush.bf16.msrb.mxu1 %v12350_v2 }
 0x9f5   :  { %v6112_v20 = vmax.f32 %v5824_v28, %v5968_v26  ;;  %v7324_v51 = vunpack.c.l.b16 %v6547_v33  ;;  %v17710_v33 = vld [vmem:[#allocation216_spill] sm:$0xff] }
 0x9f7   :  { %v6260_v7 = vadd.f32 %v15662_v1, %v6112_v20 }
 0x9f9   :  { %v6404_v61 = vmax.f32 %v6260_v7, 0.0 }
 0x9fa   :  { %v4670_v47 = vpop.f32.mrf.mxu0 }
 0x9fb   :  { %v6548_v40 = vpack.c.bf16 %v6404_v61, %v6404_v61  ;;  %v5825_v59 = vmax.f32 %v17708_v9, %v4670_v47  ;;  %v17711_v61 = vld [vmem:[#allocation112_spill] sm:$0xff] }
 0x9fc   :  { %v7258_v44 = vpop.f32.mrf.mxu2 }
 0x9fd   :  { %v7325_v26 = vunpack.c.l.b16 %v6548_v40  ;;  %v6113_v28 = vmax.f32 %v5825_v59, %v5969_v43  ;;  %11300 = vmatmul.msk.bf16.gmra.mxu0 %vm2786_vm2, %v12102_v14  ;;  %v5970_v14 = vmax.f32 %v17711_v61, %v17710_v33 }
 0x9fe   :  { %v7006_v20 = vpop.f32.mrf.mxu1 }
 0x9ff   :  { %v7252_v21 = vadd.f32 %v7251_v52, %v7006_v20  ;;  %v15746_v7 = vpack.c.b16 %v7325_v26, %v7324_v51  ;;  %v6261_v4 = vadd.f32 %v15662_v1, %v6113_v28  ;;  %v12354_v52 = vld [vmem:[%s17031_s3 + $0x88] sm:$0xff]  ;;  %v12103_v20 = vld [vmem:[%s17030_s0 + $0x500] sm:$0xff] }
 0xa00   :  { %9070 = vmatpush.bf16.msrb.mxu3 %v12354_v52 }
 0xa01   :  { %17709 = vst [vmem:[#allocation54_spill] sm:$0xff] %v15746_v7  ;;  %11673 = vmatmul.msk.bf16.vlgmr.msra.gmra.mxu1 %vm6780_vm3, %v14886_v58  ;;  %11719 = vmatmul.msk.bf16.gmra.mxu2 %vm6780_vm3, %v14987_v6  ;;  %v17712_v58 = vld [vmem:[#allocation226_spill] sm:$0xff]  ;;  %v6405_v40 = vmax.f32 %v6261_v4, 0.0 }
 0xa02   :  { %11659 = vmatmul.msk.bf16.gmra.mxu3 %vm6780_vm3, %v15746_v7  ;;  %v4672_v43 = vpop.f32.mrf.mxu0 }
 0xa03   :  { %v5826_v47 = vmax.f32 %v17712_v58, %v4672_v43  ;;  %v6549_v26 = vpack.c.bf16 %v6405_v40, %v6405_v40  ;;  %v15783_v40 = vpop.f32.mrf.mxu3 }
 0xa04   :  { %v7261_v54 = vpop.f32.mrf.mxu2  ;;  %17714 = vst [vmem:[#allocation247_spill] sm:$0xff] %v15783_v40  ;;  %v12106_v40 = vld [vmem:[%s17030_s0 + $0x518] sm:$0xff] }
 0xa05   :  { %v6114_v9 = vmax.f32 %v5826_v47, %v5970_v14  ;;  %v7326_v61 = vunpack.c.l.b16 %v6549_v26 }
 0xa06   :  { %v7008_v59 = vpop.f32.mrf.mxu1 }
 0xa07   :  { %v6262_v29 = vadd.f32 %v15662_v1, %v6114_v9  ;;  %v7254_v51 = vadd.f32 %v7253_v48, %v7008_v59 }
 0xa09   :  { %v6406_v28 = vmax.f32 %v6262_v29, 0.0 }
 0xa0a   :  { %v4675_v7 = vpop.f32.mrf.mxu0 }
 0xa0b   :  { %v6550_v10 = vpack.c.bf16 %v6406_v28, %v6406_v28 }
 0xa0c   :  { %v7263_v33 = vpop.f32.mrf.mxu2 }
 0xa0d   :  { %v7327_v43 = vunpack.c.l.b16 %v6550_v10  ;;  %11301 = vmatmul.msk.bf16.gmra.mxu0 %vm2786_vm2, %v12103_v20  ;;  %v12104_v10 = vld [vmem:[%s17030_s0 + $0x508] sm:$0xff] }
 0xa0e   :  { %v7011_v52 = vpop.f32.mrf.mxu1 }
 0xa0f   :  { %v7257_v4 = vadd.f32 %v7256_v56, %v7011_v52  ;;  %v15772_v2 = vpack.c.b16 %v7327_v43, %v7326_v61  ;;  %v17717_v43 = vld [vmem:[#allocation126_spill] sm:$0xff] }
 0xa11   :  { %17713 = vst [vmem:[#allocation51_spill] sm:$0xff] %v15772_v2  ;;  %11674 = vmatmul.msk.bf16.gmra.mxu1 %vm6780_vm3, %v14910_v0  ;;  %11720 = vmatmul.msk.bf16.gmra.mxu2 %vm6780_vm3, %v15012_v19 }
 0xa12   :  { %11660 = vmatmul.msk.bf16.gmra.mxu3 %vm6780_vm3, %v15772_v2  ;;  %v4676_v48 = vpop.f32.mrf.mxu0 }
 0xa13   :  { %v17718_v48 = vld [vmem:[#allocation238_spill] sm:$0xff] }
 0xa14   :  { %v7266_v7 = vpop.f32.mrf.mxu2 }
 0xa16   :  { %v7013_v14 = vpop.f32.mrf.mxu1 }
 0xa17   :  { %v7259_v58 = vadd.f32 %v7258_v44, %v7013_v14 }
 0xa1a   :  { %v4678_v56 = vpop.f32.mrf.mxu0 }
 0xa1c   :  { %v7268_v47 = vpop.f32.mrf.mxu2 }
 0xa1d   :  { %11302 = vmatmul.msk.bf16.gmra.mxu0 %vm2786_vm2, %v12104_v10 }
 0xa1e   :  { %v7016_v0 = vpop.f32.mrf.mxu1 }
 0xa1f   :  { %v15786_v9 = vadd.f32 %v7261_v54, %v7016_v0  ;;  %v12105_v54 = vld [vmem:[%s17030_s0 + $0x510] sm:$0xff] }
 0xa21   :  { %11675 = vmatmul.msk.bf16.gmra.mxu1 %vm6780_vm3, %v14937_v32  ;;  %11721 = vmatmul.msk.bf16.gmra.mxu2 %vm6780_vm3, %v15034_v16  ;;  %v17716_v32 = vld [vmem:[#allocation229_spill] sm:$0xff] }
 0xa22   :  { %11761 = vmatmul.msk.bf16.vlgmr.msra.gmra.mxu3 %vm6780_vm3, %v14987_v6  ;;  %v4679_v44 = vpop.f32.mrf.mxu0  ;;  %v5971_v52 = vmax.f32 %v17717_v43, %v17716_v32  ;;  %v17721_v32 = vld [vmem:[#allocation129_spill] sm:$0xff] }
 0xa24   :  { %v7271_v59 = vpop.f32.mrf.mxu2 }
 0xa25   :  { %v7501_v29 = vpop.f32.mrf.mxu3 }
 0xa26   :  { %v15794_v26 = vadd.f32 %v7501_v29, %v7252_v21  ;;  %v7018_v28 = vpop.f32.mrf.mxu1 }
 0xa27   :  { %v15796_v20 = vadd.f32 %v7263_v33, %v7018_v28 }
 0xa28   :  { %17715 = vst [vmem:[#allocation56_spill] sm:$0xff] %v15794_v26 }
 0xa2a   :  { %v4681_v61 = vpop.f32.mrf.mxu0 }
 0xa2b   :  { %v5827_v14 = vmax.f32 %v17718_v48, %v4681_v61  ;;  %v17720_v61 = vld [vmem:[#allocation232_spill] sm:$0xff] }
 0xa2c   :  { %v7273_v10 = vpop.f32.mrf.mxu2 }
 0xa2d   :  { %v6115_v56 = vmax.f32 %v5827_v14, %v5971_v52  ;;  %v7503_v0 = vpop.f32.mrf.mxu3  ;;  %11303 = vmatmul.msk.bf16.gmra.mxu0 %vm2786_vm2, %v12105_v54  ;;  %v5972_v54 = vmax.f32 %v17721_v32, %v17720_v61  ;;  %v17724_v32 = vld [vmem:[#allocation235_spill] sm:$0xff] }
 0xa2e   :  { %v15805_v21 = vadd.f32 %v7503_v0, %v7254_v51  ;;  %v7021_v44 = vpop.f32.mrf.mxu1  ;;  %v17722_v51 = vld [vmem:[#allocation240_spill] sm:$0xff] }
 0xa2f   :  { %v15807_v33 = vadd.f32 %v7266_v7, %v7021_v44  ;;  %v6263_v29 = vadd.f32 %v15662_v1, %v6115_v56 }
 0xa30   :  { %17719 = vst [vmem:[#allocation52_spill] sm:$0xff] %v15805_v21 }
 0xa31   :  { %11676 = vmatmul.msk.bf16.gmra.mxu1 %vm6780_vm3, %v14964_v46  ;;  %11722 = vmatmul.msk.bf16.gmra.mxu2 %vm6780_vm3, %v15063_v23  ;;  %v6407_v7 = vmax.f32 %v6263_v29, 0.0 }
 0xa32   :  { %11762 = vmatmul.msk.bf16.gmra.mxu3 %vm6780_vm3, %v15012_v19  ;;  %v4683_v28 = vpop.f32.mrf.mxu0 }
 0xa33   :  { %v5828_v43 = vmax.f32 %v17722_v51, %v4683_v28  ;;  %v6551_v21 = vpack.c.bf16 %v6407_v7, %v6407_v7  ;;  %v17725_v28 = vld [vmem:[#allocation132_spill] sm:$0xff] }
 0xa34   :  { %v7276_v52 = vpop.f32.mrf.mxu2  ;;  %v5973_v51 = vmax.f32 %v17725_v28, %v17724_v32 }
 0xa35   :  { %v6116_v48 = vmax.f32 %v5828_v43, %v5972_v54  ;;  %v7506_v14 = vpop.f32.mrf.mxu3  ;;  %v17726_v54 = vld [vmem:[#allocation242_spill] sm:$0xff] }
 0xa36   :  { %v15819_v56 = vadd.f32 %v7506_v14, %v7257_v4  ;;  %v7023_v0 = vpop.f32.mrf.mxu1  ;;  %v7626_v14 = vunpack.c.l.b16 %v6551_v21 }
 0xa37   :  { %v6264_v46 = vadd.f32 %v15662_v1, %v6116_v48  ;;  %v15822_v44 = vadd.f32 %v7268_v47, %v7023_v0 }
 0xa38   :  { %17723 = vst [vmem:[#allocation250_spill] sm:$0xff] %v15819_v56 }
 0xa39   :  { %v6408_v26 = vmax.f32 %v6264_v46, 0.0 }
 0xa3a   :  { %v4686_v61 = vpop.f32.mrf.mxu0 }
 0xa3b   :  { %v6552_v29 = vpack.c.bf16 %v6408_v26, %v6408_v26  ;;  %v5829_v43 = vmax.f32 %v17726_v54, %v4686_v61  ;;  %v17729_v61 = vld [vmem:[#allocation245_spill] sm:$0xff] }
 0xa3c   :  { %v7278_v4 = vpop.f32.mrf.mxu2 }
 0xa3d   :  { %v7627_v56 = vunpack.c.l.b16 %v6552_v29  ;;  %v6117_v2 = vmax.f32 %v5829_v43, %v5973_v51  ;;  %v7508_v48 = vpop.f32.mrf.mxu3  ;;  %11304 = vmatmul.msk.bf16.gmra.mxu0 %vm2786_vm2, %v12106_v40  ;;  %v17727_v40 = vld [vmem:[#allocation237_spill] sm:$0xff] }
 0xa3e   :  { %v15831_v47 = vadd.f32 %v7508_v48, %v7259_v58  ;;  %v7026_v7 = vpop.f32.mrf.mxu1  ;;  %v17728_v58 = vld [vmem:[#allocation135_spill] sm:$0xff]  ;;  %v12107_v48 = vld [vmem:[%s17030_s0 + $0x520] sm:$0xff] }
 0xa3f   :  { %v15833_v0 = vadd.f32 %v7271_v59, %v7026_v7  ;;  %v15835_v46 = vpack.c.b16 %v7627_v56, %v7626_v14  ;;  %v6265_v8 = vadd.f32 %v15662_v1, %v6117_v2  ;;  %v5974_v21 = vmax.f32 %v17728_v58, %v17727_v40  ;;  %v17732_v40 = vld [vmem:[#allocation138_spill] sm:$0xff] }
 0xa41   :  { %11677 = vmatmul.msk.bf16.gmra.mxu1 %vm6780_vm3, %v14987_v6  ;;  %11723 = vmatmul.msk.bf16.gmra.mxu2 %vm6780_vm3, %v15085_v12  ;;  %v6409_v56 = vmax.f32 %v6265_v8, 0.0 }
 0xa42   :  { %11763 = vmatmul.msk.bf16.gmra.mxu3 %vm6780_vm3, %v15034_v16  ;;  %v4688_v26 = vpop.f32.mrf.mxu0 }
 0xa43   :  { %v5830_v59 = vmax.f32 %v17729_v61, %v4688_v26  ;;  %v6553_v43 = vpack.c.bf16 %v6409_v56, %v6409_v56  ;;  %v17731_v26 = vld [vmem:[#allocation239_spill] sm:$0xff] }
 0xa44   :  { %v7281_v32 = vpop.f32.mrf.mxu2  ;;  %v5975_v8 = vmax.f32 %v17732_v40, %v17731_v26 }
 0xa45   :  { %v6118_v28 = vmax.f32 %v5830_v59, %v5974_v21  ;;  %v7511_v51 = vpop.f32.mrf.mxu3  ;;  %v17733_v21 = vld [vmem:[#allocation248_spill] sm:$0xff]  ;;  %v7628_v59 = vunpack.c.l.b16 %v6553_v43 }
 0xa46   :  { %v15848_v2 = vadd.f32 %v7511_v51, %v15786_v9  ;;  %v7028_v6 = vpop.f32.mrf.mxu1 }
 0xa47   :  { %v6266_v29 = vadd.f32 %v15662_v1, %v6118_v28  ;;  %v15851_v54 = vadd.f32 %v7273_v10, %v7028_v6 }
 0xa48   :  { %17730 = vst [vmem:[#allocation59_spill] sm:$0xff] %v15848_v2 }
 0xa49   :  { %v6410_v14 = vmax.f32 %v6266_v29, 0.0 }
 0xa4a   :  { %v4691_v7 = vpop.f32.mrf.mxu0 }
 0xa4b   :  { %v6554_v58 = vpack.c.bf16 %v6410_v14, %v6410_v14  ;;  %v5831_v61 = vmax.f32 %v17733_v21, %v4691_v7  ;;  %v17736_v14 = vld [vmem:[#allocation241_spill] sm:$0xff]  ;;  %v17738_v7 = vld [vmem:[#allocation251_spill] sm:$0xff] }
 0xa4c   :  { %v7283_v9 = vpop.f32.mrf.mxu2 }
 0xa4d   :  { %v7629_v51 = vunpack.c.l.b16 %v6554_v58  ;;  %v6119_v2 = vmax.f32 %v5831_v61, %v5975_v8  ;;  %v7513_v28 = vpop.f32.mrf.mxu3  ;;  %11305 = vmatmul.msk.bf16.gmra.mxu0 %vm2786_vm2, %v12107_v48 }
 0xa4e   :  { %v15861_v10 = vadd.f32 %v7513_v28, %v15796_v20  ;;  %v7031_v56 = vpop.f32.mrf.mxu1  ;;  %v17737_v20 = vld [vmem:[#allocation140_spill] sm:$0xff] }
 0xa4f   :  { %v15863_v6 = vadd.f32 %v7276_v52, %v7031_v56  ;;  %v15865_v29 = vpack.c.b16 %v7629_v51, %v7628_v59  ;;  %v6267_v26 = vadd.f32 %v15662_v1, %v6119_v2  ;;  %v5976_v48 = vmax.f32 %v17737_v20, %v17736_v14  ;;  %v12108_v56 = vld [vmem:[%s17030_s0 + $0x528] sm:$0xff]  ;;  %v17741_v20 = vld [vmem:[#allocation142_spill] sm:$0xff] }
 0xa50   :  { %17734 = vst [vmem:[#allocation53_spill] sm:$0xff] %v15861_v10 }
 0xa51   :  { %17735 = vst [vmem:[#allocation253_spill] sm:$0xff] %v15865_v29  ;;  %11678 = vmatmul.msk.bf16.gmra.mxu1 %vm6780_vm3, %v15012_v19  ;;  %11724 = vmatmul.msk.bf16.gmra.mxu2 %vm6780_vm3, %v15105_v11  ;;  %v6411_v8 = vmax.f32 %v6267_v26, 0.0 }
 0xa52   :  { %11764 = vmatmul.msk.bf16.gmra.mxu3 %vm6780_vm3, %v15063_v23  ;;  %v4693_v43 = vpop.f32.mrf.mxu0 }
 0xa53   :  { %v5832_v52 = vmax.f32 %v17738_v7, %v4693_v43  ;;  %v6555_v51 = vpack.c.bf16 %v6411_v8, %v6411_v8  ;;  %v17740_v43 = vld [vmem:[#allocation243_spill] sm:$0xff]  ;;  %v17742_v7 = vld [vmem:[#allocation254_spill] sm:$0xff] }
 0xa54   :  { %v7286_v40 = vpop.f32.mrf.mxu2  ;;  %v5977_v26 = vmax.f32 %v17741_v20, %v17740_v43 }
 0xa55   :  { %v6120_v58 = vmax.f32 %v5832_v52, %v5976_v48  ;;  %v7516_v21 = vpop.f32.mrf.mxu3 }
 0xa56   :  { %v15878_v2 = vadd.f32 %v7516_v21, %v15807_v33  ;;  %v7033_v19 = vpop.f32.mrf.mxu1  ;;  %v7630_v21 = vunpack.c.l.b16 %v6555_v51 }
 0xa57   :  { %v6268_v61 = vadd.f32 %v15662_v1, %v6120_v58  ;;  %v15881_v59 = vadd.f32 %v7278_v4, %v7033_v19 }
 0xa58   :  { %17739 = vst [vmem:[#allocation62_spill] sm:$0xff] %v15878_v2 }
 0xa59   :  { %v6412_v28 = vmax.f32 %v6268_v61, 0.0 }
 0xa5a   :  { %v4696_v14 = vpop.f32.mrf.mxu0 }
 0xa5b   :  { %v6556_v48 = vpack.c.bf16 %v6412_v28, %v6412_v28  ;;  %v5833_v52 = vmax.f32 %v17742_v7, %v4696_v14  ;;  %v17743_v28 = vld [vmem:[#allocation246_spill] sm:$0xff]  ;;  %v17745_v14 = vld [vmem:[#allocation257_spill] sm:$0xff] }
 0xa5c   :  { %v7288_v33 = vpop.f32.mrf.mxu2 }
 0xa5d   :  { %v7631_v2 = vunpack.c.l.b16 %v6556_v48  ;;  %v6121_v10 = vmax.f32 %v5833_v52, %v5977_v26  ;;  %v7518_v58 = vpop.f32.mrf.mxu3  ;;  %11306 = vmatmul.msk.bf16.gmra.mxu0 %vm2786_vm2, %v12108_v56 }
 0xa5e   :  { %v15891_v4 = vadd.f32 %v7518_v58, %v15822_v44  ;;  %v7036_v8 = vpop.f32.mrf.mxu1  ;;  %v17744_v44 = vld [vmem:[#allocation145_spill] sm:$0xff]  ;;  %v12109_v58 = vld [vmem:[%s17030_s0 + $0x530] sm:$0xff] }
 0xa5f   :  { %v15893_v19 = vadd.f32 %v7281_v32, %v7036_v8  ;;  %v15895_v61 = vpack.c.b16 %v7631_v2, %v7630_v21  ;;  %v6269_v43 = vadd.f32 %v15662_v1, %v6121_v10  ;;  %v5978_v56 = vmax.f32 %v17744_v44, %v17743_v28  ;;  %v17748_v28 = vld [vmem:[#allocation148_spill] sm:$0xff] }
 0xa61   :  { %11679 = vmatmul.msk.bf16.gmra.mxu1 %vm6780_vm3, %v15034_v16  ;;  %11725 = vmatmul.msk.bf16.gmra.mxu2 %vm6780_vm3, %v15249_v34  ;;  %v6413_v2 = vmax.f32 %v6269_v43, 0.0 }
 0xa62   :  { %11765 = vmatmul.msk.bf16.gmra.mxu3 %vm6780_vm3, %v15085_v12  ;;  %v4698_v51 = vpop.f32.mrf.mxu0 }
 0xa63   :  { %v5834_v32 = vmax.f32 %v17745_v14, %v4698_v51  ;;  %v6557_v21 = vpack.c.bf16 %v6413_v2, %v6413_v2  ;;  %v17747_v51 = vld [vmem:[#allocation249_spill] sm:$0xff] }
 0xa64   :  { %v7961_v20 = vpop.f32.mrf.mxu2  ;;  %v5979_v43 = vmax.f32 %v17748_v28, %v17747_v51  ;;  %v17752_v51 = vld [vmem:[#allocation263_spill] sm:$0xff] }
 0xa65   :  { %v6122_v26 = vmax.f32 %v5834_v32, %v5978_v56  ;;  %v7521_v48 = vpop.f32.mrf.mxu3  ;;  %v17749_v56 = vld [vmem:[#allocation260_spill] sm:$0xff]  ;;  %v7632_v32 = vunpack.c.l.b16 %v6557_v21 }
 0xa66   :  { %v15908_v10 = vadd.f32 %v7521_v48, %v15833_v0  ;;  %v7038_v16 = vpop.f32.mrf.mxu1 }
 0xa67   :  { %v6270_v7 = vadd.f32 %v15662_v1, %v6122_v26  ;;  %v15911_v52 = vadd.f32 %v7283_v9, %v7038_v16 }
 0xa68   :  { %17746 = vst [vmem:[#allocation55_spill] sm:$0xff] %v15908_v10 }
 0xa69   :  { %v6414_v12 = vmax.f32 %v6270_v7, 0.0 }
 0xa6a   :  { %v4701_v8 = vpop.f32.mrf.mxu0 }
 0xa6b   :  { %v6558_v44 = vpack.c.bf16 %v6414_v12, %v6414_v12  ;;  %v5835_v14 = vmax.f32 %v17749_v56, %v4701_v8 }
 0xa6c   :  { %v15919_v0 = vpop.f32.mrf.mxu2 }
 0xa6d   :  { %v7633_v48 = vunpack.c.l.b16 %v6558_v44  ;;  %v6123_v26 = vmax.f32 %v5835_v14, %v5979_v43  ;;  %v7523_v9 = vpop.f32.mrf.mxu3  ;;  %11307 = vmatmul.msk.bf16.gmra.mxu0 %vm2786_vm2, %v12109_v58  ;;  %v17750_v58 = vld [vmem:[#allocation252_spill] sm:$0xff] }
 0xa6e   :  { %v15923_v2 = vadd.f32 %v7523_v9, %v15851_v54  ;;  %v7041_v16 = vpop.f32.mrf.mxu1  ;;  %v17751_v54 = vld [vmem:[#allocation152_spill] sm:$0xff]  ;;  %v12110_v9 = vld [vmem:[%s17030_s0 + $0x538] sm:$0xff] }
 0xa6f   :  { %v15925_v7 = vadd.f32 %v7286_v40, %v7041_v16  ;;  %v15927_v10 = vpack.c.b16 %v7633_v48, %v7632_v32  ;;  %v6271_v12 = vadd.f32 %v15662_v1, %v6123_v26  ;;  %v5980_v8 = vmax.f32 %v17751_v54, %v17750_v58  ;;  %v17755_v58 = vld [vmem:[#allocation156_spill] sm:$0xff] }
 0xa71   :  { %11680 = vmatmul.msk.bf16.gmra.mxu1 %vm6780_vm3, %v15063_v23  ;;  %11726 = vmatmul.msk.bf16.gmra.mxu2 %vm6780_vm3, %v15278_v35  ;;  %v6415_v43 = vmax.f32 %v6271_v12, 0.0 }
 0xa72   :  { %11766 = vmatmul.msk.bf16.gmra.mxu3 %vm6780_vm3, %v15105_v11  ;;  %v4703_v21 = vpop.f32.mrf.mxu0 }
 0xa73   :  { %v5836_v40 = vmax.f32 %v17752_v51, %v4703_v21  ;;  %v6559_v11 = vpack.c.bf16 %v6415_v43, %v6415_v43  ;;  %v17754_v21 = vld [vmem:[#allocation255_spill] sm:$0xff] }
 0xa74   :  { %v15939_v28 = vpop.f32.mrf.mxu2  ;;  %v5981_v12 = vmax.f32 %v17755_v58, %v17754_v21  ;;  %v17759_v58 = vld [vmem:[#allocation269_spill] sm:$0xff] }
 0xa75   :  { %v6124_v44 = vmax.f32 %v5836_v40, %v5980_v8  ;;  %v7526_v56 = vpop.f32.mrf.mxu3  ;;  %v17756_v8 = vld [vmem:[#allocation266_spill] sm:$0xff]  ;;  %v7634_v40 = vunpack.c.l.b16 %v6559_v11 }
 0xa76   :  { %v15942_v14 = vadd.f32 %v7526_v56, %v15863_v6  ;;  %v7043_v23 = vpop.f32.mrf.mxu1 }
 0xa77   :  { %v6272_v32 = vadd.f32 %v15662_v1, %v6124_v44  ;;  %v15945_v48 = vadd.f32 %v7288_v33, %v7043_v23 }
 0xa78   :  { %17753 = vst [vmem:[#allocation256_spill] sm:$0xff] %v15942_v14 }
 0xa79   :  { %v6416_v26 = vmax.f32 %v6272_v32, 0.0 }
 0xa7a   :  { %v4706_v16 = vpop.f32.mrf.mxu0 }
 0xa7b   :  { %v6560_v54 = vpack.c.bf16 %v6416_v26, %v6416_v26  ;;  %v5837_v51 = vmax.f32 %v17756_v8, %v4706_v16  ;;  %v17758_v16 = vld [vmem:[#allocation160_spill] sm:$0xff] }
 0xa7c   :  { %v15953_v6 = vpop.f32.mrf.mxu2 }
 0xa7d   :  { %v7635_v56 = vunpack.c.l.b16 %v6560_v54  ;;  %v6125_v44 = vmax.f32 %v5837_v51, %v5981_v12  ;;  %v7528_v33 = vpop.f32.mrf.mxu3  ;;  %11308 = vmatmul.msk.bf16.gmra.mxu0 %vm2786_vm2, %v12110_v9  ;;  %v17757_v9 = vld [vmem:[#allocation258_spill] sm:$0xff] }
 0xa7e   :  { %v15957_v43 = vadd.f32 %v7528_v33, %v15881_v59  ;;  %v7695_v23 = vpop.f32.mrf.mxu1  ;;  %v5982_v21 = vmax.f32 %v17758_v16, %v17757_v9 }
 0xa7f   :  { %v15959_v32 = vpack.c.b16 %v7635_v56, %v7634_v40  ;;  %v7855_v14 = vadd.f32 %v7695_v23, %v14847_v31  ;;  %v6273_v26 = vadd.f32 %v15662_v1, %v6125_v44  ;;  %v7134_v31 = vadd.f32 %v14805_v50, %v14831_v38  ;;  %v12111_v50 = vld [vmem:[%s17030_s0 + $0x540] sm:$0xff] }
 0xa81   :  { %11681 = vmatmul.msk.bf16.gmra.mxu1 %vm6780_vm3, %v15200_v49  ;;  %11727 = vmatmul.msk.bf16.gmra.mxu2 %vm6780_vm3, %v15301_v60  ;;  %v15967_v11 = vadd.f32 %v7961_v20, %v7855_v14  ;;  %v7542_v8 = vadd.f32 %v14859_v13, %v7134_v31  ;;  %v6417_v51 = vmax.f32 %v6273_v26, 0.0  ;;  %v17760_v26 = vld [vmem:[#allocation261_spill] sm:$0xff] }
 0xa82   :  { %11767 = vmatmul.msk.bf16.gmra.mxu3 %vm6780_vm3, %v15125_v3  ;;  %v4708_v59 = vpop.f32.mrf.mxu0 }
 0xa83   :  { %v5838_v12 = vmax.f32 %v17759_v58, %v4708_v59  ;;  %v6561_v33 = vpack.c.bf16 %v6417_v51, %v6417_v51  ;;  %v17761_v59 = vld [vmem:[#allocation164_spill] sm:$0xff] }
 0xa84   :  { %v15976_v54 = vpop.f32.mrf.mxu2  ;;  %v5983_v9 = vmax.f32 %v17761_v59, %v17760_v26 }
 0xa85   :  { %v6126_v40 = vmax.f32 %v5838_v12, %v5982_v21  ;;  %v7531_v20 = vpop.f32.mrf.mxu3  ;;  %v7636_v58 = vunpack.c.l.b16 %v6561_v33  ;;  %v17764_v33 = vld [vmem:[#allocation264_spill] sm:$0xff] }
 0xa86   :  { %v15980_v14 = vadd.f32 %v7531_v20, %v15893_v19  ;;  %v7697_v3 = vpop.f32.mrf.mxu1  ;;  %v17762_v19 = vld [vmem:[#allocation272_spill] sm:$0xff] }
 0xa87   :  { %v6274_v56 = vadd.f32 %v15662_v1, %v6126_v40  ;;  %v7856_v44 = vadd.f32 %v7697_v3, %v7542_v8 }
 0xa89   :  { %v6418_v23 = vmax.f32 %v6274_v56, 0.0  ;;  %v15987_v38 = vadd.f32 %v15919_v0, %v7856_v44 }
 0xa8a   :  { %v4711_v13 = vpop.f32.mrf.mxu0 }
 0xa8b   :  { %v6562_v16 = vpack.c.bf16 %v6418_v23, %v6418_v23  ;;  %v5839_v21 = vmax.f32 %v17762_v19, %v4711_v13  ;;  %v17765_v23 = vld [vmem:[#allocation168_spill] sm:$0xff]  ;;  %v17766_v13 = vld [vmem:[#allocation275_spill] sm:$0xff] }
 0xa8c   :  { %v15992_v31 = vpop.f32.mrf.mxu2 }
 0xa8d   :  { %v7637_v12 = vunpack.c.l.b16 %v6562_v16  ;;  %v6127_v8 = vmax.f32 %v5839_v21, %v5983_v9  ;;  %v7533_v51 = vpop.f32.mrf.mxu3  ;;  %11309 = vmatmul.msk.bf16.gmra.mxu0 %vm2786_vm2, %v12111_v50  ;;  %v5984_v50 = vmax.f32 %v17765_v23, %v17764_v33 }
 0xa8e   :  { %v15996_v40 = vadd.f32 %v7533_v51, %v15911_v52  ;;  %v7700_v0 = vpop.f32.mrf.mxu1 }
 0xa8f   :  { %v15998_v20 = vpack.c.b16 %v7637_v12, %v7636_v58  ;;  %v7857_v3 = vadd.f32 %v7700_v0, %v14868_v27  ;;  %v6275_v56 = vadd.f32 %v15662_v1, %v6127_v8  ;;  %v7139_v27 = vadd.f32 %v14824_v39, %v14841_v30  ;;  %v12112_v39 = vld [vmem:[%s17030_s0 + $0x548] sm:$0xff] }
 0xa90   :  { %17763 = vst [vmem:[#allocation65_spill] sm:$0xff] %v15996_v40  ;;  %v17768_v0 = vld [vmem:[#allocation267_spill] sm:$0xff] }
 0xa91   :  { %11682 = vmatmul.msk.bf16.gmra.mxu1 %vm6780_vm3, %v15224_v57  ;;  %11728 = vmatmul.msk.bf16.gmra.mxu2 %vm6780_vm3, %v15326_v24  ;;  %v16007_v44 = vadd.f32 %v15939_v28, %v7857_v3  ;;  %v7544_v9 = vadd.f32 %v14881_v42, %v7139_v27  ;;  %v6419_v16 = vmax.f32 %v6275_v56, 0.0  ;;  %v17769_v3 = vld [vmem:[#allocation172_spill] sm:$0xff] }
 0xa92   :  { %11768 = vmatmul.msk.bf16.gmra.mxu3 %vm6780_vm3, %v15142_v62  ;;  %v4713_v52 = vpop.f32.mrf.mxu0  ;;  %v5985_v56 = vmax.f32 %v17769_v3, %v17768_v0 }
 0xa93   :  { %v5840_v26 = vmax.f32 %v17766_v13, %v4713_v52  ;;  %v6563_v8 = vpack.c.bf16 %v6419_v16, %v6419_v16 }
 0xa94   :  { %v16016_v59 = vpop.f32.mrf.mxu2 }
 0xa95   :  { %v6128_v19 = vmax.f32 %v5840_v26, %v5984_v50  ;;  %v7536_v28 = vpop.f32.mrf.mxu3  ;;  %v7638_v50 = vunpack.c.l.b16 %v6563_v8 }
 0xa96   :  { %v16020_v21 = vadd.f32 %v7536_v28, %v15925_v7  ;;  %v7702_v62 = vpop.f32.mrf.mxu1  ;;  %v17770_v7 = vld [vmem:[#allocation278_spill] sm:$0xff] }
 0xa97   :  { %v6276_v58 = vadd.f32 %v15662_v1, %v6128_v19  ;;  %v7858_v12 = vadd.f32 %v7702_v62, %v7544_v9 }
 0xa98   :  { %17767 = vst [vmem:[#allocation57_spill] sm:$0xff] %v16020_v21  ;;  %v17850_v21 = vld [vmem:[#allocation308_spill] sm:$0xff] }
 0xa99   :  { %v6420_v51 = vmax.f32 %v6276_v58, 0.0  ;;  %v16027_v30 = vadd.f32 %v15953_v6, %v7858_v12  ;;  %v17772_v58 = vld [vmem:[#allocation270_spill] sm:$0xff]  ;;  %v17773_v12 = vld [vmem:[#allocation176_spill] sm:$0xff] }
 0xa9a   :  { %v4716_v42 = vpop.f32.mrf.mxu0  ;;  %v5986_v8 = vmax.f32 %v17773_v12, %v17772_v58 }
 0xa9b   :  { %v6564_v52 = vpack.c.bf16 %v6420_v51, %v6420_v51  ;;  %v5841_v33 = vmax.f32 %v17770_v7, %v4716_v42  ;;  %v17774_v51 = vld [vmem:[#allocation281_spill] sm:$0xff] }
 0xa9c   :  { %v16032_v23 = vpop.f32.mrf.mxu2 }
 0xa9d   :  { %v7639_v27 = vunpack.c.l.b16 %v6564_v52  ;;  %v6129_v13 = vmax.f32 %v5841_v33, %v5985_v56  ;;  %v7538_v26 = vpop.f32.mrf.mxu3  ;;  %11310 = vmatmul.msk.bf16.gmra.mxu0 %vm2786_vm2, %v12112_v39 }
 0xa9e   :  { %v16036_v9 = vadd.f32 %v7538_v26, %v15945_v48  ;;  %v7705_v6 = vpop.f32.mrf.mxu1  ;;  %v17776_v26 = vld [vmem:[#allocation273_spill] sm:$0xff] }
 0xa9f   :  { %v16038_v16 = vpack.c.b16 %v7639_v27, %v7638_v50  ;;  %v7859_v19 = vadd.f32 %v7705_v6, %v14894_v41  ;;  %v6277_v28 = vadd.f32 %v15662_v1, %v6129_v13  ;;  %v7144_v41 = vadd.f32 %v14839_v45, %v14849_v18  ;;  %v12113_v45 = vld [vmem:[%s17030_s0 + $0x550] sm:$0xff] }
 0xaa0   :  { %17771 = vst [vmem:[#allocation259_spill] sm:$0xff] %v16036_v9  ;;  %v17777_v6 = vld [vmem:[#allocation180_spill] sm:$0xff] }
 0xaa1   :  { %11683 = vmatmul.msk.bf16.gmra.mxu1 %vm6780_vm3, %v15249_v34  ;;  %11729 = vmatmul.msk.bf16.gmra.mxu2 %vm6780_vm3, %v15348_v36  ;;  %v16047_v62 = vadd.f32 %v15976_v54, %v7859_v19  ;;  %v7546_v0 = vadd.f32 %v14905_v63, %v7144_v41  ;;  %v6421_v3 = vmax.f32 %v6277_v28, 0.0  ;;  %v5987_v19 = vmax.f32 %v17777_v6, %v17776_v26  ;;  %v17784_v26 = vld [vmem:[#allocation4_spill] sm:$0xff] }
 0xaa2   :  { %11769 = vmatmul.msk.bf16.gmra.mxu3 %vm6780_vm3, %v15301_v60  ;;  %v4718_v48 = vpop.f32.mrf.mxu0 }
 0xaa3   :  { %v5842_v39 = vmax.f32 %v17774_v51, %v4718_v48  ;;  %v6565_v27 = vpack.c.bf16 %v6421_v3, %v6421_v3 }
 0xaa4   :  { %v16056_v42 = vpop.f32.mrf.mxu2 }
 0xaa5   :  { %v6130_v56 = vmax.f32 %v5842_v39, %v5986_v8  ;;  %v8227_v54 = vpop.f32.mrf.mxu3  ;;  %v7640_v12 = vunpack.c.l.b16 %v6565_v27 }
 0xaa6   :  { %v16060_v52 = vadd.f32 %v8227_v54, %v15967_v11  ;;  %v7707_v7 = vpop.f32.mrf.mxu1  ;;  %v17778_v11 = vld [vmem:[#allocation284_spill] sm:$0xff] }
 0xaa7   :  { %v6278_v33 = vadd.f32 %v15662_v1, %v6130_v56  ;;  %v7860_v50 = vadd.f32 %v7707_v7, %v7546_v0  ;;  %v17780_v7 = vld [vmem:[#allocation276_spill] sm:$0xff] }
 0xaa8   :  { %17775 = vst [vmem:[#allocation68_spill] sm:$0xff] %v16060_v52 }
 0xaa9   :  { %v6422_v13 = vmax.f32 %v6278_v33, 0.0  ;;  %v16067_v18 = vadd.f32 %v15992_v31, %v7860_v50  ;;  %v17781_v33 = vld [vmem:[#allocation184_spill] sm:$0xff] }
 0xaaa   :  { %v4721_v63 = vpop.f32.mrf.mxu0  ;;  %v5988_v50 = vmax.f32 %v17781_v33, %v17780_v7 }
 0xaab   :  { %v6566_v28 = vpack.c.bf16 %v6422_v13, %v6422_v13  ;;  %v5843_v48 = vmax.f32 %v17778_v11, %v4721_v63  ;;  %v17783_v13 = vld [vmem:[#allocation287_spill] sm:$0xff] }
 0xaac   :  { %v16072_v58 = vpop.f32.mrf.mxu2 }
 0xaad   :  { %v7641_v8 = vunpack.c.l.b16 %v6566_v28  ;;  %v6131_v41 = vmax.f32 %v5843_v48, %v5987_v19  ;;  %v8229_v51 = vpop.f32.mrf.mxu3  ;;  %11311 = vmatmul.msk.bf16.gmra.mxu0 %vm2786_vm2, %v12113_v45 }
 0xaae   :  { %v16076_v39 = vadd.f32 %v8229_v51, %v15987_v38  ;;  %v7710_v31 = vpop.f32.mrf.mxu1 }
 0xaaf   :  { %v16078_v0 = vpack.c.b16 %v7641_v8, %v7640_v12  ;;  %v7861_v3 = vadd.f32 %v7710_v31, %v14921_v55  ;;  %v6279_v56 = vadd.f32 %v15662_v1, %v6131_v41  ;;  %v17782_v55 = vld [vmem:[#allocation79_spill] sm:$0xff] }
 0xab0   :  { %17779 = vst [vmem:[#allocation60_spill] sm:$0xff] %v16076_v39  ;;  %v7149_v27 = vadd.f32 %v17782_v55, %v14870_v17 }
 0xab1   :  { %11684 = vmatmul.msk.bf16.gmra.mxu1 %vm6780_vm3, %v15278_v35  ;;  %11730 = vmatmul.msk.bf16.gmra.mxu2 %vm6780_vm3, %v15368_v37  ;;  %v16087_v54 = vadd.f32 %v16016_v59, %v7861_v3  ;;  %v6423_v19 = vmax.f32 %v6279_v56, 0.0  ;;  %v17786_v3 = vld [vmem:[#allocation279_spill] sm:$0xff]  ;;  %v17788_v56 = vld [vmem:[#allocation290_spill] sm:$0xff] }
 0xab2   :  { %11770 = vmatmul.msk.bf16.gmra.mxu3 %vm6780_vm3, %v15326_v24  ;;  %v4723_v38 = vpop.f32.mrf.mxu0  ;;  %v7548_v6 = vadd.f32 %v17784_v26, %v7149_v27 }
 0xab3   :  { %v5844_v45 = vmax.f32 %v17783_v13, %v4723_v38  ;;  %v6567_v41 = vpack.c.bf16 %v6423_v19, %v6423_v19  ;;  %v17787_v38 = vld [vmem:[#allocation188_spill] sm:$0xff]  ;;  %v17790_v19 = vld [vmem:[#allocation5_spill] sm:$0xff] }
 0xab4   :  { %v7986_v63 = vpop.f32.mrf.mxu2  ;;  %v5989_v7 = vmax.f32 %v17787_v38, %v17786_v3  ;;  %v17795_v3 = vld [vmem:[#allocation2_spill] sm:$0xff] }
 0xab5   :  { %v6132_v28 = vmax.f32 %v5844_v45, %v5988_v50  ;;  %v8232_v11 = vpop.f32.mrf.mxu3 }
 0xab6   :  { %v16098_v59 = vadd.f32 %v8232_v11, %v16007_v44  ;;  %v7712_v48 = vpop.f32.mrf.mxu1  ;;  %v7928_v44 = vunpack.c.l.b16 %v6567_v41  ;;  %v17793_v41 = vld [vmem:[#allocation192_spill] sm:$0xff] }
 0xab7   :  { %v6280_v12 = vadd.f32 %v15662_v1, %v6132_v28  ;;  %v7862_v8 = vadd.f32 %v7712_v48, %v7548_v6  ;;  %v17791_v48 = vld [vmem:[#allocation175_spill] sm:$0xff] }
 0xab8   :  { %17785 = vst [vmem:[#allocation262_spill] sm:$0xff] %v16098_v59 }
 0xab9   :  { %v6424_v51 = vmax.f32 %v6280_v12, 0.0  ;;  %v16102_v31 = vadd.f32 %v16032_v23, %v7862_v8  ;;  %v17792_v8 = vld [vmem:[#allocation282_spill] sm:$0xff] }
 0xaba   :  { %v4726_v17 = vpop.f32.mrf.mxu0 }
 0xabb   :  { %v6568_v33 = vpack.c.bf16 %v6424_v51, %v6424_v51  ;;  %v5845_v50 = vmax.f32 %v17788_v56, %v4726_v17  ;;  %v5990_v51 = vmax.f32 %v17793_v41, %v17792_v8  ;;  %v17794_v17 = vld [vmem:[#allocation83_spill] sm:$0xff] }
 0xabc   :  { %v16107_v55 = vpop.f32.mrf.mxu2  ;;  %v7154_v38 = vadd.f32 %v17795_v3, %v17794_v17  ;;  %v17799_v3 = vld [vmem:[#allocation285_spill] sm:$0xff] }
 0xabd   :  { %v7929_v27 = vunpack.c.l.b16 %v6568_v33  ;;  %v6133_v13 = vmax.f32 %v5845_v50, %v5989_v7  ;;  %v8234_v45 = vpop.f32.mrf.mxu3  ;;  %v17796_v7 = vld [vmem:[#allocation293_spill] sm:$0xff]  ;;  %v17797_v50 = vld [vmem:[#allocation6_spill] sm:$0xff] }
 0xabe   :  { %v16110_v26 = vadd.f32 %v8234_v45, %v16027_v30  ;;  %v7715_v6 = vpop.f32.mrf.mxu1 }
 0xabf   :  { %v7863_v23 = vadd.f32 %v7715_v6, %v17790_v19  ;;  %v16113_v28 = vpack.c.b16 %v7929_v27, %v7928_v44  ;;  %v6281_v11 = vadd.f32 %v15662_v1, %v6133_v13  ;;  %v7550_v44 = vadd.f32 %v17797_v50, %v7154_v38 }
 0xac0   :  { %17789 = vst [vmem:[#allocation71_spill] sm:$0xff] %v16110_v26 }
 0xac1   :  { %11685 = vmatmul.msk.bf16.gmra.mxu1 %vm6780_vm3, %v15301_v60  ;;  %11731 = vmatmul.msk.bf16.gmra.mxu2 %vm6780_vm3, %v17791_v48  ;;  %v16121_v12 = vadd.f32 %v16056_v42, %v7863_v23  ;;  %v6425_v27 = vmax.f32 %v6281_v11, 0.0  ;;  %v17801_v11 = vld [vmem:[#allocation296_spill] sm:$0xff] }
 0xac2   :  { %11771 = vmatmul.msk.bf16.gmra.mxu3 %vm6780_vm3, %v15348_v36  ;;  %v4728_v30 = vpop.f32.mrf.mxu0 }
 0xac3   :  { %v5846_v33 = vmax.f32 %v17796_v7, %v4728_v30  ;;  %v6569_v8 = vpack.c.bf16 %v6425_v27, %v6425_v27  ;;  %v17800_v7 = vld [vmem:[#allocation196_spill] sm:$0xff] }
 0xac4   :  { %v16130_v56 = vpop.f32.mrf.mxu2  ;;  %v5991_v26 = vmax.f32 %v17800_v7, %v17799_v3  ;;  %v17808_v3 = vld [vmem:[#allocation3_spill] sm:$0xff] }
 0xac5   :  { %v6134_v13 = vmax.f32 %v5846_v33, %v5990_v51  ;;  %v8237_v42 = vpop.f32.mrf.mxu3 }
 0xac6   :  { %v16134_v45 = vadd.f32 %v8237_v42, %v16047_v62  ;;  %v7717_v6 = vpop.f32.mrf.mxu1  ;;  %v7930_v62 = vunpack.c.l.b16 %v6569_v8 }
 0xac7   :  { %v6282_v19 = vadd.f32 %v15662_v1, %v6134_v13  ;;  %v7864_v23 = vadd.f32 %v7717_v6, %v7550_v44  ;;  %v17803_v13 = vld [vmem:[#allocation99_spill] sm:$0xff] }
 0xac8   :  { %17798 = vst [vmem:[#allocation63_spill] sm:$0xff] %v16134_v45 }
 0xac9   :  { %v6426_v41 = vmax.f32 %v6282_v19, 0.0  ;;  %v16138_v17 = vadd.f32 %v16072_v58, %v7864_v23  ;;  %v17804_v23 = vld [vmem:[#allocation179_spill] sm:$0xff] }
 0xaca   :  { %v4731_v30 = vpop.f32.mrf.mxu0 }
 0xacb   :  { %v6570_v38 = vpack.c.bf16 %v6426_v41, %v6426_v41  ;;  %v5847_v51 = vmax.f32 %v17801_v11, %v4731_v30  ;;  %v17807_v30 = vld [vmem:[#allocation87_spill] sm:$0xff] }
 0xacc   :  { %v16143_v33 = vpop.f32.mrf.mxu2  ;;  %v7159_v7 = vadd.f32 %v17808_v3, %v17807_v30 }
 0xacd   :  { %v7931_v50 = vunpack.c.l.b16 %v6570_v38  ;;  %v6135_v42 = vmax.f32 %v5847_v51, %v5991_v26  ;;  %v8239_v45 = vpop.f32.mrf.mxu3  ;;  %v17805_v26 = vld [vmem:[#allocation288_spill] sm:$0xff]  ;;  %v17809_v38 = vld [vmem:[#allocation298_spill] sm:$0xff]  ;;  %v17810_v51 = vld [vmem:[#allocation7_spill] sm:$0xff] }
 0xace   :  { %v16146_v44 = vadd.f32 %v8239_v45, %v16067_v18  ;;  %v7720_v27 = vpop.f32.mrf.mxu1  ;;  %v17806_v45 = vld [vmem:[#allocation200_spill] sm:$0xff] }
 0xacf   :  { %v7865_v58 = vadd.f32 %v7720_v27, %v17803_v13  ;;  %v16149_v6 = vpack.c.b16 %v7931_v50, %v7930_v62  ;;  %v6283_v19 = vadd.f32 %v15662_v1, %v6135_v42  ;;  %v5992_v41 = vmax.f32 %v17806_v45, %v17805_v26 }
 0xad0   :  { %17802 = vst [vmem:[#allocation265_spill] sm:$0xff] %v16146_v44  ;;  %v7552_v62 = vadd.f32 %v17810_v51, %v7159_v7 }
 0xad1   :  { %11686 = vmatmul.msk.bf16.gmra.mxu1 %vm6780_vm3, %v15326_v24  ;;  %11732 = vmatmul.msk.bf16.gmra.mxu2 %vm6780_vm3, %v17804_v23  ;;  %v16156_v8 = vadd.f32 %v7986_v63, %v7865_v58  ;;  %v6427_v50 = vmax.f32 %v6283_v19, 0.0  ;;  %v16172_v58 = vld [vmem:[%s17032_s2] ss:$0 sm:$0xff]  ;;  %v17812_v19 = vld [vmem:[#allocation291_spill] sm:$0xff] }
 0xad2   :  { %11772 = vmatmul.msk.bf16.gmra.mxu3 %vm6780_vm3, %v15368_v37  ;;  %v4733_v18 = vpop.f32.mrf.mxu0 }
 0xad3   :  { %v5848_v1 = vmax.f32 %v17809_v38, %v4733_v18  ;;  %v6571_v30 = vpack.c.bf16 %v6427_v50, %v6427_v50  ;;  %v17816_v50 = vld [vmem:[#allocation103_spill] sm:$0xff] }
 0xad4   :  { %v7996_v11 = vpop.f32.mrf.mxu2 }
 0xad5   :  { %v6136_v42 = vmax.f32 %v5848_v1, %v5992_v41  ;;  %v8242_v27 = vpop.f32.mrf.mxu3  ;;  %v17813_v41 = vld [vmem:[#allocation204_spill] sm:$0xff] }
 0xad6   :  { %v16167_v63 = vadd.f32 %v8242_v27, %v16087_v54  ;;  %v7722_v13 = vpop.f32.mrf.mxu1  ;;  %v5993_v38 = vmax.f32 %v17813_v41, %v17812_v19  ;;  %v17814_v54 = vld [vmem:[#allocation300_spill] sm:$0xff] }
 0xad7   :  { %v6284_v26 = vadd.f32 %v16172_v58, %v6136_v42  ;;  %v7866_v45 = vadd.f32 %v7722_v13, %v7552_v62  ;;  %v17822_v41 = vld [vmem:[#allocation8_spill] sm:$0xff] }
 0xad8   :  { %17811 = vst [vmem:[#allocation74_spill] sm:$0xff] %v16167_v63  ;;  %v8194_v63 = vunpack.c.l.b16 %v6571_v30 }
 0xad9   :  { %v6428_v18 = vmax.f32 %v6284_v26, 0.0  ;;  %v8132_v3 = vadd.f32 %v16107_v55, %v7866_v45  ;;  %v17818_v45 = vld [vmem:[#allocation208_spill] sm:$0xff] }
 0xada   :  { %v4736_v7 = vpop.f32.mrf.mxu0 }
 0xadb   :  { %v6572_v1 = vpack.c.bf16 %v6428_v18, %v6428_v18  ;;  %v5849_v51 = vmax.f32 %v17814_v54, %v4736_v7  ;;  %v17819_v18 = vld [vmem:[#allocation95_spill] sm:$0xff]  ;;  %v17821_v7 = vld [vmem:[#allocation302_spill] sm:$0xff] }
 0xadc   :  { %v7998_v27 = vpop.f32.mrf.mxu2 }
 0xadd   :  { %v8195_v44 = vunpack.c.l.b16 %v6572_v1  ;;  %v6137_v59 = vmax.f32 %v5849_v51, %v5993_v38  ;;  %v8244_v39 = vpop.f32.mrf.mxu3 }
 0xade   :  { %v16180_v52 = vadd.f32 %v8244_v39, %v16102_v31  ;;  %v7725_v62 = vpop.f32.mrf.mxu1  ;;  %v17817_v31 = vld [vmem:[#allocation294_spill] sm:$0xff] }
 0xadf   :  { %v7867_v42 = vadd.f32 %v7725_v62, %v17816_v50  ;;  %v16183_v13 = vpack.c.b16 %v8195_v44, %v8194_v63  ;;  %v6285_v55 = vadd.f32 %v16172_v58, %v6137_v59  ;;  %v5994_v30 = vmax.f32 %v17818_v45, %v17817_v31  ;;  %v17820_v44 = vld [vmem:[#allocation91_spill] sm:$0xff] }
 0xae0   :  { %17815 = vst [vmem:[#allocation66_spill] sm:$0xff] %v16180_v52  ;;  %v7164_v63 = vadd.f32 %v17820_v44, %v17819_v18 }
 0xae1   :  { %11687 = vmatmul.msk.bf16.gmra.mxu1 %vm6780_vm3, %v15348_v36  ;;  %11733 = vmatmul.msk.bf16.gmra.mxu2 %vm6780_vm3, %v15558_v25  ;;  %v8133_v26 = vadd.f32 %v16130_v56, %v7867_v42  ;;  %v6429_v1 = vmax.f32 %v6285_v55, 0.0 }
 0xae2   :  { %11773 = vmatmul.msk.bf16.gmra.mxu3 %vm6780_vm3, %v17791_v48  ;;  %v4738_v39 = vpop.f32.mrf.mxu0  ;;  %v7554_v38 = vadd.f32 %v17822_v41, %v7164_v63 }
 0xae3   :  { %v5850_v59 = vmax.f32 %v17821_v7, %v4738_v39  ;;  %v6573_v52 = vpack.c.bf16 %v6429_v1, %v6429_v1  ;;  %v17827_v1 = vld [vmem:[#allocation9_spill] sm:$0xff] }
 0xae4   :  { %v8001_v19 = vpop.f32.mrf.mxu2 }
 0xae5   :  { %v6138_v54 = vmax.f32 %v5850_v59, %v5994_v30  ;;  %v8247_v51 = vpop.f32.mrf.mxu3  ;;  %v8196_v7 = vunpack.c.l.b16 %v6573_v52 }
 0xae6   :  { %v16200_v56 = vadd.f32 %v8247_v51, %v16121_v12  ;;  %v7727_v62 = vpop.f32.mrf.mxu1  ;;  %v17825_v12 = vld [vmem:[#allocation107_spill] sm:$0xff]  ;;  %v17828_v51 = vld [vmem:[#allocation121_spill] sm:$0xff] }
 0xae7   :  { %v6286_v50 = vadd.f32 %v16172_v58, %v6138_v54  ;;  %v7868_v42 = vadd.f32 %v7727_v62, %v7554_v38  ;;  %v17826_v38 = vld [vmem:[#allocation10_spill] sm:$0xff] }
 0xae8   :  { %17823 = vst [vmem:[#allocation268_spill] sm:$0xff] %v16200_v56 }
 0xae9   :  { %v6430_v31 = vmax.f32 %v6286_v50, 0.0  ;;  %v8134_v45 = vadd.f32 %v16143_v33, %v7868_v42 }
 0xaea   :  { %v4741_v18 = vpop.f32.mrf.mxu0 }
 0xaeb   :  { %v6574_v44 = vpack.c.bf16 %v6430_v31, %v6430_v31 }
 0xaec   :  { %v8003_v39 = vpop.f32.mrf.mxu2 }
 0xaed   :  { %v8197_v9 = vunpack.c.l.b16 %v6574_v44  ;;  %v8249_v63 = vpop.f32.mrf.mxu3 }
 0xaee   :  { %v16205_v55 = vadd.f32 %v8249_v63, %v16138_v17  ;;  %v7730_v30 = vpop.f32.mrf.mxu1  ;;  %v7169_v17 = vadd.f32 %v17827_v1, %v17826_v38  ;;  %v17833_v38 = vld [vmem:[#allocation11_spill] sm:$0xff] }
 0xaef   :  { %v7869_v59 = vadd.f32 %v7730_v30, %v17825_v12  ;;  %v16208_v41 = vpack.c.b16 %v8197_v9, %v8196_v7  ;;  %v17831_v12 = vld [vmem:[#allocation13_spill] sm:$0xff]  ;;  %v17834_v1 = vld [vmem:[#allocation111_spill] sm:$0xff] }
 0xaf0   :  { %17824 = vst [vmem:[#allocation77_spill] sm:$0xff] %v16205_v55  ;;  %v7556_v62 = vadd.f32 %v17828_v51, %v7169_v17  ;;  %v7174_v17 = vadd.f32 %v17834_v1, %v17833_v38  ;;  %v17835_v51 = vld [vmem:[#allocation125_spill] sm:$0xff]  ;;  %v17839_v1 = vld [vmem:[#allocation310_spill] sm:$0xff] }
 0xaf1   :  { %11688 = vmatmul.msk.bf16.gmra.mxu1 %vm6780_vm3, %v15368_v37  ;;  %11734 = vmatmul.msk.bf16.gmra.mxu2 %vm6780_vm3, %v15587_v22  ;;  %v8135_v33 = vadd.f32 %v7996_v11, %v7869_v59 }
 0xaf2   :  { %11774 = vmatmul.msk.bf16.gmra.mxu3 %vm6780_vm3, %v17804_v23  ;;  %v4742_v52 = vpop.f32.mrf.mxu0 }
 0xaf3   :  { %v17832_v52 = vld [vmem:[#allocation183_spill] sm:$0xff] }
 0xaf4   :  { %v8006_v54 = vpop.f32.mrf.mxu2 }
 0xaf5   :  { %v8252_v50 = vpop.f32.mrf.mxu3 }
 0xaf6   :  { %v16220_v9 = vadd.f32 %v8252_v50, %v16156_v8  ;;  %v7732_v42 = vpop.f32.mrf.mxu1 }
 0xaf7   :  { %v7870_v31 = vadd.f32 %v7732_v42, %v7556_v62  ;;  %v7558_v62 = vadd.f32 %v17835_v51, %v7174_v17  ;;  %v12351_v42 = vld [vmem:[%s17031_s3 + $0x70] sm:$0xff] }
 0xaf8   :  { %17829 = vst [vmem:[#allocation69_spill] sm:$0xff] %v16220_v9  ;;  %8805 = vmatpush.bf16.msrb.mxu2 %v12351_v42  ;;  %v17841_v42 = vld [vmem:[#allocation15_spill] sm:$0xff] }
 0xaf9   :  { %v16222_v18 = vadd.f32 %v7998_v27, %v7870_v31 }
 0xafa   :  { %v4744_v44 = vpop.f32.mrf.mxu0 }
 0xafc   :  { %v8008_v11 = vpop.f32.mrf.mxu2 }
 0xafd   :  { %v8254_v7 = vpop.f32.mrf.mxu3 }
 0xafe   :  { %v16224_v63 = vadd.f32 %v8254_v7, %v8132_v3  ;;  %v7735_v30 = vpop.f32.mrf.mxu1 }
 0xaff   :  { %v7871_v59 = vadd.f32 %v7735_v30, %v17831_v12 }
 0xb00   :  { %17830 = vst [vmem:[#allocation271_spill] sm:$0xff] %v16224_v63 }
 0xb01   :  { %11689 = vmatmul.msk.bf16.gmra.mxu1 %vm6780_vm3, %v15509_v5  ;;  %11735 = vmatmul.msk.bf16.gmra.mxu2 %vm6780_vm3, %v15610_v15  ;;  %v16231_v8 = vadd.f32 %v8001_v19, %v7871_v59  ;;  %v12353_v19 = vld [vmem:[%s17031_s3 + $0x80] sm:$0xff]  ;;  %v17837_v59 = vld [vmem:[#allocation304_spill] sm:$0xff] }
 0xb02   :  { %11775 = vmatmul.msk.bf16.gmra.mxu3 %vm6780_vm3, %v17832_v52  ;;  %v4745_v27 = vpop.f32.mrf.mxu0 }
 0xb03   :  { %9071 = vmatpush.bf16.msrb.mxu3 %v12353_v19  ;;  %v17838_v27 = vld [vmem:[#allocation222_spill] sm:$0xff] }
 0xb04   :  { %v8011_v3 = vpop.f32.mrf.mxu2  ;;  %v5995_v38 = vmax.f32 %v17838_v27, %v17837_v59 }
 0xb05   :  { %v8257_v50 = vpop.f32.mrf.mxu3 }
 0xb06   :  { %v16244_v31 = vadd.f32 %v8257_v50, %v8133_v26  ;;  %v7737_v44 = vpop.f32.mrf.mxu1  ;;  %v12349_v26 = vld [vmem:[%s17031_s3 + $0x60] sm:$0xff] }
 0xb07   :  { %v7872_v7 = vadd.f32 %v7737_v44, %v7558_v62  ;;  %8539 = vmatpush.bf16.msrb.mxu1 %v12349_v26  ;;  %v17842_v44 = vld [vmem:[#allocation43_spill] sm:$0xff]  ;;  %v17848_v26 = vld [vmem:[#allocation312_spill] sm:$0xff] }
 0xb08   :  { %17836 = vst [vmem:[#allocation81_spill] sm:$0xff] %v16244_v31 }
 0xb09   :  { %v16246_v30 = vadd.f32 %v8003_v39, %v7872_v7 }
 0xb0a   :  { %v4747_v12 = vpop.f32.mrf.mxu0 }
 0xb0b   :  { %v5851_v17 = vmax.f32 %v17839_v1, %v4747_v12  ;;  %v17843_v12 = vld [vmem:[#allocation29_spill] sm:$0xff]  ;;  %v17847_v1 = vld [vmem:[#allocation115_spill] sm:$0xff] }
 0xb0c   :  { %v8013_v51 = vpop.f32.mrf.mxu2 }
 0xb0d   :  { %v6139_v63 = vmax.f32 %v5851_v17, %v5995_v38  ;;  %v8259_v9 = vpop.f32.mrf.mxu3  ;;  %v17846_v38 = vld [vmem:[#allocation12_spill] sm:$0xff] }
 0xb0e   :  { %v16254_v50 = vadd.f32 %v8259_v9, %v8134_v45  ;;  %v7740_v62 = vpop.f32.mrf.mxu1  ;;  %v17844_v45 = vld [vmem:[#allocation306_spill] sm:$0xff]  ;;  %v17845_v9 = vld [vmem:[#allocation225_spill] sm:$0xff]  ;;  %v7179_v17 = vadd.f32 %v17847_v1, %v17846_v38  ;;  %v17851_v38 = vld [vmem:[#allocation228_spill] sm:$0xff] }
 0xb0f   :  { %v7873_v19 = vadd.f32 %v7740_v62, %v17841_v42  ;;  %v6287_v39 = vadd.f32 %v16172_v58, %v6139_v63  ;;  %v5996_v27 = vmax.f32 %v17845_v9, %v17844_v45  ;;  %v17849_v42 = vld [vmem:[#allocation131_spill] sm:$0xff]  ;;  %v5997_v1 = vmax.f32 %v17851_v38, %v17850_v21 }
 0xb10   :  { %17840 = vst [vmem:[#allocation72_spill] sm:$0xff] %v16254_v50  ;;  %v7560_v50 = vadd.f32 %v17849_v42, %v7179_v17  ;;  %v17859_v42 = vld [vmem:[#allocation123_spill] sm:$0xff] }
 0xb11   :  { %11690 = vmatmul.msk.bf16.gmra.mxu1 %vm6780_vm3, %v15533_v53  ;;  %11736 = vmatmul.msk.bf16.gmra.mxu2 %vm6780_vm3, %v17842_v44  ;;  %v16262_v7 = vadd.f32 %v8006_v54, %v7873_v19  ;;  %v6431_v31 = vmax.f32 %v6287_v39, 0.0  ;;  %v17861_v38 = vld [vmem:[#allocation315_spill] sm:$0xff] }
 0xb12   :  { %11776 = vmatmul.msk.bf16.gmra.mxu3 %vm6780_vm3, %v17843_v12  ;;  %v4749_v59 = vpop.f32.mrf.mxu0 }
 0xb13   :  { %v5852_v63 = vmax.f32 %v17848_v26, %v4749_v59  ;;  %v6575_v52 = vpack.c.bf16 %v6431_v31, %v6431_v31  ;;  %v17852_v26 = vld [vmem:[#allocation314_spill] sm:$0xff] }
 0xb14   :  { %v8016_v62 = vpop.f32.mrf.mxu2 }
 0xb15   :  { %v6140_v55 = vmax.f32 %v5852_v63, %v5996_v27  ;;  %v8262_v56 = vpop.f32.mrf.mxu3  ;;  %v8472_v39 = vunpack.c.l.b16 %v6575_v52 }
 0xb16   :  { %v16272_v54 = vadd.f32 %v8262_v56, %v8135_v33  ;;  %v7742_v19 = vpop.f32.mrf.mxu1 }
 0xb17   :  { %v6288_v12 = vadd.f32 %v16172_v58, %v6140_v55  ;;  %v7874_v53 = vadd.f32 %v7742_v19, %v7560_v50  ;;  %v17854_v50 = vld [vmem:[#allocation17_spill] sm:$0xff]  ;;  %v17860_v19 = vld [vmem:[#allocation118_spill] sm:$0xff] }
 0xb19   :  { %v6432_v5 = vmax.f32 %v6288_v12, 0.0  ;;  %v8140_v45 = vadd.f32 %v8008_v11, %v7874_v53  ;;  %v17858_v11 = vld [vmem:[#allocation231_spill] sm:$0xff] }
 0xb1a   :  { %v4752_v9 = vpop.f32.mrf.mxu0 }
 0xb1b   :  { %v6576_v59 = vpack.c.bf16 %v6432_v5, %v6432_v5  ;;  %v5853_v40 = vmax.f32 %v17852_v26, %v4752_v9  ;;  %v17856_v5 = vld [vmem:[#allocation48_spill] sm:$0xff]  ;;  %v7184_v9 = vadd.f32 %v17860_v19, %v17859_v42  ;;  %v17862_v26 = vld [vmem:[#allocation18_spill] sm:$0xff] }
 0xb1c   :  { %v8018_v17 = vpop.f32.mrf.mxu2 }
 0xb1d   :  { %v8473_v27 = vunpack.c.l.b16 %v6576_v59  ;;  %v6141_v63 = vmax.f32 %v5853_v40, %v5997_v1  ;;  %v8264_v56 = vpop.f32.mrf.mxu3 }
 0xb1e   :  { %v16279_v33 = vadd.f32 %v8264_v56, %v16222_v18  ;;  %v7745_v55 = vpop.f32.mrf.mxu1  ;;  %v17857_v18 = vld [vmem:[#allocation309_spill] sm:$0xff] }
 0xb1f   :  { %v7875_v31 = vadd.f32 %v7745_v55, %v17854_v50  ;;  %v16282_v12 = vpack.c.b16 %v8473_v27, %v8472_v39  ;;  %v6289_v53 = vadd.f32 %v16172_v58, %v6141_v63  ;;  %v5998_v52 = vmax.f32 %v17858_v11, %v17857_v18 }
 0xb20   :  { %17853 = vst [vmem:[#allocation274_spill] sm:$0xff] %v16279_v33  ;;  %v7562_v39 = vadd.f32 %v17862_v26, %v7184_v9 }
 0xb21   :  { %17855 = vst [vmem:[#allocation85_spill] sm:$0xff] %v16282_v12  ;;  %11691 = vmatmul.msk.bf16.gmra.mxu1 %vm6780_vm3, %v15558_v25  ;;  %11737 = vmatmul.msk.bf16.gmra.mxu2 %vm6780_vm3, %v17856_v5  ;;  %v8141_v21 = vadd.f32 %v8011_v3, %v7875_v31  ;;  %v6433_v27 = vmax.f32 %v6289_v53, 0.0 }
 0xb22   :  { %11777 = vmatmul.msk.bf16.gmra.mxu3 %vm6780_vm3, %v15610_v15  ;;  %v4754_v40 = vpop.f32.mrf.mxu0 }
 0xb23   :  { %v5854_v1 = vmax.f32 %v17861_v38, %v4754_v40  ;;  %v6577_v12 = vpack.c.bf16 %v6433_v27, %v6433_v27 }
 0xb24   :  { %v8021_v59 = vpop.f32.mrf.mxu2 }
 0xb25   :  { %v6142_v63 = vmax.f32 %v5854_v1, %v5998_v52  ;;  %v8267_v56 = vpop.f32.mrf.mxu3  ;;  %v8474_v19 = vunpack.c.l.b16 %v6577_v12  ;;  %v17863_v52 = vld [vmem:[#allocation19_spill] sm:$0xff]  ;;  %v17867_v12 = vld [vmem:[#allocation14_spill] sm:$0xff] }
 0xb26   :  { %v16298_v3 = vadd.f32 %v8267_v56, %v16231_v8  ;;  %v7747_v55 = vpop.f32.mrf.mxu1 }
 0xb27   :  { %v6290_v50 = vadd.f32 %v16172_v58, %v6142_v63  ;;  %v7876_v31 = vadd.f32 %v7747_v55, %v7562_v39  ;;  %v17865_v58 = vld [vmem:[#allocation45_spill] sm:$0xff]  ;;  %v17868_v39 = vld [vmem:[#allocation20_spill] sm:$0xff] }
 0xb29   :  { %v6434_v18 = vmax.f32 %v6290_v50, 0.0  ;;  %v8142_v11 = vadd.f32 %v8013_v51, %v7876_v31 }
 0xb2b   :  { %v6578_v33 = vpack.c.bf16 %v6434_v18, %v6434_v18 }
 0xb2c   :  { %v8023_v42 = vpop.f32.mrf.mxu2 }
 0xb2d   :  { %v8475_v40 = vunpack.c.l.b16 %v6578_v33  ;;  %v8269_v38 = vpop.f32.mrf.mxu3  ;;  %v17866_v33 = vld [vmem:[#allocation128_spill] sm:$0xff] }
 0xb2e   :  { %v16302_v9 = vadd.f32 %v8269_v38, %v16246_v30  ;;  %v7750_v53 = vpop.f32.mrf.mxu1  ;;  %v7189_v26 = vadd.f32 %v17867_v12, %v17866_v33  ;;  %v17871_v38 = vld [vmem:[#allocation21_spill] sm:$0xff]  ;;  %v17874_v33 = vld [vmem:[#allocation16_spill] sm:$0xff] }
 0xb2f   :  { %v7877_v1 = vadd.f32 %v7750_v53, %v17863_v52  ;;  %v16305_v8 = vpack.c.b16 %v8475_v40, %v8474_v19  ;;  %v17872_v52 = vld [vmem:[#allocation49_spill] sm:$0xff] }
 0xb30   :  { %v7564_v27 = vadd.f32 %v17868_v39, %v7189_v26  ;;  %v17875_v26 = vld [vmem:[#allocation22_spill] sm:$0xff] }
 0xb31   :  { %17864 = vst [vmem:[#allocation75_spill] sm:$0xff] %v16305_v8  ;;  %11692 = vmatmul.msk.bf16.gmra.mxu1 %vm6780_vm3, %v15587_v22  ;;  %11738 = vmatmul.msk.bf16.gmra.mxu2 %vm6780_vm3, %v17865_v58  ;;  %v8143_v51 = vadd.f32 %v8016_v62, %v7877_v1 }
 0xb32   :  { %11778 = vmatmul.msk.bf16.gmra.mxu3 %vm6780_vm3, %v17842_v44 }
 0xb34   :  { %v8026_v30 = vpop.f32.mrf.mxu2 }
 0xb35   :  { %v8272_v63 = vpop.f32.mrf.mxu3 }
 0xb36   :  { %v16317_v56 = vadd.f32 %v8272_v63, %v16262_v7  ;;  %v7752_v55 = vpop.f32.mrf.mxu1  ;;  %v17873_v7 = vld [vmem:[#allocation134_spill] sm:$0xff] }
 0xb37   :  { %v7878_v50 = vadd.f32 %v7752_v55, %v7564_v27 }
 0xb38   :  { %17869 = vst [vmem:[#allocation277_spill] sm:$0xff] %v16317_v56 }
 0xb39   :  { %v8144_v31 = vadd.f32 %v8018_v17, %v7878_v50  ;;  %v7194_v17 = vadd.f32 %v17874_v33, %v17873_v7  ;;  %v17879_v7 = vld [vmem:[#allocation50_spill] sm:$0xff] }
 0xb3c   :  { %v8028_v18 = vpop.f32.mrf.mxu2 }
 0xb3d   :  { %v8274_v19 = vpop.f32.mrf.mxu3 }
 0xb3e   :  { %v16319_v40 = vadd.f32 %v8274_v19, %v8140_v45  ;;  %v7755_v62 = vpop.f32.mrf.mxu1  ;;  %v7566_v45 = vadd.f32 %v17875_v26, %v7194_v17  ;;  %v17881_v17 = vld [vmem:[#allocation137_spill] sm:$0xff] }
 0xb3f   :  { %v7879_v53 = vadd.f32 %v7755_v62, %v17871_v38 }
 0xb40   :  { %17870 = vst [vmem:[#allocation89_spill] sm:$0xff] %v16319_v40 }
 0xb41   :  { %11693 = vmatmul.msk.bf16.gmra.mxu1 %vm6780_vm3, %v15610_v15  ;;  %11739 = vmatmul.msk.bf16.gmra.mxu2 %vm6780_vm3, %v17872_v52  ;;  %v8145_v1 = vadd.f32 %v8021_v59, %v7879_v53  ;;  %v17878_v53 = vld [vmem:[#allocation163_spill] sm:$0xff] }
 0xb42   :  { %11779 = vmatmul.msk.bf16.gmra.mxu3 %vm6780_vm3, %v17856_v5 }
 0xb44   :  { %v8031_v12 = vpop.f32.mrf.mxu2 }
 0xb45   :  { %v8277_v39 = vpop.f32.mrf.mxu3 }
 0xb46   :  { %v16331_v27 = vadd.f32 %v8277_v39, %v8141_v21  ;;  %v7757_v63 = vpop.f32.mrf.mxu1  ;;  %v17880_v21 = vld [vmem:[#allocation151_spill] sm:$0xff] }
 0xb47   :  { %v7880_v55 = vadd.f32 %v7757_v63, %v7566_v45  ;;  %v17882_v45 = vld [vmem:[#allocation23_spill] sm:$0xff] }
 0xb48   :  { %17876 = vst [vmem:[#allocation78_spill] sm:$0xff] %v16331_v27 }
 0xb49   :  { %v8146_v50 = vadd.f32 %v8023_v42, %v7880_v55  ;;  %v7199_v42 = vadd.f32 %v17881_v17, %v17880_v21  ;;  %v17887_v17 = vld [vmem:[#allocation155_spill] sm:$0xff] }
 0xb4c   :  { %v8033_v19 = vpop.f32.mrf.mxu2 }
 0xb4d   :  { %v8279_v62 = vpop.f32.mrf.mxu3 }
 0xb4e   :  { %v16333_v38 = vadd.f32 %v8279_v62, %v8142_v11  ;;  %v7760_v59 = vpop.f32.mrf.mxu1  ;;  %v7568_v11 = vadd.f32 %v17882_v45, %v7199_v42  ;;  %v17888_v45 = vld [vmem:[#allocation24_spill] sm:$0xff] }
 0xb4f   :  { %v7881_v8 = vadd.f32 %v7760_v59, %v17878_v53 }
 0xb50   :  { %17877 = vst [vmem:[#allocation280_spill] sm:$0xff] %v16333_v38 }
 0xb51   :  { %11694 = vmatmul.msk.bf16.gmra.mxu1 %vm6780_vm3, %v17842_v44  ;;  %11740 = vmatmul.msk.bf16.gmra.mxu2 %vm6780_vm3, %v17879_v7  ;;  %v8147_v33 = vadd.f32 %v8026_v30, %v7881_v8  ;;  %v17885_v30 = vld [vmem:[#allocation167_spill] sm:$0xff] }
 0xb52   :  { %11780 = vmatmul.msk.bf16.gmra.mxu3 %vm6780_vm3, %v17865_v58 }
 0xb54   :  { %v8036_v26 = vpop.f32.mrf.mxu2 }
 0xb55   :  { %v8282_v39 = vpop.f32.mrf.mxu3 }
 0xb56   :  { %v16345_v63 = vadd.f32 %v8282_v39, %v8143_v51  ;;  %v7762_v55 = vpop.f32.mrf.mxu1  ;;  %v17886_v51 = vld [vmem:[#allocation159_spill] sm:$0xff] }
 0xb57   :  { %v7882_v62 = vadd.f32 %v7762_v55, %v7568_v11 }
 0xb58   :  { %17883 = vst [vmem:[#allocation93_spill] sm:$0xff] %v16345_v63 }
 0xb59   :  { %v8148_v59 = vadd.f32 %v8028_v18, %v7882_v62  ;;  %v7204_v18 = vadd.f32 %v17887_v17, %v17886_v51  ;;  %v17893_v17 = vld [vmem:[#allocation25_spill] sm:$0xff] }
 0xb5c   :  { %v8038_v53 = vpop.f32.mrf.mxu2 }
 0xb5d   :  { %v8284_v38 = vpop.f32.mrf.mxu3 }
 0xb5e   :  { %v16347_v27 = vadd.f32 %v8284_v38, %v8144_v31  ;;  %v7765_v8 = vpop.f32.mrf.mxu1  ;;  %v7570_v31 = vadd.f32 %v17888_v45, %v7204_v18  ;;  %v17894_v45 = vld [vmem:[#allocation195_spill] sm:$0xff] }
 0xb5f   :  { %v7883_v40 = vadd.f32 %v7765_v8, %v17885_v30 }
 0xb60   :  { %17884 = vst [vmem:[#allocation82_spill] sm:$0xff] %v16347_v27 }
 0xb61   :  { %11695 = vmatmul.msk.bf16.gmra.mxu1 %vm6780_vm3, %v17856_v5  ;;  %11741 = vmatmul.msk.bf16.gmra.mxu2 %vm6780_vm3, %v15895_v61  ;;  %v8149_v21 = vadd.f32 %v8031_v12, %v7883_v40  ;;  %v17891_v12 = vld [vmem:[#allocation171_spill] sm:$0xff] }
 0xb62   :  { %11781 = vmatmul.msk.bf16.gmra.mxu3 %vm6780_vm3, %v17872_v52 }
 0xb64   :  { %v8041_v42 = vpop.f32.mrf.mxu2 }
 0xb65   :  { %v8287_v38 = vpop.f32.mrf.mxu3 }
 0xb66   :  { %v16359_v11 = vadd.f32 %v8287_v38, %v8145_v1  ;;  %v7767_v39 = vpop.f32.mrf.mxu1  ;;  %v17892_v1 = vld [vmem:[#allocation27_spill] sm:$0xff] }
 0xb67   :  { %v7884_v55 = vadd.f32 %v7767_v39, %v7570_v31 }
 0xb68   :  { %17889 = vst [vmem:[#allocation283_spill] sm:$0xff] %v16359_v11 }
 0xb69   :  { %v8150_v62 = vadd.f32 %v8033_v19, %v7884_v55  ;;  %v7209_v19 = vadd.f32 %v17893_v17, %v17892_v1  ;;  %v17898_v17 = vld [vmem:[#allocation54_spill] sm:$0xff] }
 0xb6c   :  { %v8043_v8 = vpop.f32.mrf.mxu2 }
 0xb6d   :  { %v8289_v30 = vpop.f32.mrf.mxu3 }
 0xb6e   :  { %v16361_v27 = vadd.f32 %v8289_v30, %v8146_v50  ;;  %v7770_v40 = vpop.f32.mrf.mxu1  ;;  %v7572_v50 = vadd.f32 %v17894_v45, %v7209_v19  ;;  %v17900_v19 = vld [vmem:[#allocation26_spill] sm:$0xff] }
 0xb6f   :  { %v7885_v63 = vadd.f32 %v7770_v40, %v17891_v12 }
 0xb70   :  { %17890 = vst [vmem:[#allocation97_spill] sm:$0xff] %v16361_v27 }
 0xb71   :  { %11696 = vmatmul.msk.bf16.gmra.mxu1 %vm6780_vm3, %v17865_v58  ;;  %11742 = vmatmul.msk.bf16.gmra.mxu2 %vm6780_vm3, %v15927_v10  ;;  %v8151_v51 = vadd.f32 %v8036_v26, %v7885_v63  ;;  %v17897_v63 = vld [vmem:[#allocation31_spill] sm:$0xff] }
 0xb72   :  { %11782 = vmatmul.msk.bf16.gmra.mxu3 %vm6780_vm3, %v17879_v7 }
 0xb74   :  { %v8046_v18 = vpop.f32.mrf.mxu2 }
 0xb75   :  { %v8292_v31 = vpop.f32.mrf.mxu3 }
 0xb76   :  { %v16373_v38 = vadd.f32 %v8292_v31, %v8147_v33  ;;  %v7772_v39 = vpop.f32.mrf.mxu1  ;;  %v17899_v33 = vld [vmem:[#allocation187_spill] sm:$0xff] }
 0xb77   :  { %v7886_v55 = vadd.f32 %v7772_v39, %v7572_v50  ;;  %v17901_v50 = vld [vmem:[#allocation203_spill] sm:$0xff] }
 0xb78   :  { %17895 = vst [vmem:[#allocation86_spill] sm:$0xff] %v16373_v38 }
 0xb79   :  { %v8152_v30 = vadd.f32 %v8038_v53, %v7886_v55  ;;  %v7214_v53 = vadd.f32 %v17900_v19, %v17899_v33  ;;  %v17905_v19 = vld [vmem:[#allocation51_spill] sm:$0xff] }
 0xb7c   :  { %v8048_v40 = vpop.f32.mrf.mxu2 }
 0xb7d   :  { %v8294_v12 = vpop.f32.mrf.mxu3 }
 0xb7e   :  { %v16375_v27 = vadd.f32 %v8294_v12, %v8148_v59  ;;  %v7775_v26 = vpop.f32.mrf.mxu1  ;;  %v7574_v59 = vadd.f32 %v17901_v50, %v7214_v53  ;;  %v17907_v53 = vld [vmem:[#allocation28_spill] sm:$0xff] }
 0xb7f   :  { %v7887_v11 = vadd.f32 %v7775_v26, %v17897_v63 }
 0xb80   :  { %17896 = vst [vmem:[#allocation286_spill] sm:$0xff] %v16375_v27 }
 0xb81   :  { %11697 = vmatmul.msk.bf16.gmra.mxu1 %vm6780_vm3, %v15835_v46  ;;  %11743 = vmatmul.msk.bf16.gmra.mxu2 %vm6780_vm3, %v15959_v32  ;;  %v8153_v1 = vadd.f32 %v8041_v42, %v7887_v11  ;;  %v17904_v11 = vld [vmem:[#allocation33_spill] sm:$0xff] }
 0xb82   :  { %11783 = vmatmul.msk.bf16.gmra.mxu3 %vm6780_vm3, %v17898_v17 }
 0xb84   :  { %v8051_v45 = vpop.f32.mrf.mxu2 }
 0xb85   :  { %v8297_v31 = vpop.f32.mrf.mxu3 }
 0xb86   :  { %v16387_v39 = vadd.f32 %v8297_v31, %v8149_v21  ;;  %v7777_v55 = vpop.f32.mrf.mxu1  ;;  %v17906_v21 = vld [vmem:[#allocation30_spill] sm:$0xff] }
 0xb87   :  { %v7888_v12 = vadd.f32 %v7777_v55, %v7574_v59  ;;  %v17908_v59 = vld [vmem:[#allocation211_spill] sm:$0xff] }
 0xb88   :  { %17902 = vst [vmem:[#allocation101_spill] sm:$0xff] %v16387_v39 }
 0xb89   :  { %v8154_v26 = vadd.f32 %v8043_v8, %v7888_v12  ;;  %v7219_v8 = vadd.f32 %v17907_v53, %v17906_v21  ;;  %v17913_v53 = vld [vmem:[#allocation191_spill] sm:$0xff] }
 0xb8c   :  { %v8053_v63 = vpop.f32.mrf.mxu2 }
 0xb8d   :  { %v8299_v27 = vpop.f32.mrf.mxu3 }
 0xb8e   :  { %v16389_v38 = vadd.f32 %v8299_v27, %v8150_v62  ;;  %v7780_v42 = vpop.f32.mrf.mxu1  ;;  %v7576_v27 = vadd.f32 %v17908_v59, %v7219_v8  ;;  %v17914_v59 = vld [vmem:[#allocation217_spill] sm:$0xff] }
 0xb8f   :  { %v7889_v56 = vadd.f32 %v7780_v42, %v17904_v11 }
 0xb90   :  { %17903 = vst [vmem:[#allocation90_spill] sm:$0xff] %v16389_v38 }
 0xb91   :  { %11698 = vmatmul.msk.bf16.gmra.mxu1 %vm6780_vm3, %v15865_v29  ;;  %11744 = vmatmul.msk.bf16.gmra.mxu2 %vm6780_vm3, %v15998_v20  ;;  %v8155_v33 = vadd.f32 %v8046_v18, %v7889_v56  ;;  %v17911_v18 = vld [vmem:[#allocation214_spill] sm:$0xff] }
 0xb92   :  { %11784 = vmatmul.msk.bf16.gmra.mxu3 %vm6780_vm3, %v17905_v19 }
 0xb94   :  { %v8056_v50 = vpop.f32.mrf.mxu2 }
 0xb95   :  { %v8302_v62 = vpop.f32.mrf.mxu3 }
 0xb96   :  { %v16401_v31 = vadd.f32 %v8302_v62, %v8151_v51  ;;  %v7782_v55 = vpop.f32.mrf.mxu1  ;;  %v17912_v51 = vld [vmem:[#allocation199_spill] sm:$0xff] }
 0xb97   :  { %v7890_v12 = vadd.f32 %v7782_v55, %v7576_v27 }
 0xb98   :  { %17909 = vst [vmem:[#allocation289_spill] sm:$0xff] %v16401_v31 }
 0xb99   :  { %v8156_v42 = vadd.f32 %v8048_v40, %v7890_v12  ;;  %v7224_v40 = vadd.f32 %v17913_v53, %v17912_v51  ;;  %v17919_v53 = vld [vmem:[#allocation32_spill] sm:$0xff] }
 0xb9c   :  { %v8058_v11 = vpop.f32.mrf.mxu2 }
 0xb9d   :  { %v8304_v38 = vpop.f32.mrf.mxu3 }
 0xb9e   :  { %v16403_v39 = vadd.f32 %v8304_v38, %v8152_v30  ;;  %v7785_v56 = vpop.f32.mrf.mxu1  ;;  %v7578_v38 = vadd.f32 %v17914_v59, %v7224_v40  ;;  %v17920_v59 = vld [vmem:[#allocation37_spill] sm:$0xff] }
 0xb9f   :  { %v7891_v29 = vadd.f32 %v7785_v56, %v17911_v18 }
 0xba0   :  { %17910 = vst [vmem:[#allocation105_spill] sm:$0xff] %v16403_v39 }
 0xba1   :  { %11699 = vmatmul.msk.bf16.gmra.mxu1 %vm6780_vm3, %v15895_v61  ;;  %11745 = vmatmul.msk.bf16.gmra.mxu2 %vm6780_vm3, %v16038_v16  ;;  %v8157_v21 = vadd.f32 %v8051_v45, %v7891_v29  ;;  %v17917_v45 = vld [vmem:[#allocation219_spill] sm:$0xff] }
 0xba2   :  { %11785 = vmatmul.msk.bf16.gmra.mxu3 %vm6780_vm3, %v15959_v32 }
 0xba4   :  { %v8061_v8 = vpop.f32.mrf.mxu2 }
 0xba5   :  { %v8307_v30 = vpop.f32.mrf.mxu3 }
 0xba6   :  { %v16415_v27 = vadd.f32 %v8307_v30, %v8153_v1  ;;  %v7787_v62 = vpop.f32.mrf.mxu1  ;;  %v17918_v1 = vld [vmem:[#allocation207_spill] sm:$0xff] }
 0xba7   :  { %v7892_v55 = vadd.f32 %v7787_v62, %v7578_v38 }
 0xba8   :  { %17915 = vst [vmem:[#allocation94_spill] sm:$0xff] %v16415_v27 }
 0xba9   :  { %v8158_v12 = vadd.f32 %v8053_v63, %v7892_v55  ;;  %v7229_v63 = vadd.f32 %v17919_v53, %v17918_v1  ;;  %v17925_v53 = vld [vmem:[#allocation34_spill] sm:$0xff] }
 0xbac   :  { %v8063_v56 = vpop.f32.mrf.mxu2 }
 0xbad   :  { %v8309_v18 = vpop.f32.mrf.mxu3 }
 0xbae   :  { %v16417_v39 = vadd.f32 %v8309_v18, %v8154_v26  ;;  %v7790_v29 = vpop.f32.mrf.mxu1  ;;  %v7580_v26 = vadd.f32 %v17920_v59, %v7229_v63  ;;  %v17926_v59 = vld [vmem:[#allocation224_spill] sm:$0xff] }
 0xbaf   :  { %v7893_v31 = vadd.f32 %v7790_v29, %v17917_v45 }
 0xbb0   :  { %17916 = vst [vmem:[#allocation292_spill] sm:$0xff] %v16417_v39 }
 0xbb1   :  { %11700 = vmatmul.msk.bf16.gmra.mxu1 %vm6780_vm3, %v15927_v10  ;;  %11746 = vmatmul.msk.bf16.gmra.mxu2 %vm6780_vm3, %v16078_v0  ;;  %v8159_v51 = vadd.f32 %v8056_v50, %v7893_v31  ;;  %v17923_v31 = vld [vmem:[#allocation44_spill] sm:$0xff] }
 0xbb2   :  { %11786 = vmatmul.msk.bf16.gmra.mxu3 %vm6780_vm3, %v15998_v20 }
 0xbb4   :  { %v8066_v40 = vpop.f32.mrf.mxu2 }
 0xbb5   :  { %v8312_v38 = vpop.f32.mrf.mxu3 }
 0xbb6   :  { %v16429_v30 = vadd.f32 %v8312_v38, %v8155_v33  ;;  %v7792_v62 = vpop.f32.mrf.mxu1  ;;  %v17924_v33 = vld [vmem:[#allocation38_spill] sm:$0xff] }
 0xbb7   :  { %v7894_v55 = vadd.f32 %v7792_v62, %v7580_v26 }
 0xbb8   :  { %17921 = vst [vmem:[#allocation109_spill] sm:$0xff] %v16429_v30 }
 0xbb9   :  { %v8160_v18 = vadd.f32 %v8058_v11, %v7894_v55  ;;  %v7234_v11 = vadd.f32 %v17925_v53, %v17924_v33  ;;  %v17931_v53 = vld [vmem:[#allocation35_spill] sm:$0xff] }
 0xbbc   :  { %v8068_v29 = vpop.f32.mrf.mxu2 }
 0xbbd   :  { %v8314_v45 = vpop.f32.mrf.mxu3 }
 0xbbe   :  { %v16431_v39 = vadd.f32 %v8314_v45, %v8156_v42  ;;  %v7795_v50 = vpop.f32.mrf.mxu1  ;;  %v7582_v42 = vadd.f32 %v17926_v59, %v7234_v11  ;;  %v17932_v59 = vld [vmem:[#allocation41_spill] sm:$0xff] }
 0xbbf   :  { %v7895_v27 = vadd.f32 %v7795_v50, %v17923_v31 }
 0xbc0   :  { %17922 = vst [vmem:[#allocation98_spill] sm:$0xff] %v16431_v39 }
 0xbc1   :  { %11701 = vmatmul.msk.bf16.gmra.mxu1 %vm6780_vm3, %v15959_v32  ;;  %11747 = vmatmul.msk.bf16.gmra.mxu2 %vm6780_vm3, %v16113_v28  ;;  %v8161_v1 = vadd.f32 %v8061_v8, %v7895_v27  ;;  %v17929_v27 = vld [vmem:[#allocation46_spill] sm:$0xff] }
 0xbc2   :  { %11787 = vmatmul.msk.bf16.gmra.mxu3 %vm6780_vm3, %v16038_v16 }
 0xbc4   :  { %v8071_v63 = vpop.f32.mrf.mxu2 }
 0xbc5   :  { %v8317_v26 = vpop.f32.mrf.mxu3 }
 0xbc6   :  { %v16443_v38 = vadd.f32 %v8317_v26, %v8157_v21  ;;  %v7797_v62 = vpop.f32.mrf.mxu1  ;;  %v17930_v21 = vld [vmem:[#allocation42_spill] sm:$0xff] }
 0xbc7   :  { %v7896_v55 = vadd.f32 %v7797_v62, %v7582_v42 }
 0xbc8   :  { %17927 = vst [vmem:[#allocation295_spill] sm:$0xff] %v16443_v38 }
 0xbc9   :  { %v8162_v45 = vadd.f32 %v8063_v56, %v7896_v55  ;;  %v7239_v56 = vadd.f32 %v17931_v53, %v17930_v21  ;;  %v17937_v53 = vld [vmem:[#allocation221_spill] sm:$0xff] }
 0xbcc   :  { %v8073_v50 = vpop.f32.mrf.mxu2 }
 0xbcd   :  { %v8319_v31 = vpop.f32.mrf.mxu3 }
 0xbce   :  { %v16445_v39 = vadd.f32 %v8319_v31, %v8158_v12  ;;  %v7800_v8 = vpop.f32.mrf.mxu1  ;;  %v7584_v12 = vadd.f32 %v17932_v59, %v7239_v56  ;;  %v17938_v59 = vld [vmem:[#allocation47_spill] sm:$0xff] }
 0xbcf   :  { %v7897_v30 = vadd.f32 %v7800_v8, %v17929_v27 }
 0xbd0   :  { %17928 = vst [vmem:[#allocation113_spill] sm:$0xff] %v16445_v39 }
 0xbd1   :  { %11702 = vmatmul.msk.bf16.gmra.mxu1 %vm6780_vm3, %v15998_v20  ;;  %11748 = vmatmul.msk.bf16.gmra.mxu2 %vm6780_vm3, %v16149_v6  ;;  %v8163_v33 = vadd.f32 %v8066_v40, %v7897_v30  ;;  %v17935_v30 = vld [vmem:[#allocation227_spill] sm:$0xff] }
 0xbd2   :  { %11788 = vmatmul.msk.bf16.gmra.mxu3 %vm6780_vm3, %v16078_v0 }
 0xbd4   :  { %v8076_v11 = vpop.f32.mrf.mxu2 }
 0xbd5   :  { %v8322_v42 = vpop.f32.mrf.mxu3 }
 0xbd6   :  { %v16457_v26 = vadd.f32 %v8322_v42, %v8159_v51  ;;  %v7802_v62 = vpop.f32.mrf.mxu1  ;;  %v17936_v51 = vld [vmem:[#allocation39_spill] sm:$0xff] }
 0xbd7   :  { %v7898_v55 = vadd.f32 %v7802_v62, %v7584_v12 }
 0xbd8   :  { %17933 = vst [vmem:[#allocation102_spill] sm:$0xff] %v16457_v26 }
 0xbd9   :  { %v8164_v31 = vadd.f32 %v8068_v29, %v7898_v55  ;;  %v7244_v29 = vadd.f32 %v17937_v53, %v17936_v51  ;;  %v17943_v53 = vld [vmem:[#allocation233_spill] sm:$0xff] }
 0xbdc   :  { %v8078_v8 = vpop.f32.mrf.mxu2 }
 0xbdd   :  { %v8324_v27 = vpop.f32.mrf.mxu3 }
 0xbde   :  { %v16459_v39 = vadd.f32 %v8324_v27, %v8160_v18  ;;  %v7805_v40 = vpop.f32.mrf.mxu1  ;;  %v7586_v18 = vadd.f32 %v17938_v59, %v7244_v29  ;;  %v17944_v59 = vld [vmem:[#allocation247_spill] sm:$0xff] }
 0xbdf   :  { %v7899_v38 = vadd.f32 %v7805_v40, %v17935_v30 }
 0xbe0   :  { %17934 = vst [vmem:[#allocation297_spill] sm:$0xff] %v16459_v39 }
 0xbe1   :  { %11703 = vmatmul.msk.bf16.gmra.mxu1 %vm6780_vm3, %v16038_v16  ;;  %11849 = vmatmul.msk.bf16.vlgmr.msrb.gmra.mxu2 %vm6780_vm3, %v15249_v34  ;;  %v8165_v21 = vadd.f32 %v8071_v63, %v7899_v38  ;;  %v17941_v38 = vld [vmem:[#allocation230_spill] sm:$0xff] }
 0xbe2   :  { %11789 = vmatmul.msk.bf16.gmra.mxu3 %vm6780_vm3, %v16113_v28 }
 0xbe4   :  { %v8081_v56 = vpop.f32.mrf.mxu2 }
 0xbe5   :  { %v8327_v12 = vpop.f32.mrf.mxu3 }
 0xbe6   :  { %v16471_v42 = vadd.f32 %v8327_v12, %v8161_v1  ;;  %v7807_v62 = vpop.f32.mrf.mxu1  ;;  %v17942_v1 = vld [vmem:[#allocation244_spill] sm:$0xff] }
 0xbe7   :  { %v7900_v55 = vadd.f32 %v7807_v62, %v7586_v18 }
 0xbe8   :  { %17939 = vst [vmem:[#allocation116_spill] sm:$0xff] %v16471_v42 }
 0xbe9   :  { %v8166_v27 = vadd.f32 %v8073_v50, %v7900_v55  ;;  %v7249_v50 = vadd.f32 %v17943_v53, %v17942_v1 }
 0xbec   :  { %v8083_v40 = vpop.f32.mrf.mxu2 }
 0xbed   :  { %v8329_v30 = vpop.f32.mrf.mxu3 }
 0xbee   :  { %v16473_v39 = vadd.f32 %v8329_v30, %v8162_v45  ;;  %v7810_v63 = vpop.f32.mrf.mxu1  ;;  %v7588_v45 = vadd.f32 %v17944_v59, %v7249_v50 }
 0xbef   :  { %v7901_v26 = vadd.f32 %v7810_v63, %v17941_v38 }
 0xbf0   :  { %17940 = vst [vmem:[#allocation106_spill] sm:$0xff] %v16473_v39 }
 0xbf1   :  { %11704 = vmatmul.msk.bf16.gmra.mxu1 %vm6780_vm3, %v16078_v0  ;;  %11850 = vmatmul.msk.bf16.gmra.mxu2 %vm6780_vm3, %v15278_v35  ;;  %v8167_v51 = vadd.f32 %v8076_v11, %v7901_v26  ;;  %v17945_v26 = vld [vmem:[#allocation56_spill] sm:$0xff] }
 0xbf2   :  { %11790 = vmatmul.msk.bf16.gmra.mxu3 %vm6780_vm3, %v16149_v6 }
 0xbf4   :  { %v8086_v29 = vpop.f32.mrf.mxu2 }
 0xbf5   :  { %v8332_v18 = vpop.f32.mrf.mxu3 }
 0xbf6   :  { %v16485_v12 = vadd.f32 %v8332_v18, %v8163_v33  ;;  %v7812_v62 = vpop.f32.mrf.mxu1 }
 0xbf7   :  { %v7902_v55 = vadd.f32 %v7812_v62, %v7588_v45 }
 0xbf9   :  { %v8168_v30 = vadd.f32 %v8078_v8, %v7902_v55 }
 0xbfc   :  { %v8088_v63 = vpop.f32.mrf.mxu2 }
 0xbfd   :  { %v8334_v38 = vpop.f32.mrf.mxu3 }
 0xbfe   :  { %v16487_v39 = vadd.f32 %v8334_v38, %v8164_v31  ;;  %v7815_v11 = vpop.f32.mrf.mxu1  ;;  %v17946_v31 = vld [vmem:[#allocation52_spill] sm:$0xff]  ;;  %v17947_v38 = vld [vmem:[#allocation250_spill] sm:$0xff] }
 0xbff   :  { %v7903_v42 = vadd.f32 %v7815_v11, %v17945_v26 }
 0xc01   :  { %11805 = vmatmul.msk.bf16.vlgmr.msrb.gmra.mxu1 %vm6780_vm3, %v15200_v49  ;;  %11851 = vmatmul.msk.bf16.gmra.mxu2 %vm6780_vm3, %v15301_v60  ;;  %v8169_v1 = vadd.f32 %v8081_v56, %v7903_v42 }
 0xc02   :  { %11791 = vmatmul.msk.bf16.gmra.mxu3 %vm6780_vm3, %v16183_v13 }
 0xc04   :  { %v8091_v33 = vpop.f32.mrf.mxu2 }
 0xc05   :  { %v8337_v53 = vpop.f32.mrf.mxu3 }
 0xc06   :  { %v16496_v8 = vadd.f32 %v8337_v53, %v8165_v21  ;;  %v7817_v50 = vpop.f32.mrf.mxu1 }
 0xc07   :  { %v7904_v59 = vadd.f32 %v7817_v50, %v17946_v31 }
 0xc09   :  { %v8170_v45 = vadd.f32 %v8083_v40, %v7904_v59 }
 0xc0c   :  { %v8093_v18 = vpop.f32.mrf.mxu2 }
 0xc0d   :  { %v8339_v62 = vpop.f32.mrf.mxu3 }
 0xc0e   :  { %v16499_v55 = vadd.f32 %v8339_v62, %v8166_v27  ;;  %v7820_v49 = vpop.f32.mrf.mxu1  ;;  %v17948_v62 = vld [vmem:[#allocation59_spill] sm:$0xff] }
 0xc0f   :  { %v7905_v11 = vadd.f32 %v7820_v49, %v17947_v38 }
 0xc11   :  { %11806 = vmatmul.msk.bf16.gmra.mxu1 %vm6780_vm3, %v15224_v57  ;;  %11852 = vmatmul.msk.bf16.gmra.mxu2 %vm6780_vm3, %v15326_v24  ;;  %v8171_v56 = vadd.f32 %v8086_v29, %v7905_v11 }
 0xc12   :  { %11792 = vmatmul.msk.bf16.gmra.mxu3 %vm6780_vm3, %v16208_v41 }
 0xc14   :  { %v8096_v21 = vpop.f32.mrf.mxu2 }
 0xc15   :  { %v8342_v42 = vpop.f32.mrf.mxu3 }
 0xc16   :  { %v16508_v40 = vadd.f32 %v8342_v42, %v8167_v51  ;;  %v7822_v26 = vpop.f32.mrf.mxu1 }
 0xc17   :  { %v7906_v27 = vadd.f32 %v7822_v26, %v15831_v47 }
 0xc19   :  { %v8172_v53 = vadd.f32 %v8088_v63, %v7906_v27 }
 0xc1c   :  { %v8098_v50 = vpop.f32.mrf.mxu2 }
 0xc1d   :  { %v8344_v31 = vpop.f32.mrf.mxu3 }
 0xc1e   :  { %v16511_v59 = vadd.f32 %v8344_v31, %v8168_v30  ;;  %v7825_v57 = vpop.f32.mrf.mxu1  ;;  %v17949_v30 = vld [vmem:[#allocation53_spill] sm:$0xff] }
 0xc1f   :  { %v7907_v49 = vadd.f32 %v7825_v57, %v17948_v62  ;;  %v17950_v57 = vld [vmem:[#allocation62_spill] sm:$0xff] }
 0xc21   :  { %11807 = vmatmul.msk.bf16.gmra.mxu1 %vm6780_vm3, %v15249_v34  ;;  %11853 = vmatmul.msk.bf16.gmra.mxu2 %vm6780_vm3, %v15348_v36  ;;  %v8173_v29 = vadd.f32 %v8091_v33, %v7907_v49 }
 0xc22   :  { %11893 = vmatmul.msk.bf16.vlgmr.msrb.gmra.mxu3 %vm6780_vm3, %v15301_v60 }
 0xc24   :  { %v8101_v51 = vpop.f32.mrf.mxu2 }
 0xc25   :  { %v8347_v47 = vpop.f32.mrf.mxu3 }
 0xc26   :  { %v16520_v63 = vadd.f32 %v8347_v47, %v8169_v1  ;;  %v7827_v38 = vpop.f32.mrf.mxu1 }
 0xc27   :  { %v7908_v11 = vadd.f32 %v7827_v38, %v17949_v30 }
 0xc29   :  { %v8174_v42 = vadd.f32 %v8093_v18, %v7908_v11 }
 0xc2c   :  { %v8103_v26 = vpop.f32.mrf.mxu2 }
 0xc2d   :  { %v8349_v27 = vpop.f32.mrf.mxu3 }
 0xc2e   :  { %v16523_v31 = vadd.f32 %v8349_v27, %v8170_v45  ;;  %v7830_v34 = vpop.f32.mrf.mxu1 }
 0xc2f   :  { %v7909_v62 = vadd.f32 %v7830_v34, %v17950_v57  ;;  %v17951_v34 = vld [vmem:[#allocation55_spill] sm:$0xff] }
 0xc31   :  { %11808 = vmatmul.msk.bf16.gmra.mxu1 %vm6780_vm3, %v15278_v35  ;;  %11854 = vmatmul.msk.bf16.gmra.mxu2 %vm6780_vm3, %v15368_v37  ;;  %v8175_v33 = vadd.f32 %v8096_v21, %v7909_v62 }
 0xc32   :  { %11894 = vmatmul.msk.bf16.gmra.mxu3 %vm6780_vm3, %v15326_v24 }
 0xc34   :  { %v8106_v1 = vpop.f32.mrf.mxu2 }
 0xc35   :  { %v8352_v49 = vpop.f32.mrf.mxu3 }
 0xc36   :  { %v16532_v18 = vadd.f32 %v8352_v49, %v8171_v56  ;;  %v7832_v47 = vpop.f32.mrf.mxu1 }
 0xc37   :  { %v7910_v45 = vadd.f32 %v7832_v47, %v15891_v4 }
 0xc39   :  { %v8176_v38 = vadd.f32 %v8098_v50, %v7910_v45 }
 0xc3c   :  { %v8108_v30 = vpop.f32.mrf.mxu2 }
 0xc3d   :  { %v8354_v11 = vpop.f32.mrf.mxu3 }
 0xc3e   :  { %v16535_v27 = vadd.f32 %v8354_v11, %v8172_v53  ;;  %v7835_v35 = vpop.f32.mrf.mxu1 }
 0xc3f   :  { %v7911_v57 = vadd.f32 %v7835_v35, %v17951_v34  ;;  %v17953_v35 = vld [vmem:[#allocation256_spill] sm:$0xff] }
 0xc41   :  { %11809 = vmatmul.msk.bf16.gmra.mxu1 %vm6780_vm3, %v15301_v60  ;;  %11855 = vmatmul.msk.bf16.gmra.mxu2 %vm6780_vm3, %v17791_v48  ;;  %v8177_v21 = vadd.f32 %v8101_v51, %v7911_v57 }
 0xc42   :  { %11895 = vmatmul.msk.bf16.gmra.mxu3 %vm6780_vm3, %v15348_v36 }
 0xc44   :  { %v8111_v56 = vpop.f32.mrf.mxu2 }
 0xc45   :  { %v8357_v4 = vpop.f32.mrf.mxu3 }
 0xc46   :  { %v16544_v50 = vadd.f32 %v8357_v4, %v8173_v29  ;;  %v7837_v62 = vpop.f32.mrf.mxu1 }
 0xc47   :  { %v7912_v53 = vadd.f32 %v7837_v62, %v15923_v2 }
 0xc49   :  { %v8178_v49 = vadd.f32 %v8103_v26, %v7912_v53 }
 0xc4c   :  { %v8113_v47 = vpop.f32.mrf.mxu2 }
 0xc4d   :  { %v8359_v45 = vpop.f32.mrf.mxu3 }
 0xc4e   :  { %v16547_v11 = vadd.f32 %v8359_v45, %v8174_v42  ;;  %v7840_v60 = vpop.f32.mrf.mxu1 }
 0xc4f   :  { %v7913_v34 = vadd.f32 %v7840_v60, %v17953_v35 }
 0xc50   :  { %17952 = vst [vmem:[#allocation299_spill] sm:$0xff] %v16547_v11  ;;  %v17981_v11 = vld [vmem:[#allocation69_spill] sm:$0xff] }
 0xc51   :  { %11810 = vmatmul.msk.bf16.gmra.mxu1 %vm6780_vm3, %v15326_v24  ;;  %11856 = vmatmul.msk.bf16.gmra.mxu2 %vm6780_vm3, %v17804_v23  ;;  %v8179_v51 = vadd.f32 %v8106_v1, %v7913_v34 }
 0xc52   :  { %11896 = vmatmul.msk.bf16.gmra.mxu3 %vm6780_vm3, %v15368_v37 }
 0xc54   :  { %v8116_v29 = vpop.f32.mrf.mxu2 }
 0xc55   :  { %v8362_v2 = vpop.f32.mrf.mxu3 }
 0xc56   :  { %v16556_v26 = vadd.f32 %v8362_v2, %v8175_v33  ;;  %v7842_v57 = vpop.f32.mrf.mxu1 }
 0xc57   :  { %v7914_v42 = vadd.f32 %v7842_v57, %v15957_v43 }
 0xc58   :  { %17954 = vst [vmem:[#allocation119_spill] sm:$0xff] %v16556_v26 }
 0xc59   :  { %v8180_v4 = vadd.f32 %v8108_v30, %v7914_v42 }
 0xc5c   :  { %v8118_v62 = vpop.f32.mrf.mxu2 }
 0xc5d   :  { %v8364_v53 = vpop.f32.mrf.mxu3 }
 0xc5e   :  { %v16559_v45 = vadd.f32 %v8364_v53, %v8176_v38  ;;  %v7845_v24 = vpop.f32.mrf.mxu1  ;;  %v17957_v38 = vld [vmem:[#allocation65_spill] sm:$0xff] }
 0xc5f   :  { %v7915_v60 = vadd.f32 %v7845_v24, %v15980_v14  ;;  %v17959_v53 = vld [vmem:[#allocation57_spill] sm:$0xff] }
 0xc60   :  { %17955 = vst [vmem:[#allocation110_spill] sm:$0xff] %v16559_v45 }
 0xc61   :  { %11811 = vmatmul.msk.bf16.gmra.mxu1 %vm6780_vm3, %v15348_v36  ;;  %11857 = vmatmul.msk.bf16.gmra.mxu2 %vm6780_vm3, %v15558_v25  ;;  %v8181_v1 = vadd.f32 %v8111_v56, %v7915_v60 }
 0xc62   :  { %11897 = vmatmul.msk.bf16.gmra.mxu3 %vm6780_vm3, %v17791_v48 }
 0xc64   :  { %v8807_v33 = vpop.f32.mrf.mxu2 }
 0xc65   :  { %v8367_v43 = vpop.f32.mrf.mxu3 }
 0xc66   :  { %v16568_v30 = vadd.f32 %v8367_v43, %v8177_v21  ;;  %v7847_v35 = vpop.f32.mrf.mxu1 }
 0xc67   :  { %v7916_v34 = vadd.f32 %v7847_v35, %v17957_v38 }
 0xc68   :  { %17956 = vst [vmem:[#allocation301_spill] sm:$0xff] %v16568_v30 }
 0xc69   :  { %v8182_v2 = vadd.f32 %v8113_v47, %v7916_v34 }
 0xc6c   :  { %v8809_v57 = vpop.f32.mrf.mxu2 }
 0xc6d   :  { %v8369_v14 = vpop.f32.mrf.mxu3 }
 0xc6e   :  { %v16571_v42 = vadd.f32 %v8369_v14, %v8178_v49  ;;  %v7850_v36 = vpop.f32.mrf.mxu1  ;;  %v17961_v49 = vld [vmem:[#allocation259_spill] sm:$0xff] }
 0xc6f   :  { %v7917_v24 = vadd.f32 %v7850_v36, %v17959_v53  ;;  %v17963_v36 = vld [vmem:[#allocation68_spill] sm:$0xff] }
 0xc70   :  { %17958 = vst [vmem:[#allocation122_spill] sm:$0xff] %v16571_v42  ;;  %v17970_v42 = vld [vmem:[#allocation40_spill] sm:$0xff] }
 0xc71   :  { %11812 = vmatmul.msk.bf16.gmra.mxu1 %vm6780_vm3, %v15368_v37  ;;  %11858 = vmatmul.msk.bf16.gmra.mxu2 %vm6780_vm3, %v15587_v22  ;;  %v8183_v48 = vadd.f32 %v8116_v29, %v7917_v24  ;;  %v12358_v29 = vld [vmem:[%s17034_s5 + $0x18] sm:$0xff] }
 0xc72   :  { %11898 = vmatmul.msk.bf16.gmra.mxu3 %vm6780_vm3, %v17804_v23  ;;  %9542 = vmatpush.bf16.msra.mxu1 %v12358_v29  ;;  %v17964_v23 = vld [vmem:[#allocation36_spill] sm:$0xff] }
 0xc74   :  { %v8812_v21 = vpop.f32.mrf.mxu2 }
 0xc75   :  { %v8372_v56 = vpop.f32.mrf.mxu3 }
 0xc76   :  { %v16580_v47 = vadd.f32 %v8372_v56, %v8179_v51  ;;  %v7852_v60 = vpop.f32.mrf.mxu1 }
 0xc77   :  { %v7918_v43 = vadd.f32 %v7852_v60, %v17961_v49  ;;  %v17967_v49 = vld [vmem:[#allocation60_spill] sm:$0xff] }
 0xc78   :  { %17960 = vst [vmem:[#allocation114_spill] sm:$0xff] %v16580_v47 }
 0xc79   :  { %v8184_v35 = vadd.f32 %v8118_v62, %v7918_v43  ;;  %v17965_v62 = vld [vmem:[#allocation183_spill] sm:$0xff] }
 0xc7c   :  { %v8814_v38 = vpop.f32.mrf.mxu2 }
 0xc7d   :  { %v8374_v34 = vpop.f32.mrf.mxu3 }
 0xc7e   :  { %v16583_v14 = vadd.f32 %v8374_v34, %v8180_v4  ;;  %v8541_v37 = vpop.f32.mrf.mxu1 }
 0xc7f   :  { %v8701_v53 = vadd.f32 %v8541_v37, %v17963_v36 }
 0xc80   :  { %17962 = vst [vmem:[#allocation303_spill] sm:$0xff] %v16583_v14  ;;  %v17969_v14 = vld [vmem:[#allocation262_spill] sm:$0xff] }
 0xc81   :  { %11813 = vmatmul.msk.bf16.gmra.mxu1 %vm6780_vm3, %v17964_v23  ;;  %11859 = vmatmul.msk.bf16.gmra.mxu2 %vm6780_vm3, %v15610_v15  ;;  %v8967_v51 = vadd.f32 %v8807_v33, %v8701_v53 }
 0xc82   :  { %11899 = vmatmul.msk.bf16.gmra.mxu3 %vm6780_vm3, %v17965_v62 }
 0xc84   :  { %v8817_v4 = vpop.f32.mrf.mxu2 }
 0xc85   :  { %v8377_v24 = vpop.f32.mrf.mxu3 }
 0xc86   :  { %v16595_v56 = vadd.f32 %v8377_v24, %v8181_v1  ;;  %v8543_v60 = vpop.f32.mrf.mxu1  ;;  %v17971_v1 = vld [vmem:[#allocation29_spill] sm:$0xff] }
 0xc87   :  { %v8702_v43 = vadd.f32 %v8543_v60, %v17967_v49 }
 0xc88   :  { %17966 = vst [vmem:[#allocation124_spill] sm:$0xff] %v16595_v56 }
 0xc89   :  { %v8968_v34 = vadd.f32 %v8809_v57, %v8702_v43 }
 0xc8c   :  { %v8819_v37 = vpop.f32.mrf.mxu2 }
 0xc8d   :  { %v8379_v29 = vpop.f32.mrf.mxu3 }
 0xc8e   :  { %v16598_v36 = vadd.f32 %v8379_v29, %v8182_v2  ;;  %v8546_v23 = vpop.f32.mrf.mxu1  ;;  %v17973_v2 = vld [vmem:[#allocation71_spill] sm:$0xff] }
 0xc8f   :  { %v8703_v47 = vadd.f32 %v8546_v23, %v17969_v14  ;;  %v17975_v23 = vld [vmem:[#allocation63_spill] sm:$0xff] }
 0xc90   :  { %17968 = vst [vmem:[#allocation117_spill] sm:$0xff] %v16598_v36 }
 0xc91   :  { %11814 = vmatmul.msk.bf16.gmra.mxu1 %vm6780_vm3, %v17970_v42  ;;  %11860 = vmatmul.msk.bf16.gmra.mxu2 %vm6780_vm3, %v17842_v44  ;;  %v8969_v33 = vadd.f32 %v8812_v21, %v8703_v47 }
 0xc92   :  { %11900 = vmatmul.msk.bf16.gmra.mxu3 %vm6780_vm3, %v17971_v1 }
 0xc94   :  { %v8822_v53 = vpop.f32.mrf.mxu2 }
 0xc95   :  { %v8382_v62 = vpop.f32.mrf.mxu3 }
 0xc96   :  { %v16607_v57 = vadd.f32 %v8382_v62, %v8183_v48  ;;  %v8548_v24 = vpop.f32.mrf.mxu1  ;;  %v17976_v62 = vld [vmem:[#allocation265_spill] sm:$0xff] }
 0xc97   :  { %v8704_v60 = vadd.f32 %v8548_v24, %v17973_v2 }
 0xc98   :  { %17972 = vst [vmem:[#allocation305_spill] sm:$0xff] %v16607_v57 }
 0xc99   :  { %v8970_v49 = vadd.f32 %v8814_v38, %v8704_v60 }
 0xc9c   :  { %v8824_v43 = vpop.f32.mrf.mxu2 }
 0xc9d   :  { %v8384_v14 = vpop.f32.mrf.mxu3 }
 0xc9e   :  { %v16610_v29 = vadd.f32 %v8384_v14, %v8184_v35  ;;  %v8551_v42 = vpop.f32.mrf.mxu1 }
 0xc9f   :  { %v8705_v36 = vadd.f32 %v8551_v42, %v17975_v23  ;;  %v17977_v23 = vld [vmem:[#allocation74_spill] sm:$0xff] }
 0xca0   :  { %17974 = vst [vmem:[#allocation127_spill] sm:$0xff] %v16610_v29  ;;  %v17979_v29 = vld [vmem:[#allocation268_spill] sm:$0xff] }
 0xca1   :  { %11815 = vmatmul.msk.bf16.gmra.mxu1 %vm6780_vm3, %v15558_v25  ;;  %11861 = vmatmul.msk.bf16.gmra.mxu2 %vm6780_vm3, %v17856_v5  ;;  %v8971_v21 = vadd.f32 %v8817_v4, %v8705_v36 }
 0xca2   :  { %11901 = vmatmul.msk.bf16.gmra.mxu3 %vm6780_vm3, %v15610_v15 }
 0xca4   :  { %v8827_v48 = vpop.f32.mrf.mxu2 }
 0xca5   :  { %v9073_v47 = vpop.f32.mrf.mxu3 }
 0xca6   :  { %v9233_v38 = vadd.f32 %v9073_v47, %v8967_v51  ;;  %v8553_v1 = vpop.f32.mrf.mxu1 }
 0xca7   :  { %v8706_v35 = vadd.f32 %v8553_v1, %v17976_v62  ;;  %v17978_v1 = vld [vmem:[#allocation66_spill] sm:$0xff] }
 0xca9   :  { %v8972_v24 = vadd.f32 %v8819_v37, %v8706_v35 }
 0xcac   :  { %v8829_v2 = vpop.f32.mrf.mxu2 }
 0xcad   :  { %v9075_v60 = vpop.f32.mrf.mxu3 }
 0xcae   :  { %v9234_v14 = vadd.f32 %v9075_v60, %v8968_v34  ;;  %v8556_v42 = vpop.f32.mrf.mxu1 }
 0xcaf   :  { %v8707_v25 = vadd.f32 %v8556_v42, %v17977_v23 }
 0xcb1   :  { %11816 = vmatmul.msk.bf16.gmra.mxu1 %vm6780_vm3, %v15587_v22  ;;  %11862 = vmatmul.msk.bf16.gmra.mxu2 %vm6780_vm3, %v17865_v58  ;;  %v8973_v4 = vadd.f32 %v8822_v53, %v8707_v25 }
 0xcb2   :  { %11902 = vmatmul.msk.bf16.gmra.mxu3 %vm6780_vm3, %v17842_v44 }
 0xcb4   :  { %v8832_v51 = vpop.f32.mrf.mxu2 }
 0xcb5   :  { %v9078_v36 = vpop.f32.mrf.mxu3 }
 0xcb6   :  { %v9235_v47 = vadd.f32 %v9078_v36, %v8969_v33  ;;  %v8558_v37 = vpop.f32.mrf.mxu1  ;;  %v16636_v33 = vld [vmem:[%s17033_s4] ss:$0 sm:$0xff] }
 0xcb7   :  { %v8708_v62 = vadd.f32 %v8558_v37, %v17978_v1  ;;  %v9301_v25 = vadd.f32 %v16636_v33, %v9233_v38  ;;  %v17980_v37 = vld [vmem:[#allocation77_spill] sm:$0xff]  ;;  %v9302_v56 = vadd.f32 %v16636_v33, %v9234_v14  ;;  %v17982_v14 = vld [vmem:[#allocation271_spill] sm:$0xff] }
 0xcb9   :  { %v8974_v34 = vadd.f32 %v8824_v43, %v8708_v62 }
 0xcbc   :  { %v8834_v35 = vpop.f32.mrf.mxu2 }
 0xcbd   :  { %v9080_v60 = vpop.f32.mrf.mxu3 }
 0xcbe   :  { %v9236_v42 = vadd.f32 %v9080_v60, %v8970_v49  ;;  %v8561_v23 = vpop.f32.mrf.mxu1 }
 0xcbf   :  { %v8709_v22 = vadd.f32 %v8561_v23, %v17979_v29 }
 0xcc1   :  { %11817 = vmatmul.msk.bf16.gmra.mxu1 %vm6780_vm3, %v15610_v15  ;;  %11863 = vmatmul.msk.bf16.gmra.mxu2 %vm6780_vm3, %v17872_v52  ;;  %v8975_v53 = vadd.f32 %v8827_v48, %v8709_v22  ;;  %v9365_v48 = vmax.f32 %v9301_v25, 0.0 }
 0xcc2   :  { %11903 = vmatmul.msk.bf16.gmra.mxu3 %vm6780_vm3, %v17856_v5 }
 0xcc4   :  { %v8837_v43 = vpop.f32.mrf.mxu2 }
 0xcc5   :  { %v9083_v49 = vpop.f32.mrf.mxu3 }
 0xcc6   :  { %v9237_v29 = vadd.f32 %v9083_v49, %v8971_v21  ;;  %v8563_v36 = vpop.f32.mrf.mxu1 }
 0xcc7   :  { %v8710_v15 = vadd.f32 %v8563_v36, %v17980_v37 }
 0xcc8   :  { %v9305_v1 = vadd.f32 %v16636_v33, %v9237_v29 }
 0xcc9   :  { %v8976_v62 = vadd.f32 %v8829_v2, %v8710_v15  ;;  %v9366_v2 = vmax.f32 %v9302_v56, 0.0 }
 0xcca   :  { %v9369_v60 = vmax.f32 %v9305_v1, 0.0  ;;  %v9304_v1 = vadd.f32 %v16636_v33, %v9236_v42 }
 0xccc   :  { %v16643_v23 = vmax.f32 %v9365_v48, %v9369_v60  ;;  %v8839_v22 = vpop.f32.mrf.mxu2 }
 0xccd   :  { %v9085_v57 = vpop.f32.mrf.mxu3 }
 0xcce   :  { %v9238_v30 = vadd.f32 %v9085_v57, %v8972_v24  ;;  %v8566_v45 = vpop.f32.mrf.mxu1 }
 0xccf   :  { %v8711_v26 = vadd.f32 %v8566_v45, %v17981_v11  ;;  %v9303_v11 = vadd.f32 %v16636_v33, %v9235_v47 }
 0xcd0   :  { %v9306_v21 = vadd.f32 %v16636_v33, %v9238_v30 }
 0xcd1   :  { %11818 = vmatmul.msk.bf16.gmra.mxu1 %vm6780_vm3, %v17842_v44  ;;  %11864 = vmatmul.msk.bf16.gmra.mxu2 %vm6780_vm3, %v17879_v7  ;;  %v8977_v38 = vadd.f32 %v8832_v51, %v8711_v26  ;;  %v9367_v37 = vmax.f32 %v9303_v11, 0.0 }
 0xcd2   :  { %v9370_v49 = vmax.f32 %v9306_v21, 0.0  ;;  %11904 = vmatmul.msk.bf16.gmra.mxu3 %vm6780_vm3, %v17865_v58  ;;  %v17983_v21 = vld [vmem:[#allocation81_spill] sm:$0xff] }
 0xcd4   :  { %v16654_v25 = vmax.f32 %v9366_v2, %v9370_v49  ;;  %v8842_v57 = vpop.f32.mrf.mxu2 }
 0xcd5   :  { %v9088_v24 = vpop.f32.mrf.mxu3 }
 0xcd6   :  { %v9239_v45 = vadd.f32 %v9088_v24, %v8973_v4  ;;  %v8568_v30 = vpop.f32.mrf.mxu1 }
 0xcd7   :  { %v8712_v29 = vadd.f32 %v8568_v30, %v17982_v14  ;;  %v17984_v30 = vld [vmem:[#allocation72_spill] sm:$0xff] }
 0xcd8   :  { %v9307_v44 = vadd.f32 %v16636_v33, %v9239_v45 }
 0xcd9   :  { %v8978_v36 = vadd.f32 %v8834_v35, %v8712_v29  ;;  %v9368_v35 = vmax.f32 %v9304_v1, 0.0 }
 0xcda   :  { %v9371_v26 = vmax.f32 %v9307_v44, 0.0 }
 0xcdc   :  { %v16659_v56 = vmax.f32 %v9367_v37, %v9371_v26  ;;  %v8844_v51 = vpop.f32.mrf.mxu2 }
 0xcdd   :  { %v9090_v15 = vpop.f32.mrf.mxu3 }
 0xcde   :  { %v9240_v48 = vadd.f32 %v9090_v15, %v8974_v34  ;;  %v8571_v60 = vpop.f32.mrf.mxu1 }
 0xcdf   :  { %v8713_v2 = vadd.f32 %v8571_v60, %v17983_v21 }
 0xce0   :  { %v9308_v4 = vadd.f32 %v16636_v33, %v9240_v48  ;;  %v17985_v48 = vld [vmem:[#allocation274_spill] sm:$0xff] }
 0xce1   :  { %11819 = vmatmul.msk.bf16.gmra.mxu1 %vm6780_vm3, %v17856_v5  ;;  %11865 = vmatmul.msk.bf16.gmra.mxu2 %vm6780_vm3, %v15895_v61  ;;  %v8979_v47 = vadd.f32 %v8837_v43, %v8713_v2 }
 0xce2   :  { %v9372_v49 = vmax.f32 %v9308_v4, 0.0  ;;  %11905 = vmatmul.msk.bf16.gmra.mxu3 %vm6780_vm3, %v17872_v52 }
 0xce4   :  { %v16670_v24 = vmax.f32 %v9368_v35, %v9372_v49  ;;  %v8847_v34 = vpop.f32.mrf.mxu2 }
 0xce5   :  { %v9093_v42 = vpop.f32.mrf.mxu3 }
 0xce6   :  { %v9241_v11 = vadd.f32 %v9093_v42, %v8975_v53  ;;  %v8573_v45 = vpop.f32.mrf.mxu1 }
 0xce7   :  { %v8714_v14 = vadd.f32 %v8573_v45, %v17984_v30 }
 0xce9   :  { %v8980_v29 = vadd.f32 %v8839_v22, %v8714_v14 }
 0xcec   :  { %v8849_v44 = vpop.f32.mrf.mxu2 }
 0xced   :  { %v9095_v5 = vpop.f32.mrf.mxu3 }
 0xcee   :  { %v9242_v37 = vadd.f32 %v9095_v5, %v8976_v62  ;;  %v8576_v26 = vpop.f32.mrf.mxu1 }
 0xcef   :  { %v8715_v43 = vadd.f32 %v8576_v26, %v16272_v54 }
 0xcf0   :  { %v9310_v5 = vadd.f32 %v16636_v33, %v9242_v37 }
 0xcf1   :  { %11820 = vmatmul.msk.bf16.gmra.mxu1 %vm6780_vm3, %v17865_v58  ;;  %11866 = vmatmul.msk.bf16.gmra.mxu2 %vm6780_vm3, %v15927_v10  ;;  %v8981_v52 = vadd.f32 %v8842_v57, %v8715_v43  ;;  %v12357_v57 = vld [vmem:[%s17034_s5 + $0x10] sm:$0xff] }
 0xcf2   :  { %11906 = vmatmul.msk.bf16.gmra.mxu3 %vm6780_vm3, %v17879_v7  ;;  %9543 = vmatpush.bf16.msra.mxu1 %v12357_v57  ;;  %v17988_v57 = vld [vmem:[#allocation89_spill] sm:$0xff] }
 0xcf4   :  { %v8852_v53 = vpop.f32.mrf.mxu2 }
 0xcf5   :  { %v9098_v15 = vpop.f32.mrf.mxu3 }
 0xcf6   :  { %v9243_v1 = vadd.f32 %v9098_v15, %v8977_v38  ;;  %v8578_v22 = vpop.f32.mrf.mxu1  ;;  %v17986_v15 = vld [vmem:[#allocation277_spill] sm:$0xff] }
 0xcf7   :  { %v8716_v60 = vadd.f32 %v8578_v22, %v17985_v48  ;;  %v17987_v22 = vld [vmem:[#allocation253_spill] sm:$0xff] }
 0xcf9   :  { %v8982_v62 = vadd.f32 %v8844_v51, %v8716_v60 }
 0xcfc   :  { %v8854_v21 = vpop.f32.mrf.mxu2 }
 0xcfd   :  { %v9100_v2 = vpop.f32.mrf.mxu3 }
 0xcfe   :  { %v9244_v54 = vadd.f32 %v9100_v2, %v8978_v36  ;;  %v8581_v4 = vpop.f32.mrf.mxu1  ;;  %v9309_v36 = vadd.f32 %v16636_v33, %v9241_v11  ;;  %v9311_v2 = vadd.f32 %v16636_v33, %v9243_v1 }
 0xcff   :  { %v8717_v58 = vadd.f32 %v8581_v4, %v16298_v3 }
 0xd01   :  { %11821 = vmatmul.msk.bf16.gmra.mxu1 %vm6780_vm3, %v15835_v46  ;;  %11867 = vmatmul.msk.bf16.gmra.mxu2 %vm6780_vm3, %v15959_v32  ;;  %v8983_v7 = vadd.f32 %v8847_v34, %v8717_v58  ;;  %v9373_v34 = vmax.f32 %v9309_v36, 0.0 }
 0xd02   :  { %11907 = vmatmul.msk.bf16.gmra.mxu3 %vm6780_vm3, %v17898_v17 }
 0xd04   :  { %v8857_v38 = vpop.f32.mrf.mxu2 }
 0xd05   :  { %v9103_v51 = vpop.f32.mrf.mxu3 }
 0xd06   :  { %v9245_v35 = vadd.f32 %v9103_v51, %v8979_v47  ;;  %v8583_v3 = vpop.f32.mrf.mxu1 }
 0xd07   :  { %v8718_v46 = vadd.f32 %v8583_v3, %v16302_v9  ;;  %v9375_v3 = vmax.f32 %v9311_v2, 0.0 }
 0xd08   :  { %v9313_v49 = vadd.f32 %v16636_v33, %v9245_v35 }
 0xd09   :  { %v8984_v42 = vadd.f32 %v8849_v44, %v8718_v46  ;;  %v9374_v44 = vmax.f32 %v9310_v5, 0.0  ;;  %v17989_v5 = vld [vmem:[#allocation78_spill] sm:$0xff] }
 0xd0a   :  { %v9377_v45 = vmax.f32 %v9313_v49, 0.0 }
 0xd0c   :  { %v16694_v30 = vmax.f32 %v9373_v34, %v9377_v45  ;;  %v8859_v17 = vpop.f32.mrf.mxu2 }
 0xd0d   :  { %v9105_v14 = vpop.f32.mrf.mxu3 }
 0xd0e   :  { %v9246_v26 = vadd.f32 %v9105_v14, %v8980_v29  ;;  %v8586_v43 = vpop.f32.mrf.mxu1 }
 0xd0f   :  { %v8719_v11 = vadd.f32 %v8586_v43, %v17986_v15 }
 0xd10   :  { %v9314_v47 = vadd.f32 %v16636_v33, %v9246_v26 }
 0xd11   :  { %11822 = vmatmul.msk.bf16.gmra.mxu1 %vm6780_vm3, %v17987_v22  ;;  %11868 = vmatmul.msk.bf16.gmra.mxu2 %vm6780_vm3, %v15998_v20  ;;  %v8985_v9 = vadd.f32 %v8852_v53, %v8719_v11  ;;  %v17990_v22 = vld [vmem:[#allocation280_spill] sm:$0xff] }
 0xd12   :  { %v9378_v48 = vmax.f32 %v9314_v47, 0.0  ;;  %11908 = vmatmul.msk.bf16.gmra.mxu3 %vm6780_vm3, %v17905_v19  ;;  %v9312_v19 = vadd.f32 %v16636_v33, %v9244_v54 }
 0xd14   :  { %v16705_v60 = vmax.f32 %v9374_v44, %v9378_v48  ;;  %v8862_v29 = vpop.f32.mrf.mxu2 }
 0xd15   :  { %v9108_v37 = vpop.f32.mrf.mxu3 }
 0xd16   :  { %v9247_v4 = vadd.f32 %v9108_v37, %v8981_v52  ;;  %v8588_v58 = vpop.f32.mrf.mxu1 }
 0xd17   :  { %v8720_v51 = vadd.f32 %v8588_v58, %v17988_v57  ;;  %v17991_v58 = vld [vmem:[#allocation93_spill] sm:$0xff] }
 0xd18   :  { %v9315_v36 = vadd.f32 %v16636_v33, %v9247_v4 }
 0xd19   :  { %v8986_v35 = vadd.f32 %v8854_v21, %v8720_v51  ;;  %v9376_v21 = vmax.f32 %v9312_v19, 0.0 }
 0xd1a   :  { %v9379_v53 = vmax.f32 %v9315_v36, 0.0 }
 0xd1c   :  { %v16710_v46 = vmax.f32 %v9375_v3, %v9379_v53  ;;  %v8864_v49 = vpop.f32.mrf.mxu2  ;;  %v17992_v3 = vld [vmem:[#allocation82_spill] sm:$0xff] }
 0xd1d   :  { %v9110_v34 = vpop.f32.mrf.mxu3 }
 0xd1e   :  { %v9248_v45 = vadd.f32 %v9110_v34, %v8982_v62  ;;  %v8591_v14 = vpop.f32.mrf.mxu1  ;;  %v4757_v34 = vpop.f32.mrf.mxu0 }
 0xd1f   :  { %v8721_v26 = vadd.f32 %v8591_v14, %v17989_v5  ;;  %v17993_v5 = vld [vmem:[#allocation283_spill] sm:$0xff] }
 0xd20   :  { %v9316_v52 = vadd.f32 %v16636_v33, %v9248_v45 }
 0xd21   :  { %11823 = vmatmul.msk.bf16.gmra.mxu1 %vm6780_vm3, %v15895_v61  ;;  %11869 = vmatmul.msk.bf16.gmra.mxu2 %vm6780_vm3, %v16038_v16  ;;  %v8987_v1 = vadd.f32 %v8857_v38, %v8721_v26 }
 0xd22   :  { %v9380_v43 = vmax.f32 %v9316_v52, 0.0  ;;  %11909 = vmatmul.msk.bf16.gmra.mxu3 %vm6780_vm3, %v15959_v32 }
 0xd24   :  { %v16721_v15 = vmax.f32 %v9376_v21, %v9380_v43  ;;  %v8867_v62 = vpop.f32.mrf.mxu2 }
 0xd25   :  { %v9113_v54 = vpop.f32.mrf.mxu3 }
 0xd26   :  { %v9249_v11 = vadd.f32 %v9113_v54, %v8983_v7  ;;  %v8593_v47 = vpop.f32.mrf.mxu1  ;;  %v17994_v54 = vld [vmem:[#allocation317_spill] sm:$0xff] }
 0xd27   :  { %v8722_v44 = vadd.f32 %v8593_v47, %v17990_v22  ;;  %v17995_v22 = vld [vmem:[#allocation97_spill] sm:$0xff] }
 0xd29   :  { %v8988_v48 = vadd.f32 %v8859_v17, %v8722_v44 }
 0xd2c   :  { %v8869_v37 = vpop.f32.mrf.mxu2 }
 0xd2d   :  { %v9115_v61 = vpop.f32.mrf.mxu3 }
 0xd2e   :  { %v9250_v2 = vadd.f32 %v9115_v61, %v8984_v42  ;;  %v8596_v4 = vpop.f32.mrf.mxu1  ;;  %v17996_v61 = vld [vmem:[#allocation313_spill] sm:$0xff] }
 0xd2f   :  { %v8723_v38 = vadd.f32 %v8596_v4, %v17991_v58  ;;  %v17998_v58 = vld [vmem:[#allocation316_spill] sm:$0xff] }
 0xd31   :  { %11824 = vmatmul.msk.bf16.gmra.mxu1 %vm6780_vm3, %v15927_v10  ;;  %11870 = vmatmul.msk.bf16.gmra.mxu2 %vm6780_vm3, %v16078_v0  ;;  %v8989_v57 = vadd.f32 %v8862_v29, %v8723_v38  ;;  %v4759_v29 = vpop.f32.mrf.mxu0  ;;  %v5855_v38 = vmax.f32 %v17998_v58, %v4757_v34 }
 0xd32   :  { %11910 = vmatmul.msk.bf16.gmra.mxu3 %vm6780_vm3, %v15998_v20  ;;  %v5856_v47 = vmax.f32 %v17994_v54, %v4759_v29  ;;  %v18001_v54 = vld [vmem:[#allocation86_spill] sm:$0xff] }
 0xd34   :  { %v8872_v7 = vpop.f32.mrf.mxu2 }
 0xd35   :  { %v9118_v51 = vpop.f32.mrf.mxu3 }
 0xd36   :  { %v9251_v36 = vadd.f32 %v9118_v51, %v8985_v9  ;;  %v8598_v17 = vpop.f32.mrf.mxu1 }
 0xd37   :  { %v8724_v53 = vadd.f32 %v8598_v17, %v17992_v3 }
 0xd39   :  { %v16732_v42 = vadd.f32 %v8864_v49, %v8724_v53  ;;  %v17999_v53 = vld [vmem:[#allocation311_spill] sm:$0xff] }
 0xd3c   :  { %v8874_v19 = vpop.f32.mrf.mxu2 }
 0xd3d   :  { %v9120_v45 = vpop.f32.mrf.mxu3 }
 0xd3e   :  { %v16734_v14 = vadd.f32 %v9120_v45, %v8986_v35  ;;  %v8601_v10 = vpop.f32.mrf.mxu1  ;;  %v9317_v35 = vadd.f32 %v16636_v33, %v9249_v11  ;;  %v18000_v45 = vld [vmem:[#allocation234_spill] sm:$0xff] }
 0xd3f   :  { %v8725_v26 = vadd.f32 %v8601_v10, %v17993_v5  ;;  %v5999_v11 = vmax.f32 %v18000_v45, %v17999_v53 }
 0xd40   :  { %v9381_v17 = vmax.f32 %v9317_v35, 0.0 }
 0xd41   :  { %11825 = vmatmul.msk.bf16.gmra.mxu1 %vm6780_vm3, %v15959_v32  ;;  %11871 = vmatmul.msk.bf16.gmra.mxu2 %vm6780_vm3, %v16113_v28  ;;  %v16741_v9 = vadd.f32 %v8867_v62, %v8725_v26  ;;  %v17997_v62 = vld [vmem:[#allocation236_spill] sm:$0xff]  ;;  %v6143_v26 = vmax.f32 %v5855_v38, %v5999_v11 }
 0xd42   :  { %11911 = vmatmul.msk.bf16.gmra.mxu3 %vm6780_vm3, %v16038_v16  ;;  %v6000_v4 = vmax.f32 %v17997_v62, %v17996_v61 }
 0xd44   :  { %v16745_v49 = vpop.f32.mrf.mxu2 }
 0xd45   :  { %v9123_v52 = vpop.f32.mrf.mxu3 }
 0xd46   :  { %v9253_v21 = vadd.f32 %v9123_v52, %v8987_v1  ;;  %v8603_v43 = vpop.f32.mrf.mxu1  ;;  %v6144_v1 = vmax.f32 %v5856_v47, %v6000_v4  ;;  %v9318_v52 = vadd.f32 %v16636_v33, %v9250_v2 }
 0xd47   :  { %v8726_v32 = vadd.f32 %v8603_v43, %v17995_v22 }
 0xd48   :  { %v9321_v44 = vadd.f32 %v16636_v33, %v9253_v21 }
 0xd49   :  { %v16754_v51 = vadd.f32 %v8869_v37, %v8726_v32  ;;  %v12373_v37 = vld [vmem:[%s17032_s2] ss:$0 sm:$0xff] }
 0xd4a   :  { %v9385_v3 = vmax.f32 %v9321_v44, 0.0  ;;  %v6292_v35 = vadd.f32 %v12373_v37, %v6144_v1  ;;  %v6291_v32 = vadd.f32 %v12373_v37, %v6143_v26  ;;  %v9382_v44 = vmax.f32 %v9318_v52, 0.0 }
 0xd4c   :  { %v16758_v10 = vmax.f32 %v9381_v17, %v9385_v3  ;;  %v8879_v5 = vpop.f32.mrf.mxu2  ;;  %v6436_v61 = vmax.f32 %v6292_v35, 0.0  ;;  %v6435_v58 = vmax.f32 %v6291_v32, 0.0  ;;  %v9319_v17 = vadd.f32 %v16636_v33, %v9251_v36 }
 0xd4d   :  { %v9125_v29 = vpop.f32.mrf.mxu3 }
 0xd4e   :  { %v9437_v21 = vmax.f32 %v16643_v23, %v16758_v10  ;;  %v9254_v43 = vadd.f32 %v9125_v29, %v8988_v48  ;;  %v8606_v34 = vpop.f32.mrf.mxu1  ;;  %v6580_v45 = vpack.c.bf16 %v6436_v61, %v6436_v61  ;;  %v6579_v26 = vpack.c.bf16 %v6435_v58, %v6435_v58 }
 0xd4f   :  { %v8727_v22 = vadd.f32 %v8606_v34, %v18001_v54  ;;  %v9383_v52 = vmax.f32 %v9319_v17, 0.0 }
 0xd50   :  { %v9322_v47 = vadd.f32 %v16636_v33, %v9254_v43  ;;  %v8477_v34 = vunpack.c.l.b16 %v6580_v45  ;;  %v8476_v54 = vunpack.c.l.b16 %v6579_v26 }
 0xd51   :  { %11826 = vmatmul.msk.bf16.gmra.mxu1 %vm6780_vm3, %v15998_v20  ;;  %11872 = vmatmul.msk.bf16.gmra.mxu2 %vm6780_vm3, %v16149_v6  ;;  %v8993_v2 = vadd.f32 %v8872_v7, %v8727_v22  ;;  %v18002_v7 = vld [vmem:[#allocation286_spill] sm:$0xff]  ;;  %v9320_v22 = vadd.f32 %v16636_v33, %v16734_v14 }
 0xd52   :  { %v9386_v48 = vmax.f32 %v9322_v47, 0.0  ;;  %11912 = vmatmul.msk.bf16.gmra.mxu3 %vm6780_vm3, %v16078_v0 }
 0xd53   :  { %v9384_v58 = vmax.f32 %v9320_v22, 0.0 }
 0xd54   :  { %v16774_v62 = vmax.f32 %v9382_v44, %v9386_v48  ;;  %v8882_v4 = vpop.f32.mrf.mxu2  ;;  %v18003_v44 = vld [vmem:[#allocation101_spill] sm:$0xff] }
 0xd55   :  { %v9128_v38 = vpop.f32.mrf.mxu3 }
 0xd56   :  { %v9438_v20 = vmax.f32 %v16654_v25, %v16774_v62  ;;  %v9255_v3 = vadd.f32 %v9128_v38, %v8989_v57  ;;  %v8608_v53 = vpop.f32.mrf.mxu1 }
 0xd57   :  { %v8728_v11 = vadd.f32 %v8608_v53, %v18002_v7  ;;  %v18004_v7 = vld [vmem:[#allocation90_spill] sm:$0xff] }
 0xd58   :  { %v9323_v1 = vadd.f32 %v16636_v33, %v9255_v3 }
 0xd59   :  { %v8994_v29 = vadd.f32 %v8874_v19, %v8728_v11  ;;  %v16789_v19 = vpack.c.b16 %v8477_v34, %v8476_v54  ;;  %v18005_v34 = vld [vmem:[#allocation289_spill] sm:$0xff]  ;;  %v18006_v54 = vld [vmem:[#allocation318_spill] sm:$0xff] }
 0xd5a   :  { %v9387_v43 = vmax.f32 %v9323_v1, 0.0 }
 0xd5c   :  { %v16781_v37 = vmax.f32 %v9383_v52, %v9387_v43  ;;  %v8884_v35 = vpop.f32.mrf.mxu2 }
 0xd5d   :  { %v9130_v36 = vpop.f32.mrf.mxu3 }
 0xd5e   :  { %v9439_v57 = vmax.f32 %v16659_v56, %v16781_v37  ;;  %v9256_v47 = vadd.f32 %v9130_v36, %v16732_v42  ;;  %v8611_v32 = vpop.f32.mrf.mxu1 }
 0xd5f   :  { %v8729_v48 = vadd.f32 %v8611_v32, %v18003_v44  ;;  %v18007_v32 = vld [vmem:[#allocation105_spill] sm:$0xff] }
 0xd60   :  { %v9324_v61 = vadd.f32 %v16636_v33, %v9256_v47 }
 0xd61   :  { %11827 = vmatmul.msk.bf16.gmra.mxu1 %vm6780_vm3, %v16038_v16  ;;  %11873 = vmatmul.msk.bf16.gmra.mxu2 %vm6780_vm3, %v16789_v19  ;;  %v8995_v14 = vadd.f32 %v16745_v49, %v8729_v48 }
 0xd62   :  { %v9388_v38 = vmax.f32 %v9324_v61, 0.0  ;;  %11913 = vmatmul.msk.bf16.gmra.mxu3 %vm6780_vm3, %v16113_v28 }
 0xd64   :  { %v16799_v42 = vmax.f32 %v9384_v58, %v9388_v38  ;;  %v8887_v17 = vpop.f32.mrf.mxu2 }
 0xd65   :  { %v9133_v3 = vpop.f32.mrf.mxu3 }
 0xd66   :  { %v9440_v53 = vmax.f32 %v16670_v24, %v16799_v42  ;;  %v9257_v45 = vadd.f32 %v9133_v3, %v16741_v9  ;;  %v8613_v16 = vpop.f32.mrf.mxu1  ;;  %v18008_v3 = vld [vmem:[#allocation94_spill] sm:$0xff] }
 0xd67   :  { %v8730_v11 = vadd.f32 %v8613_v16, %v18004_v7  ;;  %v18009_v16 = vld [vmem:[#allocation85_spill] sm:$0xff] }
 0xd69   :  { %v8996_v1 = vadd.f32 %v8879_v5, %v8730_v11 }
 0xd6c   :  { %v8889_v26 = vpop.f32.mrf.mxu2 }
 0xd6d   :  { %v9135_v49 = vpop.f32.mrf.mxu3 }
 0xd6e   :  { %v9258_v52 = vadd.f32 %v9135_v49, %v16754_v51  ;;  %v8616_v43 = vpop.f32.mrf.mxu1  ;;  %v18011_v49 = vld [vmem:[#allocation292_spill] sm:$0xff] }
 0xd6f   :  { %v8731_v28 = vadd.f32 %v8616_v43, %v18005_v34 }
 0xd71   :  { %11828 = vmatmul.msk.bf16.gmra.mxu1 %vm6780_vm3, %v16078_v0  ;;  %11874 = vmatmul.msk.bf16.gmra.mxu2 %vm6780_vm3, %v18006_v54  ;;  %v8997_v36 = vadd.f32 %v8882_v4, %v8731_v28  ;;  %v18010_v4 = vld [vmem:[#allocation319_spill] sm:$0xff] }
 0xd72   :  { %11914 = vmatmul.msk.bf16.gmra.mxu3 %vm6780_vm3, %v16149_v6  ;;  %v12356_v28 = vld [vmem:[%s17034_s5 + $0x8] sm:$0xff] }
 0xd73   :  { %9544 = vmatpush.bf16.msra.mxu1 %v12356_v28 }
 0xd74   :  { %v8892_v9 = vpop.f32.mrf.mxu2 }
 0xd75   :  { %v9138_v22 = vpop.f32.mrf.mxu3 }
 0xd76   :  { %v9259_v5 = vadd.f32 %v9138_v22, %v8993_v2  ;;  %v8618_v47 = vpop.f32.mrf.mxu1 }
 0xd77   :  { %v8732_v44 = vadd.f32 %v8618_v47, %v18007_v32 }
 0xd78   :  { %v9327_v23 = vadd.f32 %v16636_v33, %v9259_v5 }
 0xd79   :  { %v8998_v51 = vadd.f32 %v8884_v35, %v8732_v44  ;;  %v9325_v35 = vadd.f32 %v16636_v33, %v9257_v45 }
 0xd7c   :  { %v8894_v48 = vpop.f32.mrf.mxu2 }
 0xd7d   :  { %v9140_v61 = vpop.f32.mrf.mxu3 }
 0xd7e   :  { %v9260_v58 = vadd.f32 %v9140_v61, %v8994_v29  ;;  %v8621_v38 = vpop.f32.mrf.mxu1  ;;  %v9326_v61 = vadd.f32 %v16636_v33, %v9258_v52 }
 0xd7f   :  { %v8733_v0 = vadd.f32 %v8621_v38, %v18008_v3  ;;  %v18012_v3 = vld [vmem:[#allocation109_spill] sm:$0xff] }
 0xd80   :  { %v9328_v5 = vadd.f32 %v16636_v33, %v9260_v58 }
 0xd81   :  { %11829 = vmatmul.msk.bf16.gmra.mxu1 %vm6780_vm3, %v18009_v16  ;;  %11875 = vmatmul.msk.bf16.gmra.mxu2 %vm6780_vm3, %v18010_v4  ;;  %v16819_v6 = vadd.f32 %v8887_v17, %v8733_v0  ;;  %v9389_v17 = vmax.f32 %v9325_v35, 0.0  ;;  %v18014_v35 = vld [vmem:[#allocation320_spill] sm:$0xff] }
 0xd82   :  { %11915 = vmatmul.msk.bf16.gmra.mxu3 %vm6780_vm3, %v16183_v13  ;;  %v9392_v58 = vmax.f32 %v9328_v5, 0.0 }
 0xd84   :  { %v8897_v2 = vpop.f32.mrf.mxu2 }
 0xd85   :  { %v9143_v7 = vpop.f32.mrf.mxu3 }
 0xd86   :  { %v9261_v11 = vadd.f32 %v9143_v7, %v8995_v14  ;;  %v8623_v29 = vpop.f32.mrf.mxu1  ;;  %v18013_v7 = vld [vmem:[#allocation75_spill] sm:$0xff] }
 0xd87   :  { %v8734_v43 = vadd.f32 %v8623_v29, %v18011_v49 }
 0xd88   :  { %v9329_v34 = vadd.f32 %v16636_v33, %v9261_v11  ;;  %v9390_v11 = vmax.f32 %v9326_v61, 0.0 }
 0xd89   :  { %v9000_v22 = vadd.f32 %v8889_v26, %v8734_v43 }
 0xd8a   :  { %v9393_v47 = vmax.f32 %v9329_v34, 0.0  ;;  %v18015_v34 = vld [vmem:[#allocation98_spill] sm:$0xff] }
 0xd8c   :  { %v9445_v32 = vmax.f32 %v9389_v17, %v9393_v47  ;;  %v8899_v13 = vpop.f32.mrf.mxu2 }
 0xd8d   :  { %v9145_v44 = vpop.f32.mrf.mxu3 }
 0xd8e   :  { %v9449_v14 = vmax.f32 %v16694_v30, %v9445_v32  ;;  %v9262_v45 = vadd.f32 %v9145_v44, %v8996_v1  ;;  %v8626_v38 = vpop.f32.mrf.mxu1 }
 0xd8f   :  { %v8735_v0 = vadd.f32 %v8626_v38, %v18012_v3  ;;  %v18016_v38 = vld [vmem:[#allocation295_spill] sm:$0xff] }
 0xd90   :  { %v16835_v16 = vadd.f32 %v9449_v14, %v9437_v21  ;;  %v9330_v26 = vadd.f32 %v16636_v33, %v9262_v45 }
 0xd91   :  { %11830 = vmatmul.msk.bf16.gmra.mxu1 %vm6780_vm3, %v18013_v7  ;;  %11876 = vmatmul.msk.bf16.gmra.mxu2 %vm6780_vm3, %v18014_v35  ;;  %v9001_v52 = vadd.f32 %v8892_v9, %v8735_v0  ;;  %v18018_v7 = vld [vmem:[#allocation113_spill] sm:$0xff] }
 0xd92   :  { %v9394_v30 = vmax.f32 %v9330_v26, 0.0  ;;  %11916 = vmatmul.msk.bf16.gmra.mxu3 %vm6780_vm3, %v16208_v41  ;;  %v9391_v41 = vmax.f32 %v9327_v23, 0.0 }
 0xd94   :  { %v9446_v1 = vmax.f32 %v9390_v11, %v9394_v30  ;;  %v8902_v29 = vpop.f32.mrf.mxu2 }
 0xd95   :  { %v9148_v49 = vpop.f32.mrf.mxu3 }
 0xd96   :  { %v9450_v10 = vmax.f32 %v16705_v60, %v9446_v1  ;;  %v9263_v21 = vadd.f32 %v9148_v49, %v8997_v36  ;;  %v8628_v43 = vpop.f32.mrf.mxu1 }
 0xd97   :  { %v8736_v28 = vadd.f32 %v8628_v43, %v18015_v34 }
 0xd98   :  { %v16850_v9 = vadd.f32 %v9450_v10, %v9438_v20  ;;  %v9331_v17 = vadd.f32 %v16636_v33, %v9263_v21  ;;  %v18017_v20 = vld [vmem:[#allocation321_spill] sm:$0xff]  ;;  %v18019_v10 = vld [vmem:[#allocation102_spill] sm:$0xff] }
 0xd99   :  { %v9002_v47 = vadd.f32 %v8894_v48, %v8736_v28 }
 0xd9a   :  { %v9395_v32 = vmax.f32 %v9331_v17, 0.0 }
 0xd9c   :  { %v9447_v44 = vmax.f32 %v9391_v41, %v9395_v32  ;;  %v8904_v61 = vpop.f32.mrf.mxu2  ;;  %v18022_v32 = vld [vmem:[#allocation116_spill] sm:$0xff] }
 0xd9d   :  { %v9150_v14 = vpop.f32.mrf.mxu3 }
 0xd9e   :  { %v9451_v60 = vmax.f32 %v16710_v46, %v9447_v44  ;;  %v9264_v36 = vadd.f32 %v9150_v14, %v8998_v51  ;;  %v8631_v45 = vpop.f32.mrf.mxu1 }
 0xd9f   :  { %v8737_v3 = vadd.f32 %v8631_v45, %v18016_v38 }
 0xda0   :  { %v16859_v25 = vadd.f32 %v9451_v60, %v9439_v57  ;;  %v9332_v62 = vadd.f32 %v16636_v33, %v9264_v36 }
 0xda1   :  { %11831 = vmatmul.msk.bf16.gmra.mxu1 %vm6780_vm3, %v16789_v19  ;;  %11877 = vmatmul.msk.bf16.gmra.mxu2 %vm6780_vm3, %v18017_v20  ;;  %v9003_v48 = vadd.f32 %v8897_v2, %v8737_v3 }
 0xda2   :  { %v9396_v46 = vmax.f32 %v9332_v62, 0.0  ;;  %11917 = vmatmul.msk.bf16.gmra.mxu3 %vm6780_vm3, %v18010_v4 }
 0xda4   :  { %v9448_v51 = vmax.f32 %v9392_v58, %v9396_v46  ;;  %v8907_v0 = vpop.f32.mrf.mxu2 }
 0xda5   :  { %v9153_v26 = vpop.f32.mrf.mxu3 }
 0xda6   :  { %v9452_v56 = vmax.f32 %v16721_v15, %v9448_v51  ;;  %v9265_v37 = vadd.f32 %v9153_v26, %v16819_v6  ;;  %v8633_v57 = vpop.f32.mrf.mxu1  ;;  %v18020_v15 = vld [vmem:[#allocation322_spill] sm:$0xff] }
 0xda7   :  { %v8738_v11 = vadd.f32 %v8633_v57, %v18018_v7 }
 0xda8   :  { %v16874_v19 = vadd.f32 %v9452_v56, %v9440_v53  ;;  %v9333_v5 = vadd.f32 %v16636_v33, %v9265_v37  ;;  %v18025_v37 = vld [vmem:[#allocation324_spill] sm:$0xff] }
 0xda9   :  { %v9004_v2 = vadd.f32 %v8899_v13, %v8738_v11  ;;  %v18021_v13 = vld [vmem:[#allocation297_spill] sm:$0xff] }
 0xdaa   :  { %v9397_v3 = vmax.f32 %v9333_v5, 0.0 }
 0xdac   :  { %v8909_v1 = vpop.f32.mrf.mxu2 }
 0xdad   :  { %v9155_v30 = vpop.f32.mrf.mxu3 }
 0xdae   :  { %v9266_v49 = vadd.f32 %v9155_v30, %v9000_v22  ;;  %v8636_v23 = vpop.f32.mrf.mxu1 }
 0xdaf   :  { %v8739_v21 = vadd.f32 %v8636_v23, %v18019_v10 }
 0xdb0   :  { %v9334_v51 = vadd.f32 %v16636_v33, %v9266_v49 }
 0xdb1   :  { %11832 = vmatmul.msk.bf16.gmra.mxu1 %vm6780_vm3, %v18006_v54  ;;  %11878 = vmatmul.msk.bf16.gmra.mxu2 %vm6780_vm3, %v18020_v15  ;;  %v9005_v6 = vadd.f32 %v8902_v29, %v8739_v21  ;;  %v18023_v54 = vld [vmem:[#allocation323_spill] sm:$0xff] }
 0xdb2   :  { %11918 = vmatmul.msk.bf16.gmra.mxu3 %vm6780_vm3, %v18014_v35  ;;  %v9398_v7 = vmax.f32 %v9334_v51, 0.0 }
 0xdb4   :  { %v8912_v34 = vpop.f32.mrf.mxu2 }
 0xdb5   :  { %v9158_v24 = vpop.f32.mrf.mxu3 }
 0xdb6   :  { %v9267_v42 = vadd.f32 %v9158_v24, %v9001_v52  ;;  %v8638_v53 = vpop.f32.mrf.mxu1 }
 0xdb7   :  { %v8740_v43 = vadd.f32 %v8638_v53, %v18021_v13 }
 0xdb9   :  { %v9006_v22 = vadd.f32 %v8904_v61, %v8740_v43 }
 0xdbc   :  { %v8914_v14 = vpop.f32.mrf.mxu2 }
 0xdbd   :  { %v9160_v28 = vpop.f32.mrf.mxu3 }
 0xdbe   :  { %v9268_v17 = vadd.f32 %v9160_v28, %v9002_v47  ;;  %v8641_v41 = vpop.f32.mrf.mxu1  ;;  %v18024_v47 = vld [vmem:[#allocation106_spill] sm:$0xff] }
 0xdbf   :  { %v8741_v44 = vadd.f32 %v8641_v41, %v18022_v32 }
 0xdc1   :  { %11833 = vmatmul.msk.bf16.gmra.mxu1 %vm6780_vm3, %v18010_v4  ;;  %11879 = vmatmul.msk.bf16.gmra.mxu2 %vm6780_vm3, %v18023_v54  ;;  %v9007_v29 = vadd.f32 %v8907_v0, %v8741_v44 }
 0xdc2   :  { %11919 = vmatmul.msk.bf16.gmra.mxu3 %vm6780_vm3, %v18017_v20 }
 0xdc4   :  { %v8917_v62 = vpop.f32.mrf.mxu2 }
 0xdc5   :  { %v9163_v52 = vpop.f32.mrf.mxu3 }
 0xdc6   :  { %v9269_v61 = vadd.f32 %v9163_v52, %v9003_v48  ;;  %v8643_v60 = vpop.f32.mrf.mxu1 }
 0xdc7   :  { %v8742_v36 = vadd.f32 %v8643_v60, %v18024_v47 }
 0xdc8   :  { %v9337_v45 = vadd.f32 %v16636_v33, %v9269_v61 }
 0xdc9   :  { %v9008_v38 = vadd.f32 %v8909_v1, %v8742_v36  ;;  %v9335_v1 = vadd.f32 %v16636_v33, %v9267_v42 }
 0xdca   :  { %v9401_v4 = vmax.f32 %v9337_v45, 0.0 }
 0xdcb   :  { %v9399_v24 = vmax.f32 %v9335_v1, 0.0 }
 0xdcc   :  { %v16894_v58 = vmax.f32 %v9397_v3, %v9401_v4 }
 0xdcd   :  { %v9165_v46 = vpop.f32.mrf.mxu3 }
 0xdce   :  { %v9270_v0 = vadd.f32 %v9165_v46, %v9004_v2  ;;  %v8646_v26 = vpop.f32.mrf.mxu1 }
 0xdcf   :  { %v8743_v56 = vadd.f32 %v8646_v26, %v16485_v12  ;;  %v8919_v12 = vpop.f32.mrf.mxu2 }
 0xdd0   :  { %v9338_v48 = vadd.f32 %v16636_v33, %v9270_v0 }
 0xdd1   :  { %11834 = vmatmul.msk.bf16.gmra.mxu1 %vm6780_vm3, %v18014_v35  ;;  %11880 = vmatmul.msk.bf16.gmra.mxu2 %vm6780_vm3, %v18025_v37  ;;  %v9009_v57 = vadd.f32 %v8912_v34, %v8743_v56  ;;  %v9336_v34 = vadd.f32 %v16636_v33, %v9268_v17 }
 0xdd2   :  { %v9402_v11 = vmax.f32 %v9338_v48, 0.0  ;;  %11920 = vmatmul.msk.bf16.gmra.mxu3 %vm6780_vm3, %v18020_v15  ;;  %v18026_v48 = vld [vmem:[#allocation325_spill] sm:$0xff] }
 0xdd3   :  { %v9400_v44 = vmax.f32 %v9336_v34, 0.0 }
 0xdd4   :  { %v16905_v30 = vmax.f32 %v9398_v7, %v9402_v11 }
 0xdd5   :  { %v9168_v2 = vpop.f32.mrf.mxu3 }
 0xdd6   :  { %v9271_v49 = vadd.f32 %v9168_v2, %v9005_v6  ;;  %v8648_v23 = vpop.f32.mrf.mxu1 }
 0xdd7   :  { %v8744_v10 = vadd.f32 %v8648_v23, %v16487_v39  ;;  %v8922_v42 = vpop.f32.mrf.mxu2 }
 0xdd8   :  { %v9339_v35 = vadd.f32 %v16636_v33, %v9271_v49 }
 0xdd9   :  { %v9010_v21 = vadd.f32 %v8914_v14, %v8744_v10 }
 0xdda   :  { %v9403_v53 = vmax.f32 %v9339_v35, 0.0 }
 0xddc   :  { %v16910_v13 = vmax.f32 %v9399_v24, %v9403_v53 }
 0xddd   :  { %v9170_v43 = vpop.f32.mrf.mxu3 }
 0xdde   :  { %v9272_v28 = vadd.f32 %v9170_v43, %v9006_v22  ;;  %v8651_v41 = vpop.f32.mrf.mxu1 }
 0xddf   :  { %v8745_v32 = vadd.f32 %v8651_v41, %v16496_v8  ;;  %v8924_v60 = vpop.f32.mrf.mxu2 }
 0xde0   :  { %v9340_v6 = vadd.f32 %v16636_v33, %v9272_v28 }
 0xde1   :  { %11835 = vmatmul.msk.bf16.gmra.mxu1 %vm6780_vm3, %v18017_v20  ;;  %v9011_v39 = vadd.f32 %v8917_v62, %v8745_v32  ;;  %v18027_v32 = vld [vmem:[#allocation326_spill] sm:$0xff] }
 0xde2   :  { %v9404_v14 = vmax.f32 %v9340_v6, 0.0  ;;  %11921 = vmatmul.msk.bf16.gmra.mxu3 %vm6780_vm3, %v18023_v54 }
 0xde4   :  { %v16919_v52 = vmax.f32 %v9400_v44, %v9404_v14 }
 0xde5   :  { %v9173_v5 = vpop.f32.mrf.mxu3 }
 0xde6   :  { %v9273_v17 = vadd.f32 %v9173_v5, %v9007_v29  ;;  %v8653_v22 = vpop.f32.mrf.mxu1 }
 0xde7   :  { %v8746_v61 = vadd.f32 %v8653_v22, %v16499_v55  ;;  %v8927_v54 = vpop.f32.mrf.mxu2 }
 0xde9   :  { %v9012_v8 = vadd.f32 %v8919_v12, %v8746_v61 }
 0xded   :  { %v9175_v47 = vpop.f32.mrf.mxu3 }
 0xdee   :  { %v9274_v36 = vadd.f32 %v9175_v47, %v9008_v38  ;;  %v8656_v45 = vpop.f32.mrf.mxu1 }
 0xdef   :  { %v8747_v20 = vadd.f32 %v8656_v45, %v16508_v40  ;;  %v8929_v0 = vpop.f32.mrf.mxu2 }
 0xdf0   :  { %v9342_v35 = vadd.f32 %v16636_v33, %v9274_v36 }
 0xdf1   :  { %11836 = vmatmul.msk.bf16.gmra.mxu1 %vm6780_vm3, %v18020_v15  ;;  %v9013_v3 = vadd.f32 %v8922_v42, %v8747_v20  ;;  %v12355_v15 = vld [vmem:[%s17034_s5] sm:$0xff] }
 0xdf2   :  { %11922 = vmatmul.msk.bf16.gmra.mxu3 %vm6780_vm3, %v18025_v37  ;;  %9545 = vmatpush.bf16.msra.mxu1 %v12355_v15  ;;  %v9406_v28 = vmax.f32 %v9342_v35, 0.0 }
 0xdf5   :  { %v9178_v4 = vpop.f32.mrf.mxu3 }
 0xdf6   :  { %v9275_v29 = vadd.f32 %v9178_v4, %v9009_v57  ;;  %v8658_v62 = vpop.f32.mrf.mxu1  ;;  %v9341_v57 = vadd.f32 %v16636_v33, %v9273_v17 }
 0xdf7   :  { %v8748_v55 = vadd.f32 %v8658_v62, %v16511_v59  ;;  %v8932_v2 = vpop.f32.mrf.mxu2 }
 0xdf8   :  { %v9405_v12 = vmax.f32 %v9341_v57, 0.0 }
 0xdf9   :  { %v9014_v46 = vadd.f32 %v8924_v60, %v8748_v55 }
 0xdfd   :  { %v9180_v51 = vpop.f32.mrf.mxu3 }
 0xdfe   :  { %v9276_v38 = vadd.f32 %v9180_v51, %v9010_v21  ;;  %v8661_v26 = vpop.f32.mrf.mxu1 }
 0xdff   :  { %v8749_v40 = vadd.f32 %v8661_v26, %v16520_v63 }
 0xe00   :  { %v9344_v36 = vadd.f32 %v16636_v33, %v9276_v38 }
 0xe01   :  { %v9015_v56 = vadd.f32 %v8927_v54, %v8749_v40 }
 0xe02   :  { %11923 = vmatmul.msk.bf16.gmra.mxu3 %vm6780_vm3, %v18026_v48 }
 0xe05   :  { %v9183_v37 = vpop.f32.mrf.mxu3 }
 0xe06   :  { %v9277_v7 = vadd.f32 %v9183_v37, %v9011_v39  ;;  %v8663_v59 = vpop.f32.mrf.mxu1  ;;  %v9343_v39 = vadd.f32 %v16636_v33, %v9275_v29  ;;  %v9408_v29 = vmax.f32 %v9344_v36, 0.0  ;;  %v18028_v37 = vld [vmem:[#allocation119_spill] sm:$0xff] }
 0xe07   :  { %v8750_v11 = vadd.f32 %v8663_v59, %v16523_v31  ;;  %v8934_v31 = vpop.f32.mrf.mxu2 }
 0xe08   :  { %v9345_v1 = vadd.f32 %v16636_v33, %v9277_v7  ;;  %v9407_v22 = vmax.f32 %v9343_v39, 0.0 }
 0xe09   :  { %v9016_v63 = vadd.f32 %v8929_v0, %v8750_v11 }
 0xe0a   :  { %v9409_v49 = vmax.f32 %v9345_v1, 0.0 }
 0xe0c   :  { %v16937_v23 = vmax.f32 %v9405_v12, %v9409_v49 }
 0xe0d   :  { %v9185_v10 = vpop.f32.mrf.mxu3 }
 0xe0e   :  { %v9278_v21 = vadd.f32 %v9185_v10, %v9012_v8  ;;  %v8666_v24 = vpop.f32.mrf.mxu1  ;;  %v18029_v10 = vld [vmem:[#allocation299_spill] sm:$0xff] }
 0xe0f   :  { %v8751_v53 = vadd.f32 %v8666_v24, %v16532_v18  ;;  %v8937_v8 = vpop.f32.mrf.mxu2 }
 0xe10   :  { %v9346_v43 = vadd.f32 %v16636_v33, %v9278_v21 }
 0xe11   :  { %v9017_v34 = vadd.f32 %v8932_v2, %v8751_v53 }
 0xe12   :  { %v9410_v41 = vmax.f32 %v9346_v43, 0.0  ;;  %11924 = vmatmul.msk.bf16.gmra.mxu3 %vm6780_vm3, %v18027_v32 }
 0xe14   :  { %v16944_v42 = vmax.f32 %v9406_v28, %v9410_v41 }
 0xe15   :  { %v9188_v6 = vpop.f32.mrf.mxu3 }
 0xe16   :  { %v9279_v44 = vadd.f32 %v9188_v6, %v9013_v3  ;;  %v8668_v14 = vpop.f32.mrf.mxu1 }
 0xe17   :  { %v8752_v5 = vadd.f32 %v8668_v14, %v16535_v27  ;;  %v8939_v51 = vpop.f32.mrf.mxu2 }
 0xe18   :  { %v9347_v18 = vadd.f32 %v16636_v33, %v9279_v44 }
 0xe19   :  { %v9018_v17 = vadd.f32 %v8934_v31, %v8752_v5 }
 0xe1a   :  { %v9411_v61 = vmax.f32 %v9347_v18, 0.0 }
 0xe1c   :  { %v16949_v60 = vmax.f32 %v9407_v22, %v9411_v61  ;;  %v16969_v22 = vld [vmem:[%s17033_s4] ss:$0 sm:$0xff] }
 0xe1d   :  { %v9190_v47 = vpop.f32.mrf.mxu3 }
 0xe1e   :  { %v9280_v45 = vadd.f32 %v9190_v47, %v9014_v46  ;;  %v8671_v20 = vpop.f32.mrf.mxu1  ;;  %v18030_v47 = vld [vmem:[#allocation110_spill] sm:$0xff] }
 0xe1f   :  { %v8753_v54 = vadd.f32 %v8671_v20, %v16544_v50  ;;  %v8942_v46 = vpop.f32.mrf.mxu2 }
 0xe20   :  { %v9348_v3 = vadd.f32 %v16636_v33, %v9280_v45 }
 0xe21   :  { %v9019_v4 = vadd.f32 %v8937_v8, %v8753_v54 }
 0xe22   :  { %v9412_v27 = vmax.f32 %v9348_v3, 0.0 }
 0xe24   :  { %v16954_v62 = vmax.f32 %v9408_v29, %v9412_v27 }
 0xe25   :  { %v9193_v55 = vpop.f32.mrf.mxu3 }
 0xe26   :  { %v9281_v0 = vadd.f32 %v9193_v55, %v9015_v56  ;;  %v8673_v26 = vpop.f32.mrf.mxu1 }
 0xe27   :  { %v8754_v35 = vadd.f32 %v8673_v26, %v18029_v10  ;;  %v8944_v24 = vpop.f32.mrf.mxu2 }
 0xe28   :  { %v9349_v12 = vadd.f32 %v16636_v33, %v9281_v0 }
 0xe29   :  { %v9020_v43 = vadd.f32 %v8939_v51, %v8754_v35 }
 0xe2a   :  { %v9413_v21 = vmax.f32 %v9349_v12, 0.0 }
 0xe2d   :  { %v9195_v40 = vpop.f32.mrf.mxu3 }
 0xe2e   :  { %v9282_v48 = vadd.f32 %v9195_v40, %v9016_v63  ;;  %v8676_v15 = vpop.f32.mrf.mxu1 }
 0xe2f   :  { %v8755_v38 = vadd.f32 %v8676_v15, %v18028_v37  ;;  %v8947_v18 = vpop.f32.mrf.mxu2 }
 0xe30   :  { %v9350_v31 = vadd.f32 %v16636_v33, %v9282_v48 }
 0xe31   :  { %v9021_v57 = vadd.f32 %v8942_v46, %v8755_v38 }
 0xe32   :  { %v9414_v44 = vmax.f32 %v9350_v31, 0.0  ;;  %v18034_v31 = vld [vmem:[#allocation117_spill] sm:$0xff] }
 0xe35   :  { %v9198_v7 = vpop.f32.mrf.mxu3 }
 0xe36   :  { %v9283_v50 = vadd.f32 %v9198_v7, %v9017_v34  ;;  %v8678_v2 = vpop.f32.mrf.mxu1 }
 0xe38   :  { %v9351_v61 = vadd.f32 %v16969_v22, %v9283_v50 }
 0xe3a   :  { %v9415_v20 = vmax.f32 %v9351_v61, 0.0 }
 0xe3d   :  { %v9200_v59 = vpop.f32.mrf.mxu3 }
 0xe3e   :  { %v9284_v11 = vadd.f32 %v9200_v59, %v9018_v17  ;;  %v8681_v32 = vpop.f32.mrf.mxu1 }
 0xe40   :  { %v9352_v27 = vadd.f32 %v16969_v22, %v9284_v11 }
 0xe42   :  { %v9416_v26 = vmax.f32 %v9352_v27, 0.0 }
 0xe45   :  { %v9203_v1 = vpop.f32.mrf.mxu3 }
 0xe46   :  { %v9285_v49 = vadd.f32 %v9203_v1, %v9019_v4  ;;  %v8683_v45 = vpop.f32.mrf.mxu1 }
 0xe48   :  { %v9353_v56 = vadd.f32 %v16636_v33, %v9285_v49  ;;  %v18032_v49 = vld [vmem:[#allocation124_spill] sm:$0xff] }
 0xe4a   :  { %v9417_v63 = vmax.f32 %v9353_v56, 0.0 }
 0xe4c   :  { %v9461_v53 = vmax.f32 %v9413_v21, %v9417_v63  ;;  %v18033_v63 = vld [vmem:[#allocation122_spill] sm:$0xff] }
 0xe4d   :  { %v9205_v28 = vpop.f32.mrf.mxu3 }
 0xe4e   :  { %v9465_v34 = vmax.f32 %v16894_v58, %v9461_v53  ;;  %v9286_v41 = vadd.f32 %v9205_v28, %v9020_v43  ;;  %v8686_v48 = vpop.f32.mrf.mxu1 }
 0xe50   :  { %v16963_v6 = vadd.f32 %v9465_v34, %v16835_v16  ;;  %v9354_v39 = vadd.f32 %v16636_v33, %v9286_v41  ;;  %v8756_v16 = vadd.f32 %v8678_v2, %v18030_v47 }
 0xe52   :  { %v9418_v14 = vmax.f32 %v9354_v39, 0.0  ;;  %v9022_v4 = vadd.f32 %v8944_v24, %v8756_v16 }
 0xe54   :  { %v9462_v5 = vmax.f32 %v9414_v44, %v9418_v14 }
 0xe55   :  { %v9208_v17 = vpop.f32.mrf.mxu3 }
 0xe56   :  { %v9466_v58 = vmax.f32 %v16905_v30, %v9462_v5  ;;  %v9287_v8 = vadd.f32 %v9208_v17, %v9021_v57  ;;  %v8949_v30 = vpop.f32.mrf.mxu2  ;;  %v8688_v7 = vpop.f32.mrf.mxu1  ;;  %v18035_v5 = vld [vmem:[#allocation114_spill] sm:$0xff] }
 0xe58   :  { %v16975_v36 = vadd.f32 %v9466_v58, %v16850_v9  ;;  %v9355_v33 = vadd.f32 %v16969_v22, %v9287_v8 }
 0xe5a   :  { %v9419_v54 = vmax.f32 %v9355_v33, 0.0 }
 0xe5c   :  { %v9463_v3 = vmax.f32 %v9415_v20, %v9419_v54  ;;  %v18036_v20 = vld [vmem:[#allocation305_spill] sm:$0xff] }
 0xe5d   :  { %v9210_v29 = vpop.f32.mrf.mxu3 }
 0xe5e   :  { %v9467_v55 = vmax.f32 %v16910_v13, %v9463_v3  ;;  %v9288_v51 = vadd.f32 %v9210_v29, %v9022_v4  ;;  %v8952_v57 = vpop.f32.mrf.mxu2  ;;  %v8691_v11 = vpop.f32.mrf.mxu1 }
 0xe5f   :  { %v8761_v10 = vadd.f32 %v8691_v11, %v18032_v49 }
 0xe60   :  { %v16981_v0 = vadd.f32 %v9467_v55, %v16859_v25  ;;  %v9356_v9 = vadd.f32 %v16969_v22, %v9288_v51  ;;  %v18031_v25 = vld [vmem:[#allocation301_spill] sm:$0xff] }
 0xe61   :  { %v8757_v2 = vadd.f32 %v8681_v32, %v18031_v25 }
 0xe62   :  { %v9420_v40 = vmax.f32 %v9356_v9, 0.0 }
 0xe63   :  { %v9023_v35 = vadd.f32 %v8947_v18, %v8757_v2  ;;  %v8759_v18 = vadd.f32 %v8686_v48, %v18035_v5 }
 0xe64   :  { %v9464_v15 = vmax.f32 %v9416_v26, %v9420_v40 }
 0xe65   :  { %v9213_v37 = vpop.f32.mrf.mxu3 }
 0xe66   :  { %v9468_v38 = vmax.f32 %v16919_v52, %v9464_v15  ;;  %v8954_v50 = vpop.f32.mrf.mxu2  ;;  %v8693_v56 = vpop.f32.mrf.mxu1  ;;  %v9289_v21 = vadd.f32 %v9213_v37, %v9023_v35  ;;  %v8758_v52 = vadd.f32 %v8683_v45, %v18033_v63  ;;  %v9025_v45 = vadd.f32 %v8952_v57, %v8759_v18  ;;  %v18038_v57 = vld [vmem:[#allocation127_spill] sm:$0xff] }
 0xe67   :  { %v8762_v34 = vadd.f32 %v8693_v56, %v18034_v31 }
 0xe68   :  { %v16986_v46 = vadd.f32 %v9468_v38, %v16874_v19  ;;  %v9357_v53 = vadd.f32 %v16969_v22, %v9289_v21  ;;  %v9024_v41 = vadd.f32 %v8949_v30, %v8758_v52  ;;  %v18037_v30 = vld [vmem:[#allocation303_spill] sm:$0xff] }
 0xe69   :  { %v8760_v9 = vadd.f32 %v8688_v7, %v18037_v30 }
 0xe6a   :  { %v9421_v39 = vmax.f32 %v9357_v53, 0.0 }
 0xe6d   :  { %v9215_v13 = vpop.f32.mrf.mxu3 }
 0xe6e   :  { %v8957_v1 = vpop.f32.mrf.mxu2  ;;  %v9290_v44 = vadd.f32 %v9215_v13, %v9024_v41  ;;  %v8696_v17 = vpop.f32.mrf.mxu1 }
 0xe6f   :  { %v9027_v24 = vadd.f32 %v8957_v1, %v8761_v10  ;;  %v8763_v54 = vadd.f32 %v8696_v17, %v18036_v20 }
 0xe70   :  { %v9358_v47 = vadd.f32 %v16969_v22, %v9290_v44 }
 0xe72   :  { %v9422_v55 = vmax.f32 %v9358_v47, 0.0 }
 0xe75   :  { %v9218_v59 = vpop.f32.mrf.mxu3 }
 0xe76   :  { %v8959_v28 = vpop.f32.mrf.mxu2  ;;  %v9291_v27 = vadd.f32 %v9218_v59, %v9025_v45  ;;  %v8698_v15 = vpop.f32.mrf.mxu1 }
 0xe77   :  { %v9028_v58 = vadd.f32 %v8959_v28, %v8762_v34  ;;  %v8764_v13 = vadd.f32 %v8698_v15, %v18038_v57 }
 0xe78   :  { %v9359_v48 = vadd.f32 %v16969_v22, %v9291_v27 }
 0xe7a   :  { %v9423_v25 = vmax.f32 %v9359_v48, 0.0 }
 0xe7d   :  { %v9220_v12 = vpop.f32.mrf.mxu3 }
 0xe7e   :  { %v8962_v29 = vpop.f32.mrf.mxu2 }
 0xe7f   :  { %v9029_v40 = vadd.f32 %v8962_v29, %v8763_v54 }
 0xe85   :  { %v9223_v19 = vpop.f32.mrf.mxu3 }
 0xe86   :  { %v9293_v43 = vadd.f32 %v9223_v19, %v9027_v24  ;;  %v8964_v10 = vpop.f32.mrf.mxu2 }
 0xe87   :  { %v9030_v21 = vadd.f32 %v8964_v10, %v8764_v13 }
 0xe88   :  { %v9361_v32 = vadd.f32 %v16969_v22, %v9293_v43 }
 0xe8a   :  { %v9425_v14 = vmax.f32 %v9361_v32, 0.0 }
 0xe8c   :  { %v9477_v61 = vmax.f32 %v9421_v39, %v9425_v14 }
 0xe8d   :  { %v9225_v8 = vpop.f32.mrf.mxu3 }
 0xe8e   :  { %v9481_v16 = vmax.f32 %v16937_v23, %v9477_v61  ;;  %v9294_v33 = vadd.f32 %v9225_v8, %v9028_v58 }
 0xe90   :  { %v9485_v3 = vadd.f32 %v9481_v16, %v16963_v6  ;;  %v9362_v4 = vadd.f32 %v16969_v22, %v9294_v33  ;;  %v9026_v6 = vadd.f32 %v8954_v50, %v8760_v9 }
 0xe92   :  { %v9426_v51 = vmax.f32 %v9362_v4, 0.0  ;;  %v9292_v2 = vadd.f32 %v9220_v12, %v9026_v6  ;;  %v9489_v1 = vmul.f32 0.25, %v9485_v3 }
 0xe94   :  { %v9478_v26 = vmax.f32 %v9422_v55, %v9426_v51 }
 0xe95   :  { %v9228_v23 = vpop.f32.mrf.mxu3 }
 0xe96   :  { %v9482_v37 = vmax.f32 %v16944_v42, %v9478_v26  ;;  %v9295_v38 = vadd.f32 %v9228_v23, %v9029_v40  ;;  %v9360_v42 = vadd.f32 %v16969_v22, %v9292_v2 }
 0xe98   :  { %v9486_v11 = vadd.f32 %v9482_v37, %v16975_v36  ;;  %v9363_v59 = vadd.f32 %v16969_v22, %v9295_v38  ;;  %v9424_v24 = vmax.f32 %v9360_v42, 0.0 }
 0xe9a   :  { %v9490_v7 = vmul.f32 0.25, %v9486_v11  ;;  %v9427_v49 = vmax.f32 %v9363_v59, 0.0 }
 0xe9c   :  { %v9493_v35 = vpack.c.bf16 %v9490_v7, %v9489_v1  ;;  %v9479_v56 = vmax.f32 %v9423_v25, %v9427_v49 }
 0xe9d   :  { %v9230_v63 = vpop.f32.mrf.mxu3 }
 0xe9e   :  { %v9483_v52 = vmax.f32 %v16949_v60, %v9479_v56  ;;  %v9296_v50 = vadd.f32 %v9230_v63, %v9030_v21  ;;  %11941 = vmatmul.msk.bf16.vlgmr.msra.gmra.mxu1 %vm9531_vm4, %v9493_v35  ;;  %v12368_v60 = vld [vmem:[%s17035_s6] ss:$0 sm:$0xff] }
 0xea0   :  { %v9487_v36 = vadd.f32 %v9483_v52, %v16981_v0  ;;  %v9364_v12 = vadd.f32 %v16969_v22, %v9296_v50 }
 0xea2   :  { %v9428_v19 = vmax.f32 %v9364_v12, 0.0  ;;  %v9491_v31 = vmul.f32 0.25, %v9487_v36 }
 0xea4   :  { %v9480_v53 = vmax.f32 %v9424_v24, %v9428_v19 }
 0xea6   :  { %v9484_v43 = vmax.f32 %v16954_v62, %v9480_v53 }
 0xea8   :  { %v9488_v28 = vadd.f32 %v9484_v43, %v16986_v46 }
 0xeaa   :  { %v9492_v34 = vmul.f32 0.25, %v9488_v28 }
 0xeac   :  { %v9494_v41 = vpack.c.bf16 %v9492_v34, %v9491_v31 }
 0xeae   :  { %11942 = vmatmul.msk.bf16.gmra.mxu1 %vm9531_vm4, %v9494_v41 }
 0xf1b   :  { %v9547_v32 = vpop.f32.mrf.mxu1 }
 0xf1c   :  { %v9548_v0 = vadd.f32 %v12368_v60, %v9547_v32 }
 0xf1e   :  { %9557 = vst [vmem:[%s17036_s7] sm:$0xff] %v9548_v0 }
 0xf23   :  { %v9549_v22 = vpop.f32.mrf.mxu1 }
 0xf24   :  { %v9550_v39 = vadd.f32 %v12368_v60, %v9549_v22 }
 0xf26   :  { %9558 = vst [vmem:[%s17036_s7 + $0x8] sm:$0xff] %v9550_v39 }
 0xf2b   :  { %v9552_v62 = vpop.f32.mrf.mxu1 }
 0xf2c   :  { %v9553_v46 = vadd.f32 %v12368_v60, %v9552_v62 }
 0xf2e   :  { %9559 = vst [vmem:[%s17036_s7 + $0x10] sm:$0xff] %v9553_v46 }
 0xf33   :  { %v9554_v44 = vpop.f32.mrf.mxu1 }
 0xf34   :  { %v9555_v14 = vadd.f32 %v12368_v60, %v9554_v44 }
 0xf36   :  { %9560 = vst [vmem:[%s17036_s7 + $0x18] sm:$0xff] %v9555_v14 }

</bundles_post_ra>
